<compile_context>
chip_gen: v5e
topology: v5e:2x2
jax: 0.10.0
libtpu: 0.0.40
codegen_flags: <defaults>
</compile_context>

<pallas_src>
import functools
import math

import jax
import jax.numpy as jnp
from jax.experimental import pallas as pl
from jax.experimental.pallas import tpu as pltpu


def _round_up(x, m):
    return ((x + m - 1) // m) * m


# ------------- image_proj: fused Linear + per-token LayerNorm ---------------

def _image_proj_kernel(x_ref, w_ref, b_ref, avg_ref, exp_ref, g_ref, beta_ref,
                       o_ref, *, eps):
    # y = x @ W + b, then LayerNorm over each cross_dim segment of the N axis.
    y = jnp.dot(x_ref[...].astype(jnp.bfloat16), w_ref[...],
                preferred_element_type=jnp.float32) + b_ref[...]
    # Segment mean / variance via tiny matmuls (avoids in-kernel lane reshape).
    mean = jnp.dot(y, avg_ref[...], preferred_element_type=jnp.float32)      # (M,T)
    ex2 = jnp.dot(y * y, avg_ref[...], preferred_element_type=jnp.float32)   # (M,T)
    var = ex2 - mean * mean
    mean_b = jnp.dot(mean, exp_ref[...], preferred_element_type=jnp.float32)  # (M,N)
    var_b = jnp.dot(var, exp_ref[...], preferred_element_type=jnp.float32)    # (M,N)
    yn = (y - mean_b) * jax.lax.rsqrt(var_b + eps)
    o_ref[...] = (yn * g_ref[...] + beta_ref[...]).astype(o_ref.dtype)


def pallas_image_proj(image_embeds, p, num_tokens, cross_dim, eps=1e-5):
    B, Dc = image_embeds.shape
    N = num_tokens * cross_dim
    Mp = _round_up(B, 8)                       # tiny (<1 KB) sublane-alignment pad
    x = jnp.pad(image_embeds, ((0, Mp - B), (0, 0)))
    out = pl.pallas_call(
        functools.partial(_image_proj_kernel, eps=eps),
        grid=(1,),
        in_specs=[
            pl.BlockSpec((Mp, Dc), lambda i: (0, 0)),
            pl.BlockSpec((Dc, N), lambda i: (0, 0)),
            pl.BlockSpec((1, N), lambda i: (0, 0)),
            pl.BlockSpec((N, num_tokens), lambda i: (0, 0)),
            pl.BlockSpec((num_tokens, N), lambda i: (0, 0)),
            pl.BlockSpec((1, N), lambda i: (0, 0)),
            pl.BlockSpec((1, N), lambda i: (0, 0)),
        ],
        out_specs=pl.BlockSpec((Mp, N), lambda i: (0, 0)),
        out_shape=jax.ShapeDtypeStruct((Mp, N), jnp.float32),
        compiler_params=pltpu.CompilerParams(dimension_semantics=("arbitrary",)),
    )(x, p["proj_w"], p["proj_b"], p["ln_avg"], p["ln_exp"], p["ln_g"], p["ln_b"])
    return out[:B].reshape(B, num_tokens, cross_dim)


# -------------------- fused time-embedding MLP (one call) -------------------

def _time_mlp_kernel(t_ref, w1_ref, b1_ref, w2_ref, b2_ref, o_ref):
    t = t_ref[...].astype(jnp.bfloat16)
    h = jnp.dot(t, w1_ref[...], preferred_element_type=jnp.float32) + b1_ref[...]
    h = h * jax.nn.sigmoid(h)                                   # SiLU, f32 epilogue
    h = jnp.dot(h.astype(jnp.bfloat16), w2_ref[...],
                preferred_element_type=jnp.float32) + b2_ref[...]
    o_ref[...] = h.astype(o_ref.dtype)


def pallas_time_mlp(temb_sin, p):
    B, Cm = temb_sin.shape
    Dh = p["time_w1"].shape[1]
    Mp = _round_up(B, 8)                       # tiny pad for sublane alignment
    x = jnp.pad(temb_sin, ((0, Mp - B), (0, 0)))
    out = pl.pallas_call(
        _time_mlp_kernel,
        grid=(1,),
        in_specs=[
            pl.BlockSpec((Mp, Cm), lambda i: (0, 0)),
            pl.BlockSpec((Cm, Dh), lambda i: (0, 0)),
            pl.BlockSpec((1, Dh), lambda i: (0, 0)),
            pl.BlockSpec((Dh, Cm), lambda i: (0, 0)),
            pl.BlockSpec((1, Cm), lambda i: (0, 0)),
        ],
        out_specs=pl.BlockSpec((Mp, Cm), lambda i: (0, 0)),
        out_shape=jax.ShapeDtypeStruct((Mp, Cm), jnp.float32),
        compiler_params=pltpu.CompilerParams(dimension_semantics=("arbitrary",)),
    )(x, p["time_w1"], p["time_b1"], p["time_w2"], p["time_b2"])
    return out[:B]


# --------------- conv_in: single K=9*Cin matmul + temb epilogue -------------

def _im2col_3x3(x_nhwc):
    """(B,H,W,C) -> (B, H*W, 9*C) bf16 patches (tap-major, channel-minor)."""
    B, H, W, C = x_nhwc.shape
    xp = jnp.pad(x_nhwc, ((0, 0), (1, 1), (1, 1), (0, 0)))
    cols = [xp[:, dh:dh + H, dw:dw + W, :] for dh in range(3) for dw in range(3)]
    return jnp.concatenate(cols, axis=-1).reshape(B, H * W, 9 * C)


def _conv_in_kernel(x_ref, w_ref, b_ref, t_ref, o_ref):
    y = jnp.dot(x_ref[0], w_ref[...], preferred_element_type=jnp.float32)
    o_ref[0] = (y + b_ref[...] + t_ref[0]).astype(o_ref.dtype)


def pallas_conv_in(x_nhwc, w_flat, b, temb, out_dtype=jnp.bfloat16):
    B, H, W, Cin = x_nhwc.shape
    Cout = w_flat.shape[1]
    # 36-KB im2col slab built once in XLA (Cin=4): one K=36 matmul instead of
    # nine K=4 MXU-starved matmuls and nine in-kernel relayouts.
    patches = _im2col_3x3(x_nhwc.astype(jnp.bfloat16))
    return pl.pallas_call(
        _conv_in_kernel,
        grid=(B,),
        in_specs=[
            pl.BlockSpec((1, H * W, 9 * Cin), lambda bi: (bi, 0, 0)),
            pl.BlockSpec((9 * Cin, Cout), lambda bi: (0, 0)),
            pl.BlockSpec((1, Cout), lambda bi: (0, 0)),
            pl.BlockSpec((1, 1, Cout), lambda bi: (bi, 0, 0)),
        ],
        out_specs=pl.BlockSpec((1, H * W, Cout), lambda bi: (bi, 0, 0)),
        out_shape=jax.ShapeDtypeStruct((B, H * W, Cout), out_dtype),
        compiler_params=pltpu.CompilerParams(dimension_semantics=("parallel",)),
    )(patches, w_flat, b, temb.reshape(B, 1, Cout))


# ----------- conv_out: 9 tap matmuls into a VMEM f32 accumulator ------------

def _conv_out_kernel(x_ref, w_ref, b_ref, o_ref, acc_ref, *, H, W):
    cin = x_ref.shape[-1]
    acc_ref[...] = jnp.zeros_like(acc_ref)
    for t in range(9):
        dh, dw = t // 3, t % 3
        patch = x_ref[0, dh:dh + H, dw:dw + W, :].reshape(H * W, cin)
        acc_ref[...] += jnp.dot(patch, w_ref[t * cin:(t + 1) * cin, :],
                                preferred_element_type=jnp.float32)
    o_ref[0] = (acc_ref[...] + b_ref[...]).astype(o_ref.dtype)


def pallas_conv_out(x_nhwc, w_flat, b, out_dtype=jnp.float32):
    B, H, W, Cin = x_nhwc.shape
    Cout = w_flat.shape[1]                     # padded to 128 at init: lane-dense
    xp = jnp.pad(x_nhwc, ((0, 0), (1, 1), (1, 1), (0, 0)))    # bf16 halo, small
    return pl.pallas_call(
        functools.partial(_conv_out_kernel, H=H, W=W),
        grid=(B,),
        in_specs=[
            pl.BlockSpec((1, H + 2, W + 2, Cin), lambda bi: (bi, 0, 0, 0)),
            pl.BlockSpec((9 * Cin, Cout), lambda bi: (0, 0)),
            pl.BlockSpec((1, Cout), lambda bi: (0, 0)),
        ],
        out_specs=pl.BlockSpec((1, H * W, Cout), lambda bi: (bi, 0, 0)),
        out_shape=jax.ShapeDtypeStruct((B, H * W, Cout), out_dtype),
        scratch_shapes=[pltpu.VMEM((H * W, Cout), jnp.float32)],
        compiler_params=pltpu.CompilerParams(dimension_semantics=("parallel",)),
    )(xp, w_flat, b)


# ---- fused cross-attention: kv-proj + q-proj + softmax + o-proj + residual --

def _cross_attn_kernel(h_ref, ctx_ref, wkv_ref, bkv_ref, wq_ref, bq_ref,
                       wo_ref, bo_ref, o_ref, *, scale):
    cm = h_ref.shape[-1]
    h = h_ref[0]                                                   # (tq, Cm) bf16
    ctx = ctx_ref[0]                                               # (S, Dc) bf16
    kv = jnp.dot(ctx, wkv_ref[...], preferred_element_type=jnp.float32) + bkv_ref[...]
    kv = kv.astype(jnp.bfloat16)
    k = kv[:, :cm]                                                 # lane-aligned slices
    v = kv[:, cm:]
    q = jnp.dot(h, wq_ref[...], preferred_element_type=jnp.float32) + bq_ref[...]
    s = jnp.einsum("qd,kd->qk", q.astype(jnp.bfloat16), k,
                   preferred_element_type=jnp.float32) * scale     # (tq, S)
    m = jnp.max(s, axis=-1, keepdims=True)
    pexp = jnp.exp(s - m)
    l = jnp.sum(pexp, axis=-1, keepdims=True)
    pexp = pexp * pl.reciprocal(l, approx=True)                    # EUP slot
    a = jnp.dot(pexp.astype(jnp.bfloat16), v, preferred_element_type=jnp.float32)
    o = jnp.dot(a.astype(jnp.bfloat16), wo_ref[...],
                preferred_element_type=jnp.float32) + bo_ref[...]
    o_ref[0] = (o + h.astype(jnp.float32)).astype(o_ref.dtype)     # residual


def pallas_cross_attention(hf, ctx, wkv, bkv, wq, bq, wo, bo,
                           out_dtype=jnp.bfloat16):
    B, Nq, Cm = hf.shape
    S, Dc = ctx.shape[1], ctx.shape[2]
    # TODO(synk): real diffusers attention scales by 1/sqrt(head_dim); this is
    #             the single-head stand-in scale.
    scale = 1.0 / math.sqrt(Cm)
    tq = 128 if Nq % 128 == 0 else Nq          # >=2 parallel steps for megacore
    return pl.pallas_call(
        functools.partial(_cross_attn_kernel, scale=scale),
        grid=(B, Nq // tq),
        in_specs=[
            pl.BlockSpec((1, tq, Cm), lambda b, i: (b, i, 0)),
            pl.BlockSpec((1, S, Dc), lambda b, i: (b, 0, 0)),
            pl.BlockSpec((Dc, 2 * Cm), lambda b, i: (0, 0)),
            pl.BlockSpec((1, 2 * Cm), lambda b, i: (0, 0)),
            pl.BlockSpec((Cm, Cm), lambda b, i: (0, 0)),
            pl.BlockSpec((1, Cm), lambda b, i: (0, 0)),
            pl.BlockSpec((Cm, Cm), lambda b, i: (0, 0)),
            pl.BlockSpec((1, Cm), lambda b, i: (0, 0)),
        ],
        out_specs=pl.BlockSpec((1, tq, Cm), lambda b, i: (b, i, 0)),
        out_shape=jax.ShapeDtypeStruct((B, Nq, Cm), out_dtype),
        compiler_params=pltpu.CompilerParams(
            dimension_semantics=("parallel", "parallel")),
    )(hf, ctx, wkv, bkv, wq, bq, wo, bo)


# ------------------------------- JAX glue -----------------------------------

def timestep_embedding(t, dim):
    """Sinusoidal timestep embedding (diffusers-style)."""
    half = dim // 2
    freqs = jnp.exp(-math.log(10000.0) * jnp.arange(half, dtype=jnp.float32) / half)
    args = t.astype(jnp.float32)[:, None] * freqs[None, :]
    return jnp.concatenate([jnp.sin(args), jnp.cos(args)], axis=-1)


# ------------------------------- IPAdapter ----------------------------------

class IPAdapterPallas:
    """JAX/Pallas re-implementation of IPAdapter.forward."""

    def __init__(self, params, cross_dim, num_tokens):
        self.p = params
        self.cross_dim = cross_dim
        self.num_tokens = num_tokens

    def image_proj(self, image_embeds):
        return pallas_image_proj(image_embeds, self.p, self.num_tokens, self.cross_dim)

    # tiny UNet stand-in (conditioned on encoder_hidden_states)
    def unet(self, latents_nchw, timesteps, ctx):
        p = self.p
        B, C, H, W = latents_nchw.shape
        Cm = p["conv_in_b"].shape[-1]

        temb = pallas_time_mlp(timestep_embedding(timesteps, Cm), p)   # (B, Cm) f32

        x = jnp.transpose(latents_nchw, (0, 2, 3, 1))                  # NCHW -> NHWC
        # conv_in + bias + time-embedding add fused; bf16 lane-dense output
        hf = pallas_conv_in(x, p["conv_in_w"], p["conv_in_b"], temb)   # (B,HW,Cm) bf16

        # kv-proj + q-proj + softmax(QK^T)V + o-proj + residual, one kernel
        h = pallas_cross_attention(hf, ctx.astype(jnp.bfloat16),
                                   p["wkv"], p["bkv"], p["wq"], p["bq"],
                                   p["wo"], p["bo"])                   # (B,HW,Cm) bf16

        out = pallas_conv_out(h.reshape(B, H, W, Cm),
                              p["conv_out_w"], p["conv_out_b"])        # (B,HW,128) f32
        out = out[..., :C].reshape(B, H, W, C)                         # un-pad Cout
        return jnp.transpose(out, (0, 3, 1, 2))                        # back to NCHW

    def __call__(self, noisy_latents, timesteps, encoder_hidden_states, image_embeds):
        ip_tokens = self.image_proj(image_embeds)
        encoder_hidden_states = jnp.concatenate(
            [encoder_hidden_states, ip_tokens], axis=1)
        noise_pred = self.unet(noisy_latents, timesteps, encoder_hidden_states)
        return noise_pred


def init_params(key, clip_dim, cross_dim, num_tokens, lat_ch, model_ch):
    """Weights pre-packed / pre-padded / pre-cast (bf16) once, at init."""
    keys = jax.random.split(key, 10)
    std = 0.02

    def w(k, shape):
        return jax.random.normal(k, shape, dtype=jnp.float32) * std

    N = num_tokens * cross_dim
    # Segment-reduction constants for the fused per-token LayerNorm.
    seg = jnp.repeat(jnp.arange(num_tokens), cross_dim)                   # (N,)
    onehot = jax.nn.one_hot(seg, num_tokens, dtype=jnp.float32)           # (N, T)

    wk = w(keys[5], (cross_dim, model_ch))
    wv = w(keys[6], (cross_dim, model_ch))
    conv_in_w = w(keys[1], (9, lat_ch, model_ch)).reshape(9 * lat_ch, model_ch)
    conv_out_w = w(keys[8], (9, model_ch, lat_ch)).reshape(9 * model_ch, lat_ch)
    conv_out_w = jnp.pad(conv_out_w, ((0, 0), (0, model_ch - lat_ch)))    # lane-dense

    return {
        # image_proj_model (fused Linear + LayerNorm)
        "proj_w": w(keys[0], (clip_dim, N)).astype(jnp.bfloat16),
        "proj_b": jnp.zeros((1, N), jnp.float32),
        "ln_avg": onehot / cross_dim,                                     # (N, T)
        "ln_exp": onehot.T,                                               # (T, N)
        "ln_g": jnp.ones((1, N), jnp.float32),
        "ln_b": jnp.zeros((1, N), jnp.float32),
        # tiny unet
        "conv_in_w": conv_in_w.astype(jnp.bfloat16),                      # (36, Cm)
        "conv_in_b": jnp.zeros((1, model_ch), jnp.float32),
        "time_w1": w(keys[2], (model_ch, 4 * model_ch)).astype(jnp.bfloat16),
        "time_b1": jnp.zeros((1, 4 * model_ch), jnp.float32),
        "time_w2": w(keys[3], (4 * model_ch, model_ch)).astype(jnp.bfloat16),
        "time_b2": jnp.zeros((1, model_ch), jnp.float32),
        "wq": w(keys[4], (model_ch, model_ch)).astype(jnp.bfloat16),
        "bq": jnp.zeros((1, model_ch), jnp.float32),
        "wkv": jnp.concatenate([wk, wv], axis=1).astype(jnp.bfloat16),    # fused K|V
        "bkv": jnp.zeros((1, 2 * model_ch), jnp.float32),
        "wo": w(keys[7], (model_ch, model_ch)).astype(jnp.bfloat16),
        "bo": jnp.zeros((1, model_ch), jnp.float32),
        "conv_out_w": conv_out_w.astype(jnp.bfloat16),                    # (1152, 128)
        "conv_out_b": jnp.zeros((1, model_ch), jnp.float32),              # padded Cout
    }


if __name__ == "__main__":
    # Small, SD-consistent shapes
    B, LAT_CH, HW = 2, 4, 16        # noisy_latents: (2, 4, 16, 16) NCHW
    SEQ, CROSS_DIM = 8, 32          # encoder_hidden_states: (2, 8, 32)
    CLIP_DIM, NUM_TOKENS = 32, 4    # image_embeds: (2, 32) -> ip_tokens (2, 4, 32)
    MODEL_CH = 128                  # UNet width: 128-lane-dense on TPU

    root = jax.random.PRNGKey(0)
    k_param, k_lat, k_ctx, k_img = jax.random.split(root, 4)

    params = init_params(k_param, CLIP_DIM, CROSS_DIM, NUM_TOKENS, LAT_CH, MODEL_CH)
    model = IPAdapterPallas(params, CROSS_DIM, NUM_TOKENS)
    fwd = jax.jit(model.__call__)   # fuse the tiny XLA glue ops, one dispatch

    noisy_latents = jax.random.normal(k_lat, (B, LAT_CH, HW, HW), dtype=jnp.float32)
    timesteps = jnp.array([10, 500], dtype=jnp.int32)
    encoder_hidden_states = jax.random.normal(k_ctx, (B, SEQ, CROSS_DIM), dtype=jnp.float32)
    image_embeds = jax.random.normal(k_img, (B, CLIP_DIM), dtype=jnp.float32)

    noise_pred = fwd(noisy_latents, timesteps, encoder_hidden_states, image_embeds)
    noise_pred = jax.block_until_ready(noise_pred)

    assert noise_pred.shape == (B, LAT_CH, HW, HW), noise_pred.shape
    assert bool(jnp.all(jnp.isfinite(noise_pred)))
    print("KERNEL_OK")
</pallas_src>

<mosaic_0001>
module attributes {stable_mosaic.version = 11 : i64} {
  func.func @_time_mlp_kernel(%arg0: i32, %arg1: memref<8x128xf32, #tpu.memory_space<vmem>>, %arg2: memref<128x512xbf16, #tpu.memory_space<vmem>>, %arg3: memref<1x512xf32, #tpu.memory_space<vmem>>, %arg4: memref<512x128xbf16, #tpu.memory_space<vmem>>, %arg5: memref<1x128xf32, #tpu.memory_space<vmem>>, %arg6: memref<8x128xf32, #tpu.memory_space<vmem>>) attributes {dimension_semantics = [#tpu.dimension_semantics<arbitrary>], iteration_bounds = array<i64: 1>, scalar_prefetch = 0 : i64, scratch_operands = 0 : i64, tpu.core_type = #tpu.core_type<tc>, window_params = [{pipeline_mode = #tpu.pipeline_mode<synchronous>, transform_indices = @transform_0, window_bounds = array<i64: 8, 128>}, {pipeline_mode = #tpu.pipeline_mode<synchronous>, transform_indices = @transform_1, window_bounds = array<i64: 128, 512>}, {pipeline_mode = #tpu.pipeline_mode<synchronous>, transform_indices = @transform_2, window_bounds = array<i64: 1, 512>}, {pipeline_mode = #tpu.pipeline_mode<synchronous>, transform_indices = @transform_3, window_bounds = array<i64: 512, 128>}, {pipeline_mode = #tpu.pipeline_mode<synchronous>, transform_indices = @transform_4, window_bounds = array<i64: 1, 128>}, {pipeline_mode = #tpu.pipeline_mode<synchronous>, transform_indices = @transform_5, window_bounds = array<i64: 8, 128>}]} {
    %c0 = arith.constant 0 : index
    %c0_0 = arith.constant 0 : index
    %0 = vector.load %arg1[%c0, %c0_0] : memref<8x128xf32, #tpu.memory_space<vmem>>, vector<8x128xf32>
    %1 = arith.truncf %0 : vector<8x128xf32> to vector<8x128xbf16>
    %c0_1 = arith.constant 0 : index
    %c0_2 = arith.constant 0 : index
    %2 = vector.load %arg2[%c0_1, %c0_2] : memref<128x512xbf16, #tpu.memory_space<vmem>>, vector<128x512xbf16>
    %cst = arith.constant dense<0.000000e+00> : vector<8x512xf32>
    %3 = tpu.matmul %1, %2, %cst {dimension_numbers = #tpu.dot_dimension_numbers<[1], [0], [0], [1], [0, 0, 1, 1], [], []>} : vector<8x128xbf16>, vector<128x512xbf16>, vector<8x512xf32> -> vector<8x512xf32>
    %c0_3 = arith.constant 0 : index
    %c0_4 = arith.constant 0 : index
    %4 = vector.load %arg3[%c0_3, %c0_4] : memref<1x512xf32, #tpu.memory_space<vmem>>, vector<1x512xf32>
    %5 = vector.broadcast %4 : vector<1x512xf32> to vector<8x512xf32>
    %6 = arith.addf %3, %5 : vector<8x512xf32>
    %7 = arith.negf %6 : vector<8x512xf32>
    %8 = math.exp %7 : vector<8x512xf32>
    %cst_5 = arith.constant 1.000000e+00 : f32
    %9 = vector.broadcast %cst_5 : f32 to vector<8x512xf32>
    %10 = arith.addf %9, %8 : vector<8x512xf32>
    %11 = arith.divf %9, %10 : vector<8x512xf32>
    %12 = arith.mulf %6, %11 : vector<8x512xf32>
    %13 = arith.truncf %12 : vector<8x512xf32> to vector<8x512xbf16>
    %c0_6 = arith.constant 0 : index
    %c0_7 = arith.constant 0 : index
    %14 = vector.load %arg4[%c0_6, %c0_7] : memref<512x128xbf16, #tpu.memory_space<vmem>>, vector<512x128xbf16>
    %cst_8 = arith.constant dense<0.000000e+00> : vector<8x128xf32>
    %15 = tpu.matmul %13, %14, %cst_8 {dimension_numbers = #tpu.dot_dimension_numbers<[1], [0], [0], [1], [0, 0, 1, 1], [], []>} : vector<8x512xbf16>, vector<512x128xbf16>, vector<8x128xf32> -> vector<8x128xf32>
    %c0_9 = arith.constant 0 : index
    %c0_10 = arith.constant 0 : index
    %16 = vector.load %arg5[%c0_9, %c0_10] : memref<1x128xf32, #tpu.memory_space<vmem>>, vector<1x128xf32>
    %17 = vector.broadcast %16 : vector<1x128xf32> to vector<8x128xf32>
    %18 = arith.addf %15, %17 : vector<8x128xf32>
    %c0_11 = arith.constant 0 : index
    %c0_12 = arith.constant 0 : index
    %19 = vector.load %arg6[%c0_11, %c0_12] : memref<8x128xf32, #tpu.memory_space<vmem>>, vector<8x128xf32>
    tpu.vector_store %arg6[%c0_11, %c0_12], %18 {strides = array<i32>} : memref<8x128xf32, #tpu.memory_space<vmem>>, vector<8x128xf32>,
    return
  }
  func.func @transform_0(%arg0: i32) -> (i32, i32) {
    %c0_i32 = arith.constant 0 : i32
    %c0_i32_0 = arith.constant 0 : i32
    %c0_i32_1 = arith.constant 0 : i32
    return %c0_i32, %c0_i32_0 : i32, i32
  }
  func.func @transform_1(%arg0: i32) -> (i32, i32) {
    %c0_i32 = arith.constant 0 : i32
    %c0_i32_0 = arith.constant 0 : i32
    %c0_i32_1 = arith.constant 0 : i32
    return %c0_i32, %c0_i32_0 : i32, i32
  }
  func.func @transform_2(%arg0: i32) -> (i32, i32) {
    %c0_i32 = arith.constant 0 : i32
    %c0_i32_0 = arith.constant 0 : i32
    %c0_i32_1 = arith.constant 0 : i32
    return %c0_i32, %c0_i32_0 : i32, i32
  }
  func.func @transform_3(%arg0: i32) -> (i32, i32) {
    %c0_i32 = arith.constant 0 : i32
    %c0_i32_0 = arith.constant 0 : i32
    %c0_i32_1 = arith.constant 0 : i32
    return %c0_i32, %c0_i32_0 : i32, i32
  }
  func.func @transform_4(%arg0: i32) -> (i32, i32) {
    %c0_i32 = arith.constant 0 : i32
    %c0_i32_0 = arith.constant 0 : i32
    %c0_i32_1 = arith.constant 0 : i32
    return %c0_i32, %c0_i32_0 : i32, i32
  }
  func.func @transform_5(%arg0: i32) -> (i32, i32) {
    %c0_i32 = arith.constant 0 : i32
    %c0_i32_0 = arith.constant 0 : i32
    %c0_i32_1 = arith.constant 0 : i32
    return %c0_i32, %c0_i32_0 : i32, i32
  }
}

module attributes {stable_mosaic.version = 11 : i64} {
  func.func @_conv_in_kernel(%arg0: i32, %arg1: memref<1x256x36xbf16, #tpu.memory_space<vmem>>, %arg2: memref<36x128xbf16, #tpu.memory_space<vmem>>, %arg3: memref<1x128xf32, #tpu.memory_space<vmem>>, %arg4: memref<1x1x128xf32, #tpu.memory_space<vmem>>, %arg5: memref<1x256x128xbf16, #tpu.memory_space<vmem>>) attributes {dimension_semantics = [#tpu.dimension_semantics<parallel>], iteration_bounds = array<i64: 2>, scalar_prefetch = 0 : i64, scratch_operands = 0 : i64, tpu.core_type = #tpu.core_type<tc>, window_params = [{transform_indices = @transform_0, window_bounds = array<i64: 1, 256, 36>}, {pipeline_mode = #tpu.pipeline_mode<synchronous>, transform_indices = @transform_1, window_bounds = array<i64: 36, 128>}, {pipeline_mode = #tpu.pipeline_mode<synchronous>, transform_indices = @transform_2, window_bounds = array<i64: 1, 128>}, {transform_indices = @transform_3, window_bounds = array<i64: 1, 1, 128>}, {transform_indices = @transform_4, window_bounds = array<i64: 1, 256, 128>}]} {
    %c0 = arith.constant 0 : index
    %c0_0 = arith.constant 0 : index
    %c0_1 = arith.constant 0 : index
    %0 = vector.load %arg1[%c0, %c0_0, %c0_1] : memref<1x256x36xbf16, #tpu.memory_space<vmem>>, vector<1x256x36xbf16>
    %1 = vector.shape_cast %0 : vector<1x256x36xbf16> to vector<256x36xbf16>
    %c0_2 = arith.constant 0 : index
    %c0_3 = arith.constant 0 : index
    %2 = vector.load %arg2[%c0_2, %c0_3] : memref<36x128xbf16, #tpu.memory_space<vmem>>, vector<36x128xbf16>
    %cst = arith.constant dense<0.000000e+00> : vector<256x128xf32>
    %3 = tpu.matmul %1, %2, %cst {dimension_numbers = #tpu.dot_dimension_numbers<[1], [0], [0], [1], [0, 0, 1, 1], [], []>} : vector<256x36xbf16>, vector<36x128xbf16>, vector<256x128xf32> -> vector<256x128xf32>
    %c0_4 = arith.constant 0 : index
    %c0_5 = arith.constant 0 : index
    %4 = vector.load %arg3[%c0_4, %c0_5] : memref<1x128xf32, #tpu.memory_space<vmem>>, vector<1x128xf32>
    %5 = vector.broadcast %4 : vector<1x128xf32> to vector<256x128xf32>
    %6 = arith.addf %3, %5 : vector<256x128xf32>
    %c0_6 = arith.constant 0 : index
    %c0_7 = arith.constant 0 : index
    %c0_8 = arith.constant 0 : index
    %7 = vector.load %arg4[%c0_6, %c0_7, %c0_8] : memref<1x1x128xf32, #tpu.memory_space<vmem>>, vector<1x1x128xf32>
    %8 = vector.shape_cast %7 : vector<1x1x128xf32> to vector<1x128xf32>
    %9 = vector.broadcast %8 : vector<1x128xf32> to vector<256x128xf32>
    %10 = arith.addf %6, %9 : vector<256x128xf32>
    %11 = arith.truncf %10 : vector<256x128xf32> to vector<256x128xbf16>
    %c0_9 = arith.constant 0 : index
    %c0_10 = arith.constant 0 : index
    %c0_11 = arith.constant 0 : index
    %12 = vector.load %arg5[%c0_9, %c0_10, %c0_11] : memref<1x256x128xbf16, #tpu.memory_space<vmem>>, vector<1x256x128xbf16>
    %13 = vector.shape_cast %12 : vector<1x256x128xbf16> to vector<256x128xbf16>
    %14 = vector.shape_cast %11 : vector<256x128xbf16> to vector<1x256x128xbf16>
    tpu.vector_store %arg5[%c0_9, %c0_10, %c0_11], %14 {strides = array<i32>} : memref<1x256x128xbf16, #tpu.memory_space<vmem>>, vector<1x256x128xbf16>,
    return
  }
  func.func @transform_0(%arg0: i32) -> (i32, i32, i32) {
    %c0_i32 = arith.constant 0 : i32
    %c0_i32_0 = arith.constant 0 : i32
    %c0_i32_1 = arith.constant 0 : i32
    return %arg0, %c0_i32, %c0_i32_0 : i32, i32, i32
  }
  func.func @transform_1(%arg0: i32) -> (i32, i32) {
    %c0_i32 = arith.constant 0 : i32
    %c0_i32_0 = arith.constant 0 : i32
    %c0_i32_1 = arith.constant 0 : i32
    return %c0_i32, %c0_i32_0 : i32, i32
  }
  func.func @transform_2(%arg0: i32) -> (i32, i32) {
    %c0_i32 = arith.constant 0 : i32
    %c0_i32_0 = arith.constant 0 : i32
    %c0_i32_1 = arith.constant 0 : i32
    return %c0_i32, %c0_i32_0 : i32, i32
  }
  func.func @transform_3(%arg0: i32) -> (i32, i32, i32) {
    %c0_i32 = arith.constant 0 : i32
    %c0_i32_0 = arith.constant 0 : i32
    %c0_i32_1 = arith.constant 0 : i32
    return %arg0, %c0_i32, %c0_i32_0 : i32, i32, i32
  }
  func.func @transform_4(%arg0: i32) -> (i32, i32, i32) {
    %c0_i32 = arith.constant 0 : i32
    %c0_i32_0 = arith.constant 0 : i32
    %c0_i32_1 = arith.constant 0 : i32
    return %arg0, %c0_i32, %c0_i32_0 : i32, i32, i32
  }
}

module attributes {stable_mosaic.version = 11 : i64} {
  func.func @_image_proj_kernel(%arg0: i32, %arg1: memref<8x32xf32, #tpu.memory_space<vmem>>, %arg2: memref<32x128xbf16, #tpu.memory_space<vmem>>, %arg3: memref<1x128xf32, #tpu.memory_space<vmem>>, %arg4: memref<128x4xf32, #tpu.memory_space<vmem>>, %arg5: memref<4x128xf32, #tpu.memory_space<vmem>>, %arg6: memref<1x128xf32, #tpu.memory_space<vmem>>, %arg7: memref<1x128xf32, #tpu.memory_space<vmem>>, %arg8: memref<8x128xf32, #tpu.memory_space<vmem>>) attributes {dimension_semantics = [#tpu.dimension_semantics<arbitrary>], iteration_bounds = array<i64: 1>, scalar_prefetch = 0 : i64, scratch_operands = 0 : i64, tpu.core_type = #tpu.core_type<tc>, window_params = [{pipeline_mode = #tpu.pipeline_mode<synchronous>, transform_indices = @transform_0, window_bounds = array<i64: 8, 32>}, {pipeline_mode = #tpu.pipeline_mode<synchronous>, transform_indices = @transform_1, window_bounds = array<i64: 32, 128>}, {pipeline_mode = #tpu.pipeline_mode<synchronous>, transform_indices = @transform_2, window_bounds = array<i64: 1, 128>}, {pipeline_mode = #tpu.pipeline_mode<synchronous>, transform_indices = @transform_3, window_bounds = array<i64: 128, 4>}, {pipeline_mode = #tpu.pipeline_mode<synchronous>, transform_indices = @transform_4, window_bounds = array<i64: 4, 128>}, {pipeline_mode = #tpu.pipeline_mode<synchronous>, transform_indices = @transform_5, window_bounds = array<i64: 1, 128>}, {pipeline_mode = #tpu.pipeline_mode<synchronous>, transform_indices = @transform_6, window_bounds = array<i64: 1, 128>}, {pipeline_mode = #tpu.pipeline_mode<synchronous>, transform_indices = @transform_7, window_bounds = array<i64: 8, 128>}]} {
    %c0 = arith.constant 0 : index
    %c0_0 = arith.constant 0 : index
    %0 = vector.load %arg1[%c0, %c0_0] : memref<8x32xf32, #tpu.memory_space<vmem>>, vector<8x32xf32>
    %1 = arith.truncf %0 : vector<8x32xf32> to vector<8x32xbf16>
    %c0_1 = arith.constant 0 : index
    %c0_2 = arith.constant 0 : index
    %2 = vector.load %arg2[%c0_1, %c0_2] : memref<32x128xbf16, #tpu.memory_space<vmem>>, vector<32x128xbf16>
    %cst = arith.constant dense<0.000000e+00> : vector<8x128xf32>
    %3 = tpu.matmul %1, %2, %cst {dimension_numbers = #tpu.dot_dimension_numbers<[1], [0], [0], [1], [0, 0, 1, 1], [], []>} : vector<8x32xbf16>, vector<32x128xbf16>, vector<8x128xf32> -> vector<8x128xf32>
    %c0_3 = arith.constant 0 : index
    %c0_4 = arith.constant 0 : index
    %4 = vector.load %arg3[%c0_3, %c0_4] : memref<1x128xf32, #tpu.memory_space<vmem>>, vector<1x128xf32>
    %5 = vector.broadcast %4 : vector<1x128xf32> to vector<8x128xf32>
    %6 = arith.addf %3, %5 : vector<8x128xf32>
    %c0_5 = arith.constant 0 : index
    %c0_6 = arith.constant 0 : index
    %7 = vector.load %arg4[%c0_5, %c0_6] : memref<128x4xf32, #tpu.memory_space<vmem>>, vector<128x4xf32>
    %cst_7 = arith.constant dense<0.000000e+00> : vector<8x4xf32>
    %8 = tpu.matmul %6, %7, %cst_7 {dimension_numbers = #tpu.dot_dimension_numbers<[1], [0], [0], [1], [0, 0, 1, 1], [], []>} : vector<8x128xf32>, vector<128x4xf32>, vector<8x4xf32> -> vector<8x4xf32>
    %9 = arith.mulf %6, %6 : vector<8x128xf32>
    %c0_8 = arith.constant 0 : index
    %c0_9 = arith.constant 0 : index
    %10 = vector.load %arg4[%c0_8, %c0_9] : memref<128x4xf32, #tpu.memory_space<vmem>>, vector<128x4xf32>
    %cst_10 = arith.constant dense<0.000000e+00> : vector<8x4xf32>
    %11 = tpu.matmul %9, %10, %cst_10 {dimension_numbers = #tpu.dot_dimension_numbers<[1], [0], [0], [1], [0, 0, 1, 1], [], []>} : vector<8x128xf32>, vector<128x4xf32>, vector<8x4xf32> -> vector<8x4xf32>
    %12 = arith.mulf %8, %8 : vector<8x4xf32>
    %13 = arith.subf %11, %12 : vector<8x4xf32>
    %c0_11 = arith.constant 0 : index
    %c0_12 = arith.constant 0 : index
    %14 = vector.load %arg5[%c0_11, %c0_12] : memref<4x128xf32, #tpu.memory_space<vmem>>, vector<4x128xf32>
    %cst_13 = arith.constant dense<0.000000e+00> : vector<8x128xf32>
    %15 = tpu.matmul %8, %14, %cst_13 {dimension_numbers = #tpu.dot_dimension_numbers<[1], [0], [0], [1], [0, 0, 1, 1], [], []>} : vector<8x4xf32>, vector<4x128xf32>, vector<8x128xf32> -> vector<8x128xf32>
    %c0_14 = arith.constant 0 : index
    %c0_15 = arith.constant 0 : index
    %16 = vector.load %arg5[%c0_14, %c0_15] : memref<4x128xf32, #tpu.memory_space<vmem>>, vector<4x128xf32>
    %cst_16 = arith.constant dense<0.000000e+00> : vector<8x128xf32>
    %17 = tpu.matmul %13, %16, %cst_16 {dimension_numbers = #tpu.dot_dimension_numbers<[1], [0], [0], [1], [0, 0, 1, 1], [], []>} : vector<8x4xf32>, vector<4x128xf32>, vector<8x128xf32> -> vector<8x128xf32>
    %18 = arith.subf %6, %15 : vector<8x128xf32>
    %cst_17 = arith.constant 9.99999974E-6 : f32
    %19 = vector.broadcast %cst_17 : f32 to vector<8x128xf32>
    %20 = arith.addf %17, %19 : vector<8x128xf32>
    %21 = math.rsqrt %20 : vector<8x128xf32>
    %22 = arith.mulf %18, %21 : vector<8x128xf32>
    %c0_18 = arith.constant 0 : index
    %c0_19 = arith.constant 0 : index
    %23 = vector.load %arg6[%c0_18, %c0_19] : memref<1x128xf32, #tpu.memory_space<vmem>>, vector<1x128xf32>
    %24 = vector.broadcast %23 : vector<1x128xf32> to vector<8x128xf32>
    %25 = arith.mulf %22, %24 : vector<8x128xf32>
    %c0_20 = arith.constant 0 : index
    %c0_21 = arith.constant 0 : index
    %26 = vector.load %arg7[%c0_20, %c0_21] : memref<1x128xf32, #tpu.memory_space<vmem>>, vector<1x128xf32>
    %27 = vector.broadcast %26 : vector<1x128xf32> to vector<8x128xf32>
    %28 = arith.addf %25, %27 : vector<8x128xf32>
    %c0_22 = arith.constant 0 : index
    %c0_23 = arith.constant 0 : index
    %29 = vector.load %arg8[%c0_22, %c0_23] : memref<8x128xf32, #tpu.memory_space<vmem>>, vector<8x128xf32>
    tpu.vector_store %arg8[%c0_22, %c0_23], %28 {strides = array<i32>} : memref<8x128xf32, #tpu.memory_space<vmem>>, vector<8x128xf32>,
    return
  }
  func.func @transform_0(%arg0: i32) -> (i32, i32) {
    %c0_i32 = arith.constant 0 : i32
    %c0_i32_0 = arith.constant 0 : i32
    %c0_i32_1 = arith.constant 0 : i32
    return %c0_i32, %c0_i32_0 : i32, i32
  }
  func.func @transform_1(%arg0: i32) -> (i32, i32) {
    %c0_i32 = arith.constant 0 : i32
    %c0_i32_0 = arith.constant 0 : i32
    %c0_i32_1 = arith.constant 0 : i32
    return %c0_i32, %c0_i32_0 : i32, i32
  }
  func.func @transform_2(%arg0: i32) -> (i32, i32) {
    %c0_i32 = arith.constant 0 : i32
    %c0_i32_0 = arith.constant 0 : i32
    %c0_i32_1 = arith.constant 0 : i32
    return %c0_i32, %c0_i32_0 : i32, i32
  }
  func.func @transform_3(%arg0: i32) -> (i32, i32) {
    %c0_i32 = arith.constant 0 : i32
    %c0_i32_0 = arith.constant 0 : i32
    %c0_i32_1 = arith.constant 0 : i32
    return %c0_i32, %c0_i32_0 : i32, i32
  }
  func.func @transform_4(%arg0: i32) -> (i32, i32) {
    %c0_i32 = arith.constant 0 : i32
    %c0_i32_0 = arith.constant 0 : i32
    %c0_i32_1 = arith.constant 0 : i32
    return %c0_i32, %c0_i32_0 : i32, i32
  }
  func.func @transform_5(%arg0: i32) -> (i32, i32) {
    %c0_i32 = arith.constant 0 : i32
    %c0_i32_0 = arith.constant 0 : i32
    %c0_i32_1 = arith.constant 0 : i32
    return %c0_i32, %c0_i32_0 : i32, i32
  }
  func.func @transform_6(%arg0: i32) -> (i32, i32) {
    %c0_i32 = arith.constant 0 : i32
    %c0_i32_0 = arith.constant 0 : i32
    %c0_i32_1 = arith.constant 0 : i32
    return %c0_i32, %c0_i32_0 : i32, i32
  }
  func.func @transform_7(%arg0: i32) -> (i32, i32) {
    %c0_i32 = arith.constant 0 : i32
    %c0_i32_0 = arith.constant 0 : i32
    %c0_i32_1 = arith.constant 0 : i32
    return %c0_i32, %c0_i32_0 : i32, i32
  }
}

module attributes {stable_mosaic.version = 11 : i64} {
  func.func @_conv_out_kernel(%arg0: i32, %arg1: memref<1x18x18x128xbf16, #tpu.memory_space<vmem>>, %arg2: memref<1152x128xbf16, #tpu.memory_space<vmem>>, %arg3: memref<1x128xf32, #tpu.memory_space<vmem>>, %arg4: memref<1x256x128xf32, #tpu.memory_space<vmem>>, %arg5: memref<256x128xf32, #tpu.memory_space<vmem>>) attributes {dimension_semantics = [#tpu.dimension_semantics<parallel>], iteration_bounds = array<i64: 2>, scalar_prefetch = 0 : i64, scratch_operands = 1 : i64, tpu.core_type = #tpu.core_type<tc>, window_params = [{transform_indices = @transform_0, window_bounds = array<i64: 1, 18, 18, 128>}, {pipeline_mode = #tpu.pipeline_mode<synchronous>, transform_indices = @transform_1, window_bounds = array<i64: 1152, 128>}, {pipeline_mode = #tpu.pipeline_mode<synchronous>, transform_indices = @transform_2, window_bounds = array<i64: 1, 128>}, {transform_indices = @transform_3, window_bounds = array<i64: 1, 256, 128>}]} {
    %cst = arith.constant 0.000000e+00 : f32
    %0 = vector.broadcast %cst : f32 to vector<256x128xf32>
    %c0 = arith.constant 0 : index
    %c0_0 = arith.constant 0 : index
    %1 = vector.load %arg5[%c0, %c0_0] : memref<256x128xf32, #tpu.memory_space<vmem>>, vector<256x128xf32>
    tpu.vector_store %arg5[%c0, %c0_0], %0 {strides = array<i32>} : memref<256x128xf32, #tpu.memory_space<vmem>>, vector<256x128xf32>,
    %c0_1 = arith.constant 0 : index
    %c0_2 = arith.constant 0 : index
    %c0_3 = arith.constant 0 : index
    %c0_4 = arith.constant 0 : index
    %2 = vector.load %arg1[%c0_1, %c0_2, %c0_3, %c0_4] : memref<1x18x18x128xbf16, #tpu.memory_space<vmem>>, vector<1x16x16x128xbf16>
    %3 = vector.shape_cast %2 : vector<1x16x16x128xbf16> to vector<16x16x128xbf16>
    %4 = vector.shape_cast %3 : vector<16x16x128xbf16> to vector<256x128xbf16>
    %c0_5 = arith.constant 0 : index
    %c0_6 = arith.constant 0 : index
    %5 = vector.load %arg5[%c0_5, %c0_6] : memref<256x128xf32, #tpu.memory_space<vmem>>, vector<256x128xf32>
    %c0_7 = arith.constant 0 : index
    %c0_8 = arith.constant 0 : index
    %6 = vector.load %arg2[%c0_7, %c0_8] : memref<1152x128xbf16, #tpu.memory_space<vmem>>, vector<128x128xbf16>
    %cst_9 = arith.constant dense<0.000000e+00> : vector<256x128xf32>
    %7 = tpu.matmul %4, %6, %cst_9 {dimension_numbers = #tpu.dot_dimension_numbers<[1], [0], [0], [1], [0, 0, 1, 1], [], []>} : vector<256x128xbf16>, vector<128x128xbf16>, vector<256x128xf32> -> vector<256x128xf32>
    %8 = arith.addf %5, %7 : vector<256x128xf32>
    %c0_10 = arith.constant 0 : index
    %c0_11 = arith.constant 0 : index
    %9 = vector.load %arg5[%c0_10, %c0_11] : memref<256x128xf32, #tpu.memory_space<vmem>>, vector<256x128xf32>
    tpu.vector_store %arg5[%c0_10, %c0_11], %8 {strides = array<i32>} : memref<256x128xf32, #tpu.memory_space<vmem>>, vector<256x128xf32>,
    %c0_12 = arith.constant 0 : index
    %c0_13 = arith.constant 0 : index
    %c1 = arith.constant 1 : index
    %c0_14 = arith.constant 0 : index
    %10 = vector.load %arg1[%c0_12, %c0_13, %c1, %c0_14] : memref<1x18x18x128xbf16, #tpu.memory_space<vmem>>, vector<1x16x16x128xbf16>
    %11 = vector.shape_cast %10 : vector<1x16x16x128xbf16> to vector<16x16x128xbf16>
    %12 = vector.shape_cast %11 : vector<16x16x128xbf16> to vector<256x128xbf16>
    %c0_15 = arith.constant 0 : index
    %c0_16 = arith.constant 0 : index
    %13 = vector.load %arg5[%c0_15, %c0_16] : memref<256x128xf32, #tpu.memory_space<vmem>>, vector<256x128xf32>
    %c128 = arith.constant 128 : index
    %c0_17 = arith.constant 0 : index
    %14 = vector.load %arg2[%c128, %c0_17] : memref<1152x128xbf16, #tpu.memory_space<vmem>>, vector<128x128xbf16>
    %cst_18 = arith.constant dense<0.000000e+00> : vector<256x128xf32>
    %15 = tpu.matmul %12, %14, %cst_18 {dimension_numbers = #tpu.dot_dimension_numbers<[1], [0], [0], [1], [0, 0, 1, 1], [], []>} : vector<256x128xbf16>, vector<128x128xbf16>, vector<256x128xf32> -> vector<256x128xf32>
    %16 = arith.addf %13, %15 : vector<256x128xf32>
    %c0_19 = arith.constant 0 : index
    %c0_20 = arith.constant 0 : index
    %17 = vector.load %arg5[%c0_19, %c0_20] : memref<256x128xf32, #tpu.memory_space<vmem>>, vector<256x128xf32>
    tpu.vector_store %arg5[%c0_19, %c0_20], %16 {strides = array<i32>} : memref<256x128xf32, #tpu.memory_space<vmem>>, vector<256x128xf32>,
    %c0_21 = arith.constant 0 : index
    %c0_22 = arith.constant 0 : index
    %c2 = arith.constant 2 : index
    %c0_23 = arith.constant 0 : index
    %18 = vector.load %arg1[%c0_21, %c0_22, %c2, %c0_23] : memref<1x18x18x128xbf16, #tpu.memory_space<vmem>>, vector<1x16x16x128xbf16>
    %19 = vector.shape_cast %18 : vector<1x16x16x128xbf16> to vector<16x16x128xbf16>
    %20 = vector.shape_cast %19 : vector<16x16x128xbf16> to vector<256x128xbf16>
    %c0_24 = arith.constant 0 : index
    %c0_25 = arith.constant 0 : index
    %21 = vector.load %arg5[%c0_24, %c0_25] : memref<256x128xf32, #tpu.memory_space<vmem>>, vector<256x128xf32>
    %c256 = arith.constant 256 : index
    %c0_26 = arith.constant 0 : index
    %22 = vector.load %arg2[%c256, %c0_26] : memref<1152x128xbf16, #tpu.memory_space<vmem>>, vector<128x128xbf16>
    %cst_27 = arith.constant dense<0.000000e+00> : vector<256x128xf32>
    %23 = tpu.matmul %20, %22, %cst_27 {dimension_numbers = #tpu.dot_dimension_numbers<[1], [0], [0], [1], [0, 0, 1, 1], [], []>} : vector<256x128xbf16>, vector<128x128xbf16>, vector<256x128xf32> -> vector<256x128xf32>
    %24 = arith.addf %21, %23 : vector<256x128xf32>
    %c0_28 = arith.constant 0 : index
    %c0_29 = arith.constant 0 : index
    %25 = vector.load %arg5[%c0_28, %c0_29] : memref<256x128xf32, #tpu.memory_space<vmem>>, vector<256x128xf32>
    tpu.vector_store %arg5[%c0_28, %c0_29], %24 {strides = array<i32>} : memref<256x128xf32, #tpu.memory_space<vmem>>, vector<256x128xf32>,
    %c0_30 = arith.constant 0 : index
    %c1_31 = arith.constant 1 : index
    %c0_32 = arith.constant 0 : index
    %c0_33 = arith.constant 0 : index
    %26 = vector.load %arg1[%c0_30, %c1_31, %c0_32, %c0_33] : memref<1x18x18x128xbf16, #tpu.memory_space<vmem>>, vector<1x16x16x128xbf16>
    %27 = vector.shape_cast %26 : vector<1x16x16x128xbf16> to vector<16x16x128xbf16>
    %28 = vector.shape_cast %27 : vector<16x16x128xbf16> to vector<256x128xbf16>
    %c0_34 = arith.constant 0 : index
    %c0_35 = arith.constant 0 : index
    %29 = vector.load %arg5[%c0_34, %c0_35] : memref<256x128xf32, #tpu.memory_space<vmem>>, vector<256x128xf32>
    %c384 = arith.constant 384 : index
    %c0_36 = arith.constant 0 : index
    %30 = vector.load %arg2[%c384, %c0_36] : memref<1152x128xbf16, #tpu.memory_space<vmem>>, vector<128x128xbf16>
    %cst_37 = arith.constant dense<0.000000e+00> : vector<256x128xf32>
    %31 = tpu.matmul %28, %30, %cst_37 {dimension_numbers = #tpu.dot_dimension_numbers<[1], [0], [0], [1], [0, 0, 1, 1], [], []>} : vector<256x128xbf16>, vector<128x128xbf16>, vector<256x128xf32> -> vector<256x128xf32>
    %32 = arith.addf %29, %31 : vector<256x128xf32>
    %c0_38 = arith.constant 0 : index
    %c0_39 = arith.constant 0 : index
    %33 = vector.load %arg5[%c0_38, %c0_39] : memref<256x128xf32, #tpu.memory_space<vmem>>, vector<256x128xf32>
    tpu.vector_store %arg5[%c0_38, %c0_39], %32 {strides = array<i32>} : memref<256x128xf32, #tpu.memory_space<vmem>>, vector<256x128xf32>,
    %c0_40 = arith.constant 0 : index
    %c1_41 = arith.constant 1 : index
    %c1_42 = arith.constant 1 : index
    %c0_43 = arith.constant 0 : index
    %34 = vector.load %arg1[%c0_40, %c1_41, %c1_42, %c0_43] : memref<1x18x18x128xbf16, #tpu.memory_space<vmem>>, vector<1x16x16x128xbf16>
    %35 = vector.shape_cast %34 : vector<1x16x16x128xbf16> to vector<16x16x128xbf16>
    %36 = vector.shape_cast %35 : vector<16x16x128xbf16> to vector<256x128xbf16>
    %c0_44 = arith.constant 0 : index
    %c0_45 = arith.constant 0 : index
    %37 = vector.load %arg5[%c0_44, %c0_45] : memref<256x128xf32, #tpu.memory_space<vmem>>, vector<256x128xf32>
    %c512 = arith.constant 512 : index
    %c0_46 = arith.constant 0 : index
    %38 = vector.load %arg2[%c512, %c0_46] : memref<1152x128xbf16, #tpu.memory_space<vmem>>, vector<128x128xbf16>
    %cst_47 = arith.constant dense<0.000000e+00> : vector<256x128xf32>
    %39 = tpu.matmul %36, %38, %cst_47 {dimension_numbers = #tpu.dot_dimension_numbers<[1], [0], [0], [1], [0, 0, 1, 1], [], []>} : vector<256x128xbf16>, vector<128x128xbf16>, vector<256x128xf32> -> vector<256x128xf32>
    %40 = arith.addf %37, %39 : vector<256x128xf32>
    %c0_48 = arith.constant 0 : index
    %c0_49 = arith.constant 0 : index
    %41 = vector.load %arg5[%c0_48, %c0_49] : memref<256x128xf32, #tpu.memory_space<vmem>>, vector<256x128xf32>
    tpu.vector_store %arg5[%c0_48, %c0_49], %40 {strides = array<i32>} : memref<256x128xf32, #tpu.memory_space<vmem>>, vector<256x128xf32>,
    %c0_50 = arith.constant 0 : index
    %c1_51 = arith.constant 1 : index
    %c2_52 = arith.constant 2 : index
    %c0_53 = arith.constant 0 : index
    %42 = vector.load %arg1[%c0_50, %c1_51, %c2_52, %c0_53] : memref<1x18x18x128xbf16, #tpu.memory_space<vmem>>, vector<1x16x16x128xbf16>
    %43 = vector.shape_cast %42 : vector<1x16x16x128xbf16> to vector<16x16x128xbf16>
    %44 = vector.shape_cast %43 : vector<16x16x128xbf16> to vector<256x128xbf16>
    %c0_54 = arith.constant 0 : index
    %c0_55 = arith.constant 0 : index
    %45 = vector.load %arg5[%c0_54, %c0_55] : memref<256x128xf32, #tpu.memory_space<vmem>>, vector<256x128xf32>
    %c640 = arith.constant 640 : index
    %c0_56 = arith.constant 0 : index
    %46 = vector.load %arg2[%c640, %c0_56] : memref<1152x128xbf16, #tpu.memory_space<vmem>>, vector<128x128xbf16>
    %cst_57 = arith.constant dense<0.000000e+00> : vector<256x128xf32>
    %47 = tpu.matmul %44, %46, %cst_57 {dimension_numbers = #tpu.dot_dimension_numbers<[1], [0], [0], [1], [0, 0, 1, 1], [], []>} : vector<256x128xbf16>, vector<128x128xbf16>, vector<256x128xf32> -> vector<256x128xf32>
    %48 = arith.addf %45, %47 : vector<256x128xf32>
    %c0_58 = arith.constant 0 : index
    %c0_59 = arith.constant 0 : index
    %49 = vector.load %arg5[%c0_58, %c0_59] : memref<256x128xf32, #tpu.memory_space<vmem>>, vector<256x128xf32>
    tpu.vector_store %arg5[%c0_58, %c0_59], %48 {strides = array<i32>} : memref<256x128xf32, #tpu.memory_space<vmem>>, vector<256x128xf32>,
    %c0_60 = arith.constant 0 : index
    %c2_61 = arith.constant 2 : index
    %c0_62 = arith.constant 0 : index
    %c0_63 = arith.constant 0 : index
    %50 = vector.load %arg1[%c0_60, %c2_61, %c0_62, %c0_63] : memref<1x18x18x128xbf16, #tpu.memory_space<vmem>>, vector<1x16x16x128xbf16>
    %51 = vector.shape_cast %50 : vector<1x16x16x128xbf16> to vector<16x16x128xbf16>
    %52 = vector.shape_cast %51 : vector<16x16x128xbf16> to vector<256x128xbf16>
    %c0_64 = arith.constant 0 : index
    %c0_65 = arith.constant 0 : index
    %53 = vector.load %arg5[%c0_64, %c0_65] : memref<256x128xf32, #tpu.memory_space<vmem>>, vector<256x128xf32>
    %c768 = arith.constant 768 : index
    %c0_66 = arith.constant 0 : index
    %54 = vector.load %arg2[%c768, %c0_66] : memref<1152x128xbf16, #tpu.memory_space<vmem>>, vector<128x128xbf16>
    %cst_67 = arith.constant dense<0.000000e+00> : vector<256x128xf32>
    %55 = tpu.matmul %52, %54, %cst_67 {dimension_numbers = #tpu.dot_dimension_numbers<[1], [0], [0], [1], [0, 0, 1, 1], [], []>} : vector<256x128xbf16>, vector<128x128xbf16>, vector<256x128xf32> -> vector<256x128xf32>
    %56 = arith.addf %53, %55 : vector<256x128xf32>
    %c0_68 = arith.constant 0 : index
    %c0_69 = arith.constant 0 : index
    %57 = vector.load %arg5[%c0_68, %c0_69] : memref<256x128xf32, #tpu.memory_space<vmem>>, vector<256x128xf32>
    tpu.vector_store %arg5[%c0_68, %c0_69], %56 {strides = array<i32>} : memref<256x128xf32, #tpu.memory_space<vmem>>, vector<256x128xf32>,
    %c0_70 = arith.constant 0 : index
    %c2_71 = arith.constant 2 : index
    %c1_72 = arith.constant 1 : index
    %c0_73 = arith.constant 0 : index
    %58 = vector.load %arg1[%c0_70, %c2_71, %c1_72, %c0_73] : memref<1x18x18x128xbf16, #tpu.memory_space<vmem>>, vector<1x16x16x128xbf16>
    %59 = vector.shape_cast %58 : vector<1x16x16x128xbf16> to vector<16x16x128xbf16>
    %60 = vector.shape_cast %59 : vector<16x16x128xbf16> to vector<256x128xbf16>
    %c0_74 = arith.constant 0 : index
    %c0_75 = arith.constant 0 : index
    %61 = vector.load %arg5[%c0_74, %c0_75] : memref<256x128xf32, #tpu.memory_space<vmem>>, vector<256x128xf32>
    %c896 = arith.constant 896 : index
    %c0_76 = arith.constant 0 : index
    %62 = vector.load %arg2[%c896, %c0_76] : memref<1152x128xbf16, #tpu.memory_space<vmem>>, vector<128x128xbf16>
    %cst_77 = arith.constant dense<0.000000e+00> : vector<256x128xf32>
    %63 = tpu.matmul %60, %62, %cst_77 {dimension_numbers = #tpu.dot_dimension_numbers<[1], [0], [0], [1], [0, 0, 1, 1], [], []>} : vector<256x128xbf16>, vector<128x128xbf16>, vector<256x128xf32> -> vector<256x128xf32>
    %64 = arith.addf %61, %63 : vector<256x128xf32>
    %c0_78 = arith.constant 0 : index
    %c0_79 = arith.constant 0 : index
    %65 = vector.load %arg5[%c0_78, %c0_79] : memref<256x128xf32, #tpu.memory_space<vmem>>, vector<256x128xf32>
    tpu.vector_store %arg5[%c0_78, %c0_79], %64 {strides = array<i32>} : memref<256x128xf32, #tpu.memory_space<vmem>>, vector<256x128xf32>,
    %c0_80 = arith.constant 0 : index
    %c2_81 = arith.constant 2 : index
    %c2_82 = arith.constant 2 : index
    %c0_83 = arith.constant 0 : index
    %66 = vector.load %arg1[%c0_80, %c2_81, %c2_82, %c0_83] : memref<1x18x18x128xbf16, #tpu.memory_space<vmem>>, vector<1x16x16x128xbf16>
    %67 = vector.shape_cast %66 : vector<1x16x16x128xbf16> to vector<16x16x128xbf16>
    %68 = vector.shape_cast %67 : vector<16x16x128xbf16> to vector<256x128xbf16>
    %c0_84 = arith.constant 0 : index
    %c0_85 = arith.constant 0 : index
    %69 = vector.load %arg5[%c0_84, %c0_85] : memref<256x128xf32, #tpu.memory_space<vmem>>, vector<256x128xf32>
    %c1024 = arith.constant 1024 : index
    %c0_86 = arith.constant 0 : index
    %70 = vector.load %arg2[%c1024, %c0_86] : memref<1152x128xbf16, #tpu.memory_space<vmem>>, vector<128x128xbf16>
    %cst_87 = arith.constant dense<0.000000e+00> : vector<256x128xf32>
    %71 = tpu.matmul %68, %70, %cst_87 {dimension_numbers = #tpu.dot_dimension_numbers<[1], [0], [0], [1], [0, 0, 1, 1], [], []>} : vector<256x128xbf16>, vector<128x128xbf16>, vector<256x128xf32> -> vector<256x128xf32>
    %72 = arith.addf %69, %71 : vector<256x128xf32>
    %c0_88 = arith.constant 0 : index
    %c0_89 = arith.constant 0 : index
    %73 = vector.load %arg5[%c0_88, %c0_89] : memref<256x128xf32, #tpu.memory_space<vmem>>, vector<256x128xf32>
    tpu.vector_store %arg5[%c0_88, %c0_89], %72 {strides = array<i32>} : memref<256x128xf32, #tpu.memory_space<vmem>>, vector<256x128xf32>,
    %c0_90 = arith.constant 0 : index
    %c0_91 = arith.constant 0 : index
    %74 = vector.load %arg5[%c0_90, %c0_91] : memref<256x128xf32, #tpu.memory_space<vmem>>, vector<256x128xf32>
    %c0_92 = arith.constant 0 : index
    %c0_93 = arith.constant 0 : index
    %75 = vector.load %arg3[%c0_92, %c0_93] : memref<1x128xf32, #tpu.memory_space<vmem>>, vector<1x128xf32>
    %76 = vector.broadcast %75 : vector<1x128xf32> to vector<256x128xf32>
    %77 = arith.addf %74, %76 : vector<256x128xf32>
    %c0_94 = arith.constant 0 : index
    %c0_95 = arith.constant 0 : index
    %c0_96 = arith.constant 0 : index
    %78 = vector.load %arg4[%c0_94, %c0_95, %c0_96] : memref<1x256x128xf32, #tpu.memory_space<vmem>>, vector<1x256x128xf32>
    %79 = vector.shape_cast %78 : vector<1x256x128xf32> to vector<256x128xf32>
    %80 = vector.shape_cast %77 : vector<256x128xf32> to vector<1x256x128xf32>
    tpu.vector_store %arg4[%c0_94, %c0_95, %c0_96], %80 {strides = array<i32>} : memref<1x256x128xf32, #tpu.memory_space<vmem>>, vector<1x256x128xf32>,
    return
  }
  func.func @transform_0(%arg0: i32) -> (i32, i32, i32, i32) {
    %c0_i32 = arith.constant 0 : i32
    %c0_i32_0 = arith.constant 0 : i32
    %c0_i32_1 = arith.constant 0 : i32
    %c0_i32_2 = arith.constant 0 : i32
    return %arg0, %c0_i32, %c0_i32_0, %c0_i32_1 : i32, i32, i32, i32
  }
  func.func @transform_1(%arg0: i32) -> (i32, i32) {
    %c0_i32 = arith.constant 0 : i32
    %c0_i32_0 = arith.constant 0 : i32
    %c0_i32_1 = arith.constant 0 : i32
    return %c0_i32, %c0_i32_0 : i32, i32
  }
  func.func @transform_2(%arg0: i32) -> (i32, i32) {
    %c0_i32 = arith.constant 0 : i32
    %c0_i32_0 = arith.constant 0 : i32
    %c0_i32_1 = arith.constant 0 : i32
    return %c0_i32, %c0_i32_0 : i32, i32
  }
  func.func @transform_3(%arg0: i32) -> (i32, i32, i32) {
    %c0_i32 = arith.constant 0 : i32
    %c0_i32_0 = arith.constant 0 : i32
    %c0_i32_1 = arith.constant 0 : i32
    return %arg0, %c0_i32, %c0_i32_0 : i32, i32, i32
  }
}

module attributes {stable_mosaic.version = 11 : i64} {
  func.func @_cross_attn_kernel(%arg0: i32, %arg1: i32, %arg2: memref<1x128x128xbf16, #tpu.memory_space<vmem>>, %arg3: memref<1x12x32xbf16, #tpu.memory_space<vmem>>, %arg4: memref<32x256xbf16, #tpu.memory_space<vmem>>, %arg5: memref<1x256xf32, #tpu.memory_space<vmem>>, %arg6: memref<128x128xbf16, #tpu.memory_space<vmem>>, %arg7: memref<1x128xf32, #tpu.memory_space<vmem>>, %arg8: memref<128x128xbf16, #tpu.memory_space<vmem>>, %arg9: memref<1x128xf32, #tpu.memory_space<vmem>>, %arg10: memref<1x128x128xbf16, #tpu.memory_space<vmem>>) attributes {dimension_semantics = [#tpu.dimension_semantics<parallel>, #tpu.dimension_semantics<parallel>], iteration_bounds = array<i64: 2, 2>, scalar_prefetch = 0 : i64, scratch_operands = 0 : i64, tpu.core_type = #tpu.core_type<tc>, window_params = [{transform_indices = @transform_0, window_bounds = array<i64: 1, 128, 128>}, {transform_indices = @transform_1, window_bounds = array<i64: 1, 12, 32>}, {pipeline_mode = #tpu.pipeline_mode<synchronous>, transform_indices = @transform_2, window_bounds = array<i64: 32, 256>}, {pipeline_mode = #tpu.pipeline_mode<synchronous>, transform_indices = @transform_3, window_bounds = array<i64: 1, 256>}, {pipeline_mode = #tpu.pipeline_mode<synchronous>, transform_indices = @transform_4, window_bounds = array<i64: 128, 128>}, {pipeline_mode = #tpu.pipeline_mode<synchronous>, transform_indices = @transform_5, window_bounds = array<i64: 1, 128>}, {pipeline_mode = #tpu.pipeline_mode<synchronous>, transform_indices = @transform_6, window_bounds = array<i64: 128, 128>}, {pipeline_mode = #tpu.pipeline_mode<synchronous>, transform_indices = @transform_7, window_bounds = array<i64: 1, 128>}, {transform_indices = @transform_8, window_bounds = array<i64: 1, 128, 128>}]} {
    %c0 = arith.constant 0 : index
    %c0_0 = arith.constant 0 : index
    %c0_1 = arith.constant 0 : index
    %0 = vector.load %arg2[%c0, %c0_0, %c0_1] : memref<1x128x128xbf16, #tpu.memory_space<vmem>>, vector<1x128x128xbf16>
    %1 = vector.shape_cast %0 : vector<1x128x128xbf16> to vector<128x128xbf16>
    %c0_2 = arith.constant 0 : index
    %c0_3 = arith.constant 0 : index
    %c0_4 = arith.constant 0 : index
    %2 = vector.load %arg3[%c0_2, %c0_3, %c0_4] : memref<1x12x32xbf16, #tpu.memory_space<vmem>>, vector<1x12x32xbf16>
    %3 = vector.shape_cast %2 : vector<1x12x32xbf16> to vector<12x32xbf16>
    %c0_5 = arith.constant 0 : index
    %c0_6 = arith.constant 0 : index
    %4 = vector.load %arg4[%c0_5, %c0_6] : memref<32x256xbf16, #tpu.memory_space<vmem>>, vector<32x256xbf16>
    %cst = arith.constant dense<0.000000e+00> : vector<12x256xf32>
    %5 = tpu.matmul %3, %4, %cst {dimension_numbers = #tpu.dot_dimension_numbers<[1], [0], [0], [1], [0, 0, 1, 1], [], []>} : vector<12x32xbf16>, vector<32x256xbf16>, vector<12x256xf32> -> vector<12x256xf32>
    %c0_7 = arith.constant 0 : index
    %c0_8 = arith.constant 0 : index
    %6 = vector.load %arg5[%c0_7, %c0_8] : memref<1x256xf32, #tpu.memory_space<vmem>>, vector<1x256xf32>
    %7 = vector.broadcast %6 : vector<1x256xf32> to vector<12x256xf32>
    %8 = arith.addf %5, %7 : vector<12x256xf32>
    %9 = arith.truncf %8 : vector<12x256xf32> to vector<12x256xbf16>
    %10 = vector.extract_strided_slice %9 {offsets = [0, 0], sizes = [12, 128], strides = [1, 1]} : vector<12x256xbf16> to vector<12x128xbf16>
    %11 = vector.extract_strided_slice %9 {offsets = [0, 128], sizes = [12, 128], strides = [1, 1]} : vector<12x256xbf16> to vector<12x128xbf16>
    %c0_9 = arith.constant 0 : index
    %c0_10 = arith.constant 0 : index
    %12 = vector.load %arg6[%c0_9, %c0_10] : memref<128x128xbf16, #tpu.memory_space<vmem>>, vector<128x128xbf16>
    %cst_11 = arith.constant dense<0.000000e+00> : vector<128x128xf32>
    %13 = tpu.matmul %1, %12, %cst_11 {dimension_numbers = #tpu.dot_dimension_numbers<[1], [0], [0], [1], [0, 0, 1, 1], [], []>} : vector<128x128xbf16>, vector<128x128xbf16>, vector<128x128xf32> -> vector<128x128xf32>
    %c0_12 = arith.constant 0 : index
    %c0_13 = arith.constant 0 : index
    %14 = vector.load %arg7[%c0_12, %c0_13] : memref<1x128xf32, #tpu.memory_space<vmem>>, vector<1x128xf32>
    %15 = vector.broadcast %14 : vector<1x128xf32> to vector<128x128xf32>
    %16 = arith.addf %13, %15 : vector<128x128xf32>
    %17 = arith.truncf %16 : vector<128x128xf32> to vector<128x128xbf16>
    "tpu.trace_start"() <{level = 10 : i32, message = "qd,kd->qk"}> : () -> ()
    %cst_14 = arith.constant dense<0.000000e+00> : vector<128x12xf32>
    %18 = tpu.matmul %17, %10, %cst_14 {dimension_numbers = #tpu.dot_dimension_numbers<[1], [1], [0], [0], [0, 0, 1, 0], [], []>} : vector<128x128xbf16>, vector<12x128xbf16>, vector<128x12xf32> -> vector<128x12xf32>
    "tpu.trace_stop"() : () -> ()
    %cst_15 = arith.constant 0.0883883461 : f32
    %19 = vector.broadcast %cst_15 : f32 to vector<128x12xf32>
    %20 = arith.mulf %18, %19 : vector<128x12xf32>
    %cst_16 = arith.constant dense<0xFF800000> : vector<128xf32>
    %21 = vector.multi_reduction <maximumf>, %20, %cst_16 [1] : vector<128x12xf32> to vector<128xf32>
    %22 = vector.shape_cast %21 : vector<128xf32> to vector<128x1xf32>
    %23 = vector.broadcast %22 : vector<128x1xf32> to vector<128x12xf32>
    %24 = arith.subf %20, %23 : vector<128x12xf32>
    %25 = math.exp %24 : vector<128x12xf32>
    %cst_17 = arith.constant dense<0.000000e+00> : vector<128xf32>
    %26 = vector.multi_reduction <add>, %25, %cst_17 [1] : vector<128x12xf32> to vector<128xf32>
    %27 = vector.shape_cast %26 : vector<128xf32> to vector<128x1xf32>
    %28 = tpu.reciprocal %27 {approx = true} : vector<128x1xf32> -> vector<128x1xf32>
    %29 = vector.broadcast %28 : vector<128x1xf32> to vector<128x12xf32>
    %30 = arith.mulf %25, %29 : vector<128x12xf32>
    %31 = arith.truncf %30 : vector<128x12xf32> to vector<128x12xbf16>
    %cst_18 = arith.constant dense<0.000000e+00> : vector<128x128xf32>
    %32 = tpu.matmul %31, %11, %cst_18 {dimension_numbers = #tpu.dot_dimension_numbers<[1], [0], [0], [1], [0, 0, 1, 1], [], []>} : vector<128x12xbf16>, vector<12x128xbf16>, vector<128x128xf32> -> vector<128x128xf32>
    %33 = arith.truncf %32 : vector<128x128xf32> to vector<128x128xbf16>
    %c0_19 = arith.constant 0 : index
    %c0_20 = arith.constant 0 : index
    %34 = vector.load %arg8[%c0_19, %c0_20] : memref<128x128xbf16, #tpu.memory_space<vmem>>, vector<128x128xbf16>
    %cst_21 = arith.constant dense<0.000000e+00> : vector<128x128xf32>
    %35 = tpu.matmul %33, %34, %cst_21 {dimension_numbers = #tpu.dot_dimension_numbers<[1], [0], [0], [1], [0, 0, 1, 1], [], []>} : vector<128x128xbf16>, vector<128x128xbf16>, vector<128x128xf32> -> vector<128x128xf32>
    %c0_22 = arith.constant 0 : index
    %c0_23 = arith.constant 0 : index
    %36 = vector.load %arg9[%c0_22, %c0_23] : memref<1x128xf32, #tpu.memory_space<vmem>>, vector<1x128xf32>
    %37 = vector.broadcast %36 : vector<1x128xf32> to vector<128x128xf32>
    %38 = arith.addf %35, %37 : vector<128x128xf32>
    %39 = arith.extf %1 : vector<128x128xbf16> to vector<128x128xf32>
    %40 = arith.addf %38, %39 : vector<128x128xf32>
    %41 = arith.truncf %40 : vector<128x128xf32> to vector<128x128xbf16>
    %c0_24 = arith.constant 0 : index
    %c0_25 = arith.constant 0 : index
    %c0_26 = arith.constant 0 : index
    %42 = vector.load %arg10[%c0_24, %c0_25, %c0_26] : memref<1x128x128xbf16, #tpu.memory_space<vmem>>, vector<1x128x128xbf16>
    %43 = vector.shape_cast %42 : vector<1x128x128xbf16> to vector<128x128xbf16>
    %44 = vector.shape_cast %41 : vector<128x128xbf16> to vector<1x128x128xbf16>
    tpu.vector_store %arg10[%c0_24, %c0_25, %c0_26], %44 {strides = array<i32>} : memref<1x128x128xbf16, #tpu.memory_space<vmem>>, vector<1x128x128xbf16>,
    return
  }
  func.func @transform_0(%arg0: i32, %arg1: i32) -> (i32, i32, i32) {
    %c0_i32 = arith.constant 0 : i32
    %c0_i32_0 = arith.constant 0 : i32
    return %arg0, %arg1, %c0_i32 : i32, i32, i32
  }
  func.func @transform_1(%arg0: i32, %arg1: i32) -> (i32, i32, i32) {
    %c0_i32 = arith.constant 0 : i32
    %c0_i32_0 = arith.constant 0 : i32
    %c0_i32_1 = arith.constant 0 : i32
    return %arg0, %c0_i32, %c0_i32_0 : i32, i32, i32
  }
  func.func @transform_2(%arg0: i32, %arg1: i32) -> (i32, i32) {
    %c0_i32 = arith.constant 0 : i32
    %c0_i32_0 = arith.constant 0 : i32
    %c0_i32_1 = arith.constant 0 : i32
    return %c0_i32, %c0_i32_0 : i32, i32
  }
  func.func @transform_3(%arg0: i32, %arg1: i32) -> (i32, i32) {
    %c0_i32 = arith.constant 0 : i32
    %c0_i32_0 = arith.constant 0 : i32
    %c0_i32_1 = arith.constant 0 : i32
    return %c0_i32, %c0_i32_0 : i32, i32
  }
  func.func @transform_4(%arg0: i32, %arg1: i32) -> (i32, i32) {
    %c0_i32 = arith.constant 0 : i32
    %c0_i32_0 = arith.constant 0 : i32
    %c0_i32_1 = arith.constant 0 : i32
    return %c0_i32, %c0_i32_0 : i32, i32
  }
  func.func @transform_5(%arg0: i32, %arg1: i32) -> (i32, i32) {
    %c0_i32 = arith.constant 0 : i32
    %c0_i32_0 = arith.constant 0 : i32
    %c0_i32_1 = arith.constant 0 : i32
    return %c0_i32, %c0_i32_0 : i32, i32
  }
  func.func @transform_6(%arg0: i32, %arg1: i32) -> (i32, i32) {
    %c0_i32 = arith.constant 0 : i32
    %c0_i32_0 = arith.constant 0 : i32
    %c0_i32_1 = arith.constant 0 : i32
    return %c0_i32, %c0_i32_0 : i32, i32
  }
  func.func @transform_7(%arg0: i32, %arg1: i32) -> (i32, i32) {
    %c0_i32 = arith.constant 0 : i32
    %c0_i32_0 = arith.constant 0 : i32
    %c0_i32_1 = arith.constant 0 : i32
    return %c0_i32, %c0_i32_0 : i32, i32
  }
  func.func @transform_8(%arg0: i32, %arg1: i32) -> (i32, i32, i32) {
    %c0_i32 = arith.constant 0 : i32
    %c0_i32_0 = arith.constant 0 : i32
    return %arg0, %arg1, %c0_i32 : i32, i32, i32
  }
}

</mosaic_0001>

<bundles_post_ra>
// kernel: a_call__.5
= control target key start
LH: loop header
LB: loop body
LE: loop exit
PB: predicated region body
PF: predicated region fallthrough
CT: control target
= control target key end

     0   :  { %vm49_vm0 = vcmask 261120   ;;  %vm130_vm1 = vcmask 1043456   ;;  %vm126_vm2 = vcmask 31744   ;;  %s336_s1 = inlined_call_operand.vmem [shape: bf16[32,128], index: 1, kind: input, shape index: {}]   ;;  %s337_s0 = inlined_call_operand.vmem [shape: f32[8,32], index: 0, kind: input, shape index: {}]   ;;  %s338_s3 = inlined_call_operand.vmem [shape: f32[128,4], index: 3, kind: input, shape index: {}]   ;;  %s339_s2 = inlined_call_operand.vmem [shape: f32[1,128], index: 2, kind: input, shape index: {}, may-alias: {2,6}]   ;;  %s340_s4 = inlined_call_operand.vmem [shape: f32[4,128], index: 4, kind: input, shape index: {}]   ;;  %s341_s5 = inlined_call_operand.vmem [shape: f32[1,128], index: 5, kind: input, shape index: {}]   ;;  %s342_s6 = inlined_call_operand.vmem [shape: f32[1,128], index: 6, kind: input, shape index: {}, may-alias: {2,6}]   ;;  %s343_s7 = inlined_call_operand.vmem [shape: f32[8,128], index: 7, kind: output, shape index: {}]  }
   0x1   :  { %v218_v0 = vld [vmem:[%s336_s1 + $0x8] sm:$0xff]  ;;  %v81_v1 = vld [vmem:[%s338_s3 + $0x78] sm:$0xff]  ;;  %v80_v2 = vld [vmem:[%s338_s3 + $0x70] sm:$0xff] }
   0x2   :  { %59 = vmatpush.bf16.msra.mxu0 %v218_v0  ;;  %v217_v3 = vld [vmem:[%s336_s1] sm:$0xff]  ;;  %82 = vmatpush.msra.mxu1 %v81_v1  ;;  %v79_v5 = vld [vmem:[%s338_s3 + $0x68] sm:$0xff]  ;;  %v77_v8 = vld [vmem:[%s338_s3 + $0x58] sm:$0xff] }
   0x3   :  { %v27_v4 = vld [vmem:[%s337_s0] sm:$0xff]  ;;  %103 = vmatpush.msra.mxu2 %v81_v1  ;;  %v76_v9 = vld [vmem:[%s338_s3 + $0x50] sm:$0xff]  ;;  %v75_v10 = vld [vmem:[%s338_s3 + $0x48] sm:$0xff] }
   0x4   :  { %83 = vmatpush.msra.mxu1 %v80_v2  ;;  %v28_v6 = vpack.c.bf16 %v27_v4, %v27_v4  ;;  %v78_v7 = vld [vmem:[%s338_s3 + $0x60] sm:$0xff]  ;;  %v73_v12 = vld [vmem:[%s338_s3 + $0x38] sm:$0xff]  ;;  %v72_v13 = vld [vmem:[%s338_s3 + $0x30] sm:$0xff] }
   0x5   :  { %104 = vmatpush.msra.mxu2 %v80_v2  ;;  %v74_v11 = vld [vmem:[%s338_s3 + $0x40] sm:$0xff]  ;;  %v71_v14 = vld [vmem:[%s338_s3 + $0x28] sm:$0xff]  ;;  %v69_v16 = vld [vmem:[%s338_s3 + $0x18] sm:$0xff] }
   0x6   :  { %60 = vmatpush.bf16.msra.mxu0 %v217_v3  ;;  %84 = vmatpush.msra.mxu1 %v79_v5  ;;  %v70_v15 = vld [vmem:[%s338_s3 + $0x20] sm:$0xff]  ;;  %v68_v17 = vld [vmem:[%s338_s3 + $0x10] sm:$0xff]  ;;  %v67_v18 = vld [vmem:[%s338_s3 + $0x8] sm:$0xff] }
   0x7   :  { %105 = vmatpush.msra.mxu2 %v79_v5  ;;  %v66_v19 = vld [vmem:[%s338_s3] sm:$0xff] }
   0x8   :  { %85 = vmatpush.msra.mxu1 %v78_v7  ;;  %v219_v20 = vld [vmem:[%s339_s2] ss:$0 sm:$0xff] }
   0x9   :  { %212 = vmatmul.msk.bf16.vlgmr.msra.gmra.mxu0 %vm49_vm0, %v28_v6  ;;  %106 = vmatpush.msra.mxu2 %v78_v7  ;;  %v125_v25 = vld [vmem:[%s340_s4] sm:$0xf] }
   0xa   :  { %86 = vmatpush.msra.mxu1 %v77_v8  ;;  %213 = vmatpush.msk.msra.mxu3 %vm130_vm1, %v125_v25  ;;  %v220_v40 = vld [vmem:[%s341_s5] ss:$0 sm:$0xff] }
   0xb   :  { %107 = vmatpush.msra.mxu2 %v77_v8  ;;  %v221_v43 = vld [vmem:[%s342_s6] ss:$0 sm:$0xff] }
   0xc   :  { %87 = vmatpush.msra.mxu1 %v76_v9  ;;  %215 = vmatpush.msk.msrb.mxu3 %vm130_vm1, %v125_v25 }
   0xd   :  { %108 = vmatpush.msra.mxu2 %v76_v9 }
   0xe   :  { %88 = vmatpush.msra.mxu1 %v75_v10 }
   0xf   :  { %109 = vmatpush.msra.mxu2 %v75_v10 }
  0x10   :  { %89 = vmatpush.msra.mxu1 %v74_v11 }
  0x11   :  { %110 = vmatpush.msra.mxu2 %v74_v11 }
  0x12   :  { %90 = vmatpush.msra.mxu1 %v73_v12 }
  0x13   :  { %111 = vmatpush.msra.mxu2 %v73_v12 }
  0x14   :  { %91 = vmatpush.msra.mxu1 %v72_v13 }
  0x15   :  { %112 = vmatpush.msra.mxu2 %v72_v13 }
  0x16   :  { %92 = vmatpush.msra.mxu1 %v71_v14 }
  0x17   :  { %113 = vmatpush.msra.mxu2 %v71_v14 }
  0x18   :  { %93 = vmatpush.msra.mxu1 %v70_v15 }
  0x19   :  { %114 = vmatpush.msra.mxu2 %v70_v15 }
  0x1a   :  { %94 = vmatpush.msra.mxu1 %v69_v16 }
  0x1b   :  { %115 = vmatpush.msra.mxu2 %v69_v16 }
  0x1c   :  { %95 = vmatpush.msra.mxu1 %v68_v17 }
  0x1d   :  { %116 = vmatpush.msra.mxu2 %v68_v17 }
  0x1e   :  { %96 = vmatpush.msra.mxu1 %v67_v18 }
  0x1f   :  { %117 = vmatpush.msra.mxu2 %v67_v18 }
  0x20   :  { %97 = vmatpush.msra.mxu1 %v66_v19 }
  0x21   :  { %118 = vmatpush.msra.mxu2 %v66_v19 }
  0x86   :  { %v62_v21 = vpop.f32.mrf.mxu0 }
  0x87   :  { %v63_v22 = vadd.f32 %v219_v20, %v62_v21 }
  0x89   :  { %98 = vmatmul.f32.vlgmr.msra.gmra.mxu1 %v63_v22  ;;  %v102_v23 = vmul.f32 %v63_v22, %v63_v22 }
  0x8b   :  { %119 = vmatmul.f32.vlgmr.msra.gmra.mxu2 %v102_v23 }
  0x8e   :  { %v64_v24 = vpop.f32.mrf.mxu0 }
 0x106   :  { %v99_v26 = vpop.f32.mrf.mxu1 }
 0x107   :  { %214 = vmatmul.msk.f32.vlgmr.msra.gmra.mxu3 %vm126_vm2, %v99_v26  ;;  %v123_v27 = vmul.f32 %v99_v26, %v99_v26 }
 0x10e   :  { %v120_v28 = vpop.f32.mrf.mxu2 }
 0x10f   :  { %v124_v29 = vsub.f32 %v120_v28, %v123_v27 }
 0x111   :  { %216 = vmatmul.msk.f32.vlgmr.msrb.gmra.mxu3 %vm126_vm2, %v124_v29 }
 0x18a   :  { %v151_v30 = vpop.f32.mrf.mxu3 }
 0x18b   :  { %v154_v39 = vsub.f32 %v63_v22, %v151_v30 }
 0x194   :  { %v175_v31 = vpop.f32.mrf.mxu3 }
 0x195   :  { %v176_v32 = vadd.f32 1e-05, %v175_v31 }
 0x197   :  { %222 = vrsqrt.f32 %v176_v32  ;;  %vm184_vm4 = vweird.f32 %v176_v32 }
 0x19d   :  { %v223_v33 = vpop.eup %222 }
 0x19e   :  { %v179_v34 = vmul.f32 %v223_v33, %v176_v32  ;;  %vm185_vm3 = vweird.f32 %v223_v33 }
 0x19f   :  { %vm186_vm5 = vmor %vm184_vm4, %vm185_vm3 }
 0x1a0   :  { %v180_v35 = vmul.f32 %v223_v33, %v179_v34 }
 0x1a2   :  { %v181_v36 = vmul.f32 0.5, %v180_v35 }
 0x1a4   :  { %v182_v37 = vsub.f32 1.5, %v181_v36 }
 0x1a6   :  { %v183_v38 = vmul.f32 %v223_v33, %v182_v37 }
 0x1a8   :  { %v187_v41 = vsel %vm186_vm5, %v223_v33, %v183_v38 }
 0x1a9   :  { %v188_v42 = vmul.f32 %v187_v41, %v154_v39 }
 0x1ab   :  { %v193_v44 = vmul.f32 %v220_v40, %v188_v42 }
 0x1ad   :  { %v198_v45 = vadd.f32 %v221_v43, %v193_v44 }
 0x1af   :  { %199 = vst [vmem:[%s343_s7] sm:$0xff] %v198_v45 }

// kernel: a_call__.7
= control target key start
LH: loop header
LB: loop body
LE: loop exit
PB: predicated region body
PF: predicated region fallthrough
CT: control target
= control target key end

     0   :  { %s921_s15 = smov 0   ;;  %s1086_s0 = inlined_call_operand.vmem [shape: bf16[2,256,36], index: 0, kind: input, shape index: {}]   ;;  %s1087_s1 = inlined_call_operand.vmem [shape: bf16[36,128], index: 1, kind: input, shape index: {}]   ;;  %s1088_s2 = inlined_call_operand.vmem [shape: f32[1,128], index: 2, kind: input, shape index: {}]   ;;  %s1089_s3 = inlined_call_operand.vmem [shape: f32[2,1,128], index: 3, kind: input, shape index: {}]   ;;  %s1090_s4 = inlined_call_operand.vmem [shape: bf16[2,256,128], index: 4, kind: output, shape index: {}]  }
   0x1 LB: > { %s655_s16 = sadd.s32 4294967295, %s894_s15   ;;  %p659_p0 = scmp.ge.s32.totalorder %s894_s15, 1  ;;  %s894_s15 = sphi %s921_s15, %s14_s15  }
   0x2   : > { %p170_p1 = scmp.lt.s32.totalorder %s894_s15, 3 }
   0x4   : > { %p171_p2 = pnand %p659_p0, %p170_p1 }
   0x5   : > { %p199_p3 = scmp.lt.s32.totalorder (!%p171_p2), %s655_s16, 1 }
   0x6   : > { %174 = sbr.rel (%p171_p2) target bundleno = 225 (0xe1), region = 36 }
   0xb   : > { %v249_v0 = vld [vmem:[%s1087_s1 + $0x10] sm:$0x3]  ;;  %vm398_vm0 = vcmask 1041408   ;;  %s1092_s16 = smov (!%p199_p3, %s655_s16), 1  ;;  %v773_v4 = vld [vmem:[%s1087_s1 + $0x8] sm:$0xff]  ;;  %v772_v5 = vld [vmem:[%s1087_s1] sm:$0xff] }
   0xc   : > { %v343_v1 = vunpack.c.l.b16 %v249_v0  ;;  %s206_s21 = scalar_lea.vmem %s1089_s3, %s1092_s16  ;;  %s754_s24 = sshll.u32 %s1092_s16, 7  ;;  %vm349_vm1 = vcmask 293888   ;;  %v987_v24 = vld [vmem:[%s1088_s2] ss:$0 sm:$0xff] }
   0xd   : > { %s950_s29 = scalar_lea.vmem %s1086_s0, %s754_s24  ;;  %v994_v25 = vld [vmem:[%s206_s21] ss:$0 sm:$0xff]  ;;  %s1009_s10 = scalar_lea.vmem %s1090_s4, %s754_s24 }
   0xe   : > { %v346_v2 = vpack.c.b16 %v343_v1, %v343_v1  ;;  %v756_v6 = vld [vmem:[%s950_s29] sm:$0xff]  ;;  %v757_v10 = vld [vmem:[%s950_s29 + $0x8] sm:$0xff]  ;;  %v758_v14 = vld [vmem:[%s950_s29 + $0x10] sm:$0xff] }
   0xf   : > { %v760_v7 = vld [vmem:[%s950_s29 + $0x20] sm:$0xff]  ;;  %v761_v11 = vld [vmem:[%s950_s29 + $0x28] sm:$0xff]  ;;  %v762_v15 = vld [vmem:[%s950_s29 + $0x30] sm:$0xff] }
  0x10   : > { %v400_v3 = vsel %vm398_vm0, %v346_v2, 0  ;;  %v764_v8 = vld [vmem:[%s950_s29 + $0x40] sm:$0xff]  ;;  %v765_v12 = vld [vmem:[%s950_s29 + $0x48] sm:$0xff]  ;;  %v766_v16 = vld [vmem:[%s950_s29 + $0x50] sm:$0xff] }
  0x11   : > { %407 = vmatpush.bf16.msra.mxu0 %v400_v3  ;;  %869 = vmatpush.bf16.msra.mxu1 %v400_v3  ;;  %v768_v9 = vld [vmem:[%s950_s29 + $0x60] sm:$0xff]  ;;  %v769_v13 = vld [vmem:[%s950_s29 + $0x68] sm:$0xff]  ;;  %v770_v17 = vld [vmem:[%s950_s29 + $0x70] sm:$0xff] }
  0x12   : > { %870 = vmatpush.bf16.msra.mxu2 %v400_v3  ;;  %871 = vmatpush.bf16.msra.mxu3 %v400_v3  ;;  %v759_v18 = vld [vmem:[%s950_s29 + $0x18] sm:$0xff] }
  0x13   : > { %v763_v19 = vld [vmem:[%s950_s29 + $0x38] sm:$0xff] }
  0x14   : > { %v767_v20 = vld [vmem:[%s950_s29 + $0x58] sm:$0xff] }
  0x15   : > { %408 = vmatpush.bf16.msra.mxu0 %v773_v4  ;;  %872 = vmatpush.bf16.msra.mxu1 %v773_v4  ;;  %v771_v21 = vld [vmem:[%s950_s29 + $0x78] sm:$0xff] }
  0x16   : > { %873 = vmatpush.bf16.msra.mxu2 %v773_v4  ;;  %874 = vmatpush.bf16.msra.mxu3 %v773_v4 }
  0x19   : > { %409 = vmatpush.bf16.msra.mxu0 %v772_v5  ;;  %875 = vmatpush.bf16.msra.mxu1 %v772_v5 }
  0x1a   : > { %876 = vmatpush.bf16.msra.mxu2 %v772_v5  ;;  %877 = vmatpush.bf16.msra.mxu3 %v772_v5 }
  0x1c   : > { %736 = vmatmul.msk.bf16.vlgmr.msra.gmra.mxu0 %vm349_vm1, %v756_v6  ;;  %740 = vmatmul.msk.bf16.vlgmr.msra.gmra.mxu1 %vm349_vm1, %v760_v7 }
  0x1d   : > { %744 = vmatmul.msk.bf16.vlgmr.msra.gmra.mxu2 %vm349_vm1, %v764_v8  ;;  %748 = vmatmul.msk.bf16.vlgmr.msra.gmra.mxu3 %vm349_vm1, %v768_v9 }
  0x2c   : > { %737 = vmatmul.msk.bf16.gmra.mxu0 %vm349_vm1, %v757_v10  ;;  %741 = vmatmul.msk.bf16.gmra.mxu1 %vm349_vm1, %v761_v11 }
  0x2d   : > { %745 = vmatmul.msk.bf16.gmra.mxu2 %vm349_vm1, %v765_v12  ;;  %749 = vmatmul.msk.bf16.gmra.mxu3 %vm349_vm1, %v769_v13 }
  0x3c   : > { %738 = vmatmul.msk.bf16.gmra.mxu0 %vm349_vm1, %v758_v14  ;;  %742 = vmatmul.msk.bf16.gmra.mxu1 %vm349_vm1, %v762_v15 }
  0x3d   : > { %746 = vmatmul.msk.bf16.gmra.mxu2 %vm349_vm1, %v766_v16  ;;  %750 = vmatmul.msk.bf16.gmra.mxu3 %vm349_vm1, %v770_v17 }
  0x4c   : > { %739 = vmatmul.msk.bf16.gmra.mxu0 %vm349_vm1, %v759_v18  ;;  %743 = vmatmul.msk.bf16.gmra.mxu1 %vm349_vm1, %v763_v19 }
  0x4d   : > { %747 = vmatmul.msk.bf16.gmra.mxu2 %vm349_vm1, %v767_v20  ;;  %751 = vmatmul.msk.bf16.gmra.mxu3 %vm349_vm1, %v771_v21 }
  0x99   : > { %v411_v22 = vpop.f32.mrf.mxu0  ;;  %v431_v23 = vpop.f32.mrf.mxu1 }
  0x9a   : > { %v412_v26 = vadd.f32 %v987_v24, %v411_v22  ;;  %v432_v27 = vadd.f32 %v987_v24, %v431_v23 }
  0x9c   : > { %v495_v34 = vadd.f32 %v994_v25, %v412_v26  ;;  %v503_v35 = vadd.f32 %v994_v25, %v432_v27 }
  0xa0   : > { %v451_v28 = vpop.f32.mrf.mxu2  ;;  %v471_v29 = vpop.f32.mrf.mxu3 }
  0xa1   : > { %v413_v30 = vpop.f32.mrf.mxu0  ;;  %v433_v31 = vpop.f32.mrf.mxu1  ;;  %v452_v40 = vadd.f32 %v987_v24, %v451_v28  ;;  %v472_v41 = vadd.f32 %v987_v24, %v471_v29 }
  0xa2   : > { %v414_v32 = vadd.f32 %v987_v24, %v413_v30  ;;  %v434_v33 = vadd.f32 %v987_v24, %v433_v31 }
  0xa3   : > { %v511_v48 = vadd.f32 %v994_v25, %v452_v40  ;;  %v519_v49 = vadd.f32 %v994_v25, %v472_v41 }
  0xa4   : > { %v496_v36 = vadd.f32 %v994_v25, %v414_v32  ;;  %v504_v37 = vadd.f32 %v994_v25, %v434_v33 }
  0xa6   : > { %v777_v38 = vpack.c.bf16 %v496_v36, %v495_v34  ;;  %v797_v39 = vpack.c.bf16 %v504_v37, %v503_v35 }
  0xa8   : > { %778 = vst [vmem:[%s1009_s10] sm:$0xff] %v777_v38   ;;  %v453_v42 = vpop.f32.mrf.mxu2  ;;  %v473_v43 = vpop.f32.mrf.mxu3 }
  0xa9   : > { %857 = vst [vmem:[%s1009_s10 + $0x20] sm:$0xff] %v797_v39   ;;  %v454_v44 = vadd.f32 %v987_v24, %v453_v42  ;;  %v474_v45 = vadd.f32 %v987_v24, %v473_v43  ;;  %v416_v46 = vpop.f32.mrf.mxu0  ;;  %v436_v47 = vpop.f32.mrf.mxu1 }
  0xaa   : > { %v417_v54 = vadd.f32 %v987_v24, %v416_v46  ;;  %v437_v55 = vadd.f32 %v987_v24, %v436_v47 }
  0xab   : > { %v512_v50 = vadd.f32 %v994_v25, %v454_v44  ;;  %v520_v51 = vadd.f32 %v994_v25, %v474_v45 }
  0xac   : > { %v497_v62 = vadd.f32 %v994_v25, %v417_v54  ;;  %v505_v63 = vadd.f32 %v994_v25, %v437_v55 }
  0xad   : > { %v817_v52 = vpack.c.bf16 %v512_v50, %v511_v48  ;;  %v837_v53 = vpack.c.bf16 %v520_v51, %v519_v49 }
  0xaf   : > { %861 = vst [vmem:[%s1009_s10 + $0x40] sm:$0xff] %v817_v52  }
  0xb0   : > { %865 = vst [vmem:[%s1009_s10 + $0x60] sm:$0xff] %v837_v53   ;;  %v456_v56 = vpop.f32.mrf.mxu2  ;;  %v476_v57 = vpop.f32.mrf.mxu3 }
  0xb1   : > { %v418_v58 = vpop.f32.mrf.mxu0  ;;  %v438_v59 = vpop.f32.mrf.mxu1  ;;  %v457_v4 = vadd.f32 %v987_v24, %v456_v56  ;;  %v477_v5 = vadd.f32 %v987_v24, %v476_v57 }
  0xb2   : > { %v419_v60 = vadd.f32 %v987_v24, %v418_v58  ;;  %v439_v61 = vadd.f32 %v987_v24, %v438_v59 }
  0xb3   : > { %v513_v12 = vadd.f32 %v994_v25, %v457_v4  ;;  %v521_v13 = vadd.f32 %v994_v25, %v477_v5 }
  0xb4   : > { %v498_v0 = vadd.f32 %v994_v25, %v419_v60  ;;  %v506_v1 = vadd.f32 %v994_v25, %v439_v61 }
  0xb6   : > { %v782_v2 = vpack.c.bf16 %v498_v0, %v497_v62  ;;  %v802_v3 = vpack.c.bf16 %v506_v1, %v505_v63 }
  0xb8   : > { %854 = vst [vmem:[%s1009_s10 + $0x8] sm:$0xff] %v782_v2   ;;  %v458_v6 = vpop.f32.mrf.mxu2  ;;  %v478_v7 = vpop.f32.mrf.mxu3 }
  0xb9   : > { %858 = vst [vmem:[%s1009_s10 + $0x28] sm:$0xff] %v802_v3   ;;  %v459_v8 = vadd.f32 %v987_v24, %v458_v6  ;;  %v479_v9 = vadd.f32 %v987_v24, %v478_v7  ;;  %v421_v10 = vpop.f32.mrf.mxu0  ;;  %v441_v11 = vpop.f32.mrf.mxu1 }
  0xba   : > { %v422_v18 = vadd.f32 %v987_v24, %v421_v10  ;;  %v442_v19 = vadd.f32 %v987_v24, %v441_v11 }
  0xbb   : > { %v514_v14 = vadd.f32 %v994_v25, %v459_v8  ;;  %v522_v15 = vadd.f32 %v994_v25, %v479_v9 }
  0xbc   : > { %v499_v28 = vadd.f32 %v994_v25, %v422_v18  ;;  %v507_v29 = vadd.f32 %v994_v25, %v442_v19 }
  0xbd   : > { %v822_v16 = vpack.c.bf16 %v514_v14, %v513_v12  ;;  %v842_v17 = vpack.c.bf16 %v522_v15, %v521_v13 }
  0xbf   : > { %862 = vst [vmem:[%s1009_s10 + $0x48] sm:$0xff] %v822_v16  }
  0xc0   : > { %866 = vst [vmem:[%s1009_s10 + $0x68] sm:$0xff] %v842_v17   ;;  %v461_v20 = vpop.f32.mrf.mxu2  ;;  %v481_v21 = vpop.f32.mrf.mxu3 }
  0xc1   : > { %v423_v22 = vpop.f32.mrf.mxu0  ;;  %v443_v23 = vpop.f32.mrf.mxu1  ;;  %v462_v34 = vadd.f32 %v987_v24, %v461_v20  ;;  %v482_v35 = vadd.f32 %v987_v24, %v481_v21 }
  0xc2   : > { %v424_v26 = vadd.f32 %v987_v24, %v423_v22  ;;  %v444_v27 = vadd.f32 %v987_v24, %v443_v23 }
  0xc3   : > { %v515_v42 = vadd.f32 %v994_v25, %v462_v34  ;;  %v523_v43 = vadd.f32 %v994_v25, %v482_v35 }
  0xc4   : > { %v500_v30 = vadd.f32 %v994_v25, %v424_v26  ;;  %v508_v31 = vadd.f32 %v994_v25, %v444_v27 }
  0xc6   : > { %v787_v32 = vpack.c.bf16 %v500_v30, %v499_v28  ;;  %v807_v33 = vpack.c.bf16 %v508_v31, %v507_v29 }
  0xc8   : > { %855 = vst [vmem:[%s1009_s10 + $0x10] sm:$0xff] %v787_v32   ;;  %v463_v36 = vpop.f32.mrf.mxu2  ;;  %v483_v37 = vpop.f32.mrf.mxu3 }
  0xc9   : > { %859 = vst [vmem:[%s1009_s10 + $0x30] sm:$0xff] %v807_v33   ;;  %v464_v38 = vadd.f32 %v987_v24, %v463_v36  ;;  %v484_v39 = vadd.f32 %v987_v24, %v483_v37  ;;  %v426_v40 = vpop.f32.mrf.mxu0  ;;  %v446_v41 = vpop.f32.mrf.mxu1 }
  0xca   : > { %v427_v48 = vadd.f32 %v987_v24, %v426_v40  ;;  %v447_v49 = vadd.f32 %v987_v24, %v446_v41 }
  0xcb   : > { %v516_v44 = vadd.f32 %v994_v25, %v464_v38  ;;  %v524_v45 = vadd.f32 %v994_v25, %v484_v39 }
  0xcc   : > { %v501_v56 = vadd.f32 %v994_v25, %v427_v48  ;;  %v509_v57 = vadd.f32 %v994_v25, %v447_v49 }
  0xcd   : > { %v827_v46 = vpack.c.bf16 %v516_v44, %v515_v42  ;;  %v847_v47 = vpack.c.bf16 %v524_v45, %v523_v43 }
  0xcf   : > { %863 = vst [vmem:[%s1009_s10 + $0x50] sm:$0xff] %v827_v46  }
  0xd0   : > { %867 = vst [vmem:[%s1009_s10 + $0x70] sm:$0xff] %v847_v47   ;;  %v466_v50 = vpop.f32.mrf.mxu2  ;;  %v486_v51 = vpop.f32.mrf.mxu3 }
  0xd1   : > { %v428_v52 = vpop.f32.mrf.mxu0  ;;  %v448_v53 = vpop.f32.mrf.mxu1  ;;  %v467_v62 = vadd.f32 %v987_v24, %v466_v50  ;;  %v487_v63 = vadd.f32 %v987_v24, %v486_v51 }
  0xd2   : > { %v429_v54 = vadd.f32 %v987_v24, %v428_v52  ;;  %v449_v55 = vadd.f32 %v987_v24, %v448_v53 }
  0xd3   : > { %v517_v4 = vadd.f32 %v994_v25, %v467_v62  ;;  %v525_v5 = vadd.f32 %v994_v25, %v487_v63 }
  0xd4   : > { %v502_v58 = vadd.f32 %v994_v25, %v429_v54  ;;  %v510_v59 = vadd.f32 %v994_v25, %v449_v55 }
  0xd6   : > { %v792_v60 = vpack.c.bf16 %v502_v58, %v501_v56  ;;  %v812_v61 = vpack.c.bf16 %v510_v59, %v509_v57 }
  0xd8   : > { %856 = vst [vmem:[%s1009_s10 + $0x18] sm:$0xff] %v792_v60   ;;  %v468_v0 = vpop.f32.mrf.mxu2  ;;  %v488_v1 = vpop.f32.mrf.mxu3 }
  0xd9   : > { %860 = vst [vmem:[%s1009_s10 + $0x38] sm:$0xff] %v812_v61   ;;  %v469_v2 = vadd.f32 %v987_v24, %v468_v0  ;;  %v489_v3 = vadd.f32 %v987_v24, %v488_v1 }
  0xdb   : > { %v518_v6 = vadd.f32 %v994_v25, %v469_v2  ;;  %v526_v7 = vadd.f32 %v994_v25, %v489_v3 }
  0xdd   : > { %v832_v8 = vpack.c.bf16 %v518_v6, %v517_v4  ;;  %v852_v9 = vpack.c.bf16 %v526_v7, %v525_v5 }
  0xdf   : > { %864 = vst [vmem:[%s1009_s10 + $0x58] sm:$0xff] %v832_v8  }
  0xe0   : > { %868 = vst [vmem:[%s1009_s10 + $0x78] sm:$0xff] %v852_v9  }
  0xe1 PF: > { %s14_s15 = sadd.s32 1, %s894_s15  }
  0xe2   : > { %p11_p4 = scmp.ge.s32.totalorder %s14_s15, 4  }
  0xe4   :  { %13 = sbr.rel (!%p11_p4) target bundleno = 1 (0x1), region = 69 }

// kernel: a_call__.6
= control target key start
LH: loop header
LB: loop body
LE: loop exit
PB: predicated region body
PF: predicated region fallthrough
CT: control target
= control target key end

     0   :  { %s1371_s1 = inlined_call_operand.vmem [shape: bf16[128,512], index: 1, kind: input, shape index: {}]   ;;  %s1372_s0 = inlined_call_operand.vmem [shape: f32[8,128], index: 0, kind: input, shape index: {}]   ;;  %s1373_s4 = inlined_call_operand.vmem [shape: f32[1,128], index: 4, kind: input, shape index: {}]   ;;  %s1374_s3 = inlined_call_operand.vmem [shape: bf16[512,128], index: 3, kind: input, shape index: {}]   ;;  %s1375_s2 = inlined_call_operand.vmem [shape: f32[1,512], index: 2, kind: input, shape index: {}]   ;;  %s1376_s5 = inlined_call_operand.vmem [shape: f32[8,128], index: 5, kind: output, shape index: {}]  }
   0x1   :  { %v791_v0 = vld [vmem:[%s1371_s1 + $0xe0] sm:$0xf]  ;;  %v967_v1 = vld [vmem:[%s1371_s1 + $0xec] sm:$0xf0]  ;;  %v965_v2 = vld [vmem:[%s1371_s1 + $0xe4] sm:$0xf] }
   0x2   :  { %v792_v3 = vor.u32 %v967_v1, %v791_v0  ;;  %v793_v4 = vld [vmem:[%s1371_s1 + $0xf0] sm:$0xf0]  ;;  %v799_v5 = vld [vmem:[%s1371_s1 + $0xe8] sm:$0xf]  ;;  %v968_v6 = vld [vmem:[%s1371_s1 + $0xf4] sm:$0xf0] }
   0x3   :  { %v796_v7 = vor.u32 %v965_v2, %v793_v4  ;;  %v800_v8 = vor.u32 %v968_v6, %v799_v5  ;;  %v966_v9 = vld [vmem:[%s1371_s1 + $0xec] sm:$0xf]  ;;  %v801_v10 = vld [vmem:[%s1371_s1 + $0xf8] sm:$0xf0]  ;;  %v775_v11 = vld [vmem:[%s1371_s1 + $0xc0] sm:$0xf] }
   0x4   :  { %224 = vmatpush.bf16.msra.mxu0 %v792_v3  ;;  %v804_v12 = vor.u32 %v966_v9, %v801_v10  ;;  %v963_v13 = vld [vmem:[%s1371_s1 + $0xcc] sm:$0xf0]  ;;  %v961_v14 = vld [vmem:[%s1371_s1 + $0xc4] sm:$0xf]  ;;  %v777_v15 = vld [vmem:[%s1371_s1 + $0xd0] sm:$0xf0] }
   0x5   :  { %237 = vmatpush.bf16.msra.mxu1 %v796_v7  ;;  %250 = vmatpush.bf16.msra.mxu2 %v800_v8  ;;  %v776_v16 = vor.u32 %v963_v13, %v775_v11  ;;  %v780_v17 = vor.u32 %v961_v14, %v777_v15  ;;  %v783_v18 = vld [vmem:[%s1371_s1 + $0xc8] sm:$0xf]  ;;  %v964_v19 = vld [vmem:[%s1371_s1 + $0xd4] sm:$0xf0]  ;;  %v962_v20 = vld [vmem:[%s1371_s1 + $0xcc] sm:$0xf] }
   0x6   :  { %263 = vmatpush.bf16.msra.mxu3 %v804_v12  ;;  %v784_v21 = vor.u32 %v964_v19, %v783_v18  ;;  %v785_v22 = vld [vmem:[%s1371_s1 + $0xd8] sm:$0xf0]  ;;  %v759_v23 = vld [vmem:[%s1371_s1 + $0xa0] sm:$0xf]  ;;  %v959_v24 = vld [vmem:[%s1371_s1 + $0xac] sm:$0xf0] }
   0x7   :  { %v788_v25 = vor.u32 %v962_v20, %v785_v22  ;;  %v957_v26 = vld [vmem:[%s1371_s1 + $0xa4] sm:$0xf]  ;;  %v761_v27 = vld [vmem:[%s1371_s1 + $0xb0] sm:$0xf0]  ;;  %v767_v28 = vld [vmem:[%s1371_s1 + $0xa8] sm:$0xf]  ;;  %v760_v29 = vor.u32 %v959_v24, %v759_v23 }
   0x8   :  { %225 = vmatpush.bf16.msra.mxu0 %v776_v16  ;;  %v960_v30 = vld [vmem:[%s1371_s1 + $0xb4] sm:$0xf0]  ;;  %v958_v31 = vld [vmem:[%s1371_s1 + $0xac] sm:$0xf]  ;;  %v769_v32 = vld [vmem:[%s1371_s1 + $0xb8] sm:$0xf0]  ;;  %v764_v33 = vor.u32 %v957_v26, %v761_v27 }
   0x9   :  { %238 = vmatpush.bf16.msra.mxu1 %v780_v17  ;;  %251 = vmatpush.bf16.msra.mxu2 %v784_v21  ;;  %v768_v34 = vor.u32 %v960_v30, %v767_v28  ;;  %v743_v35 = vld [vmem:[%s1371_s1 + $0x80] sm:$0xf]  ;;  %v955_v36 = vld [vmem:[%s1371_s1 + $0x8c] sm:$0xf0]  ;;  %v953_v37 = vld [vmem:[%s1371_s1 + $0x84] sm:$0xf]  ;;  %v772_v38 = vor.u32 %v958_v31, %v769_v32 }
   0xa   :  { %264 = vmatpush.bf16.msra.mxu3 %v788_v25  ;;  %v745_v39 = vld [vmem:[%s1371_s1 + $0x90] sm:$0xf0]  ;;  %v751_v40 = vld [vmem:[%s1371_s1 + $0x88] sm:$0xf]  ;;  %v956_v41 = vld [vmem:[%s1371_s1 + $0x94] sm:$0xf0]  ;;  %v744_v44 = vor.u32 %v955_v36, %v743_v35 }
   0xb   :  { %v954_v42 = vld [vmem:[%s1371_s1 + $0x8c] sm:$0xf]  ;;  %v753_v43 = vld [vmem:[%s1371_s1 + $0x98] sm:$0xf0]  ;;  %v748_v45 = vor.u32 %v953_v37, %v745_v39  ;;  %v752_v46 = vor.u32 %v956_v41, %v751_v40  ;;  %v727_v47 = vld [vmem:[%s1371_s1 + $0x60] sm:$0xf] }
   0xc   :  { %226 = vmatpush.bf16.msra.mxu0 %v760_v29  ;;  %v951_v48 = vld [vmem:[%s1371_s1 + $0x6c] sm:$0xf0]  ;;  %v949_v49 = vld [vmem:[%s1371_s1 + $0x64] sm:$0xf]  ;;  %v756_v50 = vor.u32 %v954_v42, %v753_v43  ;;  %v729_v51 = vld [vmem:[%s1371_s1 + $0x70] sm:$0xf0] }
   0xd   :  { %239 = vmatpush.bf16.msra.mxu1 %v764_v33  ;;  %252 = vmatpush.bf16.msra.mxu2 %v768_v34  ;;  %v735_v52 = vld [vmem:[%s1371_s1 + $0x68] sm:$0xf]  ;;  %v952_v53 = vld [vmem:[%s1371_s1 + $0x74] sm:$0xf0]  ;;  %v950_v54 = vld [vmem:[%s1371_s1 + $0x6c] sm:$0xf]  ;;  %v728_v56 = vor.u32 %v951_v48, %v727_v47  ;;  %v732_v57 = vor.u32 %v949_v49, %v729_v51 }
   0xe   :  { %265 = vmatpush.bf16.msra.mxu3 %v772_v38  ;;  %v737_v55 = vld [vmem:[%s1371_s1 + $0x78] sm:$0xf0]  ;;  %v736_v58 = vor.u32 %v952_v53, %v735_v52  ;;  %v711_v59 = vld [vmem:[%s1371_s1 + $0x40] sm:$0xf]  ;;  %v947_v60 = vld [vmem:[%s1371_s1 + $0x4c] sm:$0xf0] }
   0xf   :  { %v945_v61 = vld [vmem:[%s1371_s1 + $0x44] sm:$0xf]  ;;  %v740_v62 = vor.u32 %v950_v54, %v737_v55  ;;  %v713_v63 = vld [vmem:[%s1371_s1 + $0x50] sm:$0xf0]  ;;  %v719_v0 = vld [vmem:[%s1371_s1 + $0x48] sm:$0xf]  ;;  %v712_v4 = vor.u32 %v947_v60, %v711_v59 }
  0x10   :  { %227 = vmatpush.bf16.msra.mxu0 %v744_v44  ;;  %v948_v1 = vld [vmem:[%s1371_s1 + $0x54] sm:$0xf0]  ;;  %v946_v2 = vld [vmem:[%s1371_s1 + $0x4c] sm:$0xf]  ;;  %v721_v3 = vld [vmem:[%s1371_s1 + $0x58] sm:$0xf0]  ;;  %v716_v5 = vor.u32 %v945_v61, %v713_v63 }
  0x11   :  { %240 = vmatpush.bf16.msra.mxu1 %v748_v45  ;;  %253 = vmatpush.bf16.msra.mxu2 %v752_v46  ;;  %v720_v6 = vor.u32 %v948_v1, %v719_v0  ;;  %v695_v7 = vld [vmem:[%s1371_s1 + $0x20] sm:$0xf]  ;;  %v943_v8 = vld [vmem:[%s1371_s1 + $0x2c] sm:$0xf0]  ;;  %v941_v9 = vld [vmem:[%s1371_s1 + $0x24] sm:$0xf]  ;;  %v724_v10 = vor.u32 %v946_v2, %v721_v3 }
  0x12   :  { %266 = vmatpush.bf16.msra.mxu3 %v756_v50  ;;  %v697_v11 = vld [vmem:[%s1371_s1 + $0x30] sm:$0xf0]  ;;  %v703_v12 = vld [vmem:[%s1371_s1 + $0x28] sm:$0xf]  ;;  %v944_v13 = vld [vmem:[%s1371_s1 + $0x34] sm:$0xf0]  ;;  %v696_v16 = vor.u32 %v943_v8, %v695_v7 }
  0x13   :  { %v942_v14 = vld [vmem:[%s1371_s1 + $0x2c] sm:$0xf]  ;;  %v705_v15 = vld [vmem:[%s1371_s1 + $0x38] sm:$0xf0]  ;;  %v700_v17 = vor.u32 %v941_v9, %v697_v11  ;;  %v704_v18 = vor.u32 %v944_v13, %v703_v12  ;;  %v679_v19 = vld [vmem:[%s1371_s1] sm:$0xf] }
  0x14   :  { %228 = vmatpush.bf16.msra.mxu0 %v728_v56  ;;  %v939_v20 = vld [vmem:[%s1371_s1 + $0xc] sm:$0xf0]  ;;  %v937_v21 = vld [vmem:[%s1371_s1 + $0x4] sm:$0xf]  ;;  %v708_v22 = vor.u32 %v942_v14, %v705_v15  ;;  %v681_v23 = vld [vmem:[%s1371_s1 + $0x10] sm:$0xf0] }
  0x15   :  { %241 = vmatpush.bf16.msra.mxu1 %v732_v57  ;;  %254 = vmatpush.bf16.msra.mxu2 %v736_v58  ;;  %v687_v24 = vld [vmem:[%s1371_s1 + $0x8] sm:$0xf]  ;;  %v940_v25 = vld [vmem:[%s1371_s1 + $0x14] sm:$0xf0]  ;;  %v938_v26 = vld [vmem:[%s1371_s1 + $0xc] sm:$0xf]  ;;  %v680_v28 = vor.u32 %v939_v20, %v679_v19  ;;  %v684_v30 = vor.u32 %v937_v21, %v681_v23 }
  0x16   :  { %267 = vmatpush.bf16.msra.mxu3 %v740_v62  ;;  %v689_v27 = vld [vmem:[%s1371_s1 + $0x18] sm:$0xf0]  ;;  %v20_v29 = vld [vmem:[%s1372_s0] sm:$0xff]  ;;  %v688_v31 = vor.u32 %v940_v25, %v687_v24  ;;  %v975_v36 = vld [vmem:[%s1374_s3 + $0x30] sm:$0xff] }
  0x17   :  { %v692_v32 = vor.u32 %v938_v26, %v689_v27  ;;  %v21_v33 = vpack.c.bf16 %v20_v29, %v20_v29  ;;  %v976_v34 = vld [vmem:[%s1374_s3 + $0x38] sm:$0xff]  ;;  %v983_v37 = vld [vmem:[%s1374_s3 + $0x70] sm:$0xff]  ;;  %v974_v40 = vld [vmem:[%s1374_s3 + $0x28] sm:$0xff] }
  0x18   :  { %229 = vmatpush.bf16.msra.mxu0 %v712_v4  ;;  %v984_v35 = vld [vmem:[%s1374_s3 + $0x78] sm:$0xff]  ;;  %v982_v41 = vld [vmem:[%s1374_s3 + $0x68] sm:$0xff]  ;;  %v991_v42 = vld [vmem:[%s1374_s3 + $0xb0] sm:$0xff] }
  0x19   :  { %242 = vmatpush.bf16.msra.mxu1 %v716_v5  ;;  %255 = vmatpush.bf16.msra.mxu2 %v720_v6  ;;  %v992_v38 = vld [vmem:[%s1374_s3 + $0xb8] sm:$0xff]  ;;  %v999_v43 = vld [vmem:[%s1374_s3 + $0xf0] sm:$0xff]  ;;  %v973_v44 = vld [vmem:[%s1374_s3 + $0x20] sm:$0xff] }
  0x1a   :  { %268 = vmatpush.bf16.msra.mxu3 %v724_v10  ;;  %v1000_v39 = vld [vmem:[%s1374_s3 + $0xf8] sm:$0xff]  ;;  %v981_v45 = vld [vmem:[%s1374_s3 + $0x60] sm:$0xff]  ;;  %v990_v46 = vld [vmem:[%s1374_s3 + $0xa8] sm:$0xff] }
  0x1b   :  { %v998_v47 = vld [vmem:[%s1374_s3 + $0xe8] sm:$0xff]  ;;  %v972_v48 = vld [vmem:[%s1374_s3 + $0x18] sm:$0xff]  ;;  %v989_v50 = vld [vmem:[%s1374_s3 + $0xa0] sm:$0xff] }
  0x1c   :  { %230 = vmatpush.bf16.msra.mxu0 %v696_v16  ;;  %v980_v49 = vld [vmem:[%s1374_s3 + $0x58] sm:$0xff]  ;;  %v997_v51 = vld [vmem:[%s1374_s3 + $0xe0] sm:$0xff]  ;;  %v971_v53 = vld [vmem:[%s1374_s3 + $0x10] sm:$0xff] }
  0x1d   :  { %243 = vmatpush.bf16.msra.mxu1 %v700_v17  ;;  %256 = vmatpush.bf16.msra.mxu2 %v704_v18  ;;  %v54_v52 = vld [vmem:[%s1375_s2] sm:$0xf]  ;;  %v979_v54 = vld [vmem:[%s1374_s3 + $0x50] sm:$0xff]  ;;  %v988_v55 = vld [vmem:[%s1374_s3 + $0x98] sm:$0xff] }
  0x1e   :  { %269 = vmatpush.bf16.msra.mxu3 %v708_v22  ;;  %v996_v56 = vld [vmem:[%s1374_s3 + $0xd8] sm:$0xff]  ;;  %v56_v57 = vperm.slane %v54_v52, 0  ;;  %v57_v58 = vperm.slane %v54_v52, 1  ;;  %v970_v59 = vld [vmem:[%s1374_s3 + $0x8] sm:$0xff]  ;;  %v987_v62 = vld [vmem:[%s1374_s3 + $0x90] sm:$0xff]  ;;  %v58_v7 = vperm.slane %v54_v52, 2 }
  0x1f   :  { %v978_v60 = vld [vmem:[%s1374_s3 + $0x48] sm:$0xff]  ;;  %v995_v63 = vld [vmem:[%s1374_s3 + $0xd0] sm:$0xff]  ;;  %v969_v3 = vld [vmem:[%s1374_s3] sm:$0xff]  ;;  %v59_v10 = vperm.slane %v54_v52, 3 }
  0x20   :  { %231 = vmatpush.bf16.msra.mxu0 %v680_v28  ;;  %v977_v4 = vld [vmem:[%s1374_s3 + $0x40] sm:$0xff]  ;;  %v986_v8 = vld [vmem:[%s1374_s3 + $0x88] sm:$0xff] }
  0x21   :  { %244 = vmatpush.bf16.msra.mxu1 %v684_v30  ;;  %257 = vmatpush.bf16.msra.mxu2 %v688_v31  ;;  %v994_v9 = vld [vmem:[%s1374_s3 + $0xc8] sm:$0xff]  ;;  %v985_v15 = vld [vmem:[%s1374_s3 + $0x80] sm:$0xff] }
  0x22   :  { %270 = vmatpush.bf16.msra.mxu3 %v692_v32  ;;  %v993_v16 = vld [vmem:[%s1374_s3 + $0xc0] sm:$0xff] }
  0x23   :  { %232 = vmatmul.bf16.vlgmr.msra.gmra.mxu0 %v21_v33 }
  0x24   :  { %245 = vmatmul.bf16.vlgmr.msra.gmra.mxu1 %v21_v33  ;;  %258 = vmatmul.bf16.vlgmr.msra.gmra.mxu2 %v21_v33 }
  0x25   :  { %271 = vmatmul.bf16.vlgmr.msra.gmra.mxu3 %v21_v33  ;;  %620 = vmatpush.bf16.msrb.mxu0 %v976_v34 }
  0x26   :  { %633 = vmatpush.bf16.msrb.mxu1 %v984_v35  ;;  %646 = vmatpush.bf16.msrb.mxu2 %v992_v38 }
  0x27   :  { %659 = vmatpush.bf16.msrb.mxu3 %v1000_v39 }
  0x29   :  { %621 = vmatpush.bf16.msrb.mxu0 %v975_v36 }
  0x2a   :  { %634 = vmatpush.bf16.msrb.mxu1 %v983_v37  ;;  %647 = vmatpush.bf16.msrb.mxu2 %v991_v42 }
  0x2b   :  { %660 = vmatpush.bf16.msrb.mxu3 %v999_v43 }
  0x2d   :  { %622 = vmatpush.bf16.msrb.mxu0 %v974_v40 }
  0x2e   :  { %635 = vmatpush.bf16.msrb.mxu1 %v982_v41  ;;  %648 = vmatpush.bf16.msrb.mxu2 %v990_v46 }
  0x2f   :  { %661 = vmatpush.bf16.msrb.mxu3 %v998_v47 }
  0x31   :  { %623 = vmatpush.bf16.msrb.mxu0 %v973_v44 }
  0x32   :  { %636 = vmatpush.bf16.msrb.mxu1 %v981_v45  ;;  %649 = vmatpush.bf16.msrb.mxu2 %v989_v50 }
  0x33   :  { %662 = vmatpush.bf16.msrb.mxu3 %v997_v51 }
  0x35   :  { %624 = vmatpush.bf16.msrb.mxu0 %v972_v48 }
  0x36   :  { %637 = vmatpush.bf16.msrb.mxu1 %v980_v49  ;;  %650 = vmatpush.bf16.msrb.mxu2 %v988_v55 }
  0x37   :  { %663 = vmatpush.bf16.msrb.mxu3 %v996_v56 }
  0x39   :  { %625 = vmatpush.bf16.msrb.mxu0 %v971_v53 }
  0x3a   :  { %638 = vmatpush.bf16.msrb.mxu1 %v979_v54  ;;  %651 = vmatpush.bf16.msrb.mxu2 %v987_v62 }
  0x3b   :  { %664 = vmatpush.bf16.msrb.mxu3 %v995_v63 }
  0x3d   :  { %626 = vmatpush.bf16.msrb.mxu0 %v970_v59 }
  0x3e   :  { %639 = vmatpush.bf16.msrb.mxu1 %v978_v60  ;;  %652 = vmatpush.bf16.msrb.mxu2 %v986_v8 }
  0x3f   :  { %665 = vmatpush.bf16.msrb.mxu3 %v994_v9 }
  0x41   :  { %627 = vmatpush.bf16.msrb.mxu0 %v969_v3 }
  0x42   :  { %640 = vmatpush.bf16.msrb.mxu1 %v977_v4  ;;  %653 = vmatpush.bf16.msrb.mxu2 %v985_v15 }
  0x43   :  { %666 = vmatpush.bf16.msrb.mxu3 %v993_v16 }
  0xa0   :  { %v233_v61 = vpop.f32.mrf.mxu0 }
  0xa1   :  { %v1324_v0 = vadd.f32 %v233_v61, %v56_v57  ;;  %v246_v1 = vpop.f32.mrf.mxu1 }
  0xa2   :  { %v1326_v2 = vadd.f32 %v246_v1, %v57_v58 }
  0xa3   :  { %v805_v5 = vmul.f32 -1.442695, %v1324_v0 }
  0xa4   :  { %v806_v6 = vmul.f32 -1.442695, %v1326_v2 }
  0xa5   :  { %1002 = vpow2.f32 %v805_v5 }
  0xa6   :  { %1004 = vpow2.f32 %v806_v6 }
  0xa7   :  { %v259_v11 = vpop.f32.mrf.mxu2 }
  0xa8   :  { %v1342_v12 = vadd.f32 %v259_v11, %v58_v7  ;;  %v272_v13 = vpop.f32.mrf.mxu3  ;;  %v235_v14 = vpop.f32.mrf.mxu0 }
  0xa9   :  { %v1350_v17 = vadd.f32 %v272_v13, %v59_v10  ;;  %v248_v18 = vpop.f32.mrf.mxu1 }
  0xaa   :  { %v807_v19 = vmul.f32 -1.442695, %v1342_v12 }
  0xab   :  { %v1003_v20 = vpop.eup %1002  ;;  %v808_v21 = vmul.f32 -1.442695, %v1350_v17 }
  0xac   :  { %v1005_v22 = vpop.eup %1004  ;;  %v288_v23 = vadd.f32 1.0, %v1003_v20  ;;  %1006 = vpow2.f32 %v807_v19  ;;  %v1001_v19 = vld [vmem:[%s1373_s4] ss:$0 sm:$0xff] }
  0xad   :  { %v289_v24 = vadd.f32 1.0, %v1005_v22  ;;  %1008 = vpow2.f32 %v808_v21 }
  0xae   :  { %1010 = vrcp.f32 %v288_v23  ;;  %v303_v34 = vand.u32 2147483648, %v288_v23  ;;  %vm297_vm2 = vweird.f32 %v288_v23  ;;  %v301_v41 = vand.u32 2147483647, %v288_v23 }
  0xaf   :  { %1012 = vrcp.f32 %v289_v24  ;;  %v261_v25 = vpop.f32.mrf.mxu2  ;;  %v318_v37 = vand.u32 2147483648, %v289_v24  ;;  %vm312_vm0 = vweird.f32 %v289_v24  ;;  %v316_v39 = vand.u32 2147483647, %v289_v24 }
  0xb0   :  { %v274_v26 = vpop.f32.mrf.mxu3  ;;  %v304_v42 = vor.u32 1.1754944e-38, %v303_v34  ;;  %vm302_vm7 = vcmp.eq.f32.partialorder %v301_v41, 8.507059e+37 }
  0xb1   :  { %v319_v46 = vor.u32 1.1754944e-38, %v318_v37  ;;  %vm317_vm6 = vcmp.eq.f32.partialorder %v316_v39, 8.507059e+37 }
  0xb2   :  { %v1007_v27 = vpop.eup %1006 }
  0xb3   :  { %v1009_v28 = vpop.eup %1008  ;;  %v290_v29 = vadd.f32 1.0, %v1007_v27 }
  0xb4   :  { %v1011_v30 = vpop.eup %1010  ;;  %v1354_v31 = vadd.f32 1.0, %v1009_v28 }
  0xb5   :  { %v1013_v32 = vpop.eup %1012  ;;  %v293_v33 = vmul.f32 %v1011_v30, %v288_v23  ;;  %1014 = vrcp.f32 %v290_v29  ;;  %vm298_vm3 = vweird.f32 %v1011_v30  ;;  %v331_v57 = vand.u32 2147483647, %v290_v29 }
  0xb6   :  { %v308_v35 = vmul.f32 %v1013_v32, %v289_v24  ;;  %1016 = vrcp.f32 %v1354_v31  ;;  %vm313_vm1 = vweird.f32 %v1013_v32  ;;  %vm299_vm5 = vmor %vm297_vm2, %vm298_vm3  ;;  %v333_v58 = vand.u32 2147483648, %v290_v29 }
  0xb7   :  { %v294_v36 = vsub.f32 1.0, %v293_v33  ;;  %vm314_vm4 = vmor %vm312_vm0, %vm313_vm1  ;;  %vm327_vm9 = vweird.f32 %v290_v29  ;;  %v346_v63 = vand.u32 2147483647, %v1354_v31  ;;  %v348_v1 = vand.u32 2147483648, %v1354_v31 }
  0xb8   :  { %v309_v38 = vsub.f32 1.0, %v308_v35  ;;  %vm332_vm12 = vcmp.eq.f32.partialorder %v331_v57, 8.507059e+37  ;;  %vm342_vm13 = vweird.f32 %v1354_v31 }
  0xb9   :  { %v295_v40 = vmul.f32 %v1011_v30, %v294_v36  ;;  %v349_v8 = vor.u32 1.1754944e-38, %v348_v1  ;;  %vm347_vm15 = vcmp.eq.f32.partialorder %v346_v63, 8.507059e+37 }
  0xba   :  { %v310_v43 = vmul.f32 %v1013_v32, %v309_v38 }
  0xbb   :  { %v1015_v44 = vpop.eup %1014  ;;  %v296_v45 = vadd.f32 %v1011_v30, %v295_v40 }
  0xbc   :  { %v311_v47 = vadd.f32 %v1013_v32, %v310_v43  ;;  %v323_v48 = vmul.f32 %v1015_v44, %v290_v29  ;;  %v1017_v49 = vpop.eup %1016  ;;  %vm328_vm8 = vweird.f32 %v1015_v44 }
  0xbd   :  { %v300_v50 = vsel %vm299_vm5, %v1011_v30, %v296_v45  ;;  %v338_v54 = vmul.f32 %v1017_v49, %v1354_v31  ;;  %vm343_vm10 = vweird.f32 %v1017_v49  ;;  %vm329_vm11 = vmor %vm327_vm9, %vm328_vm8 }
  0xbe   :  { %v305_v51 = vsel %vm302_vm7, %v304_v42, %v300_v50  ;;  %v315_v52 = vsel %vm314_vm4, %v1013_v32, %v311_v47  ;;  %v324_v53 = vsub.f32 1.0, %v323_v48  ;;  %vm344_vm14 = vmor %vm342_vm13, %vm343_vm10 }
  0xbf   :  { %v352_v55 = vmul.f32 %v305_v51, %v1324_v0  ;;  %v320_v56 = vsel %vm317_vm6, %v319_v46, %v315_v52  ;;  %v339_v61 = vsub.f32 1.0, %v338_v54  ;;  %v334_v0 = vor.u32 1.1754944e-38, %v333_v58 }
  0xc0   :  { %v353_v59 = vmul.f32 %v320_v56, %v1326_v2  ;;  %v325_v60 = vmul.f32 %v1015_v44, %v324_v53 }
  0xc1   :  { %v356_v62 = vpack.c.bf16 %v352_v55, %v352_v55  ;;  %v340_v5 = vmul.f32 %v1017_v49, %v339_v61 }
  0xc2   :  { %v357_v3 = vpack.c.bf16 %v353_v59, %v353_v59  ;;  %v326_v4 = vadd.f32 %v1015_v44, %v325_v60 }
  0xc3   :  { %628 = vmatmul.bf16.vlgmr.msrb.gmra.mxu0 %v356_v62  ;;  %v341_v7 = vadd.f32 %v1017_v49, %v340_v5 }
  0xc4   :  { %v330_v6 = vsel %vm329_vm11, %v1015_v44, %v326_v4  ;;  %641 = vmatmul.bf16.vlgmr.msrb.gmra.mxu1 %v357_v3 }
  0xc5   :  { %v335_v2 = vsel %vm332_vm12, %v334_v0, %v330_v6  ;;  %v345_v10 = vsel %vm344_vm14, %v1017_v49, %v341_v7 }
  0xc6   :  { %v354_v9 = vmul.f32 %v335_v2, %v1342_v12  ;;  %v350_v11 = vsel %vm347_vm15, %v349_v8, %v345_v10 }
  0xc7   :  { %v355_v14 = vmul.f32 %v350_v11, %v1350_v17 }
  0xc8   :  { %v358_v13 = vpack.c.bf16 %v354_v9, %v354_v9 }
  0xc9   :  { %v359_v15 = vpack.c.bf16 %v355_v14, %v355_v14 }
  0xca   :  { %654 = vmatmul.bf16.vlgmr.msrb.gmra.mxu2 %v358_v13 }
  0xcb   :  { %667 = vmatmul.bf16.vlgmr.msrb.gmra.mxu3 %v359_v15 }
 0x140   :  { %v629_v16 = vpop.f32.mrf.mxu0 }
 0x141   :  { %v642_v18 = vpop.f32.mrf.mxu1  ;;  %v630_v20 = vadd.f32 %v1001_v19, %v629_v16 }
 0x143   :  { %v643_v23 = vadd.f32 %v642_v18, %v630_v20 }
 0x148   :  { %v631_v21 = vpop.f32.mrf.mxu0 }
 0x149   :  { %v644_v22 = vpop.f32.mrf.mxu1 }
 0x14d   :  { %v655_v12 = vpop.f32.mrf.mxu2 }
 0x14e   :  { %v656_v24 = vadd.f32 %v655_v12, %v643_v23  ;;  %v668_v25 = vpop.f32.mrf.mxu3 }
 0x150   :  { %v669_v26 = vadd.f32 %v668_v25, %v656_v24 }
 0x152   :  { %672 = vst [vmem:[%s1376_s5] sm:$0xff] %v669_v26 }
 0x155   :  { %v657_v17 = vpop.f32.mrf.mxu2 }
 0x156   :  { %v670_v27 = vpop.f32.mrf.mxu3 }

// kernel: a_call__.8
= control target key start
LH: loop header
LB: loop body
LE: loop exit
PB: predicated region body
PF: predicated region fallthrough
CT: control target
= control target key end

     0   :  { %s1662_s27 = smov 0   ;;  %s1664_s28 = smov 0   ;;  %s2005_s0 = inlined_call_operand.vmem [shape: bf16[2,256,128], index: 0, kind: input, shape index: {}]   ;;  %s2006_s1 = inlined_call_operand.vmem [shape: bf16[2,12,32], index: 1, kind: input, shape index: {}]   ;;  %s2007_s2 = inlined_call_operand.vmem [shape: bf16[32,256], index: 2, kind: input, shape index: {}]   ;;  %s2008_s3 = inlined_call_operand.vmem [shape: f32[1,256], index: 3, kind: input, shape index: {}]   ;;  %s2009_s4 = inlined_call_operand.vmem [shape: bf16[128,128], index: 4, kind: input, shape index: {}]   ;;  %s2010_s5 = inlined_call_operand.vmem [shape: f32[1,128], index: 5, kind: input, shape index: {}, may-alias: {5,7}]   ;;  %s2011_s6 = inlined_call_operand.vmem [shape: bf16[128,128], index: 6, kind: input, shape index: {}]   ;;  %s2012_s7 = inlined_call_operand.vmem [shape: f32[1,128], index: 7, kind: input, shape index: {}, may-alias: {5,7}]   ;;  %s2013_s8 = inlined_call_operand.vmem [shape: bf16[2,256,128], index: 8, kind: output, shape index: {}]  }
   0x1   :  { %s1666_s29 = smov 0   ;;  %s1668_s30 = smov 0  }
   0x2   :  { %s1670_s9 = smov 0  }
   0x3 LB: > { %s27_s10 = sadd.s32 1, %s1607_s29  ;;  %s30_s11 = sadd.s32 1, %s1611_s30  ;;  %s1615_s9 = sphi %s1670_s9, %s18_s9   ;;  %s1611_s30 = sphi %s1668_s30, %s2017_s30   ;;  %s1607_s29 = sphi %s1666_s29, %s2016_s29   ;;  %s1603_s28 = sphi %s1664_s28, %s2015_s28   ;;  %s1599_s27 = sphi %s1662_s27, %s2014_s27  }
   0x4   : > { %p28_p0 = scmp.ge.s32.totalorder %s27_s10, 2  ;;  %p1257_p1 = scmp.ge.s32.totalorder %s1615_s9, 1 }
   0x5   : > { %p293_p2 = scmp.lt.s32.totalorder %s1615_s9, 5 }
   0x6   : > { %s2019_s10 = smov (%p28_p0, %s27_s10), 0  ;;  %s2021_s11 = smov (!%p28_p0, %s30_s11), %s1611_s30 }
   0x7   : > { %p294_p3 = pnand %p1257_p1, %p293_p2  ;;  %p32_p4 = scmp.ge.s32.totalorder %s2021_s11, 2 }
   0x8   : > { %p341_p5 = scmp.lt.s32.totalorder (!%p294_p3), %s1603_s28, 1  ;;  %s1258_s23 = sshll.u32 (!%p294_p3), %s1599_s27, 4 }
   0x9   : > { %s2023_s11 = smov (%p32_p4, %s2021_s11), 0  ;;  %297 = sbr.rel (%p294_p3) target bundleno = 1042 (0x412), region = 52 }
   0xa   : > { %p343_p6 = scmp.lt.s32.totalorder (!%p294_p3), %s1258_s23, 31 }
   0xe   : > { %v1406_v0 = vld [vmem:[%s2007_s2 + $0x14] sm:$0xf]  ;;  %v1282_v1 = vld [vmem:[%s2007_s2 + $0x18] sm:$0xf0]  ;;  %v1280_v4 = vld [vmem:[%s2007_s2 + $0x10] sm:$0xf] }
   0xf   : > { %v1415_v2 = vld [vmem:[%s2009_s4 + $0x38] sm:$0xff]  ;;  %v1285_v3 = vor.u32 %v1406_v0, %v1282_v1  ;;  %v1404_v6 = vld [vmem:[%s2007_s2 + $0x4] sm:$0xf]  ;;  %v1274_v8 = vld [vmem:[%s2007_s2 + $0x8] sm:$0xf0]  ;;  %s2025_s28 = smov (!%p341_p5, %s1603_s28), 1 }
  0x10   : > { %v1407_v5 = vld [vmem:[%s2007_s2 + $0x14] sm:$0xf0]  ;;  %569 = vmatpush.bf16.msra.mxu2 %v1415_v2  ;;  %v1414_v9 = vld [vmem:[%s2009_s4 + $0x30] sm:$0xff]  ;;  %v1272_v10 = vld [vmem:[%s2007_s2] sm:$0xf]  ;;  %v1277_v11 = vor.u32 %v1404_v6, %v1274_v8  ;;  %s1394_s17 = sshll.u32 %s2025_s28, 3 }
  0x11   : > { %v1281_v7 = vor.u32 %v1407_v5, %v1280_v4  ;;  %443 = vmatpush.bf16.msra.mxu3 %v1285_v3  ;;  %v1405_v12 = vld [vmem:[%s2007_s2 + $0x4] sm:$0xf0]  ;;  %s354_s22 = scalar_lea.vmem %s2006_s1, %s1394_s17  ;;  %vm419_vm0 = vcmask 261120   ;;  %v1412_v18 = vld [vmem:[%s2009_s4 + $0x20] sm:$0xff]  ;;  %v1411_v19 = vld [vmem:[%s2009_s4 + $0x18] sm:$0xff]  ;;  %s2027_s23 = smov (!%p343_p6, %s1258_s23), 31 }
  0x12   : > { %v1273_v13 = vor.u32 %v1405_v12, %v1272_v10  ;;  %v1413_v14 = vld [vmem:[%s2009_s4 + $0x28] sm:$0xff]  ;;  %v1268_v15 = vld [vmem:[%s354_s22] sm:$0xf]  ;;  %v1403_v16 = vld [vmem:[%s354_s22] sm:$0x30]  ;;  %s1259_s13 = sshll.u32 %s2025_s28, 5 }
  0x13   : > { %429 = vmatpush.bf16.msra.mxu0 %v1281_v7  ;;  %v1269_v17 = vor.u32 %v1403_v16, %v1268_v15  ;;  %v1410_v20 = vld [vmem:[%s2009_s4 + $0x10] sm:$0xff]  ;;  %s1744_s27 = sadd.s32 %s1259_s13, %s2027_s23  ;;  %v1409_v21 = vld [vmem:[%s2009_s4 + $0x8] sm:$0xff]  ;;  %v1408_v22 = vld [vmem:[%s2009_s4] sm:$0xff]  ;;  %vm909_vm1 = vcmask 1045504   ;;  %vm697_vm2 = vcmask 97280  }
  0x14   : > { %570 = vmatpush.bf16.msra.mxu2 %v1414_v9  ;;  %s1260_s18 = sshll.u32 %s1744_s27, 2  ;;  %v388_v30 = vld [vmem:[%s2008_s3] sm:$0x3] }
  0x15   : > { %444 = vmatpush.bf16.msra.mxu3 %v1277_v11  ;;  %s1755_s28 = scalar_lea.vmem %s2005_s0, %s1260_s18  ;;  %v390_v31 = vperm.slane %v388_v30, 0  ;;  %v391_v32 = vperm.slane %v388_v30, 1  ;;  %v1511_v52 = vld [vmem:[%s2010_s5] ss:$0 sm:$0xff]  ;;  %s1959_s19 = scalar_lea.vmem %s2013_s8, %s1260_s18 }
  0x16   : > { %v1395_v23 = vld [vmem:[%s1755_s28] sm:$0xff]  ;;  %v1396_v24 = vld [vmem:[%s1755_s28 + $0x8] sm:$0xff]  ;;  %v1397_v25 = vld [vmem:[%s1755_s28 + $0x10] sm:$0xff] }
  0x17   : > { %430 = vmatpush.bf16.msra.mxu0 %v1273_v13  ;;  %v1398_v26 = vld [vmem:[%s1755_s28 + $0x18] sm:$0xff]  ;;  %v1399_v27 = vld [vmem:[%s1755_s28 + $0x20] sm:$0xff]  ;;  %v1400_v28 = vld [vmem:[%s1755_s28 + $0x28] sm:$0xff] }
  0x18   : > { %571 = vmatpush.bf16.msra.mxu2 %v1413_v14  ;;  %1287 = vmatmul.msk.bf16.vlgmr.msra.gmra.mxu3 %vm419_vm0, %v1269_v17  ;;  %v1401_v34 = vld [vmem:[%s1755_s28 + $0x30] sm:$0xff]  ;;  %v1402_v49 = vld [vmem:[%s1755_s28 + $0x38] sm:$0xff] }
  0x1a   : > { %1286 = vmatmul.msk.bf16.vlgmr.msra.gmra.mxu0 %vm419_vm0, %v1269_v17 }
  0x1c   : > { %572 = vmatpush.bf16.msra.mxu2 %v1412_v18 }
  0x20   : > { %573 = vmatpush.bf16.msra.mxu2 %v1411_v19 }
  0x24   : > { %574 = vmatpush.bf16.msra.mxu2 %v1410_v20 }
  0x28   : > { %575 = vmatpush.bf16.msra.mxu2 %v1409_v21 }
  0x2c   : > { %576 = vmatpush.bf16.msra.mxu2 %v1408_v22 }
  0x2f   : > { %577 = vmatmul.bf16.vlgmr.msra.gmra.mxu2 %v1395_v23 }
  0x3f   : > { %582 = vmatmul.bf16.gmra.mxu2 %v1396_v24 }
  0x4f   : > { %587 = vmatmul.bf16.gmra.mxu2 %v1397_v25 }
  0x5f   : > { %592 = vmatmul.bf16.gmra.mxu2 %v1398_v26 }
  0x6f   : > { %597 = vmatmul.bf16.gmra.mxu2 %v1399_v27 }
  0x7f   : > { %602 = vmatmul.bf16.gmra.mxu2 %v1400_v28 }
  0x8f   : > { %607 = vmatmul.bf16.gmra.mxu2 %v1401_v34 }
  0x97   : > { %v432_v29 = vpop.f32.mrf.mxu0 }
  0x98   : > { %v433_v35 = vadd.f32 %v432_v29, %v390_v31 }
  0x9b   : > { %v446_v33 = vpop.f32.mrf.mxu3 }
  0x9c   : > { %v447_v36 = vadd.f32 %v446_v33, %v391_v32 }
  0x9e   : > { %v451_v38 = vpack.c.bf16 %v447_v36, %v433_v35 }
  0x9f   : > { %v434_v37 = vpop.f32.mrf.mxu0  ;;  %612 = vmatmul.bf16.gmra.mxu2 %v1402_v49 }
  0xa0   : > { %v435_v39 = vadd.f32 %v434_v37, %v390_v31  ;;  %v628_v43 = vunpack.c.l.b16 %v451_v38  ;;  %v882_v44 = vunpack.c.h.b16 %v451_v38 }
  0xa3   : > { %v448_v40 = vpop.f32.mrf.mxu3 }
  0xa4   : > { %v449_v41 = vadd.f32 %v448_v40, %v391_v32 }
  0xa6   : > { %v452_v42 = vpack.c.bf16 %v449_v41, %v435_v39 }
  0xa8   : > { %v629_v45 = vunpack.c.l.b16 %v452_v42  ;;  %v883_v46 = vunpack.c.h.b16 %v452_v42 }
  0xaa   : > { %v630_v47 = vpack.c.b16 %v629_v45, %v628_v43  ;;  %v884_v48 = vpack.c.b16 %v883_v46, %v882_v44 }
  0xac   : > { %639 = vmatpush.bf16.xpose.msrb.mxu3 %v630_v47  ;;  %v911_v50 = vsel %vm909_vm1, %v884_v48, 0 }
  0xad   : > { %920 = vmatpush.bf16.msrb.mxu0 %v911_v50 }
  0xb2   : > { %v578_v51 = vpop.f32.mrf.mxu2 }
  0xb3   : > { %v579_v54 = vadd.f32 %v1511_v52, %v578_v51 }
  0xba   : > { %v580_v53 = vpop.f32.mrf.mxu2 }
  0xbb   : > { %v581_v55 = vadd.f32 %v1511_v52, %v580_v53 }
  0xbd   : > { %v618_v56 = vpack.c.bf16 %v581_v55, %v579_v54 }
  0xbf   : > { %640 = vmatmul.bf16.vlgmr.msrb.gmra.mxu3 %v618_v56 }
  0xc2   : > { %v583_v57 = vpop.f32.mrf.mxu2 }
  0xc3   : > { %v584_v59 = vadd.f32 %v1511_v52, %v583_v57 }
  0xca   : > { %v585_v58 = vpop.f32.mrf.mxu2 }
  0xcb   : > { %v586_v60 = vadd.f32 %v1511_v52, %v585_v58 }
  0xcd   : > { %v619_v61 = vpack.c.bf16 %v586_v60, %v584_v59 }
  0xcf   : > { %645 = vmatmul.bf16.gmra.mxu3 %v619_v61 }
  0xd2   : > { %v588_v62 = vpop.f32.mrf.mxu2 }
  0xd3   : > { %v589_v0 = vadd.f32 %v1511_v52, %v588_v62 }
  0xda   : > { %v590_v63 = vpop.f32.mrf.mxu2 }
  0xdb   : > { %v591_v1 = vadd.f32 %v1511_v52, %v590_v63 }
  0xdd   : > { %v620_v2 = vpack.c.bf16 %v591_v1, %v589_v0 }
  0xdf   : > { %650 = vmatmul.bf16.gmra.mxu3 %v620_v2 }
  0xe2   : > { %v593_v3 = vpop.f32.mrf.mxu2 }
  0xe3   : > { %v594_v5 = vadd.f32 %v1511_v52, %v593_v3 }
  0xea   : > { %v595_v4 = vpop.f32.mrf.mxu2 }
  0xeb   : > { %v596_v6 = vadd.f32 %v1511_v52, %v595_v4 }
  0xed   : > { %v621_v7 = vpack.c.bf16 %v596_v6, %v594_v5 }
  0xef   : > { %655 = vmatmul.bf16.gmra.mxu3 %v621_v7 }
  0xf2   : > { %v598_v8 = vpop.f32.mrf.mxu2 }
  0xf3   : > { %v599_v9 = vadd.f32 %v1511_v52, %v598_v8 }
  0xfa   : > { %v600_v10 = vpop.f32.mrf.mxu2 }
  0xfb   : > { %v601_v11 = vadd.f32 %v1511_v52, %v600_v10 }
  0xfd   : > { %v622_v12 = vpack.c.bf16 %v601_v11, %v599_v9 }
  0xff   : > { %660 = vmatmul.bf16.gmra.mxu3 %v622_v12 }
 0x102   : > { %v603_v13 = vpop.f32.mrf.mxu2 }
 0x103   : > { %v604_v14 = vadd.f32 %v1511_v52, %v603_v13 }
 0x10a   : > { %v605_v15 = vpop.f32.mrf.mxu2 }
 0x10b   : > { %v606_v16 = vadd.f32 %v1511_v52, %v605_v15 }
 0x10d   : > { %v623_v17 = vpack.c.bf16 %v606_v16, %v604_v14 }
 0x10f   : > { %665 = vmatmul.bf16.gmra.mxu3 %v623_v17 }
 0x112   : > { %v608_v18 = vpop.f32.mrf.mxu2 }
 0x113   : > { %v609_v19 = vadd.f32 %v1511_v52, %v608_v18 }
 0x11a   : > { %v610_v20 = vpop.f32.mrf.mxu2 }
 0x11b   : > { %v611_v21 = vadd.f32 %v1511_v52, %v610_v20 }
 0x11d   : > { %v624_v22 = vpack.c.bf16 %v611_v21, %v609_v19 }
 0x11f   : > { %670 = vmatmul.bf16.gmra.mxu3 %v624_v22 }
 0x122   : > { %v613_v23 = vpop.f32.mrf.mxu2 }
 0x123   : > { %v614_v24 = vadd.f32 %v1511_v52, %v613_v23 }
 0x12a   : > { %v615_v25 = vpop.f32.mrf.mxu2 }
 0x12b   : > { %v616_v26 = vadd.f32 %v1511_v52, %v615_v25 }
 0x12d   : > { %v625_v27 = vpack.c.bf16 %v616_v26, %v614_v24 }
 0x12f   : > { %675 = vmatmul.bf16.gmra.mxu3 %v625_v27 }
 0x142   : > { %v641_v28 = vpop.f32.mrf.mxu3 }
 0x143   : > { %v681_v29 = vmul.f32 0.088388346, %v641_v28 }
 0x145   : > { %v698_v30 = vsel %vm697_vm2, %v681_v29, -inf }
 0x146   : > { %699 = vmax.xlane.f32.xlu0 %v698_v30 }
 0x14a   : > { %v643_v31 = vpop.f32.mrf.mxu3 }
 0x14b   : > { %v682_v32 = vmul.f32 0.088388346, %v643_v31 }
 0x14d   : > { %v701_v33 = vsel %vm697_vm2, %v682_v32, -inf }
 0x14e   : > { %702 = vmax.xlane.f32.xlu0 %v701_v33 }
 0x152   : > { %v646_v34 = vpop.f32.mrf.mxu3 }
 0x153   : > { %v683_v35 = vmul.f32 0.088388346, %v646_v34 }
 0x155   : > { %v704_v36 = vsel %vm697_vm2, %v683_v35, -inf }
 0x156   : > { %705 = vmax.xlane.f32.xlu1 %v704_v36 }
 0x15a   : > { %v648_v37 = vpop.f32.mrf.mxu3 }
 0x15b   : > { %v684_v38 = vmul.f32 0.088388346, %v648_v37 }
 0x15d   : > { %v707_v39 = vsel %vm697_vm2, %v684_v38, -inf }
 0x15e   : > { %708 = vmax.xlane.f32.xlu1 %v707_v39 }
 0x162   : > { %v651_v40 = vpop.f32.mrf.mxu3 }
 0x163   : > { %v685_v41 = vmul.f32 0.088388346, %v651_v40 }
 0x165   : > { %v710_v42 = vsel %vm697_vm2, %v685_v41, -inf }
 0x166   : > { %711 = vmax.xlane.f32.xlu2 %v710_v42 }
 0x16a   : > { %v653_v43 = vpop.f32.mrf.mxu3 }
 0x16b   : > { %v1779_v44 = vmul.f32 0.088388346, %v653_v43 }
 0x16d   : > { %v713_v45 = vsel %vm697_vm2, %v1779_v44, -inf }
 0x16e   : > { %714 = vmax.xlane.f32.xlu2 %v713_v45 }
 0x172   : > { %v656_v46 = vpop.f32.mrf.mxu3 }
 0x173   : > { %v1783_v47 = vmul.f32 0.088388346, %v656_v46 }
 0x175   : > { %v716_v48 = vsel %vm697_vm2, %v1783_v47, -inf }
 0x176   : > { %717 = vmax.xlane.f32.xlu0 %v716_v48 }
 0x17a   : > { %v658_v49 = vpop.f32.mrf.mxu3 }
 0x17b   : > { %v1787_v50 = vmul.f32 0.088388346, %v658_v49 }
 0x17d   : > { %v719_v51 = vsel %vm697_vm2, %v1787_v50, -inf }
 0x17e   : > { %720 = vmax.xlane.f32.xlu1 %v719_v51 }
 0x182   : > { %v661_v52 = vpop.f32.mrf.mxu3 }
 0x183   : > { %v1791_v53 = vmul.f32 0.088388346, %v661_v52 }
 0x185   : > { %v722_v54 = vsel %vm697_vm2, %v1791_v53, -inf }
 0x186   : > { %723 = vmax.xlane.f32.xlu1 %v722_v54 }
 0x18a   : > { %v663_v57 = vpop.f32.mrf.mxu3 }
 0x18b   : > { %v1799_v1 = vmul.f32 0.088388346, %v663_v57 }
 0x18d   : > { %v725_v7 = vsel %vm697_vm2, %v1799_v1, -inf }
 0x192   : > { %v666_v63 = vpop.f32.mrf.mxu3 }
 0x193   : > { %v1807_v9 = vmul.f32 0.088388346, %v666_v63 }
 0x195   : > { %v728_v15 = vsel %vm697_vm2, %v1807_v9, -inf }
 0x19a   : > { %v668_v8 = vpop.f32.mrf.mxu3 }
 0x19b   : > { %v1815_v17 = vmul.f32 0.088388346, %v668_v8 }
 0x19d   : > { %v731_v23 = vsel %vm697_vm2, %v1815_v17, -inf }
 0x1a2   : > { %v671_v16 = vpop.f32.mrf.mxu3 }
 0x1a3   : > { %v1823_v24 = vmul.f32 0.088388346, %v671_v16 }
 0x1a5   : > { %v734_v31 = vsel %vm697_vm2, %v1823_v24, -inf }
 0x1aa   : > { %v673_v26 = vpop.f32.mrf.mxu3 }
 0x1b2   : > { %v676_v36 = vpop.f32.mrf.mxu3 }
 0x1b3   : > { %v1841_v40 = vmul.f32 0.088388346, %v676_v36  ;;  %v1421_v36 = vld [vmem:[%s2011_s6 + $0x28] sm:$0xff] }
 0x1b5   : > { %v740_v46 = vsel %vm697_vm2, %v1841_v40, -inf }
 0x1b9   : > { %v700_v55 = vpop.xlane.xlu0 %699 }
 0x1ba   : > { %v746_v56 = vsub.f32 %v681_v29, %v700_v55 }
 0x1bc   : > { %v762_v58 = vmul.f32 1.442695, %v746_v56 }
 0x1be   : > { %1513 = vpow2.f32 %v762_v58 }
 0x1c1   : > { %v703_v59 = vpop.xlane.xlu0 %702 }
 0x1c2   : > { %v747_v60 = vsub.f32 %v682_v32, %v703_v59  ;;  %v1832_v32 = vmul.f32 0.088388346, %v673_v26 }
 0x1c4   : > { %v1795_v61 = vpop.eup %1513  ;;  %v764_v62 = vmul.f32 1.442695, %v747_v60  ;;  %v737_v39 = vsel %vm697_vm2, %v1832_v32, -inf }
 0x1c5   : > { %v794_v0 = vsel %vm697_vm2, %v1795_v61, 0.0 }
 0x1c6   : > { %1515 = vpow2.f32 %v764_v62  ;;  %795 = vadd.xlane.f32.xlu2 %v794_v0 }
 0x1c9   : > { %v706_v2 = vpop.xlane.xlu1 %705 }
 0x1ca   : > { %v748_v3 = vsub.f32 %v683_v35, %v706_v2 }
 0x1cc   : > { %v1801_v4 = vpop.eup %1515  ;;  %v766_v5 = vmul.f32 1.442695, %v748_v3 }
 0x1cd   : > { %v797_v6 = vsel %vm697_vm2, %v1801_v4, 0.0 }
 0x1ce   : > { %1517 = vpow2.f32 %v766_v5  ;;  %798 = vadd.xlane.f32.xlu0 %v797_v6  ;;  %726 = vmax.xlane.f32.xlu2 %v725_v7 }
 0x1d1   : > { %v709_v10 = vpop.xlane.xlu1 %708 }
 0x1d2   : > { %v749_v11 = vsub.f32 %v684_v38, %v709_v10 }
 0x1d4   : > { %v1809_v12 = vpop.eup %1517  ;;  %v768_v13 = vmul.f32 1.442695, %v749_v11 }
 0x1d5   : > { %v800_v14 = vsel %vm697_vm2, %v1809_v12, 0.0 }
 0x1d6   : > { %1519 = vpow2.f32 %v768_v13  ;;  %801 = vadd.xlane.f32.xlu0 %v800_v14  ;;  %729 = vmax.xlane.f32.xlu2 %v728_v15 }
 0x1d9   : > { %v712_v18 = vpop.xlane.xlu2 %711 }
 0x1da   : > { %v750_v19 = vsub.f32 %v685_v41, %v712_v18 }
 0x1dc   : > { %v1817_v20 = vpop.eup %1519  ;;  %v770_v21 = vmul.f32 1.442695, %v750_v19 }
 0x1dd   : > { %v803_v22 = vsel %vm697_vm2, %v1817_v20, 0.0 }
 0x1de   : > { %1521 = vpow2.f32 %v770_v21  ;;  %804 = vadd.xlane.f32.xlu1 %v803_v22  ;;  %732 = vmax.xlane.f32.xlu0 %v731_v23 }
 0x1e1   : > { %v715_v25 = vpop.xlane.xlu2 %714 }
 0x1e2   : > { %v751_v27 = vsub.f32 %v1779_v44, %v715_v25 }
 0x1e4   : > { %v1826_v28 = vpop.eup %1521  ;;  %v772_v29 = vmul.f32 1.442695, %v751_v27 }
 0x1e5   : > { %v806_v30 = vsel %vm697_vm2, %v1826_v28, 0.0 }
 0x1e6   : > { %1523 = vpow2.f32 %v772_v29  ;;  %807 = vadd.xlane.f32.xlu1 %v806_v30  ;;  %735 = vmax.xlane.f32.xlu0 %v734_v31  ;;  %v1423_v30 = vld [vmem:[%s2011_s6 + $0x38] sm:$0xff] }
 0x1e7   : > { %1038 = vmatpush.bf16.msra.mxu1 %v1423_v30 }
 0x1e9   : > { %v718_v33 = vpop.xlane.xlu0 %717 }
 0x1ea   : > { %v752_v34 = vsub.f32 %v1783_v47, %v718_v33  ;;  %v678_v47 = vpop.f32.mrf.mxu3 }
 0x1eb   : > { %v1850_v48 = vmul.f32 0.088388346, %v678_v47 }
 0x1ec   : > { %v1835_v35 = vpop.eup %1523  ;;  %v774_v37 = vmul.f32 1.442695, %v752_v34 }
 0x1ed   : > { %v809_v38 = vsel %vm697_vm2, %v1835_v35, 0.0  ;;  %v743_v55 = vsel %vm697_vm2, %v1850_v48, -inf }
 0x1ee   : > { %1525 = vpow2.f32 %v774_v37  ;;  %810 = vadd.xlane.f32.xlu2 %v809_v38  ;;  %738 = vmax.xlane.f32.xlu1 %v737_v39 }
 0x1f1   : > { %v721_v41 = vpop.xlane.xlu1 %720 }
 0x1f2   : > { %v753_v42 = vsub.f32 %v1787_v50, %v721_v41 }
 0x1f4   : > { %v1844_v43 = vpop.eup %1525  ;;  %v776_v44 = vmul.f32 1.442695, %v753_v42 }
 0x1f5   : > { %v812_v45 = vsel %vm697_vm2, %v1844_v43, 0.0 }
 0x1f6   : > { %1527 = vpow2.f32 %v776_v44  ;;  %813 = vadd.xlane.f32.xlu2 %v812_v45  ;;  %741 = vmax.xlane.f32.xlu1 %v740_v46 }
 0x1f9   : > { %v724_v49 = vpop.xlane.xlu1 %723 }
 0x1fa   : > { %v754_v51 = vsub.f32 %v1791_v53, %v724_v49 }
 0x1fc   : > { %v1853_v52 = vpop.eup %1527  ;;  %v778_v50 = vmul.f32 1.442695, %v754_v51 }
 0x1fd   : > { %v815_v54 = vsel %vm697_vm2, %v1853_v52, 0.0 }
 0x1fe   : > { %1529 = vpow2.f32 %v778_v50  ;;  %816 = vadd.xlane.f32.xlu0 %v815_v54  ;;  %744 = vmax.xlane.f32.xlu2 %v743_v55 }
 0x204   : > { %v1859_v56 = vpop.eup %1529 }
 0x205   : > { %v818_v57 = vsel %vm697_vm2, %v1859_v56, 0.0 }
 0x206   : > { %819 = vadd.xlane.f32.xlu0 %v818_v57 }
 0x239   : > { %v796_v58 = vpop.xlane.xlu2 %795 }
 0x23a   : > { %1531 = vrcp.f32 %v796_v58 }
 0x240   : > { %v1532_v63 = vpop.eup %1531 }
 0x241   : > { %v799_v53 = vpop.xlane.xlu0 %798  ;;  %v727_v59 = vpop.xlane.xlu2 %726  ;;  %v858_v2 = vmul.f32 %v1532_v63, %v1795_v61  ;;  %v1420_v63 = vld [vmem:[%s2011_s6 + $0x20] sm:$0xff] }
 0x242   : > { %1533 = vrcp.f32 %v799_v53  ;;  %v755_v60 = vsub.f32 %v1799_v1, %v727_v59 }
 0x244   : > { %v780_v62 = vmul.f32 1.442695, %v755_v60 }
 0x246   : > { %1535 = vpow2.f32 %v780_v62 }
 0x248   : > { %v1534_v0 = vpop.eup %1533 }
 0x249   : > { %v859_v3 = vmul.f32 %v1534_v0, %v1801_v4  ;;  %v802_v5 = vpop.xlane.xlu0 %801  ;;  %v730_v6 = vpop.xlane.xlu2 %729  ;;  %v1417_v0 = vld [vmem:[%s2011_s6 + $0x8] sm:$0xff] }
 0x24a   : > { %v756_v7 = vsub.f32 %v1807_v9, %v730_v6 }
 0x24b   : > { %v874_v8 = vpack.c.bf16 %v859_v3, %v858_v2  ;;  %v1416_v2 = vld [vmem:[%s2011_s6] sm:$0xff] }
 0x24c   : > { %v1867_v10 = vpop.eup %1535  ;;  %v782_v11 = vmul.f32 1.442695, %v756_v7 }
 0x24d   : > { %1352 = vmatmul.msk.bf16.vlgmr.msrb.gmra.mxu0 %vm697_vm2, %v874_v8  ;;  %v821_v1 = vsel %vm697_vm2, %v1867_v10, 0.0 }
 0x24e   : > { %1537 = vpow2.f32 %v782_v11  ;;  %822 = vadd.xlane.f32.xlu1 %v821_v1 }
 0x24f   : > { %1539 = vrcp.f32 %v802_v5 }
 0x251   : > { %v805_v13 = vpop.xlane.xlu1 %804  ;;  %v733_v61 = vpop.xlane.xlu0 %732 }
 0x252   : > { %1541 = vrcp.f32 %v805_v13  ;;  %v757_v4 = vsub.f32 %v1815_v17, %v733_v61 }
 0x254   : > { %v1873_v14 = vpop.eup %1537  ;;  %v784_v9 = vmul.f32 1.442695, %v757_v4 }
 0x255   : > { %v824_v15 = vsel %vm697_vm2, %v1873_v14, 0.0  ;;  %v1540_v16 = vpop.eup %1539 }
 0x256   : > { %1543 = vpow2.f32 %v784_v9  ;;  %825 = vadd.xlane.f32.xlu2 %v824_v15  ;;  %v860_v22 = vmul.f32 %v1540_v16, %v1809_v12  ;;  %v1422_v12 = vld [vmem:[%s2011_s6 + $0x30] sm:$0xff] }
 0x257   : > { %1039 = vmatpush.bf16.msra.mxu1 %v1422_v12 }
 0x258   : > { %v1542_v18 = vpop.eup %1541 }
 0x259   : > { %v808_v19 = vpop.xlane.xlu1 %807  ;;  %v736_v21 = vpop.xlane.xlu0 %735  ;;  %v861_v23 = vmul.f32 %v1542_v18, %v1817_v20 }
 0x25a   : > { %v758_v25 = vsub.f32 %v1823_v24, %v736_v21 }
 0x25b   : > { %v875_v26 = vpack.c.bf16 %v861_v23, %v860_v22  ;;  %1040 = vmatpush.bf16.msra.mxu1 %v1421_v36 }
 0x25c   : > { %v1880_v17 = vpop.eup %1543  ;;  %v786_v27 = vmul.f32 1.442695, %v758_v25 }
 0x25d   : > { %1353 = vmatmul.msk.bf16.gmra.mxu0 %vm697_vm2, %v875_v26  ;;  %v827_v29 = vsel %vm697_vm2, %v1880_v17, 0.0 }
 0x25e   : > { %1545 = vpow2.f32 %v786_v27  ;;  %828 = vadd.xlane.f32.xlu0 %v827_v29 }
 0x25f   : > { %1547 = vrcp.f32 %v808_v19  ;;  %1041 = vmatpush.bf16.msra.mxu1 %v1420_v63 }
 0x261   : > { %v811_v20 = vpop.xlane.xlu2 %810  ;;  %v739_v24 = vpop.xlane.xlu1 %738 }
 0x262   : > { %1549 = vrcp.f32 %v811_v20  ;;  %v759_v31 = vsub.f32 %v1832_v32, %v739_v24 }
 0x264   : > { %v1892_v33 = vpop.eup %1545  ;;  %v788_v34 = vmul.f32 1.442695, %v759_v31 }
 0x265   : > { %v830_v37 = vsel %vm697_vm2, %v1892_v33, 0.0  ;;  %v1548_v38 = vpop.eup %1547 }
 0x266   : > { %1551 = vpow2.f32 %v788_v34  ;;  %831 = vadd.xlane.f32.xlu1 %v830_v37  ;;  %v862_v32 = vmul.f32 %v1548_v38, %v1826_v28 }
 0x268   : > { %v1550_v39 = vpop.eup %1549 }
 0x269   : > { %v814_v41 = vpop.xlane.xlu2 %813  ;;  %v742_v42 = vpop.xlane.xlu1 %741  ;;  %v863_v44 = vmul.f32 %v1550_v39, %v1835_v35 }
 0x26a   : > { %v760_v45 = vsub.f32 %v1841_v40, %v742_v42 }
 0x26b   : > { %v876_v46 = vpack.c.bf16 %v863_v44, %v862_v32 }
 0x26c   : > { %v1902_v47 = vpop.eup %1551  ;;  %v790_v49 = vmul.f32 1.442695, %v760_v45 }
 0x26d   : > { %1354 = vmatmul.msk.bf16.gmra.mxu0 %vm697_vm2, %v876_v46  ;;  %v833_v51 = vsel %vm697_vm2, %v1902_v47, 0.0 }
 0x26e   : > { %1553 = vpow2.f32 %v790_v49  ;;  %834 = vadd.xlane.f32.xlu2 %v833_v51  ;;  %v1949_v49 = vld [vmem:[%s2012_s7] ss:$0 sm:$0xff] }
 0x26f   : > { %1555 = vrcp.f32 %v814_v41  ;;  %v366_v51 = vld [vmem:[%s1755_s28] sm:$0xff]  }
 0x271   : > { %v817_v50 = vpop.xlane.xlu0 %816  ;;  %v745_v54 = vpop.xlane.xlu2 %744 }
 0x272   : > { %1557 = vrcp.f32 %v817_v50  ;;  %v761_v28 = vsub.f32 %v1850_v48, %v745_v54  ;;  %v1087_v54 = vunpack.c.l.bf16 %v366_v51 }
 0x274   : > { %v1908_v35 = vpop.eup %1553  ;;  %v792_v40 = vmul.f32 1.442695, %v761_v28  ;;  %v1088_v28 = vunpack.c.h.bf16 %v366_v51 }
 0x275   : > { %v836_v55 = vsel %vm697_vm2, %v1908_v35, 0.0  ;;  %v1556_v57 = vpop.eup %1555 }
 0x276   : > { %1559 = vpow2.f32 %v792_v40  ;;  %837 = vadd.xlane.f32.xlu0 %v836_v55  ;;  %v864_v53 = vmul.f32 %v1556_v57, %v1844_v43  ;;  %v1419_v43 = vld [vmem:[%s2011_s6 + $0x18] sm:$0xff] }
 0x277   : > { %1042 = vmatpush.bf16.msra.mxu1 %v1419_v43 }
 0x278   : > { %v1558_v58 = vpop.eup %1557 }
 0x279   : > { %v865_v59 = vmul.f32 %v1558_v58, %v1853_v52  ;;  %v1418_v52 = vld [vmem:[%s2011_s6 + $0x10] sm:$0xff]  ;;  %v820_v3 = vpop.xlane.xlu0 %819 }
 0x27a   : > { %1561 = vrcp.f32 %v820_v3 }
 0x27b   : > { %v877_v60 = vpack.c.bf16 %v865_v59, %v864_v53  ;;  %1043 = vmatpush.bf16.msra.mxu1 %v1418_v52 }
 0x27c   : > { %v1914_v62 = vpop.eup %1559 }
 0x27d   : > { %1355 = vmatmul.msk.bf16.gmra.mxu0 %vm697_vm2, %v877_v60  ;;  %v839_v48 = vsel %vm697_vm2, %v1914_v62, 0.0 }
 0x27e   : > { %840 = vadd.xlane.f32.xlu1 %v839_v48  ;;  %v368_v48 = vld [vmem:[%s1755_s28 + $0x8] sm:$0xff]  }
 0x27f   : > { %1044 = vmatpush.bf16.msra.mxu1 %v1417_v0  ;;  %v1089_v43 = vunpack.c.l.bf16 %v368_v48  ;;  %v1090_v52 = vunpack.c.h.bf16 %v368_v48 }
 0x280   : > { %v1562_v6 = vpop.eup %1561 }
 0x281   : > { %v866_v8 = vmul.f32 %v1562_v6, %v1859_v56 }
 0x283   : > { %1045 = vmatpush.bf16.msra.mxu1 %v1416_v2 }
 0x2c1   : > { %v823_v5 = vpop.xlane.xlu1 %822 }
 0x2c2   : > { %1563 = vrcp.f32 %v823_v5 }
 0x2c8   : > { %v1564_v7 = vpop.eup %1563 }
 0x2c9   : > { %v867_v11 = vmul.f32 %v1564_v7, %v1867_v10  ;;  %v826_v61 = vpop.xlane.xlu2 %825 }
 0x2ca   : > { %v922_v1 = vpop.f32.mrf.mxu0  ;;  %1565 = vrcp.f32 %v826_v61 }
 0x2cb   : > { %v878_v13 = vpack.c.bf16 %v867_v11, %v866_v8 }
 0x2cd   : > { %1356 = vmatmul.msk.bf16.gmra.mxu0 %vm697_vm2, %v878_v13  ;;  %v370_v13 = vld [vmem:[%s1755_s28 + $0x10] sm:$0xff]  }
 0x2d0   : > { %v1566_v16 = vpop.eup %1565 }
 0x2d1   : > { %v829_v4 = vpop.xlane.xlu0 %828  ;;  %v868_v19 = vmul.f32 %v1566_v16, %v1873_v14 }
 0x2d2   : > { %1567 = vrcp.f32 %v829_v4  ;;  %v924_v9 = vpop.f32.mrf.mxu0  ;;  %v1091_v4 = vunpack.c.l.bf16 %v370_v13 }
 0x2d3   : > { %v962_v15 = vpack.c.bf16 %v924_v9, %v922_v1  ;;  %v1092_v9 = vunpack.c.h.bf16 %v370_v13 }
 0x2d5   : > { %1046 = vmatmul.bf16.vlgmr.msra.gmra.mxu1 %v962_v15 }
 0x2d8   : > { %v1568_v18 = vpop.eup %1567 }
 0x2d9   : > { %v869_v21 = vmul.f32 %v1568_v18, %v1880_v17  ;;  %v832_v10 = vpop.xlane.xlu1 %831 }
 0x2da   : > { %v927_v56 = vpop.f32.mrf.mxu0  ;;  %1569 = vrcp.f32 %v832_v10 }
 0x2db   : > { %v879_v22 = vpack.c.bf16 %v869_v21, %v868_v19 }
 0x2dd   : > { %1357 = vmatmul.msk.bf16.gmra.mxu0 %vm697_vm2, %v879_v22 }
 0x2e0   : > { %v1570_v27 = vpop.eup %1569 }
 0x2e1   : > { %v835_v23 = vpop.xlane.xlu2 %834  ;;  %v870_v30 = vmul.f32 %v1570_v27, %v1892_v33 }
 0x2e2   : > { %1571 = vrcp.f32 %v835_v23  ;;  %v929_v25 = vpop.f32.mrf.mxu0 }
 0x2e3   : > { %v963_v26 = vpack.c.bf16 %v929_v25, %v927_v56  ;;  %v372_v25 = vld [vmem:[%s1755_s28 + $0x18] sm:$0xff]  }
 0x2e4   : > { %v1093_v27 = vunpack.c.l.bf16 %v372_v25 }
 0x2e5   : > { %1051 = vmatmul.bf16.gmra.mxu1 %v963_v26 }
 0x2e8   : > { %v1572_v29 = vpop.eup %1571 }
 0x2e9   : > { %v871_v12 = vmul.f32 %v1572_v29, %v1902_v47  ;;  %v838_v17 = vpop.xlane.xlu0 %837  ;;  %v1094_v29 = vunpack.c.h.bf16 %v372_v25 }
 0x2ea   : > { %v932_v14 = vpop.f32.mrf.mxu0  ;;  %1573 = vrcp.f32 %v838_v17 }
 0x2eb   : > { %v880_v20 = vpack.c.bf16 %v871_v12, %v870_v30 }
 0x2ed   : > { %1358 = vmatmul.msk.bf16.gmra.mxu0 %vm697_vm2, %v880_v20 }
 0x2f0   : > { %v1574_v36 = vpop.eup %1573 }
 0x2f1   : > { %v841_v24 = vpop.xlane.xlu1 %840  ;;  %v872_v38 = vmul.f32 %v1574_v36, %v1908_v35 }
 0x2f2   : > { %1575 = vrcp.f32 %v841_v24  ;;  %v934_v31 = vpop.f32.mrf.mxu0 }
 0x2f3   : > { %v964_v34 = vpack.c.bf16 %v934_v31, %v932_v14  ;;  %v374_v31 = vld [vmem:[%s1755_s28 + $0x20] sm:$0xff]  }
 0x2f4   : > { %v1095_v36 = vunpack.c.l.bf16 %v374_v31 }
 0x2f5   : > { %1056 = vmatmul.bf16.gmra.mxu1 %v964_v34 }
 0x2f8   : > { %v1576_v37 = vpop.eup %1575 }
 0x2f9   : > { %v873_v33 = vmul.f32 %v1576_v37, %v1914_v62  ;;  %v1096_v37 = vunpack.c.h.bf16 %v374_v31 }
 0x2fa   : > { %v937_v39 = vpop.f32.mrf.mxu0 }
 0x2fb   : > { %v881_v41 = vpack.c.bf16 %v873_v33, %v872_v38 }
 0x2fd   : > { %1359 = vmatmul.msk.bf16.gmra.mxu0 %vm697_vm2, %v881_v41 }
 0x302   : > { %v939_v42 = vpop.f32.mrf.mxu0 }
 0x303   : > { %v965_v32 = vpack.c.bf16 %v939_v42, %v937_v39 }
 0x305   : > { %1061 = vmatmul.bf16.gmra.mxu1 %v965_v32 }
 0x34a   : > { %v942_v44 = vpop.f32.mrf.mxu0 }
 0x352   : > { %v944_v45 = vpop.f32.mrf.mxu0  ;;  %v1047_v46 = vpop.f32.mrf.mxu1 }
 0x353   : > { %v966_v47 = vpack.c.bf16 %v944_v45, %v942_v44  ;;  %v1048_v50 = vadd.f32 %v1949_v49, %v1047_v46  ;;  %v376_v44 = vld [vmem:[%s1755_s28 + $0x28] sm:$0xff]  }
 0x354   : > { %v1097_v46 = vunpack.c.l.bf16 %v376_v44 }
 0x355   : > { %1066 = vmatmul.bf16.gmra.mxu1 %v966_v47  ;;  %v1103_v57 = vadd.f32 %v1087_v54, %v1048_v50  ;;  %v1098_v47 = vunpack.c.h.bf16 %v376_v44 }
 0x35a   : > { %v947_v35 = vpop.f32.mrf.mxu0  ;;  %v1049_v40 = vpop.f32.mrf.mxu1 }
 0x35b   : > { %v1050_v55 = vadd.f32 %v1949_v49, %v1049_v40 }
 0x35d   : > { %v1104_v58 = vadd.f32 %v1088_v28, %v1050_v55  ;;  %v378_v55 = vld [vmem:[%s1755_s28 + $0x30] sm:$0xff]  }
 0x35f   : > { %v1427_v53 = vpack.c.bf16 %v1104_v58, %v1103_v57  ;;  %v1099_v58 = vunpack.c.l.bf16 %v378_v55 }
 0x361   : > { %1428 = vst [vmem:[%s1959_s19] sm:$0xff] %v1427_v53   ;;  %v1100_v53 = vunpack.c.h.bf16 %v378_v55 }
 0x362   : > { %v949_v59 = vpop.f32.mrf.mxu0  ;;  %v1052_v60 = vpop.f32.mrf.mxu1 }
 0x363   : > { %v967_v62 = vpack.c.bf16 %v949_v59, %v947_v35  ;;  %v1053_v63 = vadd.f32 %v1949_v49, %v1052_v60 }
 0x365   : > { %1071 = vmatmul.bf16.gmra.mxu1 %v967_v62  ;;  %v1105_v5 = vadd.f32 %v1089_v43, %v1053_v63 }
 0x36a   : > { %v952_v0 = vpop.f32.mrf.mxu0  ;;  %v1054_v2 = vpop.f32.mrf.mxu1 }
 0x36b   : > { %v1055_v3 = vadd.f32 %v1949_v49, %v1054_v2 }
 0x36d   : > { %v1106_v6 = vadd.f32 %v1090_v52, %v1055_v3  ;;  %v380_v52 = vld [vmem:[%s1755_s28 + $0x38] sm:$0xff]  }
 0x36e   : > { %v1101_v2 = vunpack.c.l.bf16 %v380_v52  ;;  %v1102_v3 = vunpack.c.h.bf16 %v380_v52 }
 0x36f   : > { %v1432_v7 = vpack.c.bf16 %v1106_v6, %v1105_v5 }
 0x371   : > { %1464 = vst [vmem:[%s1959_s19 + $0x8] sm:$0xff] %v1432_v7  }
 0x372   : > { %v954_v8 = vpop.f32.mrf.mxu0  ;;  %v1057_v11 = vpop.f32.mrf.mxu1 }
 0x373   : > { %v968_v1 = vpack.c.bf16 %v954_v8, %v952_v0  ;;  %v1058_v61 = vadd.f32 %v1949_v49, %v1057_v11 }
 0x375   : > { %1076 = vmatmul.bf16.gmra.mxu1 %v968_v1  ;;  %v1107_v19 = vadd.f32 %v1091_v4, %v1058_v61 }
 0x37a   : > { %v957_v15 = vpop.f32.mrf.mxu0  ;;  %v1059_v16 = vpop.f32.mrf.mxu1 }
 0x37b   : > { %v1060_v18 = vadd.f32 %v1949_v49, %v1059_v16 }
 0x37d   : > { %v1108_v21 = vadd.f32 %v1092_v9, %v1060_v18 }
 0x37f   : > { %v1437_v56 = vpack.c.bf16 %v1108_v21, %v1107_v19 }
 0x381   : > { %1465 = vst [vmem:[%s1959_s19 + $0x10] sm:$0xff] %v1437_v56  }
 0x382   : > { %v959_v22 = vpop.f32.mrf.mxu0  ;;  %v1062_v10 = vpop.f32.mrf.mxu1 }
 0x383   : > { %v969_v23 = vpack.c.bf16 %v959_v22, %v957_v15  ;;  %v1063_v26 = vadd.f32 %v1949_v49, %v1062_v10 }
 0x385   : > { %1081 = vmatmul.bf16.gmra.mxu1 %v969_v23  ;;  %v1109_v14 = vadd.f32 %v1093_v27, %v1063_v26 }
 0x38a   : > { %v1064_v30 = vpop.f32.mrf.mxu1 }
 0x38b   : > { %v1065_v12 = vadd.f32 %v1949_v49, %v1064_v30 }
 0x38d   : > { %v1110_v20 = vadd.f32 %v1094_v29, %v1065_v12 }
 0x38f   : > { %v1442_v17 = vpack.c.bf16 %v1110_v20, %v1109_v14 }
 0x391   : > { %1466 = vst [vmem:[%s1959_s19 + $0x18] sm:$0xff] %v1442_v17  }
 0x3d2   : > { %v1067_v24 = vpop.f32.mrf.mxu1 }
 0x3d3   : > { %v1068_v34 = vadd.f32 %v1949_v49, %v1067_v24 }
 0x3d5   : > { %v1111_v39 = vadd.f32 %v1095_v36, %v1068_v34 }
 0x3da   : > { %v1069_v38 = vpop.f32.mrf.mxu1 }
 0x3db   : > { %v1070_v33 = vadd.f32 %v1949_v49, %v1069_v38 }
 0x3dd   : > { %v1112_v41 = vadd.f32 %v1096_v37, %v1070_v33 }
 0x3df   : > { %v1447_v42 = vpack.c.bf16 %v1112_v41, %v1111_v39 }
 0x3e1   : > { %1467 = vst [vmem:[%s1959_s19 + $0x20] sm:$0xff] %v1447_v42  }
 0x3e2   : > { %v1072_v32 = vpop.f32.mrf.mxu1 }
 0x3e3   : > { %v1073_v45 = vadd.f32 %v1949_v49, %v1072_v32 }
 0x3e5   : > { %v1113_v54 = vadd.f32 %v1097_v46, %v1073_v45 }
 0x3ea   : > { %v1074_v51 = vpop.f32.mrf.mxu1 }
 0x3eb   : > { %v1075_v50 = vadd.f32 %v1949_v49, %v1074_v51 }
 0x3ed   : > { %v1114_v28 = vadd.f32 %v1098_v47, %v1075_v50 }
 0x3ef   : > { %v1452_v35 = vpack.c.bf16 %v1114_v28, %v1113_v54 }
 0x3f1   : > { %1468 = vst [vmem:[%s1959_s19 + $0x28] sm:$0xff] %v1452_v35  }
 0x3f2   : > { %v1077_v40 = vpop.f32.mrf.mxu1 }
 0x3f3   : > { %v1078_v57 = vadd.f32 %v1949_v49, %v1077_v40 }
 0x3f5   : > { %v1115_v62 = vadd.f32 %v1099_v58, %v1078_v57 }
 0x3fa   : > { %v1079_v59 = vpop.f32.mrf.mxu1 }
 0x3fb   : > { %v1080_v60 = vadd.f32 %v1949_v49, %v1079_v59 }
 0x3fd   : > { %v1116_v48 = vadd.f32 %v1100_v53, %v1080_v60 }
 0x3ff   : > { %v1457_v63 = vpack.c.bf16 %v1116_v48, %v1115_v62 }
 0x401   : > { %1469 = vst [vmem:[%s1959_s19 + $0x30] sm:$0xff] %v1457_v63  }
 0x402   : > { %v1082_v43 = vpop.f32.mrf.mxu1 }
 0x403   : > { %v1083_v0 = vadd.f32 %v1949_v49, %v1082_v43 }
 0x405   : > { %v1117_v7 = vadd.f32 %v1101_v2, %v1083_v0 }
 0x40a   : > { %v1084_v5 = vpop.f32.mrf.mxu1 }
 0x40b   : > { %v1085_v6 = vadd.f32 %v1949_v49, %v1084_v5 }
 0x40d   : > { %v1118_v8 = vadd.f32 %v1102_v3, %v1085_v6 }
 0x40f   : > { %v1462_v11 = vpack.c.bf16 %v1118_v8, %v1117_v7 }
 0x411   : > { %1470 = vst [vmem:[%s1959_s19 + $0x38] sm:$0xff] %v1462_v11  }
 0x412 PF: > { %s18_s9 = sadd.s32 1, %s1615_s9   ;;  %s2014_s27 = smov %s1607_s29 }
 0x413   : > { %p15_p7 = scmp.ge.s32.totalorder %s18_s9, 6   ;;  %s2015_s28 = smov %s1611_s30 }
 0x414   : > { %s2016_s29 = smov %s2019_s10  ;;  %s2017_s30 = smov %s2023_s11 }
 0x415   :  { %17 = sbr.rel (!%p15_p7) target bundleno = 3 (0x3), region = 85 }

// kernel: a_call__.9
= control target key start
LH: loop header
LB: loop body
LE: loop exit
PB: predicated region body
PF: predicated region fallthrough
CT: control target
= control target key end

     0   :  { %s6273_s12 = smov 0   ;;  %s7708_s0 = inlined_call_operand.vmem [shape: bf16[2,18,18,128], index: 0, kind: input, shape index: {}]   ;;  %s7709_s1 = inlined_call_operand.vmem [shape: bf16[1152,128], index: 1, kind: input, shape index: {}]   ;;  %s7710_s2 = inlined_call_operand.vmem [shape: f32[1,128], index: 2, kind: input, shape index: {}]   ;;  %s7711_s3 = inlined_call_operand.vmem [shape: f32[2,256,128], index: 3, kind: output, shape index: {}]  }
   0x1 LB: > { %s5295_s13 = sadd.s32 4294967295, %s6251_s12   ;;  %p5299_p0 = scmp.ge.s32.totalorder %s6251_s12, 1  ;;  %s6251_s12 = sphi %s6273_s12, %s13_s12  }
   0x2   : > { %p137_p1 = scmp.lt.s32.totalorder %s6251_s12, 3 }
   0x4   : > { %p138_p2 = pnand %p5299_p0, %p137_p1 }
   0x6   : > { %141 = sbr.rel (%p138_p2) target bundleno = 752 (0x2f0), region = 32 }
   0xb   : > { %v6113_v0 = vld [vmem:[%s7709_s1 + $0x38] sm:$0xff]  ;;  %v6112_v1 = vld [vmem:[%s7709_s1 + $0x30] sm:$0xff]  ;;  %v6111_v2 = vld [vmem:[%s7709_s1 + $0x28] sm:$0xff]  ;;  %p161_p3 = scmp.lt.s32.totalorder %s5295_s13, 1  ;;  %vm628_vm0 = vsmask.f32 3328 }
   0xc   : > { %6210 = vmatpush.bf16.msra.mxu1 %v6113_v0  ;;  %6211 = vmatpush.bf16.msra.mxu2 %v6113_v0  ;;  %v6110_v3 = vld [vmem:[%s7709_s1 + $0x20] sm:$0xff]  ;;  %v6109_v4 = vld [vmem:[%s7709_s1 + $0x18] sm:$0xff]  ;;  %v6108_v5 = vld [vmem:[%s7709_s1 + $0x10] sm:$0xff]  ;;  %vm629_vm1 = vsmask.f32 7440  ;;  %vm1424_vm2 = vcmask 1042432  }
   0xd   : > { %6212 = vmatpush.bf16.msra.mxu3 %v6113_v0  ;;  %427 = vmatpush.bf16.msra.mxu0 %v6113_v0  ;;  %s7735_s13 = smov (!%p161_p3, %s5295_s13), 1  ;;  %v6107_v6 = vld [vmem:[%s7709_s1 + $0x8] sm:$0xff]  ;;  %v6106_v7 = vld [vmem:[%s7709_s1] sm:$0xff]  ;;  %v6129_v8 = vld [vmem:[%s7709_s1 + $0xb8] sm:$0xff]  ;;  %vm1425_vm3 = vcmask 1046532  }
   0xe   : > { %s6234_s28 = smul.u32 216, %s7735_s13  ;;  %v6153_v9 = vld [vmem:[%s7709_s1 + $0xf8] sm:$0xff]  ;;  %v6128_v16 = vld [vmem:[%s7709_s1 + $0xb0] sm:$0xff]  ;;  %v6127_v20 = vld [vmem:[%s7709_s1 + $0xa8] sm:$0xff]  ;;  %s6089_s17 = sshll.u32 %s7735_s13, 8 }
   0xf   : > { %v6121_v14 = vld [vmem:[%s7709_s1 + $0x78] sm:$0xff]  ;;  %v6152_v17 = vld [vmem:[%s7709_s1 + $0xf0] sm:$0xff]  ;;  %v6151_v21 = vld [vmem:[%s7709_s1 + $0xe8] sm:$0xff]  ;;  %s7456_s21 = scalar_lea.vmem %s7711_s3, %s6089_s17 }
  0x10   : > { %6213 = vmatpush.bf16.msra.mxu1 %v6112_v1  ;;  %6214 = vmatpush.bf16.msra.mxu2 %v6112_v1  ;;  %s6315_s6 = scalar_lea.vmem %s7708_s0, %s6234_s28  ;;  %v6161_v15 = vld [vmem:[%s7709_s1 + $0x138] sm:$0xff]  ;;  %v6120_v18 = vld [vmem:[%s7709_s1 + $0x70] sm:$0xff]  ;;  %v6119_v22 = vld [vmem:[%s7709_s1 + $0x68] sm:$0xff] }
  0x11   : > { %6215 = vmatpush.bf16.msra.mxu3 %v6112_v1  ;;  %428 = vmatpush.bf16.msra.mxu0 %v6112_v1  ;;  %v6094_v10 = vld [vmem:[%s6315_s6 + $0x30] sm:$0xff]  ;;  %v6098_v11 = vld [vmem:[%s6315_s6 + $0x60] sm:$0xff]  ;;  %v6159_v23 = vld [vmem:[%s7709_s1 + $0x128] sm:$0xff] }
  0x12   : > { %v6102_v12 = vld [vmem:[%s6315_s6 + $0x90] sm:$0xff]  ;;  %v6090_v13 = vld [vmem:[%s6315_s6] sm:$0xff]  ;;  %v6125_v28 = vld [vmem:[%s7709_s1 + $0x98] sm:$0xff] }
  0x13   : > { %v6160_v19 = vld [vmem:[%s7709_s1 + $0x130] sm:$0xff]  ;;  %v6126_v24 = vld [vmem:[%s7709_s1 + $0xa0] sm:$0xff]  ;;  %v6149_v29 = vld [vmem:[%s7709_s1 + $0xd8] sm:$0xff] }
  0x14   : > { %6216 = vmatpush.bf16.msra.mxu1 %v6111_v2  ;;  %6217 = vmatpush.bf16.msra.mxu2 %v6111_v2  ;;  %v6150_v25 = vld [vmem:[%s7709_s1 + $0xe0] sm:$0xff]  ;;  %v6099_v31 = vld [vmem:[%s6315_s6 + $0x6c] sm:$0xff]  ;;  %v6117_v34 = vld [vmem:[%s7709_s1 + $0x58] sm:$0xff] }
  0x15   : > { %6218 = vmatpush.bf16.msra.mxu3 %v6111_v2  ;;  %429 = vmatpush.bf16.msra.mxu0 %v6111_v2  ;;  %v6118_v26 = vld [vmem:[%s7709_s1 + $0x60] sm:$0xff]  ;;  %v6091_v33 = vld [vmem:[%s6315_s6 + $0xc] sm:$0xff]  ;;  %v6157_v35 = vld [vmem:[%s7709_s1 + $0x118] sm:$0xff] }
  0x16   : > { %v6158_v27 = vld [vmem:[%s7709_s1 + $0x120] sm:$0xff]  ;;  %v6124_v36 = vld [vmem:[%s7709_s1 + $0x90] sm:$0xff]  ;;  %v6123_v40 = vld [vmem:[%s7709_s1 + $0x88] sm:$0xff] }
  0x17   : > { %v6095_v30 = vld [vmem:[%s6315_s6 + $0x3c] sm:$0xff]  ;;  %v6148_v37 = vld [vmem:[%s7709_s1 + $0xd0] sm:$0xff]  ;;  %v6147_v41 = vld [vmem:[%s7709_s1 + $0xc8] sm:$0xff] }
  0x18   : > { %6219 = vmatpush.bf16.msra.mxu1 %v6110_v3  ;;  %6220 = vmatpush.bf16.msra.mxu2 %v6110_v3  ;;  %v6103_v32 = vld [vmem:[%s6315_s6 + $0x9c] sm:$0xff]  ;;  %v6116_v38 = vld [vmem:[%s7709_s1 + $0x50] sm:$0xff]  ;;  %v6115_v42 = vld [vmem:[%s7709_s1 + $0x48] sm:$0xff] }
  0x19   : > { %6221 = vmatpush.bf16.msra.mxu3 %v6110_v3  ;;  %430 = vmatpush.bf16.msra.mxu0 %v6110_v3  ;;  %v6156_v39 = vld [vmem:[%s7709_s1 + $0x110] sm:$0xff]  ;;  %v6155_v43 = vld [vmem:[%s7709_s1 + $0x108] sm:$0xff]  ;;  %v6122_v44 = vld [vmem:[%s7709_s1 + $0x80] sm:$0xff] }
  0x1a   : > { %v6146_v45 = vld [vmem:[%s7709_s1 + $0xc0] sm:$0xff]  ;;  %v6096_v48 = vld [vmem:[%s6315_s6 + $0x48] sm:$0xff]  ;;  %v6100_v49 = vld [vmem:[%s6315_s6 + $0x78] sm:$0xff] }
  0x1b   : > { %v6114_v46 = vld [vmem:[%s7709_s1 + $0x40] sm:$0xff]  ;;  %v6104_v50 = vld [vmem:[%s6315_s6 + $0xa8] sm:$0xff]  ;;  %v6092_v51 = vld [vmem:[%s6315_s6 + $0x18] sm:$0xff] }
  0x1c   : > { %6222 = vmatpush.bf16.msra.mxu1 %v6109_v4  ;;  %6223 = vmatpush.bf16.msra.mxu2 %v6109_v4  ;;  %v6154_v47 = vld [vmem:[%s7709_s1 + $0x100] sm:$0xff]  ;;  %v6193_v54 = vld [vmem:[%s7709_s1 + $0x1b8] sm:$0xff]  ;;  %v5607_v57 = vld [vmem:[%s6315_s6 + $0xc] sm:$0xf] }
  0x1d   : > { %6224 = vmatpush.bf16.msra.mxu3 %v6109_v4  ;;  %431 = vmatpush.bf16.msra.mxu0 %v6109_v4  ;;  %v580_v52 = vld [vmem:[%s6315_s6] sm:$0xf]  ;;  %v581_v53 = vld [vmem:[%s6315_s6 + $0x4] sm:$0xf]  ;;  %v6201_v55 = vld [vmem:[%s7709_s1 + $0x1f8] sm:$0xff]  ;;  %v2279_v0 = vshrl.u32 %v5607_v57, 16 }
  0x1e   : > { %v6169_v56 = vld [vmem:[%s7709_s1 + $0x178] sm:$0xff]  ;;  %v5608_v58 = vld [vmem:[%s6315_s6 + $0x10] sm:$0xf]  ;;  %v632_v60 = vshrl.u32 %v580_v52, 16  ;;  %v635_v61 = vshll.u32 %v580_v52, 16  ;;  %v641_v62 = vshll.u32 %v581_v53, 16  ;;  %vm6459_vm4 = vmor %vm628_vm0, %vm629_vm1 }
  0x1f   : > { %v6209_v59 = vld [vmem:[%s7709_s1 + $0x238] sm:$0xff]  ;;  %v645_v63 = vshrl.u32 %v581_v53, 16  ;;  %v2282_v1 = vshll.u32 %v5607_v57, 16  ;;  %v2288_v2 = vshll.u32 %v5608_v58, 16  ;;  %v2292_v3 = vshrl.u32 %v5608_v58, 16  ;;  %vm6466_vm5 = vmor %vm1424_vm2, %vm1425_vm3 }
  0x20   : > { %6225 = vmatpush.bf16.msra.mxu1 %v6108_v5  ;;  %6226 = vmatpush.bf16.msra.mxu2 %v6108_v5  ;;  %v582_v4 = vld [vmem:[%s6315_s6 + $0x8] sm:$0x1]  ;;  %v585_v57 = vld [vmem:[%s6315_s6 + $0x14] sm:$0x1] }
  0x21   : > { %6227 = vmatpush.bf16.msra.mxu3 %v6108_v5  ;;  %432 = vmatpush.bf16.msra.mxu0 %v6108_v5  ;;  %v634_v5 = vrot.slane %v632_v60, 4 }
  0x24   : > { %6228 = vmatpush.bf16.msra.mxu1 %v6107_v6  ;;  %6229 = vmatpush.bf16.msra.mxu2 %v6107_v6 }
  0x25   : > { %6230 = vmatpush.bf16.msra.mxu3 %v6107_v6  ;;  %433 = vmatpush.bf16.msra.mxu0 %v6107_v6  ;;  %v637_v6 = vrot.slane %v635_v61, 5 }
  0x28   : > { %6231 = vmatpush.bf16.msra.mxu1 %v6106_v7  ;;  %6232 = vmatpush.bf16.msra.mxu2 %v6106_v7 }
  0x29   : > { %6233 = vmatpush.bf16.msra.mxu3 %v6106_v7  ;;  %434 = vmatpush.bf16.msra.mxu0 %v6106_v7  ;;  %v6442_v7 = vrot.slane %v641_v62, 5  ;;  %v1332_v62 = vld [vmem:[%s6315_s6 + $0x10] sm:$0xf] }
  0x2b   : > { %455 = vmatmul.bf16.vlgmr.msra.gmra.mxu1 %v6094_v10  ;;  %475 = vmatmul.bf16.vlgmr.msra.gmra.mxu2 %v6098_v11  ;;  %v2281_v10 = vrot.slane %v2279_v0, 4  ;;  %v2284_v11 = vrot.slane %v2282_v1, 5 }
  0x2c   : > { %1699 = vmatpush.bf16.msrb.mxu2 %v6129_v8  ;;  %495 = vmatmul.bf16.vlgmr.msra.gmra.mxu3 %v6102_v12  ;;  %v647_v8 = vrot.slane %v645_v63, 4  ;;  %v6445_v12 = vrot.slane %v2288_v2, 5 }
  0x2d   : > { %2077 = vmatpush.bf16.msrb.mxu3 %v6153_v9  ;;  %435 = vmatmul.bf16.vlgmr.msra.gmra.mxu0 %v6090_v13  ;;  %v1329_v9 = vld [vmem:[%s6315_s6 + $0x4] sm:$0xf]  ;;  %v2294_v13 = vrot.slane %v2292_v3, 4 }
  0x2e   : > { %1175 = vmatpush.bf16.msrb.mxu1 %v6121_v14  ;;  %2822 = vmatpush.bf16.msrb.mxu0 %v6161_v15  ;;  %v651_v14 = vshll.u32 %v582_v4, 16  ;;  %v5609_v15 = vld [vmem:[%s6315_s6 + $0x14] sm:$0x1] }
  0x30   : > { %1700 = vmatpush.bf16.msrb.mxu2 %v6128_v16  ;;  %v1429_v16 = vrot.slane %v1329_v9, 5 }
  0x31   : > { %2078 = vmatpush.bf16.msrb.mxu3 %v6152_v17  ;;  %v6097_v17 = vld [vmem:[%s6315_s6 + $0x54] sm:$0xff] }
  0x32   : > { %1176 = vmatpush.bf16.msrb.mxu1 %v6120_v18  ;;  %2823 = vmatpush.bf16.msrb.mxu0 %v6160_v19  ;;  %v6101_v18 = vld [vmem:[%s6315_s6 + $0x84] sm:$0xff]  ;;  %v638_v19 = vor.u32 %v637_v6, %v634_v5 }
  0x34   : > { %1701 = vmatpush.bf16.msrb.mxu2 %v6127_v20  ;;  %v648_v20 = vor.u32 %v647_v8, %v6442_v7 }
  0x35   : > { %2079 = vmatpush.bf16.msrb.mxu3 %v6151_v21  ;;  %v1328_v21 = vld [vmem:[%s6315_s6] sm:$0xe] }
  0x36   : > { %1177 = vmatpush.bf16.msrb.mxu1 %v6119_v22  ;;  %2824 = vmatpush.bf16.msrb.mxu0 %v6159_v23  ;;  %v6105_v22 = vld [vmem:[%s6315_s6 + $0xb4] sm:$0xff]  ;;  %v6093_v23 = vld [vmem:[%s6315_s6 + $0x24] sm:$0xff] }
  0x38   : > { %1702 = vmatpush.bf16.msrb.mxu2 %v6126_v24  ;;  %v2285_v24 = vor.u32 %v2284_v11, %v2281_v10  ;;  %v675_v10 = vshll.u32 %v585_v57, 16 }
  0x39   : > { %2080 = vmatpush.bf16.msrb.mxu3 %v6150_v25  ;;  %v2295_v25 = vor.u32 %v2294_v13, %v6445_v12  ;;  %v1436_v13 = vrot.slane %v1332_v62, 5  ;;  %v588_v62 = vld [vmem:[%s6315_s6 + $0x20] sm:$0x1] }
  0x3a   : > { %1178 = vmatpush.bf16.msrb.mxu1 %v6118_v26  ;;  %2825 = vmatpush.bf16.msrb.mxu0 %v6158_v27  ;;  %v2298_v26 = vshll.u32 %v5609_v15, 16  ;;  %v653_v27 = vrot.slane %v651_v14, 5  ;;  %v1331_v14 = vld [vmem:[%s6315_s6 + $0xc] sm:$0xe] }
  0x3b   : > { %460 = vmatmul.bf16.gmra.mxu1 %v6095_v30  ;;  %480 = vmatmul.bf16.gmra.mxu2 %v6099_v31  ;;  %v1431_v30 = vrot.slane %v1429_v16, 4  ;;  %v583_v31 = vld [vmem:[%s6315_s6 + $0xc] sm:$0xf] }
  0x3c   : > { %1703 = vmatpush.bf16.msrb.mxu2 %v6125_v28  ;;  %500 = vmatmul.bf16.gmra.mxu3 %v6103_v32  ;;  %v1330_v28 = vld [vmem:[%s6315_s6 + $0x8] sm:$0x1]  ;;  %v584_v32 = vld [vmem:[%s6315_s6 + $0x10] sm:$0xf] }
  0x3d   : > { %2081 = vmatpush.bf16.msrb.mxu3 %v6149_v29  ;;  %440 = vmatmul.bf16.gmra.mxu0 %v6091_v33  ;;  %v5431_v29 = vrot.slane %v1328_v21, 9  ;;  %v6130_v21 = vld [vmem:[%s6315_s6 + $0xc] sm:$0xff] }
  0x3e   : > { %1179 = vmatpush.bf16.msrb.mxu1 %v6117_v34  ;;  %2826 = vmatpush.bf16.msrb.mxu0 %v6157_v35  ;;  %v639_v34 = vrot.slane %v638_v19, 4  ;;  %v649_v35 = vrot.slane %v648_v20, 4  ;;  %v1333_v20 = vld [vmem:[%s6315_s6 + $0x14] sm:$0x1] }
  0x3f   : > { %v1430_v52 = vsel %vm6466_vm5, %v5431_v29, %v1429_v16 }
  0x40   : > { %1704 = vmatpush.bf16.msrb.mxu2 %v6124_v36  ;;  %v5610_v36 = vld [vmem:[%s6315_s6 + $0x18] sm:$0xf]  ;;  %v654_v53 = vsel %vm6459_vm4, %v649_v35, %v653_v27  ;;  %v1587_v5 = vunpack.c.l.b16 %v1430_v52  ;;  %v1438_v27 = vrot.slane %v1436_v13, 4  ;;  %v6192_v35 = vld [vmem:[%s7709_s1 + $0x1b0] sm:$0xff] }
  0x41   : > { %2082 = vmatpush.bf16.msrb.mxu3 %v6148_v37  ;;  %v5611_v37 = vld [vmem:[%s6315_s6 + $0x1c] sm:$0xf]  ;;  %v1064_v4 = vunpack.c.l.b16 %v654_v53 }
  0x42   : > { %1180 = vmatpush.bf16.msrb.mxu1 %v6116_v38  ;;  %2827 = vmatpush.bf16.msrb.mxu0 %v6156_v39  ;;  %v1432_v39 = vrot.slane %v1330_v28, 5  ;;  %v1439_v28 = vrot.slane %v1333_v20, 5  ;;  %v6185_v38 = vld [vmem:[%s6315_s6 + $0xcc] sm:$0xff] }
  0x44   : > { %1705 = vmatpush.bf16.msrb.mxu2 %v6123_v40  ;;  %v2286_v40 = vrot.slane %v2285_v24, 4 }
  0x45   : > { %2083 = vmatpush.bf16.msrb.mxu3 %v6147_v41  ;;  %v2296_v41 = vrot.slane %v2295_v25, 4 }
  0x46   : > { %1181 = vmatpush.bf16.msrb.mxu1 %v6115_v42  ;;  %2828 = vmatpush.bf16.msrb.mxu0 %v6155_v43  ;;  %v2300_v42 = vrot.slane %v2298_v26, 5  ;;  %v656_v43 = vshrl.u32 %v583_v31, 16  ;;  %v5432_v26 = vrot.slane %v1331_v14, 9 }
  0x48   : > { %1706 = vmatpush.bf16.msrb.mxu2 %v6122_v44  ;;  %v659_v44 = vshll.u32 %v583_v31, 16  ;;  %v658_v58 = vrot.slane %v656_v43, 4  ;;  %v5614_v43 = vld [vmem:[%s6315_s6 + $0x28] sm:$0xf] }
  0x49   : > { %2084 = vmatpush.bf16.msrb.mxu3 %v6146_v45  ;;  %v665_v45 = vshll.u32 %v584_v32, 16 }
  0x4a   : > { %1182 = vmatpush.bf16.msrb.mxu1 %v6114_v46  ;;  %2829 = vmatpush.bf16.msrb.mxu0 %v6154_v47  ;;  %v669_v46 = vshrl.u32 %v584_v32, 16  ;;  %v2303_v47 = vshrl.u32 %v5610_v36, 16  ;;  %v586_v32 = vld [vmem:[%s6315_s6 + $0x18] sm:$0xf] }
  0x4b   : > { %465 = vmatmul.bf16.gmra.mxu1 %v6096_v48  ;;  %485 = vmatmul.bf16.gmra.mxu2 %v6100_v49  ;;  %v2306_v48 = vshll.u32 %v5610_v36, 16  ;;  %v2312_v49 = vshll.u32 %v5611_v37, 16  ;;  %v6485_v60 = vrot.slane %v665_v45, 5  ;;  %v6200_v36 = vld [vmem:[%s7709_s1 + $0x1f0] sm:$0xff]  ;;  %v1440_v45 = vsel %vm6466_vm5, %v1438_v27, %v1439_v28 }
  0x4c   : > { %505 = vmatmul.bf16.gmra.mxu3 %v6104_v50  ;;  %3721 = vmatpush.bf16.msra.mxu2 %v6193_v54  ;;  %v2316_v50 = vshrl.u32 %v5611_v37, 16  ;;  %v1433_v54 = vsel %vm6466_vm5, %v1431_v30, %v1432_v39  ;;  %v671_v61 = vrot.slane %v669_v46, 4  ;;  %v2305_v63 = vrot.slane %v2303_v47, 4  ;;  %v6168_v37 = vld [vmem:[%s7709_s1 + $0x170] sm:$0xff] }
  0x4d   : > { %445 = vmatmul.bf16.gmra.mxu0 %v6092_v51  ;;  %4466 = vmatpush.bf16.msra.mxu3 %v6201_v55  ;;  %v644_v51 = vsel %vm6459_vm4, %v639_v34, %v6442_v7  ;;  %v2291_v55 = vsel %vm6459_vm4, %v2286_v40, %v6445_v12  ;;  %v2308_v0 = vrot.slane %v2306_v48, 5  ;;  %v6488_v1 = vrot.slane %v2312_v49, 5  ;;  %v5612_v7 = vld [vmem:[%s6315_s6 + $0x20] sm:$0x1]  ;;  %v587_v34 = vld [vmem:[%s6315_s6 + $0x1c] sm:$0xf] }
  0x4e   : > { %3343 = vmatpush.bf16.msra.mxu1 %v6169_v56  ;;  %4987 = vmatpush.bf16.msra.mxu0 %v6209_v59  ;;  %v2301_v56 = vsel %vm6459_vm4, %v2296_v41, %v2300_v42  ;;  %v661_v59 = vrot.slane %v659_v44, 5  ;;  %v2318_v2 = vrot.slane %v2316_v50, 4  ;;  %v1063_v3 = vunpack.c.l.b16 %v644_v51  ;;  %v5613_v42 = vld [vmem:[%s6315_s6 + $0x24] sm:$0xf]  ;;  %v6208_v44 = vld [vmem:[%s7709_s1 + $0x230] sm:$0xff] }
  0x4f   : > { %v1588_v6 = vunpack.c.l.b16 %v1433_v54  ;;  %v2710_v8 = vunpack.c.l.b16 %v2291_v55  ;;  %v2711_v9 = vunpack.c.l.b16 %v2301_v56  ;;  %v672_v12 = vor.u32 %v671_v61, %v6485_v60 }
  0x50   : > { %v662_v11 = vor.u32 %v661_v59, %v658_v58  ;;  %v2309_v15 = vor.u32 %v2308_v0, %v2305_v63  ;;  %v2319_v16 = vor.u32 %v2318_v2, %v6488_v1  ;;  %v1437_v41 = vsel %vm6466_vm5, %v5432_v26, %v1436_v13  ;;  %3722 = vmatpush.bf16.msra.mxu2 %v6192_v35  ;;  %v5617_v35 = vld [vmem:[%s6315_s6 + $0x34] sm:$0xf] }
  0x51   : > { %v1619_v19 = vpack.c.b16 %v1588_v6, %v1587_v5  ;;  %v673_v25 = vrot.slane %v672_v12, 4  ;;  %4467 = vmatpush.bf16.msra.mxu3 %v6200_v36  ;;  %v680_v48 = vshrl.u32 %v586_v32, 16  ;;  %v683_v49 = vshll.u32 %v586_v32, 16 }
  0x52   : > { %v663_v24 = vrot.slane %v662_v11, 4  ;;  %v2310_v29 = vrot.slane %v2309_v15, 4  ;;  %v2320_v30 = vrot.slane %v2319_v16, 4  ;;  %v689_v50 = vshll.u32 %v587_v34, 16  ;;  %3344 = vmatpush.bf16.msra.mxu1 %v6168_v37  ;;  %4988 = vmatpush.bf16.msra.mxu0 %v6208_v44  ;;  %v6131_v15 = vld [vmem:[%s6315_s6 + $0x18] sm:$0xff] }
  0x53   : > { %v693_v51 = vshrl.u32 %v587_v34, 16  ;;  %v2327_v52 = vshrl.u32 %v5613_v42, 16  ;;  %v2330_v53 = vshll.u32 %v5613_v42, 16  ;;  %v2336_v54 = vshll.u32 %v5614_v43, 16 }
  0x54   : > { %v668_v39 = vsel %vm6459_vm4, %v663_v24, %v6485_v60  ;;  %v2315_v46 = vsel %vm6459_vm4, %v2310_v29, %v6488_v1  ;;  %v2340_v55 = vshrl.u32 %v5614_v43, 16  ;;  %v1589_v58 = vunpack.c.l.b16 %v1437_v41  ;;  %v590_v24 = vld [vmem:[%s6315_s6 + $0x28] sm:$0xf]  ;;  %v5616_v29 = vld [vmem:[%s6315_s6 + $0x30] sm:$0xf] }
  0x55   : > { %v1065_v56 = vunpack.c.l.b16 %v668_v39  ;;  %v1590_v59 = vunpack.c.l.b16 %v1440_v45  ;;  %v2712_v60 = vunpack.c.l.b16 %v2315_v46  ;;  %v682_v63 = vrot.slane %v680_v48, 4 }
  0x56   : > { %v685_v0 = vrot.slane %v683_v49, 5  ;;  %v691_v1 = vrot.slane %v689_v50, 5  ;;  %v695_v2 = vrot.slane %v693_v51, 4  ;;  %v2332_v5 = vrot.slane %v2330_v53, 5 }
  0x57   : > { %v2338_v6 = vrot.slane %v2336_v54, 5  ;;  %v1620_v11 = vpack.c.b16 %v1590_v59, %v1589_v58  ;;  %v713_v39 = vshll.u32 %v590_v24, 16  ;;  %v2351_v41 = vshrl.u32 %v5616_v29, 16 }
  0x58   : > { %v686_v12 = vor.u32 %v685_v0, %v682_v63  ;;  %v696_v13 = vor.u32 %v695_v2, %v691_v1  ;;  %v2354_v42 = vshll.u32 %v5616_v29, 16  ;;  %v2360_v45 = vshll.u32 %v5617_v35, 16 }
  0x59   : > { %v2364_v46 = vshrl.u32 %v5617_v35, 16  ;;  %v6548_v53 = vrot.slane %v713_v39, 5  ;;  %v2353_v58 = vrot.slane %v2351_v41, 4  ;;  %v5620_v41 = vld [vmem:[%s6315_s6 + $0x40] sm:$0xf] }
  0x5a   : > { %v697_v26 = vrot.slane %v696_v13, 4  ;;  %v2356_v59 = vrot.slane %v2354_v42, 5  ;;  %v6552_v63 = vrot.slane %v2360_v45, 5 }
  0x5b   : > { %470 = vmatmul.bf16.gmra.mxu1 %v6097_v17  ;;  %490 = vmatmul.bf16.gmra.mxu2 %v6101_v18  ;;  %v2322_v17 = vshll.u32 %v5612_v7, 16  ;;  %v1095_v18 = vpack.c.b16 %v1064_v4, %v1063_v3  ;;  %v1335_v3 = vld [vmem:[%s6315_s6 + $0x1c] sm:$0xf]  ;;  %v2329_v4 = vrot.slane %v2327_v52, 4  ;;  %v2342_v7 = vrot.slane %v2340_v55, 4 }
  0x5c   : > { %510 = vmatmul.bf16.gmra.mxu3 %v6105_v22  ;;  %v2742_v22 = vpack.c.b16 %v2711_v9, %v2710_v8  ;;  %v5615_v8 = vld [vmem:[%s6315_s6 + $0x2c] sm:$0x1]  ;;  %v1443_v14 = vrot.slane %v1335_v3, 5  ;;  %v2366_v0 = vrot.slane %v2364_v46, 4  ;;  %v5618_v3 = vld [vmem:[%s6315_s6 + $0x38] sm:$0x1] }
  0x5d   : > { %450 = vmatmul.bf16.gmra.mxu0 %v6093_v23  ;;  %v677_v23 = vrot.slane %v675_v10, 5  ;;  %v2324_v31 = vrot.slane %v2322_v17, 5  ;;  %v699_v10 = vshll.u32 %v588_v62, 16  ;;  %v1334_v17 = vld [vmem:[%s6315_s6 + $0x18] sm:$0xe]  ;;  %v2346_v20 = vshll.u32 %v5615_v8, 16 }
  0x5e   : > { %v5433_v27 = vrot.slane %v1334_v17, 9  ;;  %v1445_v28 = vrot.slane %v1443_v14, 4  ;;  %v1338_v62 = vld [vmem:[%s6315_s6 + $0x28] sm:$0xf]  ;;  %v2357_v8 = vor.u32 %v2356_v59, %v2353_v58  ;;  %v2367_v13 = vor.u32 %v2366_v0, %v6552_v63  ;;  %v592_v17 = vld [vmem:[%s6315_s6 + $0x30] sm:$0xf] }
  0x5f   : > { %v678_v40 = vsel %vm6459_vm4, %v673_v25, %v677_v23  ;;  %v2325_v47 = vsel %vm6459_vm4, %v2320_v30, %v2324_v31  ;;  %v589_v23 = vld [vmem:[%s6315_s6 + $0x24] sm:$0xf]  ;;  %v687_v25 = vrot.slane %v686_v12, 4  ;;  %v2348_v34 = vrot.slane %v2346_v20, 5  ;;  %v1339_v12 = vld [vmem:[%s6315_s6 + $0x2c] sm:$0x1] }
  0x60   : > { %v1066_v57 = vunpack.c.l.b16 %v678_v40  ;;  %v2713_v61 = vunpack.c.l.b16 %v2325_v47  ;;  %v704_v36 = vshrl.u32 %v589_v23, 16  ;;  %v707_v37 = vshll.u32 %v589_v23, 16  ;;  %v6167_v46 = vld [vmem:[%s7709_s1 + $0x168] sm:$0xff] }
  0x61   : > { %v717_v40 = vshrl.u32 %v590_v24, 16  ;;  %v692_v43 = vsel %vm6459_vm4, %v687_v25, %v691_v1  ;;  %v1444_v47 = vsel %vm6466_vm5, %v5433_v27, %v1443_v14  ;;  %v2370_v14 = vshll.u32 %v5618_v3, 16  ;;  %3345 = vmatpush.bf16.msra.mxu1 %v6167_v46 }
  0x62   : > { %v1096_v9 = vpack.c.b16 %v1066_v57, %v1065_v56  ;;  %v2743_v16 = vpack.c.b16 %v2713_v61, %v2712_v60  ;;  %v706_v51 = vrot.slane %v704_v36, 4  ;;  %v709_v52 = vrot.slane %v707_v37, 5  ;;  %v591_v57 = vld [vmem:[%s6315_s6 + $0x2c] sm:$0x1]  ;;  %v5619_v36 = vld [vmem:[%s6315_s6 + $0x3c] sm:$0xf] }
  0x63   : > { %v719_v54 = vrot.slane %v717_v40, 4  ;;  %v1067_v55 = vunpack.c.l.b16 %v692_v43  ;;  %v1591_v60 = vunpack.c.l.b16 %v1444_v47  ;;  %v1453_v24 = vrot.slane %v1339_v12, 5  ;;  %v6133_v12 = vld [vmem:[%s6315_s6 + $0x30] sm:$0xff] }
  0x64   : > { %v2358_v25 = vrot.slane %v2357_v8, 4  ;;  %v2372_v27 = vrot.slane %v2370_v14, 5  ;;  %v731_v29 = vshll.u32 %v592_v17, 16 }
  0x66   : > { %v2363_v42 = vsel %vm6459_vm4, %v2358_v25, %v6552_v63  ;;  %v733_v45 = vrot.slane %v731_v29, 5 }
  0x67   : > { %v2716_v59 = vunpack.c.l.b16 %v2363_v42 }
  0x6b   : > { %1183 = vmatmul.bf16.vlgmr.msrb.gmra.mxu1 %v1095_v18  ;;  %1707 = vmatmul.bf16.vlgmr.msrb.gmra.mxu2 %v1619_v19  ;;  %v2333_v18 = vor.u32 %v2332_v5, %v2329_v4  ;;  %v2343_v19 = vor.u32 %v2342_v7, %v2338_v6  ;;  %v710_v4 = vor.u32 %v709_v52, %v706_v51  ;;  %v1450_v7 = vrot.slane %v1338_v62, 5  ;;  %v594_v51 = vld [vmem:[%s6315_s6 + $0x38] sm:$0x1]  ;;  %v1341_v62 = vld [vmem:[%s6315_s6 + $0x34] sm:$0xf] }
  0x6c   : > { %2085 = vmatmul.bf16.vlgmr.msrb.gmra.mxu3 %v6130_v21  ;;  %v1336_v21 = vld [vmem:[%s6315_s6 + $0x20] sm:$0x1]  ;;  %v720_v5 = vor.u32 %v719_v54, %v6548_v53  ;;  %v2384_v52 = vshll.u32 %v5620_v41, 16  ;;  %v6207_v54 = vld [vmem:[%s7709_s1 + $0x228] sm:$0xff]  ;;  %v747_v0 = vshll.u32 %v594_v51, 16 }
  0x6d   : > { %2830 = vmatmul.bf16.vlgmr.msrb.gmra.mxu0 %v2742_v22  ;;  %v701_v22 = vrot.slane %v699_v10, 5  ;;  %v1446_v30 = vrot.slane %v1336_v21, 5  ;;  %v2334_v31 = vrot.slane %v2333_v18, 4  ;;  %v2344_v32 = vrot.slane %v2343_v19, 4  ;;  %v593_v21 = vld [vmem:[%s6315_s6 + $0x34] sm:$0xf] }
  0x6e   : > { %v711_v18 = vrot.slane %v710_v4, 4  ;;  %v721_v19 = vrot.slane %v720_v5, 4  ;;  %v1452_v23 = vrot.slane %v1450_v7, 4  ;;  %4989 = vmatpush.bf16.msra.mxu0 %v6207_v54  ;;  %v2386_v3 = vrot.slane %v2384_v52, 5  ;;  %v597_v51 = vld [vmem:[%s6315_s6 + $0x44] sm:$0x1] }
  0x6f   : > { %v702_v44 = vsel %vm6459_vm4, %v697_v26, %v701_v22  ;;  %v1447_v48 = vsel %vm6466_vm5, %v1445_v28, %v1446_v30  ;;  %v2339_v49 = vsel %vm6459_vm4, %v2334_v31, %v2338_v6  ;;  %v2349_v50 = vsel %vm6459_vm4, %v2344_v32, %v2348_v34  ;;  %v6191_v32 = vld [vmem:[%s7709_s1 + $0x1a8] sm:$0xff]  ;;  %v1344_v54 = vld [vmem:[%s6315_s6 + $0x40] sm:$0xf] }
  0x70   : > { %v1068_v56 = vunpack.c.l.b16 %v702_v44  ;;  %v1592_v61 = vunpack.c.l.b16 %v1447_v48  ;;  %v2714_v1 = vunpack.c.l.b16 %v2339_v49  ;;  %v2715_v2 = vunpack.c.l.b16 %v2349_v50  ;;  %v6199_v34 = vld [vmem:[%s7709_s1 + $0x1e8] sm:$0xff]  ;;  %3723 = vmatpush.bf16.msra.mxu2 %v6191_v32 }
  0x71   : > { %v723_v6 = vshll.u32 %v591_v57, 16  ;;  %v2368_v26 = vrot.slane %v2367_v13, 4  ;;  %v728_v28 = vshrl.u32 %v592_v17, 16  ;;  %v737_v30 = vshll.u32 %v593_v21, 16  ;;  %4468 = vmatpush.bf16.msra.mxu3 %v6199_v34 }
  0x72   : > { %v1621_v10 = vpack.c.b16 %v1592_v61, %v1591_v60  ;;  %v741_v31 = vshrl.u32 %v593_v21, 16  ;;  %v716_v35 = vsel %vm6459_vm4, %v711_v18, %v6548_v53  ;;  %v1454_v40 = vsel %vm6466_vm5, %v1452_v23, %v1453_v24  ;;  %v596_v23 = vld [vmem:[%s6315_s6 + $0x40] sm:$0xf] }
  0x73   : > { %v725_v20 = vrot.slane %v723_v6, 5  ;;  %v2373_v43 = vsel %vm6459_vm4, %v2368_v26, %v2372_v27  ;;  %v730_v44 = vrot.slane %v728_v28, 4  ;;  %v6587_v47 = vrot.slane %v737_v30, 5  ;;  %v5621_v6 = vld [vmem:[%s6315_s6 + $0x44] sm:$0x1] }
  0x74   : > { %v743_v48 = vrot.slane %v741_v31, 4  ;;  %v2375_v49 = vshrl.u32 %v5619_v36, 16  ;;  %v2378_v50 = vshll.u32 %v5619_v36, 16  ;;  %v2388_v53 = vshrl.u32 %v5620_v41, 16  ;;  %v5622_v27 = vld [vmem:[%s6315_s6 + $0x48] sm:$0xf] }
  0x75   : > { %v726_v37 = vsel %vm6459_vm4, %v721_v19, %v725_v20  ;;  %v1594_v58 = vunpack.c.l.b16 %v1454_v40  ;;  %v2717_v60 = vunpack.c.l.b16 %v2373_v43  ;;  %v734_v61 = vor.u32 %v733_v45, %v730_v44  ;;  %v5623_v28 = vld [vmem:[%s6315_s6 + $0x4c] sm:$0xf] }
  0x76   : > { %v744_v63 = vor.u32 %v743_v48, %v6587_v47  ;;  %v2390_v4 = vrot.slane %v2388_v53, 4  ;;  %v1457_v5 = vrot.slane %v1341_v62, 5  ;;  %v2394_v18 = vshll.u32 %v5621_v6, 16 }
  0x77   : > { %v735_v13 = vrot.slane %v734_v61, 4  ;;  %v761_v36 = vshll.u32 %v596_v23, 16  ;;  %v2402_v40 = vshll.u32 %v5622_v27, 16  ;;  %v2408_v41 = vshll.u32 %v5623_v28, 16  ;;  %v5624_v61 = vld [vmem:[%s6315_s6 + $0x50] sm:$0x1] }
  0x78   : > { %v745_v14 = vrot.slane %v744_v63, 4  ;;  %v2391_v17 = vor.u32 %v2390_v4, %v2386_v3  ;;  %v1459_v20 = vrot.slane %v1457_v5, 4  ;;  %v2396_v30 = vrot.slane %v2394_v18, 5 }
  0x79   : > { %v740_v24 = vsel %vm6459_vm4, %v735_v13, %v6587_v47  ;;  %v2412_v42 = vshrl.u32 %v5623_v28, 16  ;;  %v6617_v52 = vrot.slane %v761_v36, 5  ;;  %v5625_v28 = vld [vmem:[%s6315_s6 + $0x54] sm:$0xf] }
  0x7a   : > { %v2392_v29 = vrot.slane %v2391_v17, 4  ;;  %v1071_v43 = vunpack.c.l.b16 %v740_v24  ;;  %v6190_v24 = vld [vmem:[%s7709_s1 + $0x1a0] sm:$0xff] }
  0x7b   : > { %1188 = vmatmul.bf16.gmra.mxu1 %v1096_v9  ;;  %1712 = vmatmul.bf16.gmra.mxu2 %v1620_v11  ;;  %v1097_v9 = vpack.c.b16 %v1068_v56, %v1067_v55  ;;  %v1337_v11 = vld [vmem:[%s6315_s6 + $0x24] sm:$0xe]  ;;  %v1069_v55 = vunpack.c.l.b16 %v716_v35  ;;  %v1070_v56 = vunpack.c.l.b16 %v726_v37  ;;  %v765_v37 = vshrl.u32 %v596_v23, 16  ;;  %v599_v23 = vld [vmem:[%s6315_s6 + $0x4c] sm:$0xf] }
  0x7c   : > { %2090 = vmatmul.bf16.gmra.mxu3 %v6131_v15  ;;  %v6132_v15 = vld [vmem:[%s6315_s6 + $0x24] sm:$0xff]  ;;  %v5434_v22 = vrot.slane %v1337_v11, 9  ;;  %v1342_v11 = vld [vmem:[%s6315_s6 + $0x38] sm:$0x1]  ;;  %v2397_v46 = vsel %vm6459_vm4, %v2392_v29, %v2396_v30  ;;  %3724 = vmatpush.bf16.msra.mxu2 %v6190_v24 }
  0x7d   : > { %2835 = vmatmul.bf16.gmra.mxu0 %v2743_v16  ;;  %v2744_v16 = vpack.c.b16 %v2715_v2, %v2714_v1  ;;  %v2377_v1 = vrot.slane %v2375_v49, 4  ;;  %v2380_v2 = vrot.slane %v2378_v50, 5  ;;  %v1460_v21 = vrot.slane %v1342_v11, 5  ;;  %v5626_v29 = vld [vmem:[%s6315_s6 + $0x58] sm:$0xf] }
  0x7e   : > { %v1451_v39 = vsel %vm6466_vm5, %v5434_v22, %v1450_v7  ;;  %v1098_v7 = vpack.c.b16 %v1070_v56, %v1069_v55  ;;  %v595_v22 = vld [vmem:[%s6315_s6 + $0x3c] sm:$0xf]  ;;  %v767_v53 = vrot.slane %v765_v37, 4  ;;  %v2404_v56 = vrot.slane %v2402_v40, 5 }
  0x7f   : > { %v1593_v57 = vunpack.c.l.b16 %v1451_v39  ;;  %v752_v31 = vshrl.u32 %v595_v22, 16  ;;  %v755_v32 = vshll.u32 %v595_v22, 16  ;;  %v1461_v35 = vsel %vm6466_vm5, %v1459_v20, %v1460_v21  ;;  %v598_v22 = vld [vmem:[%s6315_s6 + $0x48] sm:$0xf] }
  0x80   : > { %v2399_v39 = vshrl.u32 %v5622_v27, 16  ;;  %v1596_v50 = vunpack.c.l.b16 %v1461_v35  ;;  %v779_v35 = vshll.u32 %v598_v22, 16  ;;  %v785_v40 = vshll.u32 %v599_v23, 16 }
  0x81   : > { %v1622_v8 = vpack.c.b16 %v1594_v58, %v1593_v57  ;;  %v754_v47 = vrot.slane %v752_v31, 4  ;;  %v757_v48 = vrot.slane %v755_v32, 5  ;;  %v6620_v57 = vrot.slane %v2408_v41, 5 }
  0x82   : > { %v2401_v55 = vrot.slane %v2399_v39, 4  ;;  %v2414_v58 = vrot.slane %v2412_v42, 4  ;;  %v789_v41 = vshrl.u32 %v599_v23, 16  ;;  %v6166_v42 = vld [vmem:[%s7709_s1 + $0x160] sm:$0xff] }
  0x83   : > { %v758_v62 = vor.u32 %v757_v48, %v754_v47  ;;  %v2436_v47 = vshrl.u32 %v5626_v29, 16  ;;  %3346 = vmatpush.bf16.msra.mxu1 %v6166_v42  ;;  %v5628_v42 = vld [vmem:[%s6315_s6 + $0x60] sm:$0xf] }
  0x84   : > { %v2405_v6 = vor.u32 %v2404_v56, %v2401_v55  ;;  %v781_v55 = vrot.slane %v779_v35, 5 }
  0x85   : > { %v759_v13 = vrot.slane %v758_v62, 4  ;;  %v5627_v62 = vld [vmem:[%s6315_s6 + $0x5c] sm:$0x1] }
  0x8b   : > { %1193 = vmatmul.bf16.gmra.mxu1 %v1097_v9  ;;  %1717 = vmatmul.bf16.gmra.mxu2 %v1621_v10  ;;  %v2745_v9 = vpack.c.b16 %v2717_v60, %v2716_v59  ;;  %v1340_v10 = vld [vmem:[%s6315_s6 + $0x30] sm:$0xe]  ;;  %v2719_v60 = vunpack.c.l.b16 %v2397_v46  ;;  %v2432_v46 = vshll.u32 %v5626_v29, 16 }
  0x8c   : > { %2095 = vmatmul.bf16.gmra.mxu3 %v6132_v15  ;;  %v749_v15 = vrot.slane %v747_v0, 5  ;;  %v5435_v19 = vrot.slane %v1340_v10, 9  ;;  %v768_v0 = vor.u32 %v767_v53, %v6617_v52  ;;  %v6134_v10 = vld [vmem:[%s6315_s6 + $0x3c] sm:$0xff] }
  0x8d   : > { %2840 = vmatmul.bf16.gmra.mxu0 %v2744_v16  ;;  %v2381_v16 = vor.u32 %v2380_v2, %v2377_v1  ;;  %v771_v1 = vshll.u32 %v597_v51, 16  ;;  %v1343_v2 = vld [vmem:[%s6315_s6 + $0x3c] sm:$0xe]  ;;  %v6206_v51 = vld [vmem:[%s7709_s1 + $0x220] sm:$0xff] }
  0x8e   : > { %v750_v25 = vsel %vm6459_vm4, %v745_v14, %v749_v15  ;;  %v1458_v34 = vsel %vm6466_vm5, %v5435_v19, %v1457_v5  ;;  %v1345_v5 = vld [vmem:[%s6315_s6 + $0x44] sm:$0x1]  ;;  %v5436_v14 = vrot.slane %v1343_v2, 9  ;;  %v769_v15 = vrot.slane %v768_v0, 4  ;;  %4990 = vmatpush.bf16.msra.mxu0 %v6206_v51 }
  0x8f   : > { %v2382_v26 = vrot.slane %v2381_v16, 4  ;;  %v1072_v44 = vunpack.c.l.b16 %v750_v25  ;;  %v1595_v49 = vunpack.c.l.b16 %v1458_v34  ;;  %v773_v16 = vrot.slane %v771_v1, 5  ;;  %v6198_v25 = vld [vmem:[%s7709_s1 + $0x1e0] sm:$0xff] }
  0x90   : > { %v1467_v18 = vrot.slane %v1345_v5, 5  ;;  %v2406_v19 = vrot.slane %v2405_v6, 4  ;;  %v776_v34 = vshrl.u32 %v598_v22, 16  ;;  %4469 = vmatpush.bf16.msra.mxu3 %v6198_v25  ;;  %v6675_v1 = vrot.slane %v2432_v46, 5  ;;  %v601_v22 = vld [vmem:[%s6315_s6 + $0x54] sm:$0xf] }
  0x91   : > { %v2387_v45 = vsel %vm6459_vm4, %v2382_v26, %v2386_v3  ;;  %v1099_v63 = vpack.c.b16 %v1072_v44, %v1071_v43  ;;  %v1464_v3 = vrot.slane %v1344_v54, 5  ;;  %v1623_v4 = vpack.c.b16 %v1596_v50, %v1595_v49 }
  0x92   : > { %v2718_v59 = vunpack.c.l.b16 %v2387_v45  ;;  %v764_v26 = vsel %vm6459_vm4, %v759_v13, %v6617_v52  ;;  %v774_v31 = vsel %vm6459_vm4, %v769_v15, %v773_v16  ;;  %v2411_v37 = vsel %vm6459_vm4, %v2406_v19, %v6620_v57  ;;  %v6135_v16 = vld [vmem:[%s6315_s6 + $0x48] sm:$0xff] }
  0x93   : > { %v1466_v17 = vrot.slane %v1464_v3, 4  ;;  %v1465_v27 = vsel %vm6466_vm5, %v5436_v14, %v1464_v3  ;;  %v2423_v44 = vshrl.u32 %v5625_v28, 16  ;;  %v2426_v45 = vshll.u32 %v5625_v28, 16 }
  0x94   : > { %v2746_v11 = vpack.c.b16 %v2719_v60, %v2718_v59  ;;  %v1073_v49 = vunpack.c.l.b16 %v764_v26  ;;  %v1597_v50 = vunpack.c.l.b16 %v1465_v27  ;;  %v1074_v52 = vunpack.c.l.b16 %v774_v31  ;;  %v602_v31 = vld [vmem:[%s6315_s6 + $0x58] sm:$0xf] }
  0x95   : > { %v1468_v32 = vsel %vm6466_vm5, %v1466_v17, %v1467_v18  ;;  %v778_v54 = vrot.slane %v776_v34, 4  ;;  %v2720_v56 = vunpack.c.l.b16 %v2411_v37  ;;  %v6671_v59 = vrot.slane %v785_v40, 5  ;;  %v1348_v18 = vld [vmem:[%s6315_s6 + $0x50] sm:$0x1] }
  0x96   : > { %v1598_v53 = vunpack.c.l.b16 %v1468_v32  ;;  %v791_v60 = vrot.slane %v789_v41, 4  ;;  %v2428_v0 = vrot.slane %v2426_v45, 5  ;;  %v2438_v2 = vrot.slane %v2436_v47, 4 }
  0x97   : > { %v782_v5 = vor.u32 %v781_v55, %v778_v54  ;;  %v2442_v14 = vshll.u32 %v5627_v62, 16  ;;  %v1474_v28 = vrot.slane %v1348_v18, 5  ;;  %v800_v35 = vshrl.u32 %v601_v22, 16 }
  0x98   : > { %v803_v37 = vshll.u32 %v601_v22, 16  ;;  %v809_v40 = vshll.u32 %v602_v31, 16  ;;  %v813_v41 = vshrl.u32 %v602_v31, 16 }
  0x99   : > { %v783_v23 = vrot.slane %v782_v5, 4  ;;  %v2444_v29 = vrot.slane %v2442_v14, 5  ;;  %v802_v54 = vrot.slane %v800_v35, 4  ;;  %v1350_v5 = vld [vmem:[%s6315_s6 + $0x58] sm:$0xf] }
  0x9a   : > { %v805_v55 = vrot.slane %v803_v37, 5  ;;  %v815_v62 = vrot.slane %v813_v41, 4 }
  0x9b   : > { %1198 = vmatmul.bf16.gmra.mxu1 %v1098_v7  ;;  %1722 = vmatmul.bf16.gmra.mxu2 %v1622_v8  ;;  %v2415_v7 = vor.u32 %v2414_v58, %v6620_v57  ;;  %v2418_v8 = vshll.u32 %v5624_v61, 16  ;;  %v600_v58 = vld [vmem:[%s6315_s6 + $0x50] sm:$0x1]  ;;  %v1347_v61 = vld [vmem:[%s6315_s6 + $0x4c] sm:$0xf]  ;;  %v788_v46 = vsel %vm6459_vm4, %v783_v23, %v6671_v59  ;;  %v1478_v23 = vrot.slane %v1350_v5, 5 }
  0x9c   : > { %2100 = vmatmul.bf16.gmra.mxu3 %v6133_v12  ;;  %v795_v6 = vshll.u32 %v600_v58, 16  ;;  %v1471_v13 = vrot.slane %v1347_v61, 5  ;;  %v2450_v58 = vshll.u32 %v5628_v42, 16  ;;  %v6716_v61 = vrot.slane %v809_v40, 5 }
  0x9d   : > { %2845 = vmatmul.bf16.gmra.mxu0 %v2745_v9  ;;  %v2416_v20 = vrot.slane %v2415_v7, 4  ;;  %v2420_v21 = vrot.slane %v2418_v8, 5  ;;  %v1624_v8 = vpack.c.b16 %v1598_v53, %v1597_v50 }
  0x9e   : > { %v797_v24 = vrot.slane %v795_v6, 5  ;;  %v1473_v27 = vrot.slane %v1471_v13, 4 }
  0x9f   : > { %v2421_v39 = vsel %vm6459_vm4, %v2416_v20, %v2420_v21  ;;  %v2439_v20 = vor.u32 %v2438_v2, %v6675_v1 }
  0xa0   : > { %v2721_v57 = vunpack.c.l.b16 %v2421_v39  ;;  %v1475_v50 = vsel %vm6466_vm5, %v1473_v27, %v1474_v28  ;;  %v1351_v27 = vld [vmem:[%s6315_s6 + $0x5c] sm:$0x1] }
  0xa1   : > { %v2440_v34 = vrot.slane %v2439_v20, 4  ;;  %v1600_v2 = vunpack.c.l.b16 %v1475_v50  ;;  %v816_v20 = vor.u32 %v815_v62, %v6716_v61  ;;  %v605_v50 = vld [vmem:[%s6315_s6 + $0x64] sm:$0xf] }
  0xa2   : > { %v2747_v17 = vpack.c.b16 %v2721_v57, %v2720_v56  ;;  %v2447_v57 = vshrl.u32 %v5628_v42, 16  ;;  %v837_v5 = vshrl.u32 %v605_v50, 16 }
  0xa3   : > { %v2445_v53 = vsel %vm6459_vm4, %v2440_v34, %v2444_v29  ;;  %v6136_v29 = vld [vmem:[%s6315_s6 + $0x54] sm:$0xff]  ;;  %v817_v42 = vrot.slane %v816_v20, 4 }
  0xa4   : > { %v2449_v14 = vrot.slane %v2447_v57, 4  ;;  %v6189_v57 = vld [vmem:[%s7709_s1 + $0x198] sm:$0xff] }
  0xa5   : > { %3725 = vmatpush.bf16.msra.mxu2 %v6189_v57 }
  0xa8   : > { %v6627_v9 = vpop.f32.mrf.mxu1 }
  0xaa   : > { %v6630_v12 = vpop.f32.mrf.mxu0 }
  0xab   : > { %1203 = vmatmul.bf16.gmra.mxu1 %v1099_v63  ;;  %1727 = vmatmul.bf16.gmra.mxu2 %v1623_v4  ;;  %v2425_v63 = vrot.slane %v2423_v44, 4  ;;  %v1100_v4 = vpack.c.b16 %v1074_v52, %v1073_v49  ;;  %v5629_v44 = vld [vmem:[%s6315_s6 + $0x64] sm:$0xf] }
  0xac   : > { %2105 = vmatmul.bf16.gmra.mxu3 %v6134_v10  ;;  %v792_v10 = vor.u32 %v791_v60, %v6671_v59  ;;  %v2456_v59 = vshll.u32 %v5629_v44, 16  ;;  %v2460_v60 = vshrl.u32 %v5629_v44, 16 }
  0xad   : > { %2850 = vmatmul.bf16.gmra.mxu0 %v2746_v11  ;;  %v1346_v11 = vld [vmem:[%s6315_s6 + $0x48] sm:$0xe]  ;;  %v2429_v19 = vor.u32 %v2428_v0, %v2425_v63  ;;  %v1075_v63 = vunpack.c.l.b16 %v788_v46  ;;  %v1480_v46 = vrot.slane %v1478_v23, 4 }
  0xae   : > { %v6647_v30 = vpop.f32.mrf.mxu2  ;;  %v5437_v25 = vrot.slane %v1346_v11, 9  ;;  %v793_v26 = vrot.slane %v792_v10, 4  ;;  %v806_v10 = vor.u32 %v805_v55, %v802_v54  ;;  %v1349_v11 = vld [vmem:[%s6315_s6 + $0x54] sm:$0xe]  ;;  %v2462_v18 = vrot.slane %v2460_v60, 4 }
  0xaf   : > { %v6653_v36 = vpop.f32.mrf.mxu3  ;;  %v2430_v32 = vrot.slane %v2429_v19, 4  ;;  %v5438_v34 = vrot.slane %v1349_v11, 9 }
  0xb0   : > { %v6663_v43 = vpop.f32.mrf.mxu1  ;;  %v798_v47 = vsel %vm6459_vm4, %v793_v26, %v797_v24  ;;  %v1472_v49 = vsel %vm6466_vm5, %v5437_v25, %v1471_v13  ;;  %v5630_v13 = vld [vmem:[%s6315_s6 + $0x68] sm:$0x1] }
  0xb1   : > { %v2435_v52 = vsel %vm6459_vm4, %v2430_v32, %v6675_v1  ;;  %v1076_v0 = vunpack.c.l.b16 %v798_v47  ;;  %v1599_v1 = vunpack.c.l.b16 %v1472_v49  ;;  %v807_v32 = vrot.slane %v806_v10, 4  ;;  %v604_v49 = vld [vmem:[%s6315_s6 + $0x60] sm:$0xf] }
  0xb2   : > { %v6665_v48 = vpop.f32.mrf.mxu0  ;;  %v2722_v6 = vunpack.c.l.b16 %v2435_v52  ;;  %v2466_v35 = vshll.u32 %v5630_v13, 16  ;;  %v1481_v47 = vrot.slane %v1351_v27, 5  ;;  %v5631_v52 = vld [vmem:[%s6315_s6 + $0x6c] sm:$0xf]  ;;  %v1479_v54 = vsel %vm6466_vm5, %v5438_v34, %v1478_v23  ;;  %v6165_v27 = vld [vmem:[%s7709_s1 + $0x158] sm:$0xff] }
  0xb3   : > { %v1101_v25 = vpack.c.b16 %v1076_v0, %v1075_v63  ;;  %v1625_v26 = vpack.c.b16 %v1600_v2, %v1599_v1  ;;  %v824_v63 = vshrl.u32 %v604_v49, 16  ;;  %v827_v0 = vshll.u32 %v604_v49, 16  ;;  %v606_v34 = vld [vmem:[%s6315_s6 + $0x68] sm:$0x1]  ;;  %3347 = vmatpush.bf16.msra.mxu1 %v6165_v27 }
  0xb4   : > { %v2468_v55 = vrot.slane %v2466_v35, 5  ;;  %v1482_v2 = vsel %vm6466_vm5, %v1480_v46, %v1481_v47  ;;  %v2474_v10 = vshll.u32 %v5631_v52, 16  ;;  %v843_v57 = vshll.u32 %v606_v34, 16 }
  0xb6   : > { %v6677_v3 = vpop.f32.mrf.mxu2 }
  0xb7   : > { %v6679_v7 = vpop.f32.mrf.mxu3 }
  0xb8   : > { %v6683_v15 = vpop.f32.mrf.mxu1 }
  0xba   : > { %v6688_v21 = vpop.f32.mrf.mxu0 }
  0xbb   : > { %1208 = vmatmul.bf16.gmra.mxu1 %v1100_v4  ;;  %1732 = vmatmul.bf16.gmra.mxu2 %v1624_v8  ;;  %v603_v4 = vld [vmem:[%s6315_s6 + $0x5c] sm:$0x1]  ;;  %v2723_v8 = vunpack.c.l.b16 %v2445_v53  ;;  %v812_v53 = vsel %vm6459_vm4, %v807_v32, %v6716_v61  ;;  %v1602_v32 = vunpack.c.l.b16 %v1482_v2 }
  0xbc   : > { %2110 = vmatmul.bf16.gmra.mxu3 %v6135_v16  ;;  %v2452_v16 = vrot.slane %v2450_v58, 5  ;;  %v819_v22 = vshll.u32 %v603_v4, 16  ;;  %v5632_v58 = vld [vmem:[%s6315_s6 + $0x70] sm:$0xf]  ;;  %v833_v4 = vshll.u32 %v605_v50, 16 }
  0xbd   : > { %2855 = vmatmul.bf16.gmra.mxu0 %v2747_v17  ;;  %v6722_v17 = vrot.slane %v2456_v59, 5  ;;  %v2748_v31 = vpack.c.b16 %v2723_v8, %v2722_v6  ;;  %v6197_v59 = vld [vmem:[%s7709_s1 + $0x1d8] sm:$0xff]  ;;  %v2471_v8 = vshrl.u32 %v5631_v52, 16  ;;  %v2480_v11 = vshll.u32 %v5632_v58, 16  ;;  %v5633_v50 = vld [vmem:[%s6315_s6 + $0x74] sm:$0x1] }
  0xbe   : > { %v6692_v39 = vpop.f32.mrf.mxu2  ;;  %v2453_v40 = vor.u32 %v2452_v16, %v2449_v14  ;;  %v821_v44 = vrot.slane %v819_v22, 5  ;;  %4470 = vmatpush.bf16.msra.mxu3 %v6197_v59  ;;  %v2484_v13 = vshrl.u32 %v5632_v58, 16  ;;  %v1077_v16 = vunpack.c.l.b16 %v812_v53 }
  0xbf   : > { %v6696_v45 = vpop.f32.mrf.mxu3  ;;  %v2463_v41 = vor.u32 %v2462_v18, %v6722_v17  ;;  %v1601_v18 = vunpack.c.l.b16 %v1479_v54  ;;  %v6775_v35 = vrot.slane %v833_v4, 5  ;;  %v6137_v4 = vld [vmem:[%s6315_s6 + $0x60] sm:$0xff] }
  0xc0   : > { %v6707_v51 = vpop.f32.mrf.mxu1  ;;  %v2454_v60 = vrot.slane %v2453_v40, 4  ;;  %v822_v61 = vsel %vm6459_vm4, %v817_v42, %v821_v44  ;;  %v1353_v40 = vld [vmem:[%s6315_s6 + $0x64] sm:$0xf]  ;;  %v2476_v42 = vrot.slane %v2474_v10, 5  ;;  %v6778_v44 = vrot.slane %v2480_v11, 5 }
  0xc1   : > { %v2464_v62 = vrot.slane %v2463_v41, 4  ;;  %v2473_v41 = vrot.slane %v2471_v8, 4  ;;  %v2486_v46 = vrot.slane %v2484_v13, 4  ;;  %v1485_v58 = vrot.slane %v1353_v40, 5  ;;  %v1354_v8 = vld [vmem:[%s6315_s6 + $0x68] sm:$0x1] }
  0xc2   : > { %v6714_v56 = vpop.f32.mrf.mxu0  ;;  %v2459_v22 = vsel %vm6459_vm4, %v2454_v60, %v6722_v17  ;;  %v839_v17 = vrot.slane %v837_v5, 4  ;;  %v1626_v60 = vpack.c.b16 %v1602_v32, %v1601_v18  ;;  %v607_v13 = vld [vmem:[%s6315_s6 + $0x6c] sm:$0xf]  ;;  %v1488_v18 = vrot.slane %v1354_v8, 5 }
  0xc3   : > { %v2469_v23 = vsel %vm6459_vm4, %v2464_v62, %v2468_v55  ;;  %v2724_v47 = vunpack.c.l.b16 %v2459_v22  ;;  %v1352_v62 = vld [vmem:[%s6315_s6 + $0x60] sm:$0xe]  ;;  %v848_v32 = vshrl.u32 %v607_v13, 16  ;;  %v851_v34 = vshll.u32 %v607_v13, 16 }
  0xc4   : > { %v2725_v49 = vunpack.c.l.b16 %v2469_v23  ;;  %v840_v55 = vor.u32 %v839_v17, %v6775_v35  ;;  %v845_v23 = vrot.slane %v843_v57, 5 }
  0xc6   : > { %v6724_v19 = vpop.f32.mrf.mxu2  ;;  %v2749_v5 = vpack.c.b16 %v2725_v49, %v2724_v47  ;;  %v841_v22 = vrot.slane %v840_v55, 4  ;;  %v5634_v47 = vld [vmem:[%s6315_s6 + $0x78] sm:$0xf]  ;;  %v5635_v49 = vld [vmem:[%s6315_s6 + $0x7c] sm:$0xf] }
  0xc7   : > { %v6727_v24 = vpop.f32.mrf.mxu3  ;;  %v2504_v8 = vshll.u32 %v5635_v49, 16 }
  0xc8   : > { %7716 = vst [vmem:[#allocation3_spill] sm:$0xff] %v6727_v24  ;;  %v6730_v28 = vpop.f32.mrf.mxu1 }
  0xca   : > { %v6733_v37 = vpop.f32.mrf.mxu0 }
  0xcb   : > { %1213 = vmatmul.bf16.gmra.mxu1 %v1101_v25  ;;  %1737 = vmatmul.bf16.gmra.mxu2 %v1625_v26  ;;  %v826_v25 = vrot.slane %v824_v63, 4  ;;  %v829_v26 = vrot.slane %v827_v0, 5  ;;  %v2477_v63 = vor.u32 %v2476_v42, %v2473_v41  ;;  %v2487_v0 = vor.u32 %v2486_v46, %v6778_v44 }
  0xcc   : > { %2115 = vmatmul.bf16.gmra.mxu3 %v6136_v29  ;;  %v6205_v29 = vld [vmem:[%s7709_s1 + $0x218] sm:$0xff] }
  0xcd   : > { %2860 = vmatmul.bf16.gmra.mxu0 %v2748_v31  ;;  %v1078_v31 = vunpack.c.l.b16 %v822_v61  ;;  %v830_v52 = vor.u32 %v829_v26, %v826_v25  ;;  %v2490_v61 = vshll.u32 %v5633_v50, 16  ;;  %v5439_v25 = vrot.slane %v1352_v62, 9 }
  0xce   : > { %v6751_v1 = vpop.f32.mrf.mxu2  ;;  %4991 = vmatpush.bf16.msra.mxu0 %v6205_v29  ;;  %v1487_v26 = vrot.slane %v1485_v58, 4  ;;  %v2478_v27 = vrot.slane %v2477_v63, 4  ;;  %v2488_v29 = vrot.slane %v2487_v0, 4 }
  0xcf   : > { %v6757_v6 = vpop.f32.mrf.mxu3  ;;  %v1102_v54 = vpack.c.b16 %v1078_v31, %v1077_v16  ;;  %v831_v11 = vrot.slane %v830_v52, 4  ;;  %v608_v16 = vld [vmem:[%s6315_s6 + $0x70] sm:$0xf]  ;;  %v2492_v31 = vrot.slane %v2490_v61, 5  ;;  %v1486_v46 = vsel %vm6466_vm5, %v5439_v25, %v1485_v58  ;;  %v609_v61 = vld [vmem:[%s6315_s6 + $0x74] sm:$0x1] }
  0xd0   : > { %7717 = vst [vmem:[#allocation4_spill] sm:$0xff] %v6757_v6  ;;  %v6759_v14 = vpop.f32.mrf.mxu1  ;;  %v857_v17 = vshll.u32 %v608_v16, 16  ;;  %v861_v40 = vshrl.u32 %v608_v16, 16  ;;  %v846_v52 = vsel %vm6459_vm4, %v841_v22, %v845_v23  ;;  %v2483_v55 = vsel %vm6459_vm4, %v2478_v27, %v6778_v44 }
  0xd1   : > { %v836_v42 = vsel %vm6459_vm4, %v831_v11, %v6775_v35  ;;  %v2493_v35 = vsel %vm6459_vm4, %v2488_v29, %v2492_v31  ;;  %v850_v58 = vrot.slane %v848_v32, 4  ;;  %v2508_v11 = vshrl.u32 %v5635_v49, 16  ;;  %v1356_v29 = vld [vmem:[%s6315_s6 + $0x70] sm:$0xf]  ;;  %v1355_v31 = vld [vmem:[%s6315_s6 + $0x6c] sm:$0xe] }
  0xd2   : > { %v6761_v20 = vpop.f32.mrf.mxu0  ;;  %v6818_v62 = vrot.slane %v857_v17, 5  ;;  %v863_v63 = vrot.slane %v861_v40, 4  ;;  %v1079_v44 = vunpack.c.l.b16 %v836_v42  ;;  %v1603_v13 = vunpack.c.l.b16 %v1486_v46  ;;  %v5636_v46 = vld [vmem:[%s6315_s6 + $0x80] sm:$0x1] }
  0xd3   : > { %v1080_v16 = vunpack.c.l.b16 %v846_v52  ;;  %v2726_v23 = vunpack.c.l.b16 %v2483_v55  ;;  %v2727_v25 = vunpack.c.l.b16 %v2493_v35  ;;  %v867_v27 = vshll.u32 %v609_v61, 16 }
  0xd4   : > { %v6826_v17 = vrot.slane %v2504_v8, 5  ;;  %v2510_v40 = vrot.slane %v2508_v11, 4  ;;  %v1492_v35 = vrot.slane %v1356_v29, 5 }
  0xd5   : > { %v1103_v49 = vpack.c.b16 %v1080_v16, %v1079_v44  ;;  %v2750_v55 = vpack.c.b16 %v2727_v25, %v2726_v23  ;;  %v869_v61 = vrot.slane %v867_v27, 5  ;;  %v610_v16 = vld [vmem:[%s6315_s6 + $0x78] sm:$0xf]  ;;  %v611_v25 = vld [vmem:[%s6315_s6 + $0x7c] sm:$0xf] }
  0xd6   : > { %v6781_v53 = vpop.f32.mrf.mxu2  ;;  %v2511_v44 = vor.u32 %v2510_v40, %v6826_v17  ;;  %v872_v27 = vshrl.u32 %v610_v16, 16  ;;  %v875_v29 = vshll.u32 %v610_v16, 16 }
  0xd7   : > { %v6784_v59 = vpop.f32.mrf.mxu3 }
  0xd8   : > { %7718 = vst [vmem:[#allocation5_spill] sm:$0xff] %v6784_v59  ;;  %v6788_v2 = vpop.f32.mrf.mxu1 }
  0xda   : > { %v6792_v10 = vpop.f32.mrf.mxu0 }
  0xdb   : > { %1218 = vmatmul.bf16.gmra.mxu1 %v1102_v54  ;;  %1742 = vmatmul.bf16.gmra.mxu2 %v1626_v60  ;;  %v1489_v54 = vsel %vm6466_vm5, %v1487_v26, %v1488_v18  ;;  %v853_v60 = vrot.slane %v851_v34, 5  ;;  %v864_v18 = vor.u32 %v863_v63, %v6818_v62 }
  0xdc   : > { %2120 = vmatmul.bf16.gmra.mxu3 %v6137_v4  ;;  %v2495_v4 = vshrl.u32 %v5634_v47, 16  ;;  %v1604_v22 = vunpack.c.l.b16 %v1489_v54  ;;  %v6138_v54 = vld [vmem:[%s6315_s6 + $0x6c] sm:$0xff] }
  0xdd   : > { %2865 = vmatmul.bf16.gmra.mxu0 %v2749_v5  ;;  %v2498_v5 = vshll.u32 %v5634_v47, 16  ;;  %v854_v26 = vor.u32 %v853_v60, %v850_v58  ;;  %v865_v63 = vrot.slane %v864_v18, 4 }
  0xde   : > { %v6796_v41 = vpop.f32.mrf.mxu2  ;;  %v2497_v32 = vrot.slane %v2495_v4, 4  ;;  %v1627_v52 = vpack.c.b16 %v1604_v22, %v1603_v13  ;;  %v1357_v4 = vld [vmem:[%s6315_s6 + $0x74] sm:$0x1]  ;;  %v2514_v13 = vshll.u32 %v5636_v46, 16  ;;  %v1494_v22 = vrot.slane %v1492_v35, 4 }
  0xdf   : > { %v6805_v50 = vpop.f32.mrf.mxu3  ;;  %v2500_v34 = vrot.slane %v2498_v5, 5  ;;  %v855_v60 = vrot.slane %v854_v26, 4  ;;  %v5440_v5 = vrot.slane %v1355_v31, 9  ;;  %v1495_v23 = vrot.slane %v1357_v4, 5  ;;  %v5637_v26 = vld [vmem:[%s6315_s6 + $0x84] sm:$0xf] }
  0xe0   : > { %7719 = vst [vmem:[#allocation6_spill] sm:$0xff] %v6805_v50  ;;  %v6816_v57 = vpop.f32.mrf.mxu1  ;;  %v6188_v31 = vld [vmem:[%s7709_s1 + $0x190] sm:$0xff]  ;;  %v870_v40 = vsel %vm6459_vm4, %v865_v63, %v869_v61  ;;  %v874_v63 = vrot.slane %v872_v27, 4  ;;  %v877_v61 = vrot.slane %v875_v29, 5 }
  0xe1   : > { %v2501_v50 = vor.u32 %v2500_v34, %v2497_v32  ;;  %v1493_v18 = vsel %vm6466_vm5, %v5440_v5, %v1492_v35  ;;  %v5638_v32 = vld [vmem:[%s6315_s6 + $0x88] sm:$0xf]  ;;  %v6196_v34 = vld [vmem:[%s7709_s1 + $0x1d0] sm:$0xff]  ;;  %3726 = vmatpush.bf16.msra.mxu2 %v6188_v31  ;;  %v2519_v35 = vshrl.u32 %v5637_v26, 16  ;;  %v1082_v6 = vunpack.c.l.b16 %v870_v40 }
  0xe2   : > { %v6820_v0 = vpop.f32.mrf.mxu0  ;;  %4471 = vmatpush.bf16.msra.mxu3 %v6196_v34  ;;  %v2528_v16 = vshll.u32 %v5638_v32, 16 }
  0xe3   : > { %v2502_v46 = vrot.slane %v2501_v50, 4  ;;  %v1496_v50 = vsel %vm6466_vm5, %v1494_v22, %v1495_v23  ;;  %v6204_v22 = vld [vmem:[%s7709_s1 + $0x210] sm:$0xff]  ;;  %v612_v23 = vld [vmem:[%s6315_s6 + $0x80] sm:$0x1] }
  0xe4   : > { %v1606_v31 = vunpack.c.l.b16 %v1496_v50  ;;  %v6874_v34 = vrot.slane %v2528_v16, 5  ;;  %4992 = vmatpush.bf16.msra.mxu0 %v6204_v22 }
  0xe6   : > { %v6828_v42 = vpop.f32.mrf.mxu2 }
  0xe7   : > { %v6831_v47 = vpop.f32.mrf.mxu3 }
  0xe8   : > { %7720 = vst [vmem:[#allocation7_spill] sm:$0xff] %v6831_v47  ;;  %v1184_v58 = vpop.f32.mrf.mxu1  ;;  %v2532_v47 = vshrl.u32 %v5638_v32, 16  ;;  %v1359_v32 = vld [vmem:[%s6315_s6 + $0x7c] sm:$0xf] }
  0xe9   : > { %v1264_v8 = vadd.f32 %v1184_v58, %v6630_v12  ;;  %v860_v12 = vsel %vm6459_vm4, %v855_v60, %v6818_v62  ;;  %v2516_v62 = vrot.slane %v2514_v13, 5  ;;  %v2522_v58 = vshll.u32 %v5637_v26, 16 }
  0xea   : > { %v6836_v11 = vpop.f32.mrf.mxu0  ;;  %v1081_v5 = vunpack.c.l.b16 %v860_v12  ;;  %v6164_v12 = vld [vmem:[%s7709_s1 + $0x150] sm:$0xff]  ;;  %v2534_v40 = vrot.slane %v2532_v47, 4 }
  0xeb   : > { %1223 = vmatmul.bf16.gmra.mxu1 %v1103_v49  ;;  %1747 = vmatmul.bf16.gmra.mxu2 %v1627_v52  ;;  %v2512_v49 = vrot.slane %v2511_v44, 4  ;;  %v2524_v29 = vrot.slane %v2522_v58, 5  ;;  %v1358_v58 = vld [vmem:[%s6315_s6 + $0x78] sm:$0xe] }
  0xec   : > { %2125 = vmatmul.bf16.gmra.mxu3 %v6138_v54  ;;  %v881_v54 = vshll.u32 %v611_v25, 16  ;;  %3348 = vmatpush.bf16.msra.mxu1 %v6164_v12  ;;  %v1360_v12 = vld [vmem:[%s6315_s6 + $0x80] sm:$0x1]  ;;  %v2535_v22 = vor.u32 %v2534_v40, %v6874_v34  ;;  %v614_v40 = vld [vmem:[%s6315_s6 + $0x88] sm:$0xf] }
  0xed   : > { %2870 = vmatmul.bf16.gmra.mxu0 %v2750_v55  ;;  %v885_v55 = vshrl.u32 %v611_v25, 16  ;;  %v2517_v26 = vsel %vm6459_vm4, %v2512_v49, %v2516_v62  ;;  %v878_v62 = vor.u32 %v877_v61, %v874_v63  ;;  %v6139_v61 = vld [vmem:[%s6315_s6 + $0x78] sm:$0xff] }
  0xee   : > { %v1708_v52 = vpop.f32.mrf.mxu2  ;;  %v6871_v27 = vrot.slane %v881_v54, 5  ;;  %v2729_v49 = vunpack.c.l.b16 %v2517_v26  ;;  %v891_v54 = vshll.u32 %v612_v23, 16 }
  0xef   : > { %v1788_v60 = vadd.f32 %v1708_v52, %v1264_v8  ;;  %v2086_v4 = vpop.f32.mrf.mxu3  ;;  %v2507_v8 = vsel %vm6459_vm4, %v2502_v46, %v6826_v17  ;;  %v1605_v17 = vunpack.c.l.b16 %v1493_v18  ;;  %v5639_v52 = vld [vmem:[%s6315_s6 + $0x8c] sm:$0x1]  ;;  %v1499_v18 = vrot.slane %v1359_v32, 5 }
  0xf0   : > { %v1186_v59 = vpop.f32.mrf.mxu1  ;;  %v2728_v46 = vunpack.c.l.b16 %v2507_v8  ;;  %v2538_v8 = vshll.u32 %v5639_v52, 16  ;;  %v879_v23 = vrot.slane %v878_v62, 4  ;;  %v2536_v52 = vrot.slane %v2535_v22, 4 }
  0xf1   : > { %v2166_v44 = vadd.f32 %v2086_v4, %v1788_v60  ;;  %v1265_v13 = vadd.f32 %v1186_v59, %v6665_v48  ;;  %v887_v48 = vrot.slane %v885_v55, 4  ;;  %v2521_v59 = vrot.slane %v2519_v35, 4 }
  0xf2   : > { %v2833_v25 = vpop.f32.mrf.mxu0  ;;  %v1104_v55 = vpack.c.b16 %v1082_v6, %v1081_v5  ;;  %v1628_v47 = vpack.c.b16 %v1606_v31, %v1605_v17  ;;  %v2751_v26 = vpack.c.b16 %v2729_v49, %v2728_v46  ;;  %v1501_v17 = vrot.slane %v1499_v18, 4 }
  0xf3   : > { %v888_v35 = vor.u32 %v887_v48, %v6871_v27  ;;  %v2525_v4 = vor.u32 %v2524_v29, %v2521_v59  ;;  %v893_v48 = vrot.slane %v891_v54, 5  ;;  %v5441_v59 = vrot.slane %v1358_v58, 9  ;;  %v613_v29 = vld [vmem:[%s6315_s6 + $0x84] sm:$0xf] }
  0xf4   : > { %v1502_v31 = vrot.slane %v1360_v12, 5  ;;  %v2540_v46 = vrot.slane %v2538_v8, 5  ;;  %v6888_v49 = vadd.f32 %v6836_v11, %v2166_v44  ;;  %v896_v62 = vshrl.u32 %v613_v29, 16 }
  0xf5   : > { %v2526_v32 = vrot.slane %v2525_v4, 4  ;;  %v899_v54 = vshll.u32 %v613_v29, 16  ;;  %v905_v58 = vshll.u32 %v614_v40, 16  ;;  %v909_v4 = vshrl.u32 %v614_v40, 16  ;;  %v615_v29 = vld [vmem:[%s6315_s6 + $0x8c] sm:$0x1] }
  0xf6   : > { %v1710_v60 = vpop.f32.mrf.mxu2  ;;  %v1503_v11 = vsel %vm6466_vm5, %v1501_v17, %v1502_v31 }
  0xf7   : > { %v1789_v16 = vadd.f32 %v1710_v60, %v1265_v13  ;;  %v2088_v50 = vpop.f32.mrf.mxu3  ;;  %v889_v13 = vrot.slane %v888_v35, 4  ;;  %v5640_v60 = vld [vmem:[%s6315_s6 + $0x90] sm:$0xf]  ;;  %v884_v35 = vsel %vm6459_vm4, %v879_v23, %v6871_v27  ;;  %v2531_v44 = vsel %vm6459_vm4, %v2526_v32, %v6874_v34 }
  0xf8   : > { %v1189_v63 = vpop.f32.mrf.mxu1  ;;  %v2543_v12 = vshrl.u32 %v5640_v60, 16  ;;  %v2546_v22 = vshll.u32 %v5640_v60, 16  ;;  %v911_v34 = vrot.slane %v909_v4, 4  ;;  %v1608_v32 = vunpack.c.l.b16 %v1503_v11  ;;  %v1362_v60 = vld [vmem:[%s6315_s6 + $0x88] sm:$0xf] }
  0xf9   : > { %v2167_v24 = vadd.f32 %v2088_v50, %v1789_v16  ;;  %v1266_v6 = vadd.f32 %v1189_v63, %v6688_v21  ;;  %v894_v50 = vsel %vm6459_vm4, %v889_v13, %v893_v48  ;;  %v898_v63 = vrot.slane %v896_v62, 4  ;;  %v1361_v4 = vld [vmem:[%s6315_s6 + $0x84] sm:$0xe] }
  0xfa   : > { %v6883_v5 = vpop.f32.mrf.mxu0  ;;  %v6910_v13 = vrot.slane %v905_v58, 5  ;;  %v1084_v17 = vunpack.c.l.b16 %v894_v50  ;;  %v2730_v40 = vunpack.c.l.b16 %v2531_v44  ;;  %v2548_v62 = vrot.slane %v2546_v22, 5 }
  0xfb   : > { %1228 = vmatmul.bf16.gmra.mxu1 %v1104_v55  ;;  %1752 = vmatmul.bf16.gmra.mxu2 %v1628_v47  ;;  %v6890_v21 = vadd.f32 %v2833_v25, %v2167_v24  ;;  %v5641_v55 = vld [vmem:[%s6315_s6 + $0x94] sm:$0xf]  ;;  %v1500_v24 = vsel %vm6466_vm5, %v5441_v59, %v1499_v18  ;;  %v2541_v47 = vsel %vm6459_vm4, %v2536_v52, %v2540_v46  ;;  %v2545_v46 = vrot.slane %v2543_v12, 4 }
  0xfc   : > { %2130 = vmatmul.bf16.gmra.mxu3 %v6139_v61  ;;  %v901_v61 = vrot.slane %v899_v54, 5  ;;  %v2556_v18 = vshrl.u32 %v5641_v55, 16  ;;  %v1607_v31 = vunpack.c.l.b16 %v1500_v24  ;;  %v2731_v52 = vunpack.c.l.b16 %v2541_v47  ;;  %v1363_v47 = vld [vmem:[%s6315_s6 + $0x8c] sm:$0x1] }
  0xfd   : > { %2875 = vmatmul.bf16.gmra.mxu0 %v2751_v26  ;;  %v2552_v26 = vshll.u32 %v5641_v55, 16  ;;  %v915_v54 = vshll.u32 %v615_v29, 16  ;;  %v1506_v12 = vrot.slane %v1362_v60, 5  ;;  %v2549_v22 = vor.u32 %v2548_v62, %v2545_v46  ;;  %v617_v62 = vld [vmem:[%s6315_s6 + $0x94] sm:$0xf] }
  0xfe   : > { %v1713_v16 = vpop.f32.mrf.mxu2  ;;  %v902_v58 = vor.u32 %v901_v61, %v898_v63  ;;  %v1629_v24 = vpack.c.b16 %v1608_v32, %v1607_v31  ;;  %v5442_v63 = vrot.slane %v1361_v4, 9  ;;  %v1509_v32 = vrot.slane %v1363_v47, 5  ;;  %v6187_v4 = vld [vmem:[%s7709_s1 + $0x188] sm:$0xff] }
  0xff   : > { %v1790_v25 = vadd.f32 %v1713_v16, %v1266_v6  ;;  %v2091_v27 = vpop.f32.mrf.mxu3  ;;  %v1083_v6 = vunpack.c.l.b16 %v884_v35  ;;  %v6913_v55 = vrot.slane %v2552_v26, 5  ;;  %v912_v16 = vor.u32 %v911_v34, %v6910_v13  ;;  %v6140_v26 = vld [vmem:[%s6315_s6 + $0x84] sm:$0xff]  ;;  %3727 = vmatpush.bf16.msra.mxu2 %v6187_v4 }
 0x100   : > { %v1191_v8 = vpop.f32.mrf.mxu1  ;;  %v917_v29 = vrot.slane %v915_v54, 5  ;;  %v2550_v46 = vrot.slane %v2549_v22, 4  ;;  %v5643_v54 = vld [vmem:[%s6315_s6 + $0x9c] sm:$0xf] }
 0x101   : > { %v2168_v23 = vadd.f32 %v2091_v27, %v1790_v25  ;;  %v1267_v48 = vadd.f32 %v1191_v8, %v6714_v56  ;;  %v2558_v56 = vrot.slane %v2556_v18, 4  ;;  %v5642_v25 = vld [vmem:[%s6315_s6 + $0x98] sm:$0x1]  ;;  %v1105_v50 = vpack.c.b16 %v1084_v17, %v1083_v6 }
 0x102   : > { %v2838_v59 = vpop.f32.mrf.mxu0  ;;  %v2752_v27 = vpack.c.b16 %v2731_v52, %v2730_v40  ;;  %v2562_v18 = vshll.u32 %v5642_v25, 16  ;;  %v913_v31 = vrot.slane %v912_v16, 4  ;;  %v616_v40 = vld [vmem:[%s6315_s6 + $0x90] sm:$0xf]  ;;  %v1508_v52 = vrot.slane %v1506_v12, 4 }
 0x103   : > { %v2559_v61 = vor.u32 %v2558_v56, %v6913_v55  ;;  %v6928_v60 = vadd.f32 %v6883_v5, %v2168_v23  ;;  %v5644_v25 = vld [vmem:[%s6315_s6 + $0xa0] sm:$0xf]  ;;  %v2570_v47 = vshll.u32 %v5643_v54, 16 }
 0x104   : > { %v2564_v16 = vrot.slane %v2562_v18, 5  ;;  %v918_v23 = vsel %vm6459_vm4, %v913_v31, %v917_v29  ;;  %v2555_v18 = vsel %vm6459_vm4, %v2550_v46, %v6913_v55  ;;  %v6203_v55 = vld [vmem:[%s7709_s1 + $0x208] sm:$0xff] }
 0x105   : > { %v1086_v29 = vunpack.c.l.b16 %v918_v23  ;;  %4993 = vmatpush.bf16.msra.mxu0 %v6203_v55  ;;  %v2732_v23 = vunpack.c.l.b16 %v2555_v18 }
 0x106   : > { %v1715_v35 = vpop.f32.mrf.mxu2 }
 0x107   : > { %v1791_v11 = vadd.f32 %v1715_v35, %v1267_v48  ;;  %v2093_v44 = vpop.f32.mrf.mxu3  ;;  %v903_v48 = vrot.slane %v902_v58, 4  ;;  %v2560_v58 = vrot.slane %v2559_v61, 4  ;;  %v6195_v35 = vld [vmem:[%s7709_s1 + $0x1c8] sm:$0xff] }
 0x108   : > { %v1194_v8 = vpop.f32.mrf.mxu1  ;;  %4472 = vmatpush.bf16.msra.mxu3 %v6195_v35 }
 0x109   : > { %v2169_v34 = vadd.f32 %v2093_v44, %v1791_v11  ;;  %v1268_v6 = vadd.f32 %v1194_v8, %v6733_v37  ;;  %v1507_v37 = vsel %vm6466_vm5, %v5442_v63, %v1506_v12  ;;  %v908_v5 = vsel %vm6459_vm4, %v903_v48, %v6910_v13 }
 0x10a   : > { %v6922_v17 = vpop.f32.mrf.mxu0  ;;  %v929_v11 = vshll.u32 %v617_v62, 16  ;;  %v933_v44 = vshrl.u32 %v617_v62, 16  ;;  %v1510_v8 = vsel %vm6466_vm5, %v1508_v52, %v1509_v32  ;;  %v2580_v13 = vshrl.u32 %v5644_v25, 16  ;;  %v6163_v52 = vld [vmem:[%s7709_s1 + $0x148] sm:$0xff] }
 0x10b   : > { %1233 = vmatmul.bf16.gmra.mxu1 %v1105_v50  ;;  %1757 = vmatmul.bf16.gmra.mxu2 %v1629_v24  ;;  %v6930_v56 = vadd.f32 %v2838_v59, %v2169_v34  ;;  %v920_v59 = vshrl.u32 %v616_v40, 16  ;;  %v923_v50 = vshll.u32 %v616_v40, 16  ;;  %v1085_v61 = vunpack.c.l.b16 %v908_v5  ;;  %v618_v40 = vld [vmem:[%s6315_s6 + $0x98] sm:$0x1] }
 0x10c   : > { %2135 = vmatmul.bf16.gmra.mxu3 %v6140_v26  ;;  %v2576_v26 = vshll.u32 %v5644_v25, 16  ;;  %v2565_v34 = vsel %vm6459_vm4, %v2560_v58, %v2564_v16  ;;  %v6961_v46 = vrot.slane %v929_v11, 5  ;;  %v2572_v16 = vrot.slane %v2570_v47, 5  ;;  %v1365_v25 = vld [vmem:[%s6315_s6 + $0x94] sm:$0xf]  ;;  %3349 = vmatpush.bf16.msra.mxu1 %v6163_v52 }
 0x10d   : > { %7721 = vst [vmem:[#allocation8_spill] sm:$0xff] %v6930_v56  ;;  %2880 = vmatmul.bf16.gmra.mxu0 %v2752_v27  ;;  %v2567_v27 = vshrl.u32 %v5643_v54, 16  ;;  %v922_v62 = vrot.slane %v920_v59, 4  ;;  %v925_v32 = vrot.slane %v923_v50, 5  ;;  %v935_v54 = vrot.slane %v933_v44, 4 }
 0x10e   : > { %v1718_v24 = vpop.f32.mrf.mxu2  ;;  %v1610_v4 = vunpack.c.l.b16 %v1510_v8  ;;  %v6964_v35 = vrot.slane %v2576_v26, 5  ;;  %v2582_v5 = vrot.slane %v2580_v13, 4  ;;  %v2733_v59 = vunpack.c.l.b16 %v2565_v34  ;;  %v1364_v47 = vld [vmem:[%s6315_s6 + $0x90] sm:$0xe] }
 0x10f   : > { %v1792_v12 = vadd.f32 %v1718_v24, %v1268_v6  ;;  %v2096_v22 = vpop.f32.mrf.mxu3  ;;  %v2569_v58 = vrot.slane %v2567_v27, 4  ;;  %v939_v50 = vshll.u32 %v618_v40, 16  ;;  %v5645_v24 = vld [vmem:[%s6315_s6 + $0xa4] sm:$0x1]  ;;  %v1106_v11 = vpack.c.b16 %v1086_v29, %v1085_v61  ;;  %v6141_v40 = vld [vmem:[%s6315_s6 + $0x90] sm:$0xff] }
 0x110   : > { %v1196_v63 = vpop.f32.mrf.mxu1  ;;  %v926_v44 = vor.u32 %v925_v32, %v922_v62  ;;  %v936_v27 = vor.u32 %v935_v54, %v6961_v46  ;;  %v2583_v52 = vor.u32 %v2582_v5, %v6964_v35  ;;  %v2586_v18 = vshll.u32 %v5645_v24, 16 }
 0x111   : > { %v2170_v48 = vadd.f32 %v2096_v22, %v1792_v12  ;;  %v1269_v6 = vadd.f32 %v1196_v63, %v6761_v20  ;;  %v1609_v20 = vunpack.c.l.b16 %v1507_v37  ;;  %v1366_v37 = vld [vmem:[%s6315_s6 + $0x98] sm:$0x1]  ;;  %v1513_v22 = vrot.slane %v1365_v25, 5  ;;  %v619_v25 = vld [vmem:[%s6315_s6 + $0x9c] sm:$0xf] }
 0x112   : > { %v2843_v31 = vpop.f32.mrf.mxu0  ;;  %v2573_v8 = vor.u32 %v2572_v16, %v2569_v58  ;;  %v2753_v55 = vpack.c.b16 %v2733_v59, %v2732_v23  ;;  %v941_v56 = vrot.slane %v939_v50, 5  ;;  %v5443_v32 = vrot.slane %v1364_v47, 9  ;;  %v620_v59 = vld [vmem:[%s6315_s6 + $0xa0] sm:$0xf]  ;;  %v5647_v47 = vld [vmem:[%s6315_s6 + $0xac] sm:$0xf] }
 0x113   : > { %v1630_v13 = vpack.c.b16 %v1610_v4, %v1609_v20  ;;  %v1516_v54 = vrot.slane %v1366_v37, 5  ;;  %v927_v58 = vrot.slane %v926_v44, 4  ;;  %v1515_v16 = vrot.slane %v1513_v22, 4  ;;  %v5646_v44 = vld [vmem:[%s6315_s6 + $0xa8] sm:$0xf] }
 0x114   : > { %v2574_v20 = vrot.slane %v2573_v8, 4  ;;  %v2584_v4 = vrot.slane %v2583_v52, 4  ;;  %v2588_v5 = vrot.slane %v2586_v18, 5  ;;  %v6977_v23 = vadd.f32 %v6922_v17, %v2170_v48 }
 0x115   : > { %v944_v50 = vshrl.u32 %v619_v25, 16  ;;  %v947_v24 = vshll.u32 %v619_v25, 16  ;;  %v1517_v48 = vsel %vm6466_vm5, %v1515_v16, %v1516_v54  ;;  %v2594_v18 = vshll.u32 %v5646_v44, 16 }
 0x116   : > { %v1720_v12 = vpop.f32.mrf.mxu2  ;;  %v1612_v25 = vunpack.c.l.b16 %v1517_v48 }
 0x117   : > { %v1793_v26 = vadd.f32 %v1720_v12, %v1269_v6  ;;  %v2098_v63 = vpop.f32.mrf.mxu3  ;;  %v937_v6 = vrot.slane %v936_v27, 4  ;;  %v1514_v12 = vsel %vm6466_vm5, %v5443_v32, %v1513_v22  ;;  %v2589_v22 = vsel %vm6459_vm4, %v2584_v4, %v2588_v5  ;;  %v621_v4 = vld [vmem:[%s6315_s6 + $0xa4] sm:$0x1] }
 0x118   : > { %v1199_v34 = vpop.f32.mrf.mxu1  ;;  %v949_v52 = vrot.slane %v947_v24, 5  ;;  %v1611_v54 = vunpack.c.l.b16 %v1514_v12 }
 0x119   : > { %v2171_v61 = vadd.f32 %v2098_v63, %v1793_v26  ;;  %v1270_v29 = vadd.f32 %v1199_v34, %v6792_v10  ;;  %v942_v17 = vsel %vm6459_vm4, %v937_v6, %v941_v56  ;;  %v953_v26 = vshll.u32 %v620_v59, 16 }
 0x11a   : > { %v6973_v62 = vpop.f32.mrf.mxu0  ;;  %v957_v63 = vshrl.u32 %v620_v59, 16  ;;  %v2591_v56 = vshrl.u32 %v5646_v44, 16  ;;  %v1088_v32 = vunpack.c.l.b16 %v942_v17  ;;  %v1368_v59 = vld [vmem:[%s6315_s6 + $0xa0] sm:$0xf]  ;;  %v5648_v17 = vld [vmem:[%s6315_s6 + $0xb0] sm:$0x1] }
 0x11b   : > { %1238 = vmatmul.bf16.gmra.mxu1 %v1106_v11  ;;  %1762 = vmatmul.bf16.gmra.mxu2 %v1630_v13  ;;  %v6979_v10 = vadd.f32 %v2843_v31, %v2171_v61  ;;  %v932_v11 = vsel %vm6459_vm4, %v927_v58, %v6961_v46  ;;  %v2579_v31 = vsel %vm6459_vm4, %v2574_v20, %v6964_v35  ;;  %v946_v46 = vrot.slane %v944_v50, 4  ;;  %v1367_v50 = vld [vmem:[%s6315_s6 + $0x9c] sm:$0xe] }
 0x11c   : > { %2140 = vmatmul.bf16.gmra.mxu3 %v6141_v40  ;;  %v2604_v61 = vshrl.u32 %v5647_v47, 16  ;;  %v6999_v58 = vrot.slane %v953_v26, 5  ;;  %v959_v6 = vrot.slane %v957_v63, 4  ;;  %v2734_v16 = vunpack.c.l.b16 %v2579_v31  ;;  %v6142_v26 = vld [vmem:[%s6315_s6 + $0x9c] sm:$0xff] }
 0x11d   : > { %2885 = vmatmul.bf16.gmra.mxu0 %v2753_v55  ;;  %v2600_v55 = vshll.u32 %v5647_v47, 16  ;;  %v2735_v20 = vunpack.c.l.b16 %v2589_v22  ;;  %v950_v5 = vor.u32 %v949_v52, %v946_v46  ;;  %v2593_v24 = vrot.slane %v2591_v56, 4 }
 0x11e   : > { %v1723_v27 = vpop.f32.mrf.mxu2  ;;  %v960_v31 = vor.u32 %v959_v6, %v6999_v58  ;;  %v5444_v46 = vrot.slane %v1367_v50, 9  ;;  %v1520_v52 = vrot.slane %v1368_v59, 5  ;;  %v623_v6 = vld [vmem:[%s6315_s6 + $0xac] sm:$0xf] }
 0x11f   : > { %v1794_v37 = vadd.f32 %v1723_v27, %v1270_v29  ;;  %v2101_v8 = vpop.f32.mrf.mxu3  ;;  %v1087_v29 = vunpack.c.l.b16 %v932_v11  ;;  %v7004_v44 = vrot.slane %v2600_v55, 5  ;;  %v2606_v27 = vrot.slane %v2604_v61, 4  ;;  %v1369_v55 = vld [vmem:[%s6315_s6 + $0xa4] sm:$0x1] }
 0x120   : > { %v1201_v13 = vpop.f32.mrf.mxu1  ;;  %v2754_v63 = vpack.c.b16 %v2735_v20, %v2734_v16  ;;  %v1522_v59 = vrot.slane %v1520_v52, 4  ;;  %v1523_v50 = vrot.slane %v1369_v55, 5 }
 0x121   : > { %v2172_v34 = vadd.f32 %v2101_v8, %v1794_v37  ;;  %v1271_v40 = vadd.f32 %v1201_v13, %v6820_v0  ;;  %v2596_v0 = vrot.slane %v2594_v18, 5  ;;  %v1107_v12 = vpack.c.b16 %v1088_v32, %v1087_v29 }
 0x122   : > { %v2848_v35 = vpop.f32.mrf.mxu0  ;;  %v1631_v37 = vpack.c.b16 %v1612_v25, %v1611_v54  ;;  %v963_v8 = vshll.u32 %v621_v4, 16  ;;  %v951_v13 = vrot.slane %v950_v5, 4  ;;  %v2610_v29 = vshll.u32 %v5648_v17, 16  ;;  %v622_v25 = vld [vmem:[%s6315_s6 + $0xa8] sm:$0xf] }
 0x123   : > { %v2597_v61 = vor.u32 %v2596_v0, %v2593_v24  ;;  %v961_v32 = vrot.slane %v960_v31, 4  ;;  %v7016_v16 = vadd.f32 %v6973_v62, %v2172_v34  ;;  %v7025_v5 = vsel %vm6466_vm5, %v5444_v46, %v1520_v52  ;;  %v6186_v24 = vld [vmem:[%s7709_s1 + $0x180] sm:$0xff]  ;;  %v5649_v62 = vld [vmem:[%s6315_s6 + $0xb4] sm:$0xf] }
 0x124   : > { %v965_v54 = vrot.slane %v963_v8, 5  ;;  %v956_v4 = vsel %vm6459_vm4, %v951_v13, %v6999_v58  ;;  %v6194_v34 = vld [vmem:[%s7709_s1 + $0x1c0] sm:$0xff]  ;;  %v2612_v58 = vrot.slane %v2610_v29, 5  ;;  %v968_v17 = vshrl.u32 %v622_v25, 16  ;;  %3728 = vmatpush.bf16.msra.mxu2 %v6186_v24 }
 0x125   : > { %v2598_v0 = vrot.slane %v2597_v61, 4  ;;  %4473 = vmatpush.bf16.msra.mxu3 %v6194_v34  ;;  %v2618_v13 = vshll.u32 %v5649_v62, 16  ;;  %v1613_v46 = vunpack.c.l.b16 %v7025_v5 }
 0x126   : > { %v1725_v11 = vpop.f32.mrf.mxu2  ;;  %v970_v5 = vrot.slane %v968_v17, 4 }
 0x127   : > { %v1795_v48 = vadd.f32 %v1725_v11, %v1271_v40  ;;  %v2103_v47 = vpop.f32.mrf.mxu3  ;;  %v2607_v40 = vor.u32 %v2606_v27, %v7004_v44  ;;  %v5650_v11 = vld [vmem:[%s6315_s6 + $0xb8] sm:$0xf]  ;;  %v2603_v29 = vsel %vm6459_vm4, %v2598_v0, %v7004_v44 }
 0x128   : > { %v1204_v22 = vpop.f32.mrf.mxu1  ;;  %v2624_v52 = vshll.u32 %v5650_v11, 16  ;;  %v2736_v0 = vunpack.c.l.b16 %v2603_v29 }
 0x129   : > { %v2173_v56 = vadd.f32 %v2103_v47, %v1795_v48  ;;  %v2608_v27 = vrot.slane %v2607_v40, 4  ;;  %v971_v48 = vshll.u32 %v622_v25, 16  ;;  %v977_v47 = vshll.u32 %v623_v6, 16  ;;  %v6202_v25 = vld [vmem:[%s7709_s1 + $0x200] sm:$0xff] }
 0x12a   : > { %v7009_v18 = vpop.f32.mrf.mxu0  ;;  %v1089_v40 = vunpack.c.l.b16 %v956_v4  ;;  %4994 = vmatpush.bf16.msra.mxu0 %v6202_v25  ;;  %v6143_v25 = vld [vmem:[%s6315_s6 + $0xa8] sm:$0xff] }
 0x12b   : > { %1243 = vmatmul.bf16.gmra.mxu1 %v1107_v12  ;;  %1767 = vmatmul.bf16.gmra.mxu2 %v1631_v37  ;;  %v7018_v20 = vadd.f32 %v2848_v35, %v2173_v56  ;;  %v1272_v35 = vadd.f32 %v1204_v22, %v6627_v9  ;;  %v981_v37 = vshrl.u32 %v623_v6, 16  ;;  %v1524_v22 = vsel %vm6466_vm5, %v1522_v59, %v1523_v50  ;;  %v624_v6 = vld [vmem:[%s6315_s6 + $0xb0] sm:$0x1] }
 0x12c   : > { %2145 = vmatmul.bf16.gmra.mxu3 %v6142_v26  ;;  %v966_v26 = vsel %vm6459_vm4, %v961_v32, %v965_v54  ;;  %v2628_v56 = vshrl.u32 %v5650_v11, 16  ;;  %v2613_v32 = vsel %vm6459_vm4, %v2608_v27, %v2612_v58  ;;  %v6162_v54 = vld [vmem:[%s7709_s1 + $0x140] sm:$0xff]  ;;  %v973_v59 = vrot.slane %v971_v48, 5  ;;  %v5651_v48 = vld [vmem:[%s6315_s6 + $0xbc] sm:$0x1] }
 0x12d   : > { %7722 = vst [vmem:[#allocation9_spill] sm:$0xff] %v7018_v20  ;;  %2890 = vmatmul.bf16.gmra.mxu0 %v2754_v63  ;;  %v2615_v63 = vshrl.u32 %v5649_v62, 16  ;;  %v7053_v4 = vrot.slane %v977_v47, 5  ;;  %v983_v50 = vrot.slane %v981_v37, 4  ;;  %v1090_v24 = vunpack.c.l.b16 %v966_v26  ;;  %v1371_v62 = vld [vmem:[%s6315_s6 + $0xac] sm:$0xf]  ;;  %3350 = vmatpush.bf16.msra.mxu1 %v6162_v54 }
 0x12e   : > { %v1728_v12 = vpop.f32.mrf.mxu2  ;;  %v1614_v44 = vunpack.c.l.b16 %v1524_v22  ;;  %v2737_v27 = vunpack.c.l.b16 %v2613_v32  ;;  %v7056_v58 = vrot.slane %v2624_v52, 5  ;;  %v2630_v11 = vrot.slane %v2628_v56, 4  ;;  %v1372_v54 = vld [vmem:[%s6315_s6 + $0xb0] sm:$0x1] }
 0x12f   : > { %v1796_v31 = vadd.f32 %v1728_v12, %v1272_v35  ;;  %v2106_v8 = vpop.f32.mrf.mxu3  ;;  %v2617_v34 = vrot.slane %v2615_v63, 4  ;;  %v2620_v35 = vrot.slane %v2618_v13, 5  ;;  %v987_v17 = vshll.u32 %v624_v6, 16 }
 0x130   : > { %v1206_v9 = vpop.f32.mrf.mxu1  ;;  %v974_v37 = vor.u32 %v973_v59, %v970_v5  ;;  %v1527_v26 = vrot.slane %v1371_v62, 5  ;;  %v1108_v22 = vpack.c.b16 %v1090_v24, %v1089_v40  ;;  %v1632_v29 = vpack.c.b16 %v1614_v44, %v1613_v46 }
 0x131   : > { %v2174_v55 = vadd.f32 %v2106_v8, %v1796_v31  ;;  %v1273_v12 = vadd.f32 %v1206_v9, %v6663_v43  ;;  %v984_v31 = vor.u32 %v983_v50, %v7053_v4  ;;  %v1370_v8 = vld [vmem:[%s6315_s6 + $0xa8] sm:$0xe]  ;;  %v2621_v32 = vor.u32 %v2620_v35, %v2617_v34 }
 0x132   : > { %v2853_v61 = vpop.f32.mrf.mxu0  ;;  %v2755_v56 = vpack.c.b16 %v2737_v27, %v2736_v0  ;;  %v2631_v20 = vor.u32 %v2630_v11, %v7056_v58  ;;  %v2634_v43 = vshll.u32 %v5651_v48, 16  ;;  %v989_v5 = vrot.slane %v987_v17, 5  ;;  %v625_v0 = vld [vmem:[%s6315_s6 + $0xb4] sm:$0xf]  ;;  %v626_v11 = vld [vmem:[%s6315_s6 + $0xb8] sm:$0xf] }
 0x133   : > { %v5445_v59 = vrot.slane %v1370_v8, 9  ;;  %v975_v50 = vrot.slane %v974_v37, 4  ;;  %v985_v62 = vrot.slane %v984_v31, 4  ;;  %v1530_v40 = vrot.slane %v1372_v54, 5  ;;  %v5652_v17 = vld [vmem:[%s6315_s6 + $0xc0] sm:$0xf] }
 0x134   : > { %v2622_v46 = vrot.slane %v2621_v32, 4  ;;  %v7066_v24 = vadd.f32 %v7009_v18, %v2174_v55  ;;  %v2632_v34 = vrot.slane %v2631_v20, 4  ;;  %v2636_v35 = vrot.slane %v2634_v43, 5 }
 0x135   : > { %v990_v18 = vsel %vm6459_vm4, %v985_v62, %v989_v5  ;;  %v1528_v55 = vsel %vm6466_vm5, %v5445_v59, %v1527_v26  ;;  %v992_v8 = vshrl.u32 %v625_v0, 16  ;;  %v627_v62 = vld [vmem:[%s6315_s6 + $0xbc] sm:$0x1] }
 0x136   : > { %v1730_v47 = vpop.f32.mrf.mxu2 }
 0x137   : > { %v1797_v63 = vadd.f32 %v1730_v47, %v1273_v12  ;;  %v2108_v13 = vpop.f32.mrf.mxu3  ;;  %v1529_v12 = vrot.slane %v1527_v26, 4  ;;  %v980_v47 = vsel %vm6459_vm4, %v975_v50, %v7053_v4  ;;  %v2637_v4 = vsel %vm6459_vm4, %v2632_v34, %v2636_v35  ;;  %v1374_v35 = vld [vmem:[%s6315_s6 + $0xb8] sm:$0xf] }
 0x138   : > { %v1209_v52 = vpop.f32.mrf.mxu1  ;;  %v2639_v26 = vshrl.u32 %v5652_v17, 16  ;;  %v1091_v43 = vunpack.c.l.b16 %v980_v47  ;;  %v2739_v50 = vunpack.c.l.b16 %v2637_v4 }
 0x139   : > { %v2175_v9 = vadd.f32 %v2108_v13, %v1797_v63  ;;  %v1274_v27 = vadd.f32 %v1209_v52, %v6683_v15  ;;  %v1531_v20 = vsel %vm6466_vm5, %v1529_v12, %v1530_v40  ;;  %v2627_v15 = vsel %vm6459_vm4, %v2622_v46, %v7056_v58 }
 0x13a   : > { %v2856_v6 = vpop.f32.mrf.mxu0  ;;  %v995_v63 = vshll.u32 %v625_v0, 16  ;;  %v2642_v52 = vshll.u32 %v5652_v17, 16  ;;  %v1615_v58 = vunpack.c.l.b16 %v1528_v55  ;;  %v1616_v5 = vunpack.c.l.b16 %v1531_v20  ;;  %v1373_v17 = vld [vmem:[%s6315_s6 + $0xb4] sm:$0xe] }
 0x13b   : > { %1248 = vmatmul.bf16.gmra.mxu1 %v1108_v22  ;;  %1772 = vmatmul.bf16.gmra.mxu2 %v1632_v29  ;;  %v7068_v44 = vadd.f32 %v2853_v61, %v2175_v9  ;;  %v5653_v61 = vld [vmem:[%s6315_s6 + $0xc4] sm:$0xf]  ;;  %v1001_v22 = vshll.u32 %v626_v11, 16  ;;  %v1005_v29 = vshrl.u32 %v626_v11, 16  ;;  %v1092_v9 = vunpack.c.l.b16 %v990_v18 }
 0x13c   : > { %2150 = vmatmul.bf16.gmra.mxu3 %v6143_v25  ;;  %v2648_v25 = vshll.u32 %v5653_v61, 16  ;;  %v2738_v59 = vunpack.c.l.b16 %v2627_v15  ;;  %v994_v12 = vrot.slane %v992_v8, 4  ;;  %v997_v40 = vrot.slane %v995_v63, 5 }
 0x13d   : > { %2895 = vmatmul.bf16.gmra.mxu0 %v2755_v56  ;;  %v2652_v56 = vshrl.u32 %v5653_v61, 16  ;;  %v7090_v46 = vrot.slane %v1001_v22, 5  ;;  %v1007_v34 = vrot.slane %v1005_v29, 4  ;;  %v2641_v0 = vrot.slane %v2639_v26, 4  ;;  %v5654_v61 = vld [vmem:[%s6315_s6 + $0xc8] sm:$0x1] }
 0x13e   : > { %v1733_v48 = vpop.f32.mrf.mxu2  ;;  %v7097_v47 = vrot.slane %v2648_v25, 5  ;;  %v1109_v20 = vpack.c.b16 %v1092_v9, %v1091_v43  ;;  %v1633_v15 = vpack.c.b16 %v1616_v5, %v1615_v58  ;;  %v2756_v8 = vpack.c.b16 %v2739_v50, %v2738_v59  ;;  %v5911_v5 = vld [vmem:[%s6315_s6 + $0x18] sm:$0xf]  ;;  %v5912_v59 = vld [vmem:[%s6315_s6 + $0x1c] sm:$0xf] }
 0x13f   : > { %v1798_v37 = vadd.f32 %v1733_v48, %v1274_v27  ;;  %v2111_v31 = vpop.f32.mrf.mxu3  ;;  %v2644_v48 = vrot.slane %v2642_v52, 5  ;;  %v2654_v18 = vrot.slane %v2652_v56, 4  ;;  %v1011_v63 = vshll.u32 %v627_v62, 16 }
 0x140   : > { %v1211_v13 = vpop.f32.mrf.mxu1  ;;  %v998_v22 = vor.u32 %v997_v40, %v994_v12  ;;  %v5446_v29 = vrot.slane %v1373_v17, 9  ;;  %v1534_v26 = vrot.slane %v1374_v35, 5  ;;  %v2658_v43 = vshll.u32 %v5654_v61, 16 }
 0x141   : > { %v2176_v54 = vadd.f32 %v2111_v31, %v1798_v37  ;;  %v1275_v11 = vadd.f32 %v1211_v13, %v6707_v51  ;;  %v1008_v51 = vor.u32 %v1007_v34, %v7090_v46  ;;  %v1375_v13 = vld [vmem:[%s6315_s6 + $0xbc] sm:$0x1]  ;;  %v2645_v25 = vor.u32 %v2644_v48, %v2641_v0 }
 0x142   : > { %v2858_v32 = vpop.f32.mrf.mxu0  ;;  %v2655_v56 = vor.u32 %v2654_v18, %v7097_v47  ;;  %v1013_v9 = vrot.slane %v1011_v63, 5  ;;  %v1537_v58 = vrot.slane %v1375_v13, 5  ;;  %v999_v62 = vrot.slane %v998_v22, 4  ;;  %v5688_v13 = vld [vmem:[%s6315_s6 + $0x10] sm:$0xf] }
 0x143   : > { %v7093_v27 = vadd.f32 %v2856_v6, %v2176_v54  ;;  %v6144_v6 = vld [vmem:[%s6315_s6 + $0xb4] sm:$0xff]  ;;  %v1009_v12 = vrot.slane %v1008_v51, 4  ;;  %v1535_v40 = vsel %vm6466_vm5, %v5446_v29, %v1534_v26  ;;  %v1536_v34 = vrot.slane %v1534_v26, 4 }
 0x144   : > { %v2646_v0 = vrot.slane %v2645_v25, 4  ;;  %v2660_v17 = vrot.slane %v2658_v43, 5  ;;  %v3923_v18 = vshrl.u32 %v5911_v5, 16 }
 0x146   : > { %v1735_v55 = vpop.f32.mrf.mxu2  ;;  %v2651_v22 = vsel %vm6459_vm4, %v2646_v0, %v7097_v47  ;;  %v5992_v47 = vld [vmem:[%s6315_s6 + $0x1c] sm:$0xf] }
 0x147   : > { %v1799_v37 = vadd.f32 %v1735_v55, %v1275_v11  ;;  %v2113_v31 = vpop.f32.mrf.mxu3  ;;  %v2656_v11 = vrot.slane %v2655_v56, 4  ;;  %v3926_v55 = vshll.u32 %v5911_v5, 16  ;;  %v2740_v5 = vunpack.c.l.b16 %v2651_v22 }
 0x148   : > { %v1214_v4 = vpop.f32.mrf.mxu1 }
 0x149   : > { %v2177_v54 = vadd.f32 %v2113_v31, %v1799_v37  ;;  %v1276_v35 = vadd.f32 %v1214_v4, %v6730_v28  ;;  %v1014_v28 = vsel %vm6459_vm4, %v1009_v12, %v1013_v9  ;;  %v2661_v51 = vsel %vm6459_vm4, %v2656_v11, %v2660_v17  ;;  %v5913_v9 = vld [vmem:[%s6315_s6 + $0x20] sm:$0x1] }
 0x14a   : > { %v2861_v52 = vpop.f32.mrf.mxu0  ;;  %v3928_v29 = vrot.slane %v3926_v55, 5  ;;  %v1094_v56 = vunpack.c.l.b16 %v1014_v28  ;;  %v3073_v12 = vrot.slane %v5688_v13, 5  ;;  %v3942_v11 = vshll.u32 %v5913_v9, 16  ;;  %v5689_v55 = vld [vmem:[%s6315_s6 + $0x14] sm:$0x1] }
 0x14b   : > { %1253 = vmatmul.bf16.gmra.mxu1 %v1109_v20  ;;  %1777 = vmatmul.bf16.gmra.mxu2 %v1633_v15  ;;  %v7106_v50 = vadd.f32 %v2858_v32, %v2177_v54  ;;  %v3932_v20 = vshll.u32 %v5912_v59, 16  ;;  %v3936_v32 = vshrl.u32 %v5912_v59, 16  ;;  %v1004_v15 = vsel %vm6459_vm4, %v999_v62, %v7090_v46  ;;  %v5915_v9 = vld [vmem:[%s6315_s6 + $0x28] sm:$0xf] }
 0x14c   : > { %2155 = vmatmul.bf16.gmra.mxu3 %v6144_v6  ;;  %v1617_v6 = vunpack.c.l.b16 %v1535_v40  ;;  %v3925_v46 = vrot.slane %v3923_v18, 4  ;;  %v1093_v25 = vunpack.c.l.b16 %v1004_v15  ;;  %v2741_v59 = vunpack.c.l.b16 %v2661_v51  ;;  %v5991_v15 = vld [vmem:[%s6315_s6 + $0x18] sm:$0xe] }
 0x14d   : > { %2900 = vmatmul.bf16.gmra.mxu0 %v2756_v8  ;;  %v1538_v8 = vsel %vm6466_vm5, %v1536_v34, %v1537_v58  ;;  %v7124_v26 = vrot.slane %v3932_v20, 5  ;;  %v3938_v54 = vrot.slane %v3936_v32, 4  ;;  %v5687_v34 = vld [vmem:[%s6315_s6 + $0xc] sm:$0xe]  ;;  %v4717_v20 = vrot.slane %v5992_v47, 5 }
 0x14e   : > { %v1738_v48 = vpop.f32.mrf.mxu2  ;;  %v1618_v43 = vunpack.c.l.b16 %v1538_v8  ;;  %v1110_v18 = vpack.c.b16 %v1094_v56, %v1093_v25  ;;  %v5735_v8 = vrot.slane %v5687_v34, 9  ;;  %v3076_v22 = vrot.slane %v5689_v55, 5 }
 0x14f   : > { %v1800_v61 = vadd.f32 %v1738_v48, %v1276_v35  ;;  %v2116_v37 = vpop.f32.mrf.mxu3  ;;  %v3929_v35 = vor.u32 %v3928_v29, %v3925_v46  ;;  %v3939_v0 = vor.u32 %v3938_v54, %v7124_v26  ;;  %v3944_v46 = vrot.slane %v3942_v11, 5 }
 0x150   : > { %v1216_v31 = vpop.f32.mrf.mxu1  ;;  %v4719_v29 = vrot.slane %v4717_v20, 4 }
 0x151   : > { %v2178_v63 = vadd.f32 %v2116_v37, %v1800_v61  ;;  %v1277_v62 = vadd.f32 %v1216_v31, %v6759_v14  ;;  %v6145_v61 = vld [vmem:[%s6315_s6 + $0xc0] sm:$0xff]  ;;  %v2757_v37 = vpack.c.b16 %v2741_v59, %v2740_v5  ;;  %v3930_v51 = vrot.slane %v3929_v35, 4 }
 0x152   : > { %v2863_v4 = vpop.f32.mrf.mxu0  ;;  %v5993_v14 = vld [vmem:[%s6315_s6 + $0x20] sm:$0x1]  ;;  %v3940_v13 = vrot.slane %v3939_v0, 4  ;;  %v3074_v59 = vsel %vm6466_vm5, %v5735_v8, %v3073_v12 }
 0x153   : > { %v7127_v58 = vadd.f32 %v2861_v52, %v2178_v63  ;;  %v1634_v52 = vpack.c.b16 %v1618_v43, %v1617_v6  ;;  %v3075_v63 = vrot.slane %v3073_v12, 4  ;;  %v6039_v6 = vrot.slane %v5991_v15, 9  ;;  %v5914_v43 = vld [vmem:[%s6315_s6 + $0x24] sm:$0xf] }
 0x154   : > { %v4720_v54 = vrot.slane %v5993_v14, 5  ;;  %v3945_v34 = vsel %vm6459_vm4, %v3940_v13, %v3944_v46  ;;  %v3947_v0 = vshrl.u32 %v5914_v43, 16  ;;  %v3950_v11 = vshll.u32 %v5914_v43, 16  ;;  %v5691_v14 = vld [vmem:[%s6315_s6 + $0x1c] sm:$0xf] }
 0x155   : > { %v3077_v47 = vsel %vm6466_vm5, %v3075_v63, %v3076_v22  ;;  %v5916_v13 = vld [vmem:[%s6315_s6 + $0x2c] sm:$0x1] }
 0x156   : > { %v1740_v40 = vpop.f32.mrf.mxu2  ;;  %v4721_v35 = vsel %vm6466_vm5, %v4719_v29, %v4720_v54  ;;  %v3232_v55 = vunpack.c.l.b16 %v3077_v47  ;;  %v3952_v8 = vrot.slane %v3950_v11, 5  ;;  %v5690_v47 = vld [vmem:[%s6315_s6 + $0x18] sm:$0xe] }
 0x157   : > { %v1801_v17 = vadd.f32 %v1740_v40, %v1277_v62  ;;  %v2118_v48 = vpop.f32.mrf.mxu3  ;;  %v3935_v62 = vsel %vm6459_vm4, %v3930_v51, %v7124_v26  ;;  %v5736_v11 = vrot.slane %v5690_v47, 9 }
 0x158   : > { %v1219_v32 = vpop.f32.mrf.mxu1 }
 0x159   : > { %v2179_v31 = vadd.f32 %v2118_v48, %v1801_v17  ;;  %v1278_v56 = vadd.f32 %v1219_v32, %v6788_v2  ;;  %v4718_v2 = vsel %vm6466_vm5, %v6039_v6, %v4717_v20  ;;  %v3956_v17 = vshll.u32 %v5915_v9, 16  ;;  %v5995_v6 = vld [vmem:[%s6315_s6 + $0x28] sm:$0xf] }
 0x15a   : > { %v2866_v28 = vpop.f32.mrf.mxu0  ;;  %v3960_v48 = vshrl.u32 %v5915_v9, 16  ;;  %v4354_v32 = vunpack.c.l.b16 %v3935_v62  ;;  %v4876_v20 = vunpack.c.l.b16 %v4721_v35  ;;  %v3080_v9 = vrot.slane %v5691_v14, 5 }
 0x15b   : > { %1258 = vmatmul.bf16.gmra.mxu1 %v1110_v18  ;;  %1782 = vmatmul.bf16.gmra.mxu2 %v1634_v52  ;;  %v7137_v25 = vadd.f32 %v2863_v4, %v2179_v31  ;;  %v3231_v52 = vunpack.c.l.b16 %v3074_v59  ;;  %v3949_v31 = vrot.slane %v3947_v0, 4  ;;  %v7158_v63 = vrot.slane %v3956_v17, 5  ;;  %v5996_v0 = vld [vmem:[%s6315_s6 + $0x2c] sm:$0x1] }
 0x15c   : > { %2160 = vmatmul.bf16.gmra.mxu3 %v6145_v61  ;;  %v4355_v61 = vunpack.c.l.b16 %v3945_v34  ;;  %v3962_v22 = vrot.slane %v3960_v48, 4  ;;  %v4724_v35 = vrot.slane %v5995_v6, 5  ;;  %v3082_v17 = vrot.slane %v3080_v9, 4  ;;  %v5917_v48 = vld [vmem:[%s6315_s6 + $0x30] sm:$0xf] }
 0x15d   : > { %2905 = vmatmul.bf16.gmra.mxu0 %v2757_v37  ;;  %v4875_v37 = vunpack.c.l.b16 %v4718_v2  ;;  %v3953_v62 = vor.u32 %v3952_v8, %v3949_v31  ;;  %v5692_v2 = vld [vmem:[%s6315_s6 + $0x20] sm:$0x1]  ;;  %v4727_v8 = vrot.slane %v5996_v0, 5  ;;  %v5919_v0 = vld [vmem:[%s6315_s6 + $0x38] sm:$0x1] }
 0x15e   : > { %v1743_v5 = vpop.f32.mrf.mxu2  ;;  %v4386_v43 = vpack.c.b16 %v4355_v61, %v4354_v32  ;;  %v4726_v31 = vrot.slane %v4724_v35, 4 }
 0x15f   : > { %v1802_v40 = vadd.f32 %v1743_v5, %v1278_v56  ;;  %v2121_v4 = vpop.f32.mrf.mxu3  ;;  %v3263_v56 = vpack.c.b16 %v3232_v55, %v3231_v52  ;;  %v4907_v59 = vpack.c.b16 %v4876_v20, %v4875_v37  ;;  %v3083_v55 = vrot.slane %v5692_v2, 5 }
 0x160   : > { %v1221_v12 = vpop.f32.mrf.mxu1  ;;  %v3954_v32 = vrot.slane %v3953_v62, 4  ;;  %v4728_v62 = vsel %vm6466_vm5, %v4726_v31, %v4727_v8  ;;  %v3990_v8 = vshll.u32 %v5919_v0, 16 }
 0x161   : > { %v2180_v18 = vadd.f32 %v2121_v4, %v1802_v40  ;;  %v1279_v51 = vadd.f32 %v1221_v12, %v6816_v57  ;;  %v3963_v57 = vor.u32 %v3962_v22, %v7158_v63  ;;  %v3966_v40 = vshll.u32 %v5916_v13, 16  ;;  %v5994_v12 = vld [vmem:[%s6315_s6 + $0x24] sm:$0xe] }
 0x162   : > { %v2868_v26 = vpop.f32.mrf.mxu0  ;;  %v6040_v14 = vrot.slane %v5994_v12, 9  ;;  %v3974_v13 = vshll.u32 %v5917_v48, 16 }
 0x163   : > { %v7155_v15 = vadd.f32 %v2866_v28, %v2180_v18  ;;  %v6170_v28 = vld [vmem:[%s6315_s6 + $0x18] sm:$0xff]  ;;  %v5918_v18 = vld [vmem:[%s6315_s6 + $0x34] sm:$0xf]  ;;  %v3964_v61 = vrot.slane %v3963_v57, 4  ;;  %v3968_v37 = vrot.slane %v3966_v40, 5 }
 0x164   : > { %v3984_v6 = vshrl.u32 %v5918_v18, 16  ;;  %v4725_v47 = vsel %vm6466_vm5, %v6040_v14, %v4724_v35  ;;  %v3976_v40 = vrot.slane %v3974_v13, 5  ;;  %v6171_v13 = vld [vmem:[%s6315_s6 + $0x24] sm:$0xff] }
 0x165   : > { %v4877_v35 = vunpack.c.l.b16 %v4725_v47 }
 0x166   : > { %v1745_v46 = vpop.f32.mrf.mxu2  ;;  %v3986_v2 = vrot.slane %v3984_v6, 4 }
 0x167   : > { %v1803_v29 = vadd.f32 %v1745_v46, %v1279_v51  ;;  %v2123_v54 = vpop.f32.mrf.mxu3  ;;  %v3971_v51 = vshrl.u32 %v5917_v48, 16  ;;  %v3980_v46 = vshll.u32 %v5918_v18, 16  ;;  %v4878_v18 = vunpack.c.l.b16 %v4728_v62 }
 0x168   : > { %v1224_v5 = vpop.f32.mrf.mxu1 }
 0x169   : > { %v2181_v4 = vadd.f32 %v2123_v54, %v1803_v29  ;;  %v1280_v20 = vadd.f32 %v1224_v5, %v6647_v30  ;;  %v3959_v30 = vsel %vm6459_vm4, %v3954_v32, %v7158_v63  ;;  %v3973_v57 = vrot.slane %v3971_v51, 4 }
 0x16a   : > { %v2871_v34 = vpop.f32.mrf.mxu0 }
 0x16b   : > { %3351 = vmatmul.bf16.vlgmr.msra.gmra.mxu1 %v3263_v56  ;;  %3729 = vmatmul.bf16.vlgmr.msra.gmra.mxu2 %v6170_v28  ;;  %v7171_v52 = vadd.f32 %v2868_v26, %v2181_v4  ;;  %v3081_v56 = vsel %vm6466_vm5, %v5736_v11, %v3080_v9  ;;  %v3084_v28 = vsel %vm6466_vm5, %v3082_v17, %v3083_v55  ;;  %v5694_v9 = vld [vmem:[%s6315_s6 + $0x28] sm:$0xf]  ;;  %v7188_v4 = vrot.slane %v3980_v46, 5  ;;  %v5998_v55 = vld [vmem:[%s6315_s6 + $0x34] sm:$0xf] }
 0x16c   : > { %4474 = vmatmul.bf16.vlgmr.msra.gmra.mxu3 %v4386_v43  ;;  %v3233_v63 = vunpack.c.l.b16 %v3081_v56  ;;  %v3234_v12 = vunpack.c.l.b16 %v3084_v28  ;;  %v4356_v17 = vunpack.c.l.b16 %v3959_v30  ;;  %v3977_v14 = vor.u32 %v3976_v40, %v3973_v57  ;;  %v5695_v46 = vld [vmem:[%s6315_s6 + $0x2c] sm:$0x1]  ;;  %v5997_v28 = vld [vmem:[%s6315_s6 + $0x30] sm:$0xe] }
 0x16d   : > { %4995 = vmatmul.bf16.vlgmr.msra.gmra.mxu0 %v4907_v59  ;;  %v3969_v59 = vsel %vm6459_vm4, %v3964_v61, %v3968_v37  ;;  %v3087_v61 = vrot.slane %v5694_v9, 5  ;;  %v3987_v31 = vor.u32 %v3986_v2, %v7188_v4  ;;  %v4731_v6 = vrot.slane %v5998_v55, 5 }
 0x16e   : > { %v1748_v22 = vpop.f32.mrf.mxu2  ;;  %v4357_v48 = vunpack.c.l.b16 %v3969_v59  ;;  %v3264_v51 = vpack.c.b16 %v3234_v12, %v3233_v63  ;;  %v4908_v56 = vpack.c.b16 %v4878_v18, %v4877_v35  ;;  %v3090_v47 = vrot.slane %v5695_v46, 5 }
 0x16f   : > { %v1804_v29 = vadd.f32 %v1748_v22, %v1280_v20  ;;  %v2126_v26 = vpop.f32.mrf.mxu3  ;;  %v5693_v20 = vld [vmem:[%s6315_s6 + $0x24] sm:$0xe]  ;;  %v3089_v59 = vrot.slane %v3087_v61, 4  ;;  %v3978_v62 = vrot.slane %v3977_v14, 4  ;;  %v3988_v9 = vrot.slane %v3987_v31, 4 }
 0x170   : > { %v1226_v54 = vpop.f32.mrf.mxu1  ;;  %v3992_v57 = vrot.slane %v3990_v8, 5  ;;  %v6041_v40 = vrot.slane %v5997_v28, 9  ;;  %v4733_v2 = vrot.slane %v4731_v6, 4 }
 0x171   : > { %v2182_v43 = vadd.f32 %v2126_v26, %v1804_v29  ;;  %v1281_v32 = vadd.f32 %v1226_v54, %v6677_v3  ;;  %v4387_v26 = vpack.c.b16 %v4357_v48, %v4356_v17  ;;  %v5999_v3 = vld [vmem:[%s6315_s6 + $0x38] sm:$0x1]  ;;  %v5920_v17 = vld [vmem:[%s6315_s6 + $0x3c] sm:$0xf]  ;;  %v5921_v48 = vld [vmem:[%s6315_s6 + $0x40] sm:$0xf]  ;;  %v3091_v55 = vsel %vm6466_vm5, %v3089_v59, %v3090_v47 }
 0x172   : > { %v2873_v5 = vpop.f32.mrf.mxu0  ;;  %v4734_v63 = vrot.slane %v5999_v3, 5  ;;  %v3995_v31 = vshrl.u32 %v5920_v17, 16  ;;  %v3998_v8 = vshll.u32 %v5920_v17, 16  ;;  %v3236_v46 = vunpack.c.l.b16 %v3091_v55  ;;  %v5697_v3 = vld [vmem:[%s6315_s6 + $0x34] sm:$0xf] }
 0x173   : > { %v7191_v11 = vadd.f32 %v2871_v34, %v2182_v43  ;;  %v5737_v43 = vrot.slane %v5693_v20, 9  ;;  %v3993_v20 = vsel %vm6459_vm4, %v3988_v9, %v3992_v57  ;;  %v5922_v9 = vld [vmem:[%s6315_s6 + $0x44] sm:$0x1]  ;;  %v5696_v55 = vld [vmem:[%s6315_s6 + $0x30] sm:$0xe] }
 0x174   : > { %v4735_v14 = vsel %vm6466_vm5, %v4733_v2, %v4734_v63 }
 0x175   : > { %v3088_v18 = vsel %vm6466_vm5, %v5737_v43, %v3087_v61  ;;  %v4000_v43 = vrot.slane %v3998_v8, 5  ;;  %v5738_v8 = vrot.slane %v5696_v55, 9 }
 0x176   : > { %v1750_v37 = vpop.f32.mrf.mxu2 }
 0x177   : > { %v1805_v34 = vadd.f32 %v1750_v37, %v1281_v32  ;;  %v2128_v22 = vpop.f32.mrf.mxu3  ;;  %v3983_v32 = vsel %vm6459_vm4, %v3978_v62, %v7188_v4 }
 0x178   : > { %v1229_v29 = vpop.f32.mrf.mxu1 }
 0x179   : > { %v2183_v54 = vadd.f32 %v2128_v22, %v1805_v34  ;;  %v1282_v0 = vadd.f32 %v1229_v29, %v6692_v39  ;;  %v4732_v39 = vsel %vm6466_vm5, %v6041_v40, %v4731_v6  ;;  %v4004_v34 = vshll.u32 %v5921_v48, 16  ;;  %v6001_v40 = vld [vmem:[%s6315_s6 + $0x40] sm:$0xf] }
 0x17a   : > { %v2876_v30 = vpop.f32.mrf.mxu0  ;;  %v4008_v22 = vshrl.u32 %v5921_v48, 16  ;;  %v4358_v29 = vunpack.c.l.b16 %v3983_v32  ;;  %v4880_v6 = vunpack.c.l.b16 %v4735_v14  ;;  %v3094_v48 = vrot.slane %v5697_v3, 5 }
 0x17b   : > { %3356 = vmatmul.bf16.gmra.mxu1 %v3264_v51  ;;  %3734 = vmatmul.bf16.gmra.mxu2 %v6171_v13  ;;  %v7201_v12 = vadd.f32 %v2873_v5, %v2183_v54  ;;  %v3235_v13 = vunpack.c.l.b16 %v3088_v18  ;;  %v3997_v54 = vrot.slane %v3995_v31, 4  ;;  %v7222_v59 = vrot.slane %v4004_v34, 5  ;;  %v6002_v31 = vld [vmem:[%s6315_s6 + $0x44] sm:$0x1] }
 0x17c   : > { %4479 = vmatmul.bf16.gmra.mxu3 %v4387_v26  ;;  %v4359_v26 = vunpack.c.l.b16 %v3993_v20  ;;  %v4010_v47 = vrot.slane %v4008_v22, 4  ;;  %v4738_v14 = vrot.slane %v6001_v40, 5  ;;  %v3096_v34 = vrot.slane %v3094_v48, 4  ;;  %v5923_v22 = vld [vmem:[%s6315_s6 + $0x48] sm:$0xf] }
 0x17d   : > { %5000 = vmatmul.bf16.gmra.mxu0 %v4908_v56  ;;  %v4879_v56 = vunpack.c.l.b16 %v4732_v39  ;;  %v4001_v32 = vor.u32 %v4000_v43, %v3997_v54  ;;  %v5698_v39 = vld [vmem:[%s6315_s6 + $0x38] sm:$0x1]  ;;  %v4741_v43 = vrot.slane %v6002_v31, 5  ;;  %v5925_v31 = vld [vmem:[%s6315_s6 + $0x50] sm:$0x1] }
 0x17e   : > { %v1753_v35 = vpop.f32.mrf.mxu2  ;;  %v4388_v17 = vpack.c.b16 %v4359_v26, %v4358_v29  ;;  %v4740_v54 = vrot.slane %v4738_v14, 4 }
 0x17f   : > { %v1806_v37 = vadd.f32 %v1753_v35, %v1282_v0  ;;  %v2131_v5 = vpop.f32.mrf.mxu3  ;;  %v3265_v0 = vpack.c.b16 %v3236_v46, %v3235_v13  ;;  %v4909_v18 = vpack.c.b16 %v4880_v6, %v4879_v56  ;;  %v3097_v46 = vrot.slane %v5698_v39, 5 }
 0x180   : > { %v1231_v61 = vpop.f32.mrf.mxu1  ;;  %v4002_v29 = vrot.slane %v4001_v32, 4  ;;  %v4742_v32 = vsel %vm6466_vm5, %v4740_v54, %v4741_v43  ;;  %v4038_v43 = vshll.u32 %v5925_v31, 16 }
 0x181   : > { %v2184_v51 = vadd.f32 %v2131_v5, %v1806_v37  ;;  %v1283_v62 = vadd.f32 %v1231_v61, %v6724_v19  ;;  %v4011_v19 = vor.u32 %v4010_v47, %v7222_v59  ;;  %v4014_v37 = vshll.u32 %v5922_v9, 16  ;;  %v6000_v61 = vld [vmem:[%s6315_s6 + $0x3c] sm:$0xe] }
 0x182   : > { %v2878_v4 = vpop.f32.mrf.mxu0  ;;  %v6042_v3 = vrot.slane %v6000_v61, 9  ;;  %v4022_v9 = vshll.u32 %v5923_v22, 16 }
 0x183   : > { %v7219_v28 = vadd.f32 %v2876_v30, %v2184_v51  ;;  %v6172_v30 = vld [vmem:[%s6315_s6 + $0x30] sm:$0xff]  ;;  %v5924_v51 = vld [vmem:[%s6315_s6 + $0x4c] sm:$0xf]  ;;  %v4012_v26 = vrot.slane %v4011_v19, 4  ;;  %v4016_v56 = vrot.slane %v4014_v37, 5 }
 0x184   : > { %v4032_v40 = vshrl.u32 %v5924_v51, 16  ;;  %v4739_v55 = vsel %vm6466_vm5, %v6042_v3, %v4738_v14  ;;  %v4024_v37 = vrot.slane %v4022_v9, 5  ;;  %v6173_v9 = vld [vmem:[%s6315_s6 + $0x3c] sm:$0xff] }
 0x185   : > { %v4881_v14 = vunpack.c.l.b16 %v4739_v55 }
 0x186   : > { %v1755_v57 = vpop.f32.mrf.mxu2  ;;  %v4034_v39 = vrot.slane %v4032_v40, 4 }
 0x187   : > { %v1807_v2 = vadd.f32 %v1755_v57, %v1283_v62  ;;  %v2133_v63 = vpop.f32.mrf.mxu3  ;;  %v4019_v62 = vshrl.u32 %v5923_v22, 16  ;;  %v4028_v57 = vshll.u32 %v5924_v51, 16  ;;  %v4882_v51 = vunpack.c.l.b16 %v4742_v32 }
 0x188   : > { %v1234_v35 = vpop.f32.mrf.mxu1 }
 0x189   : > { %v2185_v5 = vadd.f32 %v2133_v63, %v1807_v2  ;;  %v1284_v6 = vadd.f32 %v1234_v35, %v6751_v1  ;;  %v4007_v1 = vsel %vm6459_vm4, %v4002_v29, %v7222_v59  ;;  %v4021_v19 = vrot.slane %v4019_v62, 4 }
 0x18a   : > { %v2881_v20 = vpop.f32.mrf.mxu0 }
 0x18b   : > { %3361 = vmatmul.bf16.gmra.mxu1 %v3265_v0  ;;  %3739 = vmatmul.bf16.gmra.mxu2 %v6172_v30  ;;  %v7235_v13 = vadd.f32 %v2878_v4, %v2185_v5  ;;  %v3095_v0 = vsel %vm6466_vm5, %v5738_v8, %v3094_v48  ;;  %v3098_v30 = vsel %vm6466_vm5, %v3096_v34, %v3097_v46  ;;  %v5700_v48 = vld [vmem:[%s6315_s6 + $0x40] sm:$0xf]  ;;  %v7252_v5 = vrot.slane %v4028_v57, 5  ;;  %v6004_v46 = vld [vmem:[%s6315_s6 + $0x4c] sm:$0xf] }
 0x18c   : > { %4484 = vmatmul.bf16.gmra.mxu3 %v4388_v17  ;;  %v3237_v59 = vunpack.c.l.b16 %v3095_v0  ;;  %v3238_v61 = vunpack.c.l.b16 %v3098_v30  ;;  %v4360_v34 = vunpack.c.l.b16 %v4007_v1  ;;  %v4025_v3 = vor.u32 %v4024_v37, %v4021_v19  ;;  %v5701_v57 = vld [vmem:[%s6315_s6 + $0x44] sm:$0x1]  ;;  %v6003_v30 = vld [vmem:[%s6315_s6 + $0x48] sm:$0xe] }
 0x18d   : > { %5005 = vmatmul.bf16.gmra.mxu0 %v4909_v18  ;;  %v4017_v18 = vsel %vm6459_vm4, %v4012_v26, %v4016_v56  ;;  %v3101_v26 = vrot.slane %v5700_v48, 5  ;;  %v4035_v54 = vor.u32 %v4034_v39, %v7252_v5  ;;  %v4745_v40 = vrot.slane %v6004_v46, 5 }
 0x18e   : > { %v1758_v47 = vpop.f32.mrf.mxu2  ;;  %v4361_v22 = vunpack.c.l.b16 %v4017_v18  ;;  %v3266_v62 = vpack.c.b16 %v3238_v61, %v3237_v59  ;;  %v4910_v0 = vpack.c.b16 %v4882_v51, %v4881_v14  ;;  %v3104_v55 = vrot.slane %v5701_v57, 5 }
 0x18f   : > { %v1808_v2 = vadd.f32 %v1758_v47, %v1284_v6  ;;  %v2136_v4 = vpop.f32.mrf.mxu3  ;;  %v5699_v6 = vld [vmem:[%s6315_s6 + $0x3c] sm:$0xe]  ;;  %v3103_v18 = vrot.slane %v3101_v26, 4  ;;  %v4026_v32 = vrot.slane %v4025_v3, 4  ;;  %v4036_v48 = vrot.slane %v4035_v54, 4 }
 0x190   : > { %v1236_v63 = vpop.f32.mrf.mxu1  ;;  %v4040_v19 = vrot.slane %v4038_v43, 5  ;;  %v6043_v37 = vrot.slane %v6003_v30, 9  ;;  %v4747_v39 = vrot.slane %v4745_v40, 4 }
 0x191   : > { %v2186_v17 = vadd.f32 %v2136_v4, %v1808_v2  ;;  %v1285_v29 = vadd.f32 %v1236_v63, %v6781_v53  ;;  %v4389_v4 = vpack.c.b16 %v4361_v22, %v4360_v34  ;;  %v6005_v53 = vld [vmem:[%s6315_s6 + $0x50] sm:$0x1]  ;;  %v5926_v34 = vld [vmem:[%s6315_s6 + $0x54] sm:$0xf]  ;;  %v5927_v22 = vld [vmem:[%s6315_s6 + $0x58] sm:$0xf]  ;;  %v3105_v46 = vsel %vm6466_vm5, %v3103_v18, %v3104_v55 }
 0x192   : > { %v2883_v35 = vpop.f32.mrf.mxu0  ;;  %v4748_v59 = vrot.slane %v6005_v53, 5  ;;  %v4043_v54 = vshrl.u32 %v5926_v34, 16  ;;  %v4046_v43 = vshll.u32 %v5926_v34, 16  ;;  %v3240_v57 = vunpack.c.l.b16 %v3105_v46  ;;  %v5703_v53 = vld [vmem:[%s6315_s6 + $0x4c] sm:$0xf] }
 0x193   : > { %v7255_v8 = vadd.f32 %v2881_v20, %v2186_v17  ;;  %v5739_v17 = vrot.slane %v5699_v6, 9  ;;  %v4041_v6 = vsel %vm6459_vm4, %v4036_v48, %v4040_v19  ;;  %v5928_v48 = vld [vmem:[%s6315_s6 + $0x5c] sm:$0x1]  ;;  %v5702_v46 = vld [vmem:[%s6315_s6 + $0x48] sm:$0xe] }
 0x194   : > { %v4749_v3 = vsel %vm6466_vm5, %v4747_v39, %v4748_v59 }
 0x195   : > { %v3102_v51 = vsel %vm6466_vm5, %v5739_v17, %v3101_v26  ;;  %v4048_v17 = vrot.slane %v4046_v43, 5  ;;  %v5740_v43 = vrot.slane %v5702_v46, 9 }
 0x196   : > { %v1760_v56 = vpop.f32.mrf.mxu2 }
 0x197   : > { %v1809_v20 = vadd.f32 %v1760_v56, %v1285_v29  ;;  %v2138_v47 = vpop.f32.mrf.mxu3  ;;  %v4031_v29 = vsel %vm6459_vm4, %v4026_v32, %v7252_v5 }
 0x198   : > { %v1239_v2 = vpop.f32.mrf.mxu1 }
 0x199   : > { %v2187_v63 = vadd.f32 %v2138_v47, %v1809_v20  ;;  %v1286_v31 = vadd.f32 %v1239_v2, %v6796_v41  ;;  %v4746_v41 = vsel %vm6466_vm5, %v6043_v37, %v4745_v40  ;;  %v4052_v20 = vshll.u32 %v5927_v22, 16  ;;  %v6007_v37 = vld [vmem:[%s6315_s6 + $0x58] sm:$0xf] }
 0x19a   : > { %v2886_v1 = vpop.f32.mrf.mxu0  ;;  %v4056_v47 = vshrl.u32 %v5927_v22, 16  ;;  %v4362_v2 = vunpack.c.l.b16 %v4031_v29  ;;  %v4884_v40 = vunpack.c.l.b16 %v4749_v3  ;;  %v3108_v22 = vrot.slane %v5703_v53, 5 }
 0x19b   : > { %3366 = vmatmul.bf16.gmra.mxu1 %v3266_v62  ;;  %3744 = vmatmul.bf16.gmra.mxu2 %v6173_v9  ;;  %v7265_v61 = vadd.f32 %v2883_v35, %v2187_v63  ;;  %v3239_v9 = vunpack.c.l.b16 %v3102_v51  ;;  %v4045_v63 = vrot.slane %v4043_v54, 4  ;;  %v7286_v18 = vrot.slane %v4052_v20, 5  ;;  %v6008_v54 = vld [vmem:[%s6315_s6 + $0x5c] sm:$0x1] }
 0x19c   : > { %4489 = vmatmul.bf16.gmra.mxu3 %v4389_v4  ;;  %v4363_v4 = vunpack.c.l.b16 %v4041_v6  ;;  %v4058_v55 = vrot.slane %v4056_v47, 4  ;;  %v4752_v3 = vrot.slane %v6007_v37, 5  ;;  %v3110_v20 = vrot.slane %v3108_v22, 4  ;;  %v5929_v47 = vld [vmem:[%s6315_s6 + $0x60] sm:$0xf] }
 0x19d   : > { %5010 = vmatmul.bf16.gmra.mxu0 %v4910_v0  ;;  %v4883_v0 = vunpack.c.l.b16 %v4746_v41  ;;  %v4049_v29 = vor.u32 %v4048_v17, %v4045_v63  ;;  %v5704_v41 = vld [vmem:[%s6315_s6 + $0x50] sm:$0x1]  ;;  %v4755_v17 = vrot.slane %v6008_v54, 5  ;;  %v5931_v54 = vld [vmem:[%s6315_s6 + $0x68] sm:$0x1] }
 0x19e   : > { %v1763_v14 = vpop.f32.mrf.mxu2  ;;  %v4390_v34 = vpack.c.b16 %v4363_v4, %v4362_v2  ;;  %v4754_v63 = vrot.slane %v4752_v3, 4 }
 0x19f   : > { %v1810_v56 = vadd.f32 %v1763_v14, %v1286_v31  ;;  %v2141_v35 = vpop.f32.mrf.mxu3  ;;  %v3267_v31 = vpack.c.b16 %v3240_v57, %v3239_v9  ;;  %v4911_v51 = vpack.c.b16 %v4884_v40, %v4883_v0  ;;  %v3111_v57 = vrot.slane %v5704_v41, 5 }
 0x1a0   : > { %v1241_v26 = vpop.f32.mrf.mxu1  ;;  %v4050_v2 = vrot.slane %v4049_v29, 4  ;;  %v4756_v29 = vsel %vm6466_vm5, %v4754_v63, %v4755_v17  ;;  %v4086_v17 = vshll.u32 %v5931_v54, 16 }
 0x1a1   : > { %v2188_v62 = vadd.f32 %v2141_v35, %v1810_v56  ;;  %v1287_v32 = vadd.f32 %v1241_v26, %v6828_v42  ;;  %v4059_v42 = vor.u32 %v4058_v55, %v7286_v18  ;;  %v4062_v56 = vshll.u32 %v5928_v48, 16  ;;  %v6006_v26 = vld [vmem:[%s6315_s6 + $0x54] sm:$0xe] }
 0x1a2   : > { %v2888_v5 = vpop.f32.mrf.mxu0  ;;  %v6044_v53 = vrot.slane %v6006_v26, 9  ;;  %v4070_v48 = vshll.u32 %v5929_v47, 16 }
 0x1a3   : > { %v7283_v30 = vadd.f32 %v2886_v1, %v2188_v62  ;;  %v6174_v1 = vld [vmem:[%s6315_s6 + $0x48] sm:$0xff]  ;;  %v5930_v62 = vld [vmem:[%s6315_s6 + $0x64] sm:$0xf]  ;;  %v4060_v4 = vrot.slane %v4059_v42, 4  ;;  %v4064_v0 = vrot.slane %v4062_v56, 5 }
 0x1a4   : > { %v4080_v37 = vshrl.u32 %v5930_v62, 16  ;;  %v4753_v46 = vsel %vm6466_vm5, %v6044_v53, %v4752_v3  ;;  %v4072_v56 = vrot.slane %v4070_v48, 5  ;;  %v6175_v48 = vld [vmem:[%s6315_s6 + $0x54] sm:$0xff] }
 0x1a5   : > { %v4885_v3 = vunpack.c.l.b16 %v4753_v46 }
 0x1a6   : > { %v1765_v19 = vpop.f32.mrf.mxu2  ;;  %v4082_v41 = vrot.slane %v4080_v37, 4 }
 0x1a7   : > { %v1811_v39 = vadd.f32 %v1765_v19, %v1287_v32  ;;  %v2143_v59 = vpop.f32.mrf.mxu3  ;;  %v4067_v32 = vshrl.u32 %v5929_v47, 16  ;;  %v4076_v19 = vshll.u32 %v5930_v62, 16  ;;  %v4886_v62 = vunpack.c.l.b16 %v4756_v29 }
 0x1a8   : > { %v1244_v14 = vpop.f32.mrf.mxu1 }
 0x1a9   : > { %v2189_v35 = vadd.f32 %v2143_v59, %v1811_v39  ;;  %v1288_v40 = vadd.f32 %v1244_v14, %v6653_v36  ;;  %v4055_v36 = vsel %vm6459_vm4, %v4050_v2, %v7286_v18  ;;  %v4069_v42 = vrot.slane %v4067_v32, 4 }
 0x1aa   : > { %v2891_v6 = vpop.f32.mrf.mxu0 }
 0x1ab   : > { %3371 = vmatmul.bf16.gmra.mxu1 %v3267_v31  ;;  %3749 = vmatmul.bf16.gmra.mxu2 %v6174_v1  ;;  %v7299_v9 = vadd.f32 %v2888_v5, %v2189_v35  ;;  %v3109_v31 = vsel %vm6466_vm5, %v5740_v43, %v3108_v22  ;;  %v3112_v1 = vsel %vm6466_vm5, %v3110_v20, %v3111_v57  ;;  %v5706_v22 = vld [vmem:[%s6315_s6 + $0x58] sm:$0xf]  ;;  %v7316_v35 = vrot.slane %v4076_v19, 5  ;;  %v6010_v57 = vld [vmem:[%s6315_s6 + $0x64] sm:$0xf] }
 0x1ac   : > { %4494 = vmatmul.bf16.gmra.mxu3 %v4390_v34  ;;  %v3241_v18 = vunpack.c.l.b16 %v3109_v31  ;;  %v3242_v26 = vunpack.c.l.b16 %v3112_v1  ;;  %v4364_v20 = vunpack.c.l.b16 %v4055_v36  ;;  %v4073_v53 = vor.u32 %v4072_v56, %v4069_v42  ;;  %v5707_v19 = vld [vmem:[%s6315_s6 + $0x5c] sm:$0x1]  ;;  %v6009_v1 = vld [vmem:[%s6315_s6 + $0x60] sm:$0xe] }
 0x1ad   : > { %5015 = vmatmul.bf16.gmra.mxu0 %v4911_v51  ;;  %v4065_v51 = vsel %vm6459_vm4, %v4060_v4, %v4064_v0  ;;  %v3115_v4 = vrot.slane %v5706_v22, 5  ;;  %v4083_v63 = vor.u32 %v4082_v41, %v7316_v35  ;;  %v4759_v37 = vrot.slane %v6010_v57, 5 }
 0x1ae   : > { %v1768_v55 = vpop.f32.mrf.mxu2  ;;  %v4365_v47 = vunpack.c.l.b16 %v4065_v51  ;;  %v3268_v32 = vpack.c.b16 %v3242_v26, %v3241_v18  ;;  %v4912_v31 = vpack.c.b16 %v4886_v62, %v4885_v3  ;;  %v3118_v46 = vrot.slane %v5707_v19, 5 }
 0x1af   : > { %v1812_v39 = vadd.f32 %v1768_v55, %v1288_v40  ;;  %v2146_v5 = vpop.f32.mrf.mxu3  ;;  %v5705_v40 = vld [vmem:[%s6315_s6 + $0x54] sm:$0xe]  ;;  %v3117_v51 = vrot.slane %v3115_v4, 4  ;;  %v4074_v29 = vrot.slane %v4073_v53, 4  ;;  %v4084_v22 = vrot.slane %v4083_v63, 4 }
 0x1b0   : > { %v1246_v59 = vpop.f32.mrf.mxu1  ;;  %v4088_v42 = vrot.slane %v4086_v17, 5  ;;  %v6045_v56 = vrot.slane %v6009_v1, 9  ;;  %v4761_v41 = vrot.slane %v4759_v37, 4 }
 0x1b1   : > { %v2190_v34 = vadd.f32 %v2146_v5, %v1812_v39  ;;  %v1289_v2 = vadd.f32 %v1246_v59, %v6679_v7  ;;  %v4391_v5 = vpack.c.b16 %v4365_v47, %v4364_v20  ;;  %v6011_v7 = vld [vmem:[%s6315_s6 + $0x68] sm:$0x1]  ;;  %v5932_v20 = vld [vmem:[%s6315_s6 + $0x6c] sm:$0xf]  ;;  %v5933_v47 = vld [vmem:[%s6315_s6 + $0x70] sm:$0xf]  ;;  %v3119_v57 = vsel %vm6466_vm5, %v3117_v51, %v3118_v46 }
 0x1b2   : > { %v2893_v14 = vpop.f32.mrf.mxu0  ;;  %v4762_v18 = vrot.slane %v6011_v7, 5  ;;  %v4091_v63 = vshrl.u32 %v5932_v20, 16  ;;  %v4094_v17 = vshll.u32 %v5932_v20, 16  ;;  %v3244_v19 = vunpack.c.l.b16 %v3119_v57  ;;  %v5709_v7 = vld [vmem:[%s6315_s6 + $0x64] sm:$0xf] }
 0x1b3   : > { %v7319_v43 = vadd.f32 %v2891_v6, %v2190_v34  ;;  %v5741_v34 = vrot.slane %v5705_v40, 9  ;;  %v4089_v40 = vsel %vm6459_vm4, %v4084_v22, %v4088_v42  ;;  %v5934_v42 = vld [vmem:[%s6315_s6 + $0x74] sm:$0x1] }
 0x1b4   : > { %v4763_v53 = vsel %vm6466_vm5, %v4761_v41, %v4762_v18  ;;  %v6013_v41 = vld [vmem:[%s6315_s6 + $0x70] sm:$0xf] }
 0x1b5   : > { %v3116_v62 = vsel %vm6466_vm5, %v5741_v34, %v3115_v4  ;;  %v4096_v34 = vrot.slane %v4094_v17, 5  ;;  %v6012_v17 = vld [vmem:[%s6315_s6 + $0x6c] sm:$0xe] }
 0x1b6   : > { %v1770_v0 = vpop.f32.mrf.mxu2 }
 0x1b7   : > { %v1813_v6 = vadd.f32 %v1770_v0, %v1289_v2  ;;  %v2148_v55 = vpop.f32.mrf.mxu3  ;;  %v4079_v2 = vsel %vm6459_vm4, %v4074_v29, %v7316_v35  ;;  %v7723_v29 = vld [vmem:[#allocation3_spill] sm:$0xff] }
 0x1b8   : > { %v1249_v39 = vpop.f32.mrf.mxu1 }
 0x1b9   : > { %v2191_v59 = vadd.f32 %v2148_v55, %v1813_v6  ;;  %v1290_v54 = vadd.f32 %v1249_v39, %v6696_v45  ;;  %v4760_v45 = vsel %vm6466_vm5, %v6045_v56, %v4759_v37  ;;  %v4100_v6 = vshll.u32 %v5933_v47, 16 }
 0x1ba   : > { %v2896_v36 = vpop.f32.mrf.mxu0  ;;  %v4104_v55 = vshrl.u32 %v5933_v47, 16  ;;  %v4366_v39 = vunpack.c.l.b16 %v4079_v2  ;;  %v4888_v37 = vunpack.c.l.b16 %v4763_v53  ;;  %v5708_v2 = vld [vmem:[%s6315_s6 + $0x60] sm:$0xe] }
 0x1bb   : > { %3376 = vmatmul.bf16.gmra.mxu1 %v3268_v32  ;;  %3754 = vmatmul.bf16.gmra.mxu2 %v6175_v48  ;;  %v7329_v26 = vadd.f32 %v2893_v14, %v2191_v59  ;;  %v3243_v48 = vunpack.c.l.b16 %v3116_v62  ;;  %v4093_v59 = vrot.slane %v4091_v63, 4  ;;  %v7350_v51 = vrot.slane %v4100_v6, 5  ;;  %v6014_v6 = vld [vmem:[%s6315_s6 + $0x74] sm:$0x1] }
 0x1bc   : > { %4499 = vmatmul.bf16.gmra.mxu3 %v4391_v5  ;;  %v4367_v5 = vunpack.c.l.b16 %v4089_v40  ;;  %v4106_v46 = vrot.slane %v4104_v55, 4  ;;  %v4110_v40 = vshll.u32 %v5934_v42, 16  ;;  %v4766_v63 = vrot.slane %v6013_v41, 5 }
 0x1bd   : > { %5020 = vmatmul.bf16.gmra.mxu0 %v4912_v31  ;;  %v4887_v31 = vunpack.c.l.b16 %v4760_v45  ;;  %v3269_v20 = vpack.c.b16 %v3244_v19, %v3243_v48  ;;  %v5742_v55 = vrot.slane %v5708_v2, 9  ;;  %v5935_v48 = vld [vmem:[%s6315_s6 + $0x78] sm:$0xf]  ;;  %v5936_v19 = vld [vmem:[%s6315_s6 + $0x7c] sm:$0xf] }
 0x1be   : > { %v1773_v3 = vpop.f32.mrf.mxu2  ;;  %v4392_v47 = vpack.c.b16 %v4367_v5, %v4366_v39  ;;  %v4118_v41 = vshll.u32 %v5935_v48, 16 }
 0x1bf   : > { %v1814_v0 = vadd.f32 %v1773_v3, %v1290_v54  ;;  %v2151_v14 = vpop.f32.mrf.mxu3  ;;  %v3122_v3 = vrot.slane %v5709_v7, 5  ;;  %v4913_v57 = vpack.c.b16 %v4888_v37, %v4887_v31  ;;  %v4112_v7 = vrot.slane %v4110_v40, 5 }
 0x1c0   : > { %v1251_v4 = vpop.f32.mrf.mxu1 }
 0x1c1   : > { %v2192_v32 = vadd.f32 %v2151_v14, %v1814_v0  ;;  %v1291_v22 = vadd.f32 %v1251_v4, %v7723_v29  ;;  %v4097_v0 = vor.u32 %v4096_v34, %v4093_v59  ;;  %v4107_v14 = vor.u32 %v4106_v46, %v7350_v51  ;;  %v5710_v4 = vld [vmem:[%s6315_s6 + $0x68] sm:$0x1] }
 0x1c2   : > { %v2898_v35 = vpop.f32.mrf.mxu0  ;;  %v3125_v5 = vrot.slane %v5710_v4, 5  ;;  %v7724_v59 = vld [vmem:[#allocation4_spill] sm:$0xff]  ;;  %v6046_v46 = vrot.slane %v6012_v17, 9  ;;  %v4768_v29 = vrot.slane %v4766_v63, 4  ;;  %v4120_v4 = vrot.slane %v4118_v41, 5 }
 0x1c3   : > { %v7347_v1 = vadd.f32 %v2896_v36, %v2192_v32  ;;  %v6176_v36 = vld [vmem:[%s6315_s6 + $0x60] sm:$0xff]  ;;  %v3124_v32 = vrot.slane %v3122_v3, 4  ;;  %v4098_v31 = vrot.slane %v4097_v0, 4  ;;  %v4108_v37 = vrot.slane %v4107_v14, 4 }
 0x1c4   : > { %v4767_v40 = vsel %vm6466_vm5, %v6046_v46, %v4766_v63 }
 0x1c5   : > { %v4113_v14 = vsel %vm6459_vm4, %v4108_v37, %v4112_v7  ;;  %v4889_v63 = vunpack.c.l.b16 %v4767_v40  ;;  %v6016_v7 = vld [vmem:[%s6315_s6 + $0x7c] sm:$0xf] }
 0x1c6   : > { %v1775_v56 = vpop.f32.mrf.mxu2 }
 0x1c7   : > { %v1815_v18 = vadd.f32 %v1775_v56, %v1291_v22  ;;  %v2153_v54 = vpop.f32.mrf.mxu3  ;;  %v4769_v22 = vrot.slane %v6014_v6, 5  ;;  %v4115_v56 = vshrl.u32 %v5935_v48, 16  ;;  %v5937_v48 = vld [vmem:[%s6315_s6 + $0x80] sm:$0x1] }
 0x1c8   : > { %v1254_v62 = vpop.f32.mrf.mxu1 }
 0x1c9   : > { %v2193_v45 = vadd.f32 %v2153_v54, %v1815_v18  ;;  %v1292_v34 = vadd.f32 %v1254_v62, %v7724_v59  ;;  %v4124_v18 = vshll.u32 %v5936_v19, 16  ;;  %v4128_v54 = vshrl.u32 %v5936_v19, 16  ;;  %v7725_v59 = vld [vmem:[#allocation5_spill] sm:$0xff] }
 0x1ca   : > { %v2901_v53 = vpop.f32.mrf.mxu0  ;;  %v4103_v62 = vsel %vm6459_vm4, %v4098_v31, %v7350_v51  ;;  %v4369_v31 = vunpack.c.l.b16 %v4113_v14  ;;  %v6015_v14 = vld [vmem:[%s6315_s6 + $0x78] sm:$0xe] }
 0x1cb   : > { %3381 = vmatmul.bf16.gmra.mxu1 %v3269_v20  ;;  %3759 = vmatmul.bf16.gmra.mxu2 %v6176_v36  ;;  %v7363_v39 = vadd.f32 %v2898_v35, %v2193_v45  ;;  %v4770_v45 = vsel %vm6466_vm5, %v4768_v29, %v4769_v22  ;;  %v7379_v17 = vrot.slane %v4124_v18, 5  ;;  %v4130_v6 = vrot.slane %v4128_v54, 4  ;;  %v5711_v29 = vld [vmem:[%s6315_s6 + $0x6c] sm:$0xe]  ;;  %v5713_v22 = vld [vmem:[%s6315_s6 + $0x74] sm:$0x1] }
 0x1cc   : > { %4504 = vmatmul.bf16.gmra.mxu3 %v4392_v47  ;;  %v3123_v47 = vsel %vm6466_vm5, %v5742_v55, %v3122_v3  ;;  %v4117_v3 = vrot.slane %v4115_v56, 4  ;;  %v4890_v37 = vunpack.c.l.b16 %v4770_v45  ;;  %v4134_v18 = vshll.u32 %v5937_v48, 16 }
 0x1cd   : > { %5025 = vmatmul.bf16.gmra.mxu0 %v4913_v57  ;;  %v3126_v57 = vsel %vm6466_vm5, %v3124_v32, %v3125_v5  ;;  %v3245_v51 = vunpack.c.l.b16 %v3123_v47  ;;  %v5712_v32 = vld [vmem:[%s6315_s6 + $0x70] sm:$0xf]  ;;  %v4368_v5 = vunpack.c.l.b16 %v4103_v62  ;;  %v4131_v41 = vor.u32 %v4130_v6, %v7379_v17 }
 0x1ce   : > { %v1778_v42 = vpop.f32.mrf.mxu2  ;;  %v3246_v55 = vunpack.c.l.b16 %v3126_v57  ;;  %v4121_v56 = vor.u32 %v4120_v4, %v4117_v3  ;;  %v4773_v47 = vrot.slane %v6016_v7, 5  ;;  %v4136_v48 = vrot.slane %v4134_v18, 5 }
 0x1cf   : > { %v1816_v20 = vadd.f32 %v1778_v42, %v1292_v34  ;;  %v2156_v36 = vpop.f32.mrf.mxu3  ;;  %v3129_v42 = vrot.slane %v5712_v32, 5  ;;  %v4393_v62 = vpack.c.b16 %v4369_v31, %v4368_v5  ;;  %v3132_v32 = vrot.slane %v5713_v22, 5  ;;  %v7726_v5 = vld [vmem:[#allocation6_spill] sm:$0xff] }
 0x1d0   : > { %v1256_v35 = vpop.f32.mrf.mxu1  ;;  %v4122_v4 = vrot.slane %v4121_v56, 4  ;;  %v4132_v6 = vrot.slane %v4131_v41, 4 }
 0x1d1   : > { %v2194_v2 = vadd.f32 %v2156_v36, %v1816_v20  ;;  %v1293_v34 = vadd.f32 %v1256_v35, %v7725_v59  ;;  %v3270_v20 = vpack.c.b16 %v3246_v55, %v3245_v51  ;;  %v6177_v36 = vld [vmem:[%s6315_s6 + $0x6c] sm:$0xff]  ;;  %v6017_v35 = vld [vmem:[%s6315_s6 + $0x80] sm:$0x1]  ;;  %v5743_v59 = vrot.slane %v5711_v29, 9 }
 0x1d2   : > { %v2903_v0 = vpop.f32.mrf.mxu0  ;;  %v3131_v3 = vrot.slane %v3129_v42, 4  ;;  %v6047_v51 = vrot.slane %v6015_v14, 9  ;;  %v4775_v55 = vrot.slane %v4773_v47, 4  ;;  %v4776_v7 = vrot.slane %v6017_v35, 5 }
 0x1d3   : > { %v7383_v19 = vadd.f32 %v2901_v53, %v2194_v2  ;;  %v4914_v2 = vpack.c.b16 %v4890_v37, %v4889_v63  ;;  %v5938_v63 = vld [vmem:[%s6315_s6 + $0x84] sm:$0xf]  ;;  %v5939_v37 = vld [vmem:[%s6315_s6 + $0x88] sm:$0xf]  ;;  %v3130_v29 = vsel %vm6466_vm5, %v5743_v59, %v3129_v42  ;;  %v4127_v56 = vsel %vm6459_vm4, %v4122_v4, %v7379_v17  ;;  %v5715_v4 = vld [vmem:[%s6315_s6 + $0x7c] sm:$0xf] }
 0x1d4   : > { %v3133_v22 = vsel %vm6466_vm5, %v3131_v3, %v3132_v32  ;;  %v4137_v18 = vsel %vm6459_vm4, %v4132_v6, %v4136_v48  ;;  %v3247_v14 = vunpack.c.l.b16 %v3130_v29 }
 0x1d5   : > { %v3248_v35 = vunpack.c.l.b16 %v3133_v22  ;;  %v4371_v59 = vunpack.c.l.b16 %v4137_v18 }
 0x1d6   : > { %v1780_v46 = vpop.f32.mrf.mxu2 }
 0x1d7   : > { %v1817_v53 = vadd.f32 %v1780_v46, %v1293_v34  ;;  %v2158_v54 = vpop.f32.mrf.mxu3  ;;  %v3271_v22 = vpack.c.b16 %v3248_v35, %v3247_v14 }
 0x1d8   : > { %v1259_v57 = vpop.f32.mrf.mxu1 }
 0x1d9   : > { %v2195_v40 = vadd.f32 %v2158_v54, %v1817_v53  ;;  %v1294_v31 = vadd.f32 %v1259_v57, %v7726_v5  ;;  %v4774_v53 = vsel %vm6466_vm5, %v6047_v51, %v4773_v47  ;;  %v4777_v54 = vsel %vm6466_vm5, %v4775_v55, %v4776_v7  ;;  %v7728_v7 = vld [vmem:[#allocation7_spill] sm:$0xff] }
 0x1da   : > { %v2906_v45 = vpop.f32.mrf.mxu0  ;;  %v4148_v57 = vshll.u32 %v5939_v37, 16  ;;  %v4891_v32 = vunpack.c.l.b16 %v4774_v53  ;;  %v4892_v47 = vunpack.c.l.b16 %v4777_v54  ;;  %v5714_v53 = vld [vmem:[%s6315_s6 + $0x78] sm:$0xe] }
 0x1db   : > { %3386 = vmatmul.bf16.gmra.mxu1 %v3270_v20  ;;  %3764 = vmatmul.bf16.gmra.mxu2 %v6177_v36  ;;  %v7393_v34 = vadd.f32 %v2903_v0, %v2195_v40  ;;  %v4139_v20 = vshrl.u32 %v5938_v63, 16  ;;  %v4142_v36 = vshll.u32 %v5938_v63, 16  ;;  %v4370_v40 = vunpack.c.l.b16 %v4127_v56 }
 0x1dc   : > { %4509 = vmatmul.bf16.gmra.mxu3 %v4393_v62  ;;  %v4152_v62 = vshrl.u32 %v5939_v37, 16  ;;  %v7414_v51 = vrot.slane %v4148_v57, 5  ;;  %v6019_v37 = vld [vmem:[%s6315_s6 + $0x88] sm:$0xf]  ;;  %v4915_v18 = vpack.c.b16 %v4892_v47, %v4891_v32  ;;  %v5744_v14 = vrot.slane %v5714_v53, 9 }
 0x1dd   : > { %5030 = vmatmul.bf16.gmra.mxu0 %v4914_v2  ;;  %v4141_v6 = vrot.slane %v4139_v20, 4  ;;  %v4144_v48 = vrot.slane %v4142_v36, 5  ;;  %v4394_v56 = vpack.c.b16 %v4371_v59, %v4370_v40  ;;  %v5941_v40 = vld [vmem:[%s6315_s6 + $0x90] sm:$0xf]  ;;  %v5942_v59 = vld [vmem:[%s6315_s6 + $0x94] sm:$0xf] }
 0x1de   : > { %v1783_v46 = vpop.f32.mrf.mxu2  ;;  %v4154_v55 = vrot.slane %v4152_v62, 4  ;;  %v5716_v62 = vld [vmem:[%s6315_s6 + $0x80] sm:$0x1]  ;;  %v4176_v53 = vshrl.u32 %v5942_v59, 16 }
 0x1df   : > { %v1818_v41 = vadd.f32 %v1783_v46, %v1294_v31  ;;  %v2161_v0 = vpop.f32.mrf.mxu3  ;;  %v5940_v31 = vld [vmem:[%s6315_s6 + $0x8c] sm:$0x1]  ;;  %v4145_v54 = vor.u32 %v4144_v48, %v4141_v6  ;;  %v3139_v32 = vrot.slane %v5716_v62, 5 }
 0x1e0   : > { %v1261_v42 = vpop.f32.mrf.mxu1  ;;  %v4158_v20 = vshll.u32 %v5940_v31, 16 }
 0x1e1   : > { %v2196_v2 = vadd.f32 %v2161_v0, %v1818_v41  ;;  %v1295_v5 = vadd.f32 %v1261_v42, %v7728_v7  ;;  %v3136_v41 = vrot.slane %v5715_v4, 5  ;;  %v4155_v42 = vor.u32 %v4154_v55, %v7414_v51  ;;  %v6018_v7 = vld [vmem:[%s6315_s6 + $0x84] sm:$0xe] }
 0x1e2   : > { %v2908_v17 = vpop.f32.mrf.mxu0  ;;  %v4146_v47 = vrot.slane %v4145_v54, 4  ;;  %v4160_v48 = vrot.slane %v4158_v20, 5  ;;  %v6048_v31 = vrot.slane %v6018_v7, 9 }
 0x1e3   : > { %v7411_v3 = vadd.f32 %v2906_v45, %v2196_v2  ;;  %v6178_v45 = vld [vmem:[%s6315_s6 + $0x78] sm:$0xff]  ;;  %v4780_v2 = vrot.slane %v6019_v37, 5  ;;  %v3138_v35 = vrot.slane %v3136_v41, 4  ;;  %v4156_v6 = vrot.slane %v4155_v42, 4  ;;  %v7441_v42 = vld [vmem:[%s7710_s2] ss:$0 sm:$0xff] }
 0x1e5   : > { %7727 = vst [vmem:[#allocation3_spill] sm:$0xff] %v7411_v3  ;;  %v3140_v54 = vsel %vm6466_vm5, %v3138_v35, %v3139_v32  ;;  %v4161_v62 = vsel %vm6459_vm4, %v4156_v6, %v4160_v48 }
 0x1e6   : > { %v1785_v63 = vpop.f32.mrf.mxu2  ;;  %v4373_v6 = vunpack.c.l.b16 %v4161_v62 }
 0x1e7   : > { %v1819_v46 = vadd.f32 %v1785_v63, %v1295_v5  ;;  %v2163_v29 = vpop.f32.mrf.mxu3  ;;  %v6020_v5 = vld [vmem:[%s6315_s6 + $0x8c] sm:$0x1]  ;;  %v4782_v63 = vrot.slane %v4780_v2, 4 }
 0x1e8   : > { %v3352_v0 = vpop.f32.mrf.mxu1  ;;  %v4783_v37 = vrot.slane %v6020_v5, 5 }
 0x1e9   : > { %v2197_v36 = vadd.f32 %v2163_v29, %v1819_v46  ;;  %v3432_v55 = vadd.f32 %v3352_v0, %v6888_v49  ;;  %v4163_v29 = vshrl.u32 %v5941_v40, 16  ;;  %v4151_v49 = vsel %vm6459_vm4, %v4146_v47, %v7414_v51  ;;  %v5718_v51 = vld [vmem:[%s6315_s6 + $0x88] sm:$0xf] }
 0x1ea   : > { %v4996_v57 = vpop.f32.mrf.mxu0  ;;  %v4784_v7 = vsel %vm6466_vm5, %v4782_v63, %v4783_v37  ;;  %v3250_v47 = vunpack.c.l.b16 %v3140_v54  ;;  %v6022_v63 = vld [vmem:[%s6315_s6 + $0x94] sm:$0xf] }
 0x1eb   : > { %3391 = vmatmul.bf16.gmra.mxu1 %v3271_v22  ;;  %3769 = vmatmul.bf16.gmra.mxu2 %v6178_v45  ;;  %v7427_v4 = vadd.f32 %v2908_v17, %v2197_v36  ;;  %v4166_v22 = vshll.u32 %v5941_v40, 16  ;;  %v4172_v45 = vshll.u32 %v5942_v59, 16  ;;  %v4165_v5 = vrot.slane %v4163_v29, 4 }
 0x1ec   : > { %4514 = vmatmul.bf16.gmra.mxu3 %v4394_v56  ;;  %v4178_v40 = vrot.slane %v4176_v53, 4  ;;  %v4787_v62 = vrot.slane %v6022_v63, 5  ;;  %v5945_v63 = vld [vmem:[%s6315_s6 + $0xa0] sm:$0xf] }
 0x1ed   : > { %7729 = vst [vmem:[#allocation4_spill] sm:$0xff] %v7427_v4  ;;  %5035 = vmatmul.bf16.gmra.mxu0 %v4915_v18  ;;  %v3137_v18 = vsel %vm6466_vm5, %v5744_v14, %v3136_v41  ;;  %v4781_v41 = vsel %vm6466_vm5, %v6048_v31, %v4780_v2  ;;  %v4168_v14 = vrot.slane %v4166_v22, 5  ;;  %v7450_v35 = vrot.slane %v4172_v45, 5  ;;  %v5717_v22 = vld [vmem:[%s6315_s6 + $0x84] sm:$0xe] }
 0x1ee   : > { %v3730_v46 = vpop.f32.mrf.mxu2  ;;  %v3249_v32 = vunpack.c.l.b16 %v3137_v18  ;;  %v4372_v2 = vunpack.c.l.b16 %v4151_v49  ;;  %v4893_v48 = vunpack.c.l.b16 %v4781_v41  ;;  %v4894_v31 = vunpack.c.l.b16 %v4784_v7  ;;  %v6179_v49 = vld [vmem:[%s6315_s6 + $0x84] sm:$0xff] }
 0x1ef   : > { %v3810_v17 = vadd.f32 %v3730_v46, %v3432_v55  ;;  %v4475_v36 = vpop.f32.mrf.mxu3  ;;  %v5943_v55 = vld [vmem:[%s6315_s6 + $0x98] sm:$0x1]  ;;  %v3143_v46 = vrot.slane %v5718_v51, 5  ;;  %v4169_v45 = vor.u32 %v4168_v14, %v4165_v5  ;;  %v4179_v53 = vor.u32 %v4178_v40, %v7450_v35 }
 0x1f0   : > { %v3354_v56 = vpop.f32.mrf.mxu1  ;;  %v3272_v54 = vpack.c.b16 %v3250_v47, %v3249_v32  ;;  %v4395_v7 = vpack.c.b16 %v4373_v6, %v4372_v2  ;;  %v5745_v3 = vrot.slane %v5717_v22, 9  ;;  %v4789_v47 = vrot.slane %v4787_v62, 4 }
 0x1f1   : > { %v4555_v0 = vadd.f32 %v4475_v36, %v3810_v17  ;;  %v4182_v17 = vshll.u32 %v5943_v55, 16  ;;  %v3145_v5 = vrot.slane %v3143_v46, 4  ;;  %v4170_v40 = vrot.slane %v4169_v45, 4 }
 0x1f2   : > { %v4998_v20 = vpop.f32.mrf.mxu0  ;;  %v4180_v55 = vrot.slane %v4179_v53, 4  ;;  %v3144_v22 = vsel %vm6466_vm5, %v5745_v3, %v3143_v46 }
 0x1f3   : > { %v5076_v59 = vadd.f32 %v4996_v57, %v4555_v0  ;;  %v3433_v57 = vadd.f32 %v3354_v56, %v6890_v21  ;;  %v5719_v0 = vld [vmem:[%s6315_s6 + $0x8c] sm:$0x1]  ;;  %v6021_v21 = vld [vmem:[%s6315_s6 + $0x90] sm:$0xe]  ;;  %v6023_v56 = vld [vmem:[%s6315_s6 + $0x98] sm:$0x1]  ;;  %v4175_v45 = vsel %vm6459_vm4, %v4170_v40, %v7450_v35 }
 0x1f4   : > { %v3146_v14 = vrot.slane %v5719_v0, 5  ;;  %v6049_v32 = vrot.slane %v6021_v21, 9  ;;  %v4790_v2 = vrot.slane %v6023_v56, 5  ;;  %v4200_v0 = vshrl.u32 %v5945_v63, 16 }
 0x1f5   : > { %v5176_v37 = vadd.f32 %v7441_v42, %v5076_v59  ;;  %v4916_v59 = vpack.c.b16 %v4894_v31, %v4893_v48  ;;  %v5944_v31 = vld [vmem:[%s6315_s6 + $0x9c] sm:$0xf]  ;;  %v4374_v21 = vunpack.c.l.b16 %v4175_v45  ;;  %v5720_v45 = vld [vmem:[%s6315_s6 + $0x90] sm:$0xe] }
 0x1f6   : > { %v3732_v29 = vpop.f32.mrf.mxu2  ;;  %v4791_v3 = vsel %vm6466_vm5, %v4789_v47, %v4790_v2  ;;  %v7730_v47 = vld [vmem:[#allocation8_spill] sm:$0xff] }
 0x1f7   : > { %5208 = vst [vmem:[%s7456_s21] sm:$0xff] %v5176_v37  ;;  %v3811_v36 = vadd.f32 %v3732_v29, %v3433_v57  ;;  %v4477_v18 = vpop.f32.mrf.mxu3  ;;  %v4184_v37 = vrot.slane %v4182_v17, 5 }
 0x1f8   : > { %v3357_v41 = vpop.f32.mrf.mxu1 }
 0x1f9   : > { %v4556_v51 = vadd.f32 %v4477_v18, %v3811_v36  ;;  %v3434_v48 = vadd.f32 %v3357_v41, %v6928_v60  ;;  %v4185_v36 = vsel %vm6459_vm4, %v4180_v55, %v4184_v37  ;;  %v4788_v60 = vsel %vm6466_vm5, %v6049_v32, %v4787_v62 }
 0x1fa   : > { %v5001_v4 = vpop.f32.mrf.mxu0  ;;  %v4187_v18 = vshrl.u32 %v5944_v31, 16  ;;  %v4895_v62 = vunpack.c.l.b16 %v4788_v60  ;;  %v5722_v60 = vld [vmem:[%s6315_s6 + $0x98] sm:$0x1] }
 0x1fb   : > { %v5077_v57 = vadd.f32 %v4998_v20, %v4556_v51  ;;  %3396 = vmatmul.bf16.gmra.mxu1 %v3272_v54  ;;  %3774 = vmatmul.bf16.gmra.mxu2 %v6179_v49  ;;  %v3147_v20 = vsel %vm6466_vm5, %v3145_v5, %v3146_v14  ;;  %v4190_v54 = vshll.u32 %v5944_v31, 16  ;;  %v4196_v49 = vshll.u32 %v5945_v63, 16  ;;  %v5721_v14 = vld [vmem:[%s6315_s6 + $0x94] sm:$0xf]  ;;  %v6025_v31 = vld [vmem:[%s6315_s6 + $0xa0] sm:$0xf] }
 0x1fc   : > { %4519 = vmatmul.bf16.gmra.mxu3 %v4395_v7  ;;  %v3251_v7 = vunpack.c.l.b16 %v3144_v22  ;;  %v4375_v51 = vunpack.c.l.b16 %v4185_v36  ;;  %v4896_v5 = vunpack.c.l.b16 %v4791_v3  ;;  %v4189_v40 = vrot.slane %v4187_v18, 4  ;;  %v6180_v22 = vld [vmem:[%s6315_s6 + $0x90] sm:$0xff] }
 0x1fd   : > { %5040 = vmatmul.bf16.gmra.mxu0 %v4916_v59  ;;  %v5177_v6 = vadd.f32 %v7441_v42, %v5077_v57  ;;  %v3252_v59 = vunpack.c.l.b16 %v3147_v20  ;;  %v4192_v55 = vrot.slane %v4190_v54, 5  ;;  %v7487_v37 = vrot.slane %v4196_v49, 5 }
 0x1fe   : > { %v3735_v29 = vpop.f32.mrf.mxu2  ;;  %v4202_v57 = vrot.slane %v4200_v0, 4  ;;  %v4396_v20 = vpack.c.b16 %v4375_v51, %v4374_v21  ;;  %v4917_v36 = vpack.c.b16 %v4896_v5, %v4895_v62  ;;  %v6024_v0 = vld [vmem:[%s6315_s6 + $0x9c] sm:$0xe]  ;;  %v3153_v51 = vrot.slane %v5722_v60, 5  ;;  %v5948_v62 = vld [vmem:[%s6315_s6 + $0xac] sm:$0xf] }
 0x1ff   : > { %5209 = vst [vmem:[%s7456_s21 + $0x8] sm:$0xff] %v5177_v6  ;;  %v3812_v53 = vadd.f32 %v3735_v29, %v3434_v48  ;;  %v4480_v17 = vpop.f32.mrf.mxu3  ;;  %v5946_v6 = vld [vmem:[%s6315_s6 + $0xa4] sm:$0x1]  ;;  %v3273_v29 = vpack.c.b16 %v3252_v59, %v3251_v7  ;;  %v4193_v3 = vor.u32 %v4192_v55, %v4189_v40 }
 0x200   : > { %v3359_v46 = vpop.f32.mrf.mxu1  ;;  %v4206_v18 = vshll.u32 %v5946_v6, 16  ;;  %v6026_v7 = vld [vmem:[%s6315_s6 + $0xa4] sm:$0x1] }
 0x201   : > { %v4557_v41 = vadd.f32 %v4480_v17, %v3812_v53  ;;  %v3435_v2 = vadd.f32 %v3359_v46, %v7730_v47  ;;  %v3150_v53 = vrot.slane %v5721_v14, 5  ;;  %v4203_v46 = vor.u32 %v4202_v57, %v7487_v37  ;;  %v5947_v14 = vld [vmem:[%s6315_s6 + $0xa8] sm:$0xf] }
 0x202   : > { %v5003_v35 = vpop.f32.mrf.mxu0  ;;  %v4194_v5 = vrot.slane %v4193_v3, 4  ;;  %v4208_v55 = vrot.slane %v4206_v18, 5  ;;  %v6050_v57 = vrot.slane %v6024_v0, 9  ;;  %v4797_v6 = vrot.slane %v6026_v7, 5  ;;  %v5724_v18 = vld [vmem:[%s6315_s6 + $0xa0] sm:$0xf] }
 0x203   : > { %v5078_v56 = vadd.f32 %v5001_v4, %v4557_v41  ;;  %v4794_v41 = vrot.slane %v6025_v31, 5  ;;  %v3152_v21 = vrot.slane %v3150_v53, 4  ;;  %v4204_v40 = vrot.slane %v4203_v46, 4 }
 0x204   : > { %v4214_v31 = vshll.u32 %v5947_v14, 16 }
 0x205   : > { %v5178_v32 = vadd.f32 %v7441_v42, %v5078_v56  ;;  %v5746_v56 = vrot.slane %v5720_v45, 9  ;;  %v4209_v3 = vsel %vm6459_vm4, %v4204_v40, %v4208_v55  ;;  %v4795_v46 = vsel %vm6466_vm5, %v6050_v57, %v4794_v41  ;;  %v6028_v40 = vld [vmem:[%s6315_s6 + $0xac] sm:$0xf] }
 0x206   : > { %v3737_v48 = vpop.f32.mrf.mxu2  ;;  %v4216_v0 = vrot.slane %v4214_v31, 5 }
 0x207   : > { %5210 = vst [vmem:[%s7456_s21 + $0x10] sm:$0xff] %v5178_v32  ;;  %v3813_v4 = vadd.f32 %v3737_v48, %v3435_v2  ;;  %v4482_v63 = vpop.f32.mrf.mxu3  ;;  %v4796_v2 = vrot.slane %v4794_v41, 4  ;;  %v4211_v48 = vshrl.u32 %v5947_v14, 16  ;;  %v3151_v45 = vsel %vm6466_vm5, %v5746_v56, %v3150_v53 }
 0x208   : > { %v3362_v17 = vpop.f32.mrf.mxu1 }
 0x209   : > { %v4558_v54 = vadd.f32 %v4482_v63, %v3813_v4  ;;  %v3436_v47 = vadd.f32 %v3362_v17, %v6977_v23  ;;  %v4220_v4 = vshll.u32 %v5948_v62, 16  ;;  %v4224_v63 = vshrl.u32 %v5948_v62, 16 }
 0x20a   : > { %v5006_v49 = vpop.f32.mrf.mxu0  ;;  %v4199_v23 = vsel %vm6459_vm4, %v4194_v5, %v7487_v37  ;;  %v4798_v53 = vsel %vm6466_vm5, %v4796_v2, %v4797_v6  ;;  %v4377_v62 = vunpack.c.l.b16 %v4209_v3  ;;  %v4897_v5 = vunpack.c.l.b16 %v4795_v46 }
 0x20b   : > { %v5079_v59 = vadd.f32 %v5003_v35, %v4558_v54  ;;  %3401 = vmatmul.bf16.gmra.mxu1 %v3273_v29  ;;  %3779 = vmatmul.bf16.gmra.mxu2 %v6180_v22  ;;  %v4213_v54 = vrot.slane %v4211_v48, 4  ;;  %v7519_v56 = vrot.slane %v4220_v4, 5  ;;  %v4226_v7 = vrot.slane %v4224_v63, 4  ;;  %v6181_v63 = vld [vmem:[%s6315_s6 + $0x9c] sm:$0xff] }
 0x20c   : > { %4524 = vmatmul.bf16.gmra.mxu3 %v4396_v20  ;;  %v4376_v14 = vunpack.c.l.b16 %v4199_v23  ;;  %v4898_v41 = vunpack.c.l.b16 %v4798_v53 }
 0x20d   : > { %5045 = vmatmul.bf16.gmra.mxu0 %v4917_v36  ;;  %v5179_v32 = vadd.f32 %v7441_v42, %v5079_v59  ;;  %v3154_v36 = vsel %vm6466_vm5, %v3152_v21, %v3153_v51  ;;  %v3253_v59 = vunpack.c.l.b16 %v3151_v45  ;;  %v5949_v51 = vld [vmem:[%s6315_s6 + $0xb0] sm:$0x1]  ;;  %v4217_v2 = vor.u32 %v4216_v0, %v4213_v54 }
 0x20e   : > { %v3740_v35 = vpop.f32.mrf.mxu2  ;;  %v3254_v21 = vunpack.c.l.b16 %v3154_v36  ;;  %v4227_v6 = vor.u32 %v4226_v7, %v7519_v56  ;;  %v4397_v36 = vpack.c.b16 %v4377_v62, %v4376_v14  ;;  %v4918_v23 = vpack.c.b16 %v4898_v41, %v4897_v5  ;;  %v5950_v5 = vld [vmem:[%s6315_s6 + $0xb4] sm:$0xf]  ;;  %v5951_v41 = vld [vmem:[%s6315_s6 + $0xb8] sm:$0xf] }
 0x20f   : > { %5211 = vst [vmem:[%s7456_s21 + $0x18] sm:$0xff] %v5179_v32  ;;  %v3814_v29 = vadd.f32 %v3740_v35, %v3436_v47  ;;  %v4485_v22 = vpop.f32.mrf.mxu3  ;;  %v3157_v32 = vrot.slane %v5724_v18, 5  ;;  %v4230_v35 = vshll.u32 %v5949_v51, 16  ;;  %v4218_v54 = vrot.slane %v4217_v2, 4 }
 0x210   : > { %v3364_v20 = vpop.f32.mrf.mxu1  ;;  %v3274_v4 = vpack.c.b16 %v3254_v21, %v3253_v59  ;;  %v4228_v0 = vrot.slane %v4227_v6, 4 }
 0x211   : > { %v4559_v17 = vadd.f32 %v4485_v22, %v3814_v29  ;;  %v3437_v57 = vadd.f32 %v3364_v20, %v6979_v10  ;;  %v5725_v29 = vld [vmem:[%s6315_s6 + $0xa4] sm:$0x1]  ;;  %v4801_v22 = vrot.slane %v6028_v40, 5  ;;  %v6027_v10 = vld [vmem:[%s6315_s6 + $0xa8] sm:$0xe]  ;;  %v3159_v53 = vrot.slane %v3157_v32, 4 }
 0x212   : > { %v5008_v60 = vpop.f32.mrf.mxu0  ;;  %v6029_v20 = vld [vmem:[%s6315_s6 + $0xb0] sm:$0x1]  ;;  %v3160_v18 = vrot.slane %v5725_v29, 5  ;;  %v4232_v7 = vrot.slane %v4230_v35, 5  ;;  %v6051_v59 = vrot.slane %v6027_v10, 9  ;;  %v4235_v35 = vshrl.u32 %v5950_v5, 16 }
 0x213   : > { %v5080_v37 = vadd.f32 %v5006_v49, %v4559_v17  ;;  %v5723_v49 = vld [vmem:[%s6315_s6 + $0x9c] sm:$0xe]  ;;  %v4803_v21 = vrot.slane %v4801_v22, 4  ;;  %v4804_v51 = vrot.slane %v6029_v20, 5 }
 0x214   : > { %v5747_v46 = vrot.slane %v5723_v49, 9  ;;  %v4233_v2 = vsel %vm6459_vm4, %v4228_v0, %v4232_v7  ;;  %v7731_v7 = vld [vmem:[#allocation9_spill] sm:$0xff] }
 0x215   : > { %v5180_v55 = vadd.f32 %v7441_v42, %v5080_v37  ;;  %v4379_v10 = vunpack.c.l.b16 %v4233_v2 }
 0x216   : > { %v3742_v47 = vpop.f32.mrf.mxu2 }
 0x217   : > { %5212 = vst [vmem:[%s7456_s21 + $0x20] sm:$0xff] %v5180_v55  ;;  %v3815_v48 = vadd.f32 %v3742_v47, %v3437_v57  ;;  %v4487_v31 = vpop.f32.mrf.mxu3  ;;  %v3158_v55 = vsel %vm6466_vm5, %v5747_v46, %v3157_v32  ;;  %v4223_v57 = vsel %vm6459_vm4, %v4218_v54, %v7519_v56  ;;  %v4805_v32 = vsel %vm6466_vm5, %v4803_v21, %v4804_v51  ;;  %v6031_v51 = vld [vmem:[%s6315_s6 + $0xb8] sm:$0xf] }
 0x218   : > { %v3367_v45 = vpop.f32.mrf.mxu1  ;;  %v3255_v29 = vunpack.c.l.b16 %v3158_v55  ;;  %v4900_v20 = vunpack.c.l.b16 %v4805_v32  ;;  %v4237_v46 = vrot.slane %v4235_v35, 4  ;;  %v6030_v35 = vld [vmem:[%s6315_s6 + $0xb4] sm:$0xe] }
 0x219   : > { %v4560_v17 = vadd.f32 %v4487_v31, %v3815_v48  ;;  %v3438_v62 = vadd.f32 %v3367_v45, %v7016_v16  ;;  %v4802_v16 = vsel %vm6466_vm5, %v6051_v59, %v4801_v22  ;;  %v4238_v48 = vshll.u32 %v5950_v5, 16  ;;  %v5952_v59 = vld [vmem:[%s6315_s6 + $0xbc] sm:$0x1]  ;;  %v6182_v5 = vld [vmem:[%s6315_s6 + $0xa8] sm:$0xff] }
 0x21a   : > { %v5011_v3 = vpop.f32.mrf.mxu0  ;;  %v4244_v31 = vshll.u32 %v5951_v41, 16  ;;  %v4899_v22 = vunpack.c.l.b16 %v4802_v16  ;;  %v4254_v16 = vshll.u32 %v5952_v59, 16 }
 0x21b   : > { %v5081_v37 = vadd.f32 %v5008_v60, %v4560_v17  ;;  %3406 = vmatmul.bf16.gmra.mxu1 %v3274_v4  ;;  %3784 = vmatmul.bf16.gmra.mxu2 %v6181_v63  ;;  %v3161_v60 = vsel %vm6466_vm5, %v3159_v53, %v3160_v18  ;;  %v4248_v4 = vshrl.u32 %v5951_v41, 16  ;;  %v5727_v17 = vld [vmem:[%s6315_s6 + $0xac] sm:$0xf]  ;;  %v4240_v53 = vrot.slane %v4238_v48, 5 }
 0x21c   : > { %4529 = vmatmul.bf16.gmra.mxu3 %v4397_v36  ;;  %v3256_v45 = vunpack.c.l.b16 %v3161_v60  ;;  %v4378_v36 = vunpack.c.l.b16 %v4223_v57  ;;  %v7551_v18 = vrot.slane %v4244_v31, 5  ;;  %v3164_v55 = vrot.slane %v5727_v17, 5 }
 0x21d   : > { %5050 = vmatmul.bf16.gmra.mxu0 %v4918_v23  ;;  %v5181_v14 = vadd.f32 %v7441_v42, %v5081_v37  ;;  %v4250_v54 = vrot.slane %v4248_v4, 4  ;;  %v4919_v57 = vpack.c.b16 %v4900_v20, %v4899_v22  ;;  %v4808_v48 = vrot.slane %v6031_v51, 5  ;;  %v6032_v4 = vld [vmem:[%s6315_s6 + $0xbc] sm:$0x1] }
 0x21e   : > { %v3745_v40 = vpop.f32.mrf.mxu2  ;;  %v4398_v41 = vpack.c.b16 %v4379_v10, %v4378_v36  ;;  %v5953_v36 = vld [vmem:[%s6315_s6 + $0xc0] sm:$0xf]  ;;  %v4256_v20 = vrot.slane %v4254_v16, 5  ;;  %v6052_v17 = vrot.slane %v6030_v35, 9 }
 0x21f   : > { %5213 = vst [vmem:[%s7456_s21 + $0x28] sm:$0xff] %v5181_v14  ;;  %v3816_v47 = vadd.f32 %v3745_v40, %v3438_v62  ;;  %v4490_v49 = vpop.f32.mrf.mxu3  ;;  %v3275_v62 = vpack.c.b16 %v3256_v45, %v3255_v29  ;;  %v5726_v40 = vld [vmem:[%s6315_s6 + $0xa8] sm:$0xe]  ;;  %v4251_v2 = vor.u32 %v4250_v54, %v7551_v18  ;;  %v3166_v29 = vrot.slane %v3164_v55, 4 }
 0x220   : > { %v3369_v6 = vpop.f32.mrf.mxu1  ;;  %v5748_v31 = vrot.slane %v5726_v40, 9  ;;  %v4810_v54 = vrot.slane %v4808_v48, 4 }
 0x221   : > { %v4561_v63 = vadd.f32 %v4490_v49, %v3816_v47  ;;  %v3439_v37 = vadd.f32 %v3369_v6, %v7731_v7  ;;  %v5728_v47 = vld [vmem:[%s6315_s6 + $0xb0] sm:$0x1]  ;;  %v4241_v49 = vor.u32 %v4240_v53, %v4237_v46  ;;  %v4252_v22 = vrot.slane %v4251_v2, 4 }
 0x222   : > { %v5013_v56 = vpop.f32.mrf.mxu0  ;;  %v3167_v45 = vrot.slane %v5728_v47, 5  ;;  %v4259_v7 = vshrl.u32 %v5953_v36, 16  ;;  %v5730_v47 = vld [vmem:[%s6315_s6 + $0xb8] sm:$0xf] }
 0x223   : > { %v5082_v23 = vadd.f32 %v5011_v3, %v4561_v63  ;;  %v4242_v10 = vrot.slane %v4241_v49, 4 }
 0x224   : > { %v4261_v49 = vrot.slane %v4259_v7, 4  ;;  %v6183_v7 = vld [vmem:[%s6315_s6 + $0xb4] sm:$0xff] }
 0x225   : > { %v5182_v0 = vadd.f32 %v7441_v42, %v5082_v23  ;;  %v5954_v23 = vld [vmem:[%s6315_s6 + $0xc4] sm:$0xf] }
 0x226   : > { %v3747_v21 = vpop.f32.mrf.mxu2  ;;  %v4268_v59 = vshll.u32 %v5954_v23, 16 }
 0x227   : > { %5214 = vst [vmem:[%s7456_s21 + $0x30] sm:$0xff] %v5182_v0  ;;  %v3817_v3 = vadd.f32 %v3747_v21, %v3439_v37  ;;  %v4492_v14 = vpop.f32.mrf.mxu3  ;;  %v4811_v0 = vrot.slane %v6032_v4, 5  ;;  %v4262_v37 = vshll.u32 %v5953_v36, 16  ;;  %v4272_v21 = vshrl.u32 %v5954_v23, 16  ;;  %v5955_v4 = vld [vmem:[%s6315_s6 + $0xc8] sm:$0x1] }
 0x228   : > { %v3372_v60 = vpop.f32.mrf.mxu1  ;;  %v7583_v16 = vrot.slane %v4268_v59, 5  ;;  %v6034_v36 = vld [vmem:[%s6315_s6 + $0xc4] sm:$0xf] }
 0x229   : > { %v4562_v32 = vadd.f32 %v4492_v14, %v3817_v3  ;;  %v3440_v53 = vadd.f32 %v3372_v60, %v7066_v24  ;;  %v4247_v24 = vsel %vm6459_vm4, %v4242_v10, %v7551_v18  ;;  %v4257_v60 = vsel %vm6459_vm4, %v4252_v22, %v4256_v20 }
 0x22a   : > { %v5016_v6 = vpop.f32.mrf.mxu0  ;;  %v4264_v2 = vrot.slane %v4262_v37, 5  ;;  %v3171_v22 = vrot.slane %v5730_v47, 5  ;;  %v5731_v37 = vld [vmem:[%s6315_s6 + $0xbc] sm:$0x1]  ;;  %v4815_v59 = vrot.slane %v6034_v36, 5 }
 0x22b   : > { %v5083_v63 = vadd.f32 %v5013_v56, %v4562_v32  ;;  %3411 = vmatmul.bf16.gmra.mxu1 %v3275_v62  ;;  %3789 = vmatmul.bf16.gmra.mxu2 %v6182_v5  ;;  %v3165_v62 = vsel %vm6466_vm5, %v5748_v31, %v3164_v55  ;;  %v3168_v5 = vsel %vm6466_vm5, %v3166_v29, %v3167_v45  ;;  %v4274_v32 = vrot.slane %v4272_v21, 4 }
 0x22c   : > { %4534 = vmatmul.bf16.gmra.mxu3 %v4398_v41  ;;  %v4812_v55 = vsel %vm6466_vm5, %v4810_v54, %v4811_v0  ;;  %v3257_v35 = vunpack.c.l.b16 %v3165_v62  ;;  %v3258_v31 = vunpack.c.l.b16 %v3168_v5  ;;  %v4381_v29 = vunpack.c.l.b16 %v4257_v60 }
 0x22d   : > { %5055 = vmatmul.bf16.gmra.mxu0 %v4919_v57  ;;  %v5183_v46 = vadd.f32 %v7441_v42, %v5083_v63  ;;  %v4809_v57 = vsel %vm6466_vm5, %v6052_v17, %v4808_v48  ;;  %v4380_v63 = vunpack.c.l.b16 %v4247_v24  ;;  %v4902_v48 = vunpack.c.l.b16 %v4812_v55 }
 0x22e   : > { %v3750_v56 = vpop.f32.mrf.mxu2  ;;  %v4901_v45 = vunpack.c.l.b16 %v4809_v57  ;;  %v4265_v17 = vor.u32 %v4264_v2, %v4261_v49  ;;  %v3174_v60 = vrot.slane %v5731_v37, 5 }
 0x22f   : > { %5215 = vst [vmem:[%s7456_s21 + $0x38] sm:$0xff] %v5183_v46  ;;  %v3818_v51 = vadd.f32 %v3750_v56, %v3440_v53  ;;  %v4495_v3 = vpop.f32.mrf.mxu3  ;;  %v4275_v46 = vor.u32 %v4274_v32, %v7583_v16  ;;  %v4278_v53 = vshll.u32 %v5955_v4, 16  ;;  %v3276_v56 = vpack.c.b16 %v3258_v31, %v3257_v35  ;;  %v5956_v4 = vld [vmem:[%s6315_s6 + $0xcc] sm:$0xf] }
 0x230   : > { %v3374_v14 = vpop.f32.mrf.mxu1  ;;  %v4266_v57 = vrot.slane %v4265_v17, 4  ;;  %v4817_v32 = vrot.slane %v4815_v59, 4  ;;  %v4286_v17 = vshll.u32 %v5956_v4, 16 }
 0x231   : > { %v4563_v41 = vadd.f32 %v4495_v3, %v3818_v51  ;;  %v3441_v10 = vadd.f32 %v3374_v14, %v7068_v44  ;;  %v4399_v51 = vpack.c.b16 %v4381_v29, %v4380_v63  ;;  %v4920_v3 = vpack.c.b16 %v4902_v48, %v4901_v45  ;;  %v6033_v44 = vld [vmem:[%s6315_s6 + $0xc0] sm:$0xe]  ;;  %v6035_v14 = vld [vmem:[%s6315_s6 + $0xc8] sm:$0x1]  ;;  %v5957_v63 = vld [vmem:[%s6315_s6 + $0xd0] sm:$0xf] }
 0x232   : > { %v5018_v40 = vpop.f32.mrf.mxu0  ;;  %v4276_v55 = vrot.slane %v4275_v46, 4  ;;  %v4280_v47 = vrot.slane %v4278_v53, 5  ;;  %v6053_v2 = vrot.slane %v6033_v44, 9  ;;  %v4271_v48 = vsel %vm6459_vm4, %v4266_v57, %v7583_v16  ;;  %v5958_v57 = vld [vmem:[%s6315_s6 + $0xd4] sm:$0x1] }
 0x233   : > { %v5084_v18 = vadd.f32 %v5016_v6, %v4563_v41  ;;  %v5729_v6 = vld [vmem:[%s6315_s6 + $0xb4] sm:$0xe]  ;;  %v3173_v41 = vrot.slane %v3171_v22, 4  ;;  %v4292_v46 = vshll.u32 %v5957_v63, 16  ;;  %v4296_v53 = vshrl.u32 %v5957_v63, 16 }
 0x234   : > { %v5749_v24 = vrot.slane %v5729_v6, 9  ;;  %v4283_v6 = vshrl.u32 %v5956_v4, 16  ;;  %v5732_v63 = vld [vmem:[%s6315_s6 + $0xc0] sm:$0xe] }
 0x235   : > { %v5184_v23 = vadd.f32 %v7441_v42, %v5084_v18  ;;  %v4818_v18 = vrot.slane %v6035_v14, 5  ;;  %v4288_v14 = vrot.slane %v4286_v17, 5 }
 0x236   : > { %v3752_v20 = vpop.f32.mrf.mxu2  ;;  %v3172_v45 = vsel %vm6466_vm5, %v5749_v24, %v3171_v22  ;;  %v4285_v44 = vrot.slane %v4283_v6, 4  ;;  %v4298_v24 = vrot.slane %v4296_v53, 4 }
 0x237   : > { %5216 = vst [vmem:[%s7456_s21 + $0x40] sm:$0xff] %v5184_v23  ;;  %v3819_v54 = vadd.f32 %v3752_v20, %v3441_v10  ;;  %v4497_v0 = vpop.f32.mrf.mxu3  ;;  %v4281_v10 = vsel %vm6459_vm4, %v4276_v55, %v4280_v47  ;;  %v4819_v22 = vsel %vm6466_vm5, %v4817_v32, %v4818_v18  ;;  %v6037_v47 = vld [vmem:[%s6315_s6 + $0xd0] sm:$0xf]  ;;  %v6184_v32 = vld [vmem:[%s6315_s6 + $0xc0] sm:$0xff] }
 0x238   : > { %v3377_v21 = vpop.f32.mrf.mxu1 }
 0x239   : > { %v4564_v62 = vadd.f32 %v4497_v0, %v3819_v54  ;;  %v3442_v31 = vadd.f32 %v3377_v21, %v7093_v27  ;;  %v4816_v27 = vsel %vm6466_vm5, %v6053_v2, %v4815_v59  ;;  %v3259_v0 = vunpack.c.l.b16 %v3172_v45 }
 0x23a   : > { %v5021_v5 = vpop.f32.mrf.mxu0  ;;  %v4383_v21 = vunpack.c.l.b16 %v4281_v10  ;;  %v4903_v59 = vunpack.c.l.b16 %v4816_v27  ;;  %v4289_v45 = vor.u32 %v4288_v14, %v4285_v44  ;;  %v4822_v10 = vrot.slane %v6037_v47, 5  ;;  %v6038_v27 = vld [vmem:[%s6315_s6 + $0xd4] sm:$0x1] }
 0x23b   : > { %v5085_v49 = vadd.f32 %v5018_v40, %v4564_v62  ;;  %3416 = vmatmul.bf16.gmra.mxu1 %v3276_v56  ;;  %3794 = vmatmul.bf16.gmra.mxu2 %v6183_v7  ;;  %v3175_v40 = vsel %vm6466_vm5, %v3173_v41, %v3174_v60  ;;  %v4382_v7 = vunpack.c.l.b16 %v4271_v48  ;;  %v4294_v62 = vrot.slane %v4292_v46, 5 }
 0x23c   : > { %4539 = vmatmul.bf16.gmra.mxu3 %v4399_v51  ;;  %v3260_v56 = vunpack.c.l.b16 %v3175_v40  ;;  %v4904_v51 = vunpack.c.l.b16 %v4819_v22  ;;  %v4302_v48 = vshll.u32 %v5958_v57, 16  ;;  %v4290_v46 = vrot.slane %v4289_v45, 4 }
 0x23d   : > { %5060 = vmatmul.bf16.gmra.mxu0 %v4920_v3  ;;  %v5185_v35 = vadd.f32 %v7441_v42, %v5085_v49  ;;  %v5733_v3 = vld [vmem:[%s6315_s6 + $0xc4] sm:$0xf]  ;;  %v4400_v18 = vpack.c.b16 %v4383_v21, %v4382_v7  ;;  %v4299_v40 = vor.u32 %v4298_v24, %v4294_v62  ;;  %v4825_v21 = vrot.slane %v6038_v27, 5 }
 0x23e   : > { %v3755_v29 = vpop.f32.mrf.mxu2  ;;  %v3277_v2 = vpack.c.b16 %v3260_v56, %v3259_v0  ;;  %v4921_v4 = vpack.c.b16 %v4904_v51, %v4903_v59  ;;  %v4295_v24 = vsel %vm6459_vm4, %v4290_v46, %v4294_v62 }
 0x23f   : > { %5217 = vst [vmem:[%s7456_s21 + $0x48] sm:$0xff] %v5185_v35  ;;  %v3820_v36 = vadd.f32 %v3755_v29, %v3442_v31  ;;  %v4500_v23 = vpop.f32.mrf.mxu3  ;;  %v3178_v35 = vrot.slane %v5733_v3, 5  ;;  %v5734_v29 = vld [vmem:[%s6315_s6 + $0xc8] sm:$0x1]  ;;  %v4300_v53 = vrot.slane %v4299_v40, 4 }
 0x240   : > { %v3379_v20 = vpop.f32.mrf.mxu1  ;;  %v3181_v17 = vrot.slane %v5734_v29, 5 }
 0x241   : > { %v4565_v54 = vadd.f32 %v4500_v23, %v3820_v36  ;;  %v3443_v60 = vadd.f32 %v3379_v20, %v7106_v50  ;;  %v6036_v23 = vld [vmem:[%s6315_s6 + $0xcc] sm:$0xe]  ;;  %v5750_v20 = vrot.slane %v5732_v63, 9  ;;  %v3180_v6 = vrot.slane %v3178_v35, 4 }
 0x242   : > { %v5023_v16 = vpop.f32.mrf.mxu0  ;;  %v6054_v0 = vrot.slane %v6036_v23, 9 }
 0x243   : > { %v5086_v37 = vadd.f32 %v5021_v5, %v4565_v54  ;;  %v4304_v54 = vrot.slane %v4302_v48, 5  ;;  %v3179_v44 = vsel %vm6466_vm5, %v5750_v20, %v3178_v35  ;;  %v3182_v14 = vsel %vm6466_vm5, %v3180_v6, %v3181_v17 }
 0x244   : > { %v4823_v57 = vsel %vm6466_vm5, %v6054_v0, %v4822_v10 }
 0x245   : > { %v5186_v41 = vadd.f32 %v7441_v42, %v5086_v37  ;;  %v4824_v37 = vrot.slane %v4822_v10, 4 }
 0x246   : > { %v3757_v55 = vpop.f32.mrf.mxu2 }
 0x247   : > { %5218 = vst [vmem:[%s7456_s21 + $0x50] sm:$0xff] %v5186_v41  ;;  %v3821_v5 = vadd.f32 %v3757_v55, %v3443_v60  ;;  %v4502_v49 = vpop.f32.mrf.mxu3  ;;  %v4826_v55 = vsel %vm6466_vm5, %v4824_v37, %v4825_v21 }
 0x248   : > { %v3382_v31 = vpop.f32.mrf.mxu1  ;;  %v4906_v62 = vunpack.c.l.b16 %v4826_v55 }
 0x249   : > { %v4566_v50 = vadd.f32 %v4502_v49, %v3821_v5  ;;  %v3444_v7 = vadd.f32 %v3382_v31, %v7127_v58  ;;  %v4305_v58 = vsel %vm6459_vm4, %v4300_v53, %v4304_v54  ;;  %v3261_v5 = vunpack.c.l.b16 %v3179_v44 }
 0x24a   : > { %v5026_v36 = vpop.f32.mrf.mxu0  ;;  %v3262_v49 = vunpack.c.l.b16 %v3182_v14 }
 0x24b   : > { %v5087_v22 = vadd.f32 %v5023_v16, %v4566_v50  ;;  %3421 = vmatmul.bf16.gmra.mxu1 %v3277_v2  ;;  %3799 = vmatmul.bf16.gmra.mxu2 %v6184_v32  ;;  %v4384_v2 = vunpack.c.l.b16 %v4295_v24  ;;  %v4385_v32 = vunpack.c.l.b16 %v4305_v58 }
 0x24c   : > { %4544 = vmatmul.bf16.gmra.mxu3 %v4400_v18  ;;  %v4905_v18 = vunpack.c.l.b16 %v4823_v57  ;;  %v3278_v29 = vpack.c.b16 %v3262_v49, %v3261_v5 }
 0x24d   : > { %5065 = vmatmul.bf16.gmra.mxu0 %v4921_v4  ;;  %v5187_v56 = vadd.f32 %v7441_v42, %v5087_v22  ;;  %v4401_v40 = vpack.c.b16 %v4385_v32, %v4384_v2 }
 0x24e   : > { %v3760_v59 = vpop.f32.mrf.mxu2  ;;  %v4922_v48 = vpack.c.b16 %v4906_v62, %v4905_v18 }
 0x24f   : > { %5219 = vst [vmem:[%s7456_s21 + $0x58] sm:$0xff] %v5187_v56  ;;  %v3822_v16 = vadd.f32 %v3760_v59, %v3444_v7  ;;  %v4505_v51 = vpop.f32.mrf.mxu3 }
 0x250   : > { %v3384_v3 = vpop.f32.mrf.mxu1 }
 0x251   : > { %v4567_v41 = vadd.f32 %v4505_v51, %v3822_v16  ;;  %v3445_v31 = vadd.f32 %v3384_v3, %v7137_v25 }
 0x252   : > { %v5028_v60 = vpop.f32.mrf.mxu0 }
 0x253   : > { %v5088_v47 = vadd.f32 %v5026_v36, %v4567_v41 }
 0x255   : > { %v5188_v35 = vadd.f32 %v7441_v42, %v5088_v47 }
 0x256   : > { %v3762_v33 = vpop.f32.mrf.mxu2 }
 0x257   : > { %5220 = vst [vmem:[%s7456_s21 + $0x60] sm:$0xff] %v5188_v35  ;;  %v3823_v4 = vadd.f32 %v3762_v33, %v3445_v31  ;;  %v4507_v63 = vpop.f32.mrf.mxu3 }
 0x258   : > { %v3387_v45 = vpop.f32.mrf.mxu1 }
 0x259   : > { %v4568_v50 = vadd.f32 %v4507_v63, %v3823_v4  ;;  %v3446_v10 = vadd.f32 %v3387_v45, %v7155_v15 }
 0x25a   : > { %v5031_v36 = vpop.f32.mrf.mxu0 }
 0x25b   : > { %v5089_v23 = vadd.f32 %v5028_v60, %v4568_v50  ;;  %3426 = vmatmul.bf16.gmra.mxu1 %v3278_v29  ;;  %3804 = vmatmul.bf16.gmra.mxu2 %v6185_v38 }
 0x25c   : > { %4549 = vmatmul.bf16.gmra.mxu3 %v4401_v40 }
 0x25d   : > { %5070 = vmatmul.bf16.gmra.mxu0 %v4922_v48  ;;  %v5189_v25 = vadd.f32 %v7441_v42, %v5089_v23 }
 0x25e   : > { %v3765_v27 = vpop.f32.mrf.mxu2 }
 0x25f   : > { %5221 = vst [vmem:[%s7456_s21 + $0x68] sm:$0xff] %v5189_v25  ;;  %v3824_v22 = vadd.f32 %v3765_v27, %v3446_v10  ;;  %v4510_v20 = vpop.f32.mrf.mxu3 }
 0x260   : > { %v3389_v6 = vpop.f32.mrf.mxu1 }
 0x261   : > { %v4569_v17 = vadd.f32 %v4510_v20, %v3824_v22  ;;  %v3447_v0 = vadd.f32 %v3389_v6, %v7171_v52 }
 0x262   : > { %v5033_v46 = vpop.f32.mrf.mxu0 }
 0x263   : > { %v5090_v53 = vadd.f32 %v5031_v36, %v4569_v17 }
 0x265   : > { %v5190_v54 = vadd.f32 %v7441_v42, %v5090_v53 }
 0x266   : > { %v3767_v56 = vpop.f32.mrf.mxu2 }
 0x267   : > { %5222 = vst [vmem:[%s7456_s21 + $0x70] sm:$0xff] %v5190_v54  ;;  %v3825_v7 = vadd.f32 %v3767_v56, %v3447_v0  ;;  %v4512_v37 = vpop.f32.mrf.mxu3  ;;  %v7668_v0 = vld [vmem:[%s7710_s2] ss:$0 sm:$0xff] }
 0x268   : > { %v3392_v21 = vpop.f32.mrf.mxu1 }
 0x269   : > { %v4570_v59 = vadd.f32 %v4512_v37, %v3825_v7  ;;  %v3448_v3 = vadd.f32 %v3392_v21, %v7191_v11 }
 0x26a   : > { %v5036_v15 = vpop.f32.mrf.mxu0 }
 0x26b   : > { %v5091_v16 = vadd.f32 %v5033_v46, %v4570_v59 }
 0x26d   : > { %v5191_v51 = vadd.f32 %v7441_v42, %v5091_v16 }
 0x26e   : > { %v3770_v44 = vpop.f32.mrf.mxu2 }
 0x26f   : > { %5223 = vst [vmem:[%s7456_s21 + $0x78] sm:$0xff] %v5191_v51  ;;  %v3826_v14 = vadd.f32 %v3770_v44, %v3448_v3  ;;  %v4515_v24 = vpop.f32.mrf.mxu3 }
 0x270   : > { %v3394_v41 = vpop.f32.mrf.mxu1 }
 0x271   : > { %v4571_v60 = vadd.f32 %v4515_v24, %v3826_v14  ;;  %v3449_v55 = vadd.f32 %v3394_v41, %v7201_v12 }
 0x272   : > { %v5038_v52 = vpop.f32.mrf.mxu0 }
 0x273   : > { %v5092_v58 = vadd.f32 %v5036_v15, %v4571_v60 }
 0x275   : > { %v5192_v57 = vadd.f32 %v7441_v42, %v5092_v58 }
 0x276   : > { %v3772_v47 = vpop.f32.mrf.mxu2 }
 0x277   : > { %5224 = vst [vmem:[%s7456_s21 + $0x80] sm:$0xff] %v5192_v57  ;;  %v3827_v5 = vadd.f32 %v3772_v47, %v3449_v55  ;;  %v4517_v49 = vpop.f32.mrf.mxu3 }
 0x278   : > { %v3397_v2 = vpop.f32.mrf.mxu1 }
 0x279   : > { %v4572_v32 = vadd.f32 %v4517_v49, %v3827_v5  ;;  %v3450_v35 = vadd.f32 %v3397_v2, %v7219_v28 }
 0x27a   : > { %v5041_v11 = vpop.f32.mrf.mxu0 }
 0x27b   : > { %v5093_v18 = vadd.f32 %v5038_v52, %v4572_v32 }
 0x27d   : > { %v5193_v62 = vadd.f32 %v7441_v42, %v5093_v18 }
 0x27e   : > { %v3775_v31 = vpop.f32.mrf.mxu2 }
 0x27f   : > { %5225 = vst [vmem:[%s7456_s21 + $0x88] sm:$0xff] %v5193_v62  ;;  %v3828_v33 = vadd.f32 %v3775_v31, %v3450_v35  ;;  %v4520_v4 = vpop.f32.mrf.mxu3 }
 0x280   : > { %v3399_v63 = vpop.f32.mrf.mxu1 }
 0x281   : > { %v4573_v29 = vadd.f32 %v4520_v4, %v3828_v33  ;;  %v3451_v40 = vadd.f32 %v3399_v63, %v7235_v13 }
 0x282   : > { %v5043_v12 = vpop.f32.mrf.mxu0 }
 0x283   : > { %v5094_v38 = vadd.f32 %v5041_v11, %v4573_v29 }
 0x285   : > { %v5194_v45 = vadd.f32 %v7441_v42, %v5094_v38 }
 0x286   : > { %v3777_v48 = vpop.f32.mrf.mxu2 }
 0x287   : > { %5226 = vst [vmem:[%s7456_s21 + $0x90] sm:$0xff] %v5194_v45  ;;  %v3829_v50 = vadd.f32 %v3777_v48, %v3451_v40  ;;  %v4522_v36 = vpop.f32.mrf.mxu3 }
 0x288   : > { %v3402_v23 = vpop.f32.mrf.mxu1 }
 0x289   : > { %v4574_v25 = vadd.f32 %v4522_v36, %v3829_v50  ;;  %v3452_v22 = vadd.f32 %v3402_v23, %v7255_v8 }
 0x28a   : > { %v5046_v28 = vpop.f32.mrf.mxu0 }
 0x28b   : > { %v5095_v10 = vadd.f32 %v5043_v12, %v4574_v25 }
 0x28d   : > { %v5195_v27 = vadd.f32 %v7441_v42, %v5095_v10 }
 0x28e   : > { %v3780_v20 = vpop.f32.mrf.mxu2 }
 0x28f   : > { %5227 = vst [vmem:[%s7456_s21 + $0x98] sm:$0xff] %v5195_v27  ;;  %v3830_v6 = vadd.f32 %v3780_v20, %v3452_v22  ;;  %v4525_v17 = vpop.f32.mrf.mxu3 }
 0x290   : > { %v3404_v46 = vpop.f32.mrf.mxu1 }
 0x291   : > { %v4575_v53 = vadd.f32 %v4525_v17, %v3830_v6  ;;  %v3453_v42 = vadd.f32 %v3404_v46, %v7265_v61 }
 0x292   : > { %v5048_v13 = vpop.f32.mrf.mxu0 }
 0x293   : > { %v5096_v54 = vadd.f32 %v5046_v28, %v4575_v53 }
 0x295   : > { %v5196_v56 = vadd.f32 %v7668_v0, %v5096_v54 }
 0x296   : > { %v3782_v7 = vpop.f32.mrf.mxu2 }
 0x297   : > { %5228 = vst [vmem:[%s7456_s21 + $0xa0] sm:$0xff] %v5196_v56  ;;  %v3831_v8 = vadd.f32 %v3782_v7, %v3453_v42  ;;  %v4527_v37 = vpop.f32.mrf.mxu3 }
 0x298   : > { %v3407_v21 = vpop.f32.mrf.mxu1 }
 0x299   : > { %v4576_v59 = vadd.f32 %v4527_v37, %v3831_v8  ;;  %v3454_v3 = vadd.f32 %v3407_v21, %v7283_v30 }
 0x29a   : > { %v5051_v15 = vpop.f32.mrf.mxu0 }
 0x29b   : > { %v5097_v16 = vadd.f32 %v5048_v13, %v4576_v59 }
 0x29d   : > { %v5197_v51 = vadd.f32 %v7668_v0, %v5097_v16 }
 0x29e   : > { %v3785_v44 = vpop.f32.mrf.mxu2 }
 0x29f   : > { %5229 = vst [vmem:[%s7456_s21 + $0xa8] sm:$0xff] %v5197_v51  ;;  %v3832_v14 = vadd.f32 %v3785_v44, %v3454_v3  ;;  %v4530_v24 = vpop.f32.mrf.mxu3 }
 0x2a0   : > { %v3409_v41 = vpop.f32.mrf.mxu1 }
 0x2a1   : > { %v4577_v60 = vadd.f32 %v4530_v24, %v3832_v14  ;;  %v3455_v57 = vadd.f32 %v3409_v41, %v7299_v9 }
 0x2a2   : > { %v5053_v61 = vpop.f32.mrf.mxu0 }
 0x2a3   : > { %v5098_v52 = vadd.f32 %v5051_v15, %v4577_v60 }
 0x2a5   : > { %v5198_v58 = vadd.f32 %v7668_v0, %v5098_v52 }
 0x2a6   : > { %v3787_v55 = vpop.f32.mrf.mxu2 }
 0x2a7   : > { %5230 = vst [vmem:[%s7456_s21 + $0xb0] sm:$0xff] %v5198_v58  ;;  %v3833_v47 = vadd.f32 %v3787_v55, %v3455_v57  ;;  %v4532_v5 = vpop.f32.mrf.mxu3  ;;  %v7732_v57 = vld [vmem:[#allocation3_spill] sm:$0xff] }
 0x2a8   : > { %v3412_v49 = vpop.f32.mrf.mxu1 }
 0x2a9   : > { %v4578_v2 = vadd.f32 %v4532_v5, %v3833_v47  ;;  %v3456_v18 = vadd.f32 %v3412_v49, %v7319_v43 }
 0x2aa   : > { %v5056_v30 = vpop.f32.mrf.mxu0 }
 0x2ab   : > { %v5099_v32 = vadd.f32 %v5053_v61, %v4578_v2 }
 0x2ad   : > { %v5199_v11 = vadd.f32 %v7668_v0, %v5099_v32 }
 0x2ae   : > { %v3790_v62 = vpop.f32.mrf.mxu2 }
 0x2af   : > { %5231 = vst [vmem:[%s7456_s21 + $0xb8] sm:$0xff] %v5199_v11  ;;  %v3834_v35 = vadd.f32 %v3790_v62, %v3456_v18  ;;  %v4535_v31 = vpop.f32.mrf.mxu3  ;;  %v7733_v18 = vld [vmem:[#allocation4_spill] sm:$0xff] }
 0x2b0   : > { %v3414_v33 = vpop.f32.mrf.mxu1 }
 0x2b1   : > { %v4579_v4 = vadd.f32 %v4535_v31, %v3834_v35  ;;  %v3457_v12 = vadd.f32 %v3414_v33, %v7329_v26 }
 0x2b2   : > { %v5058_v9 = vpop.f32.mrf.mxu0 }
 0x2b3   : > { %v5100_v63 = vadd.f32 %v5056_v30, %v4579_v4 }
 0x2b5   : > { %v5200_v29 = vadd.f32 %v7668_v0, %v5100_v63 }
 0x2b6   : > { %v3792_v38 = vpop.f32.mrf.mxu2 }
 0x2b7   : > { %5232 = vst [vmem:[%s7456_s21 + $0xc0] sm:$0xff] %v5200_v29  ;;  %v3835_v45 = vadd.f32 %v3792_v38, %v3457_v12  ;;  %v4537_v40 = vpop.f32.mrf.mxu3 }
 0x2b8   : > { %v3417_v48 = vpop.f32.mrf.mxu1 }
 0x2b9   : > { %v4580_v50 = vadd.f32 %v4537_v40, %v3835_v45  ;;  %v3458_v25 = vadd.f32 %v3417_v48, %v7347_v1 }
 0x2ba   : > { %v5061_v43 = vpop.f32.mrf.mxu0 }
 0x2bb   : > { %v5101_v36 = vadd.f32 %v5058_v9, %v4580_v50 }
 0x2bd   : > { %v5201_v23 = vadd.f32 %v7668_v0, %v5101_v36 }
 0x2be   : > { %v3795_v28 = vpop.f32.mrf.mxu2 }
 0x2bf   : > { %5233 = vst [vmem:[%s7456_s21 + $0xc8] sm:$0xff] %v5201_v23  ;;  %v3836_v10 = vadd.f32 %v3795_v28, %v3458_v25  ;;  %v4540_v27 = vpop.f32.mrf.mxu3 }
 0x2c0   : > { %v3419_v22 = vpop.f32.mrf.mxu1 }
 0x2c1   : > { %v4581_v20 = vadd.f32 %v4540_v27, %v3836_v10  ;;  %v3459_v46 = vadd.f32 %v3419_v22, %v7363_v39 }
 0x2c2   : > { %v5063_v26 = vpop.f32.mrf.mxu0 }
 0x2c3   : > { %v5102_v6 = vadd.f32 %v5061_v43, %v4581_v20 }
 0x2c5   : > { %v5202_v17 = vadd.f32 %v7668_v0, %v5102_v6 }
 0x2c6   : > { %v3797_v53 = vpop.f32.mrf.mxu2 }
 0x2c7   : > { %5234 = vst [vmem:[%s7456_s21 + $0xd0] sm:$0xff] %v5202_v17  ;;  %v3837_v13 = vadd.f32 %v3797_v53, %v3459_v46  ;;  %v4542_v54 = vpop.f32.mrf.mxu3 }
 0x2c8   : > { %v3422_v56 = vpop.f32.mrf.mxu1 }
 0x2c9   : > { %v4582_v42 = vadd.f32 %v4542_v54, %v3837_v13  ;;  %v3460_v37 = vadd.f32 %v3422_v56, %v7383_v19 }
 0x2ca   : > { %v5066_v7 = vpop.f32.mrf.mxu0 }
 0x2cb   : > { %v5103_v1 = vadd.f32 %v5063_v26, %v4582_v42 }
 0x2cd   : > { %v5203_v8 = vadd.f32 %v7668_v0, %v5103_v1 }
 0x2ce   : > { %v3800_v21 = vpop.f32.mrf.mxu2 }
 0x2cf   : > { %5235 = vst [vmem:[%s7456_s21 + $0xd8] sm:$0xff] %v5203_v8  ;;  %v3838_v59 = vadd.f32 %v3800_v21, %v3460_v37  ;;  %v4545_v15 = vpop.f32.mrf.mxu3 }
 0x2d0   : > { %v3424_v16 = vpop.f32.mrf.mxu1 }
 0x2d1   : > { %v4583_v39 = vadd.f32 %v4545_v15, %v3838_v59  ;;  %v3461_v44 = vadd.f32 %v3424_v16, %v7393_v34 }
 0x2d2   : > { %v5068_v14 = vpop.f32.mrf.mxu0 }
 0x2d3   : > { %v5104_v51 = vadd.f32 %v5066_v7, %v4583_v39 }
 0x2d5   : > { %v5204_v3 = vadd.f32 %v7668_v0, %v5104_v51 }
 0x2d6   : > { %v3802_v24 = vpop.f32.mrf.mxu2 }
 0x2d7   : > { %5236 = vst [vmem:[%s7456_s21 + $0xe0] sm:$0xff] %v5204_v3  ;;  %v3839_v41 = vadd.f32 %v3802_v24, %v3461_v44  ;;  %v4547_v60 = vpop.f32.mrf.mxu3 }
 0x2d8   : > { %v3427_v61 = vpop.f32.mrf.mxu1 }
 0x2d9   : > { %v4584_v19 = vadd.f32 %v4547_v60, %v3839_v41  ;;  %v3462_v55 = vadd.f32 %v3427_v61, %v7732_v57 }
 0x2da   : > { %v5071_v2 = vpop.f32.mrf.mxu0 }
 0x2db   : > { %v5105_v52 = vadd.f32 %v5068_v14, %v4584_v19 }
 0x2dd   : > { %v5205_v58 = vadd.f32 %v7668_v0, %v5105_v52 }
 0x2de   : > { %v3805_v47 = vpop.f32.mrf.mxu2 }
 0x2df   : > { %5237 = vst [vmem:[%s7456_s21 + $0xe8] sm:$0xff] %v5205_v58  ;;  %v3840_v5 = vadd.f32 %v3805_v47, %v3462_v55  ;;  %v4550_v49 = vpop.f32.mrf.mxu3 }
 0x2e0   : > { %v3429_v30 = vpop.f32.mrf.mxu1 }
 0x2e1   : > { %v4585_v34 = vadd.f32 %v4550_v49, %v3840_v5  ;;  %v3463_v62 = vadd.f32 %v3429_v30, %v7733_v18 }
 0x2e2   : > { %v5073_v9 = vpop.f32.mrf.mxu0 }
 0x2e3   : > { %v5106_v32 = vadd.f32 %v5071_v2, %v4585_v34 }
 0x2e5   : > { %v5206_v11 = vadd.f32 %v7668_v0, %v5106_v32 }
 0x2e6   : > { %v3807_v35 = vpop.f32.mrf.mxu2 }
 0x2e7   : > { %5238 = vst [vmem:[%s7456_s21 + $0xf0] sm:$0xff] %v5206_v11  ;;  %v3841_v31 = vadd.f32 %v3807_v35, %v3463_v62  ;;  %v4552_v33 = vpop.f32.mrf.mxu3 }
 0x2e9   : > { %v4586_v4 = vadd.f32 %v4552_v33, %v3841_v31 }
 0x2eb   : > { %v5107_v63 = vadd.f32 %v5073_v9, %v4586_v4 }
 0x2ed   : > { %v5207_v29 = vadd.f32 %v7668_v0, %v5107_v63 }
 0x2ef   : > { %5239 = vst [vmem:[%s7456_s21 + $0xf8] sm:$0xff] %v5207_v29 }
 0x2f0 PF: > { %s13_s12 = sadd.s32 1, %s6251_s12  }
 0x2f1   : > { %p10_p4 = scmp.ge.s32.totalorder %s13_s12, 4  }
 0x2f3   :  { %12 = sbr.rel (!%p10_p4) target bundleno = 1 (0x1), region = 64 }

</bundles_post_ra>
